<compile_context>
chip_gen: v7x
topology: tpu7x:2x2x1
jax: 0.10.0
libtpu: 0.0.40
codegen_flags: <defaults>
</compile_context>

<pallas_src>
import math

import jax
import jax.numpy as jnp
from jax.experimental import pallas as pl
from jax.experimental.pallas import tpu as pltpu

LANE = 128          # lanes per gate chunk (== padded hidden width)
GW = 4 * LANE       # padded gate width (i | f | g | o), 512


# ----------------------------------------------------------------------------
# Fused kernel: 4 LSTM layers + FC epilogue, single invocation.
# ----------------------------------------------------------------------------
def make_fused_kernel(S, B_PAD):
    H_PAD = LANE

    def kernel(x_ref, w_ref, b_ref, fcw_ref, fcb_ref, out_ref,
               gx, seq_a, seq_b):
        # w_ref: (8, 128, 512) bf16, rows [2l] = W_ih^T, [2l+1] = W_hh^T (gate-lane padded)
        # b_ref: (4, 512) f32, combined b_ih + b_hh per layer (gate-lane padded)

        def run_layer(l, in_ref, out_seq, apply_relu):
            # All timesteps' input-side gate pre-activations in ONE MXU pass.
            gx[...] = (
                jnp.dot(in_ref[...].astype(jnp.bfloat16), w_ref[2 * l],
                        preferred_element_type=jnp.float32)
                + b_ref[l:l + 1, :])

            h = jnp.zeros((B_PAD, H_PAD), jnp.float32)
            c = jnp.zeros((B_PAD, H_PAD), jnp.float32)
            for t in range(S):  # static unroll; only the recurrent dot is serial
                g = gx[t * B_PAD:(t + 1) * B_PAD, :] + jnp.dot(
                    h.astype(jnp.bfloat16), w_ref[2 * l + 1],
                    preferred_element_type=jnp.float32)          # (8, 512) f32
                # gate chunks are 128-lane aligned: i | f | g | o
                i_f = jax.nn.sigmoid(g[:, 0:2 * H_PAD])
                i_g = i_f[:, 0:H_PAD]
                f_g = i_f[:, H_PAD:2 * H_PAD]
                g_g = jnp.tanh(g[:, 2 * H_PAD:3 * H_PAD])
                o_g = jax.nn.sigmoid(g[:, 3 * H_PAD:4 * H_PAD])
                c = f_g * c + i_g * g_g
                h = o_g * jnp.tanh(c)                 # recurrent state NOT relu'd
                out = jnp.maximum(h, 0.0) if apply_relu else h
                out_seq[t * B_PAD:(t + 1) * B_PAD, :] = out       # aligned (8,128) store

        run_layer(0, x_ref, seq_a, False)   # lstm1 layer 0
        run_layer(1, seq_a, seq_b, True)    # lstm1 layer 1  (+ ReLU between stacks)
        run_layer(2, seq_b, seq_a, False)   # lstm2 layer 0
        run_layer(3, seq_a, seq_b, True)    # lstm2 layer 1  (+ ReLU)

        # TODO(synk): nn.Dropout(0.2) is identity in eval mode; training dropout not implemented.
        # FC over the full padded sequence; the wrapper selects the batch row
        # corresponding to the original `lstm_out[:, -1, :]` semantics.
        out_ref[...] = jnp.dot(seq_b[...], fcw_ref[...],
                               preferred_element_type=jnp.float32) + fcb_ref[...]

    return kernel


# ----------------------------------------------------------------------------
# Weight packing: PyTorch (4H, Din) layout -> transposed, gate-lane padded slabs.
# ----------------------------------------------------------------------------
def _pad_gates(mat, H):
    # mat: (K, 4H) with PyTorch gate order i, f, g, o along the last axis.
    K = mat.shape[0]
    out = jnp.zeros((K, GW), mat.dtype)
    for gi in range(4):
        out = out.at[:, gi * LANE: gi * LANE + H].set(mat[:, gi * H:(gi + 1) * H])
    return out


def _pad_rows(mat, rows):
    return jnp.pad(mat, ((0, rows - mat.shape[0]), (0, 0)))


def _pack_layer(p, H):
    wx = _pad_rows(_pad_gates(jnp.transpose(p["w_ih"]), H), LANE)      # (128, 512)
    wh = _pad_rows(_pad_gates(jnp.transpose(p["w_hh"]), H), LANE)      # (128, 512)
    b = _pad_gates((p["b_ih"] + p["b_hh"]).reshape(1, -1), H)          # (1, 512)
    return wx, wh, b


@jax.jit
def lstm_network_forward(x, params):
    S, B, Din = x.shape
    H1 = params["lstm1"][0]["w_hh"].shape[1]
    H2 = params["lstm2"][0]["w_hh"].shape[1]
    B_PAD = 8

    # x: (S, B, Din) -> zero-pad batch to 8 sublanes and features to 128 lanes,
    # seq-major flatten, bf16 (MXU operand).
    x_p = jnp.zeros((S, B_PAD, LANE), jnp.float32).at[:, :B, :Din].set(x)
    x_p = x_p.reshape(S * B_PAD, LANE).astype(jnp.bfloat16)

    mats, biases = [], []
    for p, H in zip(params["lstm1"] + params["lstm2"], (H1, H1, H2, H2)):
        wx, wh, b = _pack_layer(p, H)
        mats += [wx, wh]
        biases.append(b)
    w_slab = jnp.stack(mats).astype(jnp.bfloat16)       # (8, 128, 512) bf16, one DMA
    b_slab = jnp.concatenate(biases, axis=0)            # (4, 512) f32

    fcw = _pad_rows(jnp.transpose(params["fc_w"]), LANE)        # (128, 1) f32
    fcb = params["fc_b"].reshape(1, 1)                          # (1, 1) f32

    out = pl.pallas_call(
        make_fused_kernel(S, B_PAD),
        out_shape=jax.ShapeDtypeStruct((S * B_PAD, 1), jnp.float32),
        in_specs=[pl.BlockSpec(memory_space=pltpu.MemorySpace.VMEM)] * 5,
        out_specs=pl.BlockSpec(memory_space=pltpu.MemorySpace.VMEM),
        scratch_shapes=[
            pltpu.VMEM((S * B_PAD, GW), jnp.float32),    # gate pre-acts (reused per layer)
            pltpu.VMEM((S * B_PAD, LANE), jnp.float32),  # hidden sequence (ping)
            pltpu.VMEM((S * B_PAD, LANE), jnp.float32),  # hidden sequence (pong)
        ],
    )(x_p, w_slab, b_slab, fcw, fcb)

    # Original semantics: lstm_out[:, -1, :] on the seq-major tensor selects
    # batch index B-1 at every time step -> final output shape (S,).
    return out.reshape(S, B_PAD)[:, B - 1]


# ----------------------------------------------------------------------------
# Deterministic parameter init (PyTorch-style uniform(-1/sqrt(H), 1/sqrt(H)))
# ----------------------------------------------------------------------------
def _uniform(key, shape, k):
    return jax.random.uniform(key, shape, jnp.float32, -k, k)


def init_lstm_stack(key, in_dim, H, num_layers):
    k = 1.0 / math.sqrt(H)
    layers = []
    for l in range(num_layers):
        d = in_dim if l == 0 else H
        key, k1, k2, k3, k4 = jax.random.split(key, 5)
        layers.append(dict(
            w_ih=_uniform(k1, (4 * H, d), k),
            w_hh=_uniform(k2, (4 * H, H), k),
            b_ih=_uniform(k3, (4 * H,), k),
            b_hh=_uniform(k4, (4 * H,), k),
        ))
    return layers, key


def init_params(key, input_dim, hidden_dim):
    lstm1, key = init_lstm_stack(key, input_dim, hidden_dim, num_layers=2)
    lstm2, key = init_lstm_stack(key, hidden_dim, hidden_dim // 2, num_layers=2)
    kf = 1.0 / math.sqrt(hidden_dim // 2)
    key, k1, k2 = jax.random.split(key, 3)
    fc_w = _uniform(k1, (1, hidden_dim // 2), kf)
    fc_b = _uniform(k2, (1,), kf)
    return dict(lstm1=lstm1, lstm2=lstm2, fc_w=fc_w, fc_b=fc_b)


if __name__ == "__main__":
    S, B = 8, 2
    input_dim, hidden_dim = 4, 64

    x = jax.random.normal(jax.random.PRNGKey(0), (S, B, input_dim), dtype=jnp.float32)
    params = init_params(jax.random.PRNGKey(1), input_dim, hidden_dim)

    out = lstm_network_forward(x, params)
    out = jax.block_until_ready(out)
    assert out.shape == (S,) and out.dtype == jnp.float32
    print("KERNEL_OK")
</pallas_src>

<mosaic_0001>
module attributes {stable_mosaic.version = 11 : i64} {
  func.func @kernel(%arg0: memref<64x128xbf16, #tpu.memory_space<vmem>>, %arg1: memref<8x128x512xbf16, #tpu.memory_space<vmem>>, %arg2: memref<4x512xf32, #tpu.memory_space<vmem>>, %arg3: memref<128x1xf32, #tpu.memory_space<vmem>>, %arg4: memref<1x1xf32, #tpu.memory_space<vmem>>, %arg5: memref<64x1xf32, #tpu.memory_space<vmem>>, %arg6: memref<64x512xf32, #tpu.memory_space<vmem>>, %arg7: memref<64x128xf32, #tpu.memory_space<vmem>>, %arg8: memref<64x128xf32, #tpu.memory_space<vmem>>) attributes {dimension_semantics = [], scalar_prefetch = 0 : i64, scratch_operands = 3 : i64, tpu.core_type = #tpu.core_type<tc>} {
    %c0 = arith.constant 0 : index
    %c0_0 = arith.constant 0 : index
    %0 = vector.load %arg0[%c0, %c0_0] : memref<64x128xbf16, #tpu.memory_space<vmem>>, vector<64x128xbf16>
    %c0_1 = arith.constant 0 : index
    %c0_2 = arith.constant 0 : index
    %c0_3 = arith.constant 0 : index
    %1 = vector.load %arg1[%c0_1, %c0_2, %c0_3] : memref<8x128x512xbf16, #tpu.memory_space<vmem>>, vector<1x128x512xbf16>
    %2 = vector.shape_cast %1 : vector<1x128x512xbf16> to vector<128x512xbf16>
    %cst = arith.constant dense<0.000000e+00> : vector<64x512xf32>
    %3 = tpu.matmul %0, %2, %cst {dimension_numbers = #tpu.dot_dimension_numbers<[1], [0], [0], [1], [0, 0, 1, 1], [], []>} : vector<64x128xbf16>, vector<128x512xbf16>, vector<64x512xf32> -> vector<64x512xf32>
    %c0_4 = arith.constant 0 : index
    %c0_5 = arith.constant 0 : index
    %4 = vector.load %arg2[%c0_4, %c0_5] : memref<4x512xf32, #tpu.memory_space<vmem>>, vector<1x512xf32>
    %5 = vector.broadcast %4 : vector<1x512xf32> to vector<64x512xf32>
    %6 = arith.addf %3, %5 : vector<64x512xf32>
    %c0_6 = arith.constant 0 : index
    %c0_7 = arith.constant 0 : index
    %7 = vector.load %arg6[%c0_6, %c0_7] : memref<64x512xf32, #tpu.memory_space<vmem>>, vector<64x512xf32>
    tpu.vector_store %arg6[%c0_6, %c0_7], %6 {strides = array<i32>} : memref<64x512xf32, #tpu.memory_space<vmem>>, vector<64x512xf32>,
    %cst_8 = arith.constant 0.000000e+00 : f32
    %8 = vector.broadcast %cst_8 : f32 to vector<8x128xf32>
    %cst_9 = arith.constant 0.000000e+00 : f32
    %9 = vector.broadcast %cst_9 : f32 to vector<8x128xf32>
    %c0_10 = arith.constant 0 : index
    %c0_11 = arith.constant 0 : index
    %10 = vector.load %arg6[%c0_10, %c0_11] : memref<64x512xf32, #tpu.memory_space<vmem>>, vector<8x512xf32>
    %11 = arith.truncf %8 : vector<8x128xf32> to vector<8x128xbf16>
    %c1 = arith.constant 1 : index
    %c0_12 = arith.constant 0 : index
    %c0_13 = arith.constant 0 : index
    %12 = vector.load %arg1[%c1, %c0_12, %c0_13] : memref<8x128x512xbf16, #tpu.memory_space<vmem>>, vector<1x128x512xbf16>
    %13 = vector.shape_cast %12 : vector<1x128x512xbf16> to vector<128x512xbf16>
    %cst_14 = arith.constant dense<0.000000e+00> : vector<8x512xf32>
    %14 = tpu.matmul %11, %13, %cst_14 {dimension_numbers = #tpu.dot_dimension_numbers<[1], [0], [0], [1], [0, 0, 1, 1], [], []>} : vector<8x128xbf16>, vector<128x512xbf16>, vector<8x512xf32> -> vector<8x512xf32>
    %15 = arith.addf %10, %14 : vector<8x512xf32>
    %16 = vector.extract_strided_slice %15 {offsets = [0, 0], sizes = [8, 256], strides = [1, 1]} : vector<8x512xf32> to vector<8x256xf32>
    %17 = arith.negf %16 : vector<8x256xf32>
    %18 = math.exp %17 : vector<8x256xf32>
    %cst_15 = arith.constant 1.000000e+00 : f32
    %19 = vector.broadcast %cst_15 : f32 to vector<8x256xf32>
    %20 = arith.addf %19, %18 : vector<8x256xf32>
    %21 = arith.divf %19, %20 : vector<8x256xf32>
    %22 = vector.extract_strided_slice %21 {offsets = [0, 0], sizes = [8, 128], strides = [1, 1]} : vector<8x256xf32> to vector<8x128xf32>
    %23 = vector.extract_strided_slice %21 {offsets = [0, 128], sizes = [8, 128], strides = [1, 1]} : vector<8x256xf32> to vector<8x128xf32>
    %24 = vector.extract_strided_slice %15 {offsets = [0, 256], sizes = [8, 128], strides = [1, 1]} : vector<8x512xf32> to vector<8x128xf32>
    %25 = math.tanh %24 : vector<8x128xf32>
    %26 = vector.extract_strided_slice %15 {offsets = [0, 384], sizes = [8, 128], strides = [1, 1]} : vector<8x512xf32> to vector<8x128xf32>
    %27 = arith.negf %26 : vector<8x128xf32>
    %28 = math.exp %27 : vector<8x128xf32>
    %cst_16 = arith.constant 1.000000e+00 : f32
    %29 = vector.broadcast %cst_16 : f32 to vector<8x128xf32>
    %30 = arith.addf %29, %28 : vector<8x128xf32>
    %31 = arith.divf %29, %30 : vector<8x128xf32>
    %32 = arith.mulf %23, %9 : vector<8x128xf32>
    %33 = arith.mulf %22, %25 : vector<8x128xf32>
    %34 = arith.addf %32, %33 : vector<8x128xf32>
    %35 = math.tanh %34 : vector<8x128xf32>
    %36 = arith.mulf %31, %35 : vector<8x128xf32>
    %c0_17 = arith.constant 0 : index
    %c0_18 = arith.constant 0 : index
    %37 = vector.load %arg7[%c0_17, %c0_18] : memref<64x128xf32, #tpu.memory_space<vmem>>, vector<8x128xf32>
    tpu.vector_store %arg7[%c0_17, %c0_18], %36 {strides = array<i32>} : memref<64x128xf32, #tpu.memory_space<vmem>>, vector<8x128xf32>,
    %c8 = arith.constant 8 : index
    %c0_19 = arith.constant 0 : index
    %38 = vector.load %arg6[%c8, %c0_19] : memref<64x512xf32, #tpu.memory_space<vmem>>, vector<8x512xf32>
    %39 = arith.truncf %36 : vector<8x128xf32> to vector<8x128xbf16>
    %c1_20 = arith.constant 1 : index
    %c0_21 = arith.constant 0 : index
    %c0_22 = arith.constant 0 : index
    %40 = vector.load %arg1[%c1_20, %c0_21, %c0_22] : memref<8x128x512xbf16, #tpu.memory_space<vmem>>, vector<1x128x512xbf16>
    %41 = vector.shape_cast %40 : vector<1x128x512xbf16> to vector<128x512xbf16>
    %cst_23 = arith.constant dense<0.000000e+00> : vector<8x512xf32>
    %42 = tpu.matmul %39, %41, %cst_23 {dimension_numbers = #tpu.dot_dimension_numbers<[1], [0], [0], [1], [0, 0, 1, 1], [], []>} : vector<8x128xbf16>, vector<128x512xbf16>, vector<8x512xf32> -> vector<8x512xf32>
    %43 = arith.addf %38, %42 : vector<8x512xf32>
    %44 = vector.extract_strided_slice %43 {offsets = [0, 0], sizes = [8, 256], strides = [1, 1]} : vector<8x512xf32> to vector<8x256xf32>
    %45 = arith.negf %44 : vector<8x256xf32>
    %46 = math.exp %45 : vector<8x256xf32>
    %cst_24 = arith.constant 1.000000e+00 : f32
    %47 = vector.broadcast %cst_24 : f32 to vector<8x256xf32>
    %48 = arith.addf %47, %46 : vector<8x256xf32>
    %49 = arith.divf %47, %48 : vector<8x256xf32>
    %50 = vector.extract_strided_slice %49 {offsets = [0, 0], sizes = [8, 128], strides = [1, 1]} : vector<8x256xf32> to vector<8x128xf32>
    %51 = vector.extract_strided_slice %49 {offsets = [0, 128], sizes = [8, 128], strides = [1, 1]} : vector<8x256xf32> to vector<8x128xf32>
    %52 = vector.extract_strided_slice %43 {offsets = [0, 256], sizes = [8, 128], strides = [1, 1]} : vector<8x512xf32> to vector<8x128xf32>
    %53 = math.tanh %52 : vector<8x128xf32>
    %54 = vector.extract_strided_slice %43 {offsets = [0, 384], sizes = [8, 128], strides = [1, 1]} : vector<8x512xf32> to vector<8x128xf32>
    %55 = arith.negf %54 : vector<8x128xf32>
    %56 = math.exp %55 : vector<8x128xf32>
    %cst_25 = arith.constant 1.000000e+00 : f32
    %57 = vector.broadcast %cst_25 : f32 to vector<8x128xf32>
    %58 = arith.addf %57, %56 : vector<8x128xf32>
    %59 = arith.divf %57, %58 : vector<8x128xf32>
    %60 = arith.mulf %51, %34 : vector<8x128xf32>
    %61 = arith.mulf %50, %53 : vector<8x128xf32>
    %62 = arith.addf %60, %61 : vector<8x128xf32>
    %63 = math.tanh %62 : vector<8x128xf32>
    %64 = arith.mulf %59, %63 : vector<8x128xf32>
    %c8_26 = arith.constant 8 : index
    %c0_27 = arith.constant 0 : index
    %65 = vector.load %arg7[%c8_26, %c0_27] : memref<64x128xf32, #tpu.memory_space<vmem>>, vector<8x128xf32>
    tpu.vector_store %arg7[%c8_26, %c0_27], %64 {strides = array<i32>} : memref<64x128xf32, #tpu.memory_space<vmem>>, vector<8x128xf32>,
    %c16 = arith.constant 16 : index
    %c0_28 = arith.constant 0 : index
    %66 = vector.load %arg6[%c16, %c0_28] : memref<64x512xf32, #tpu.memory_space<vmem>>, vector<8x512xf32>
    %67 = arith.truncf %64 : vector<8x128xf32> to vector<8x128xbf16>
    %c1_29 = arith.constant 1 : index
    %c0_30 = arith.constant 0 : index
    %c0_31 = arith.constant 0 : index
    %68 = vector.load %arg1[%c1_29, %c0_30, %c0_31] : memref<8x128x512xbf16, #tpu.memory_space<vmem>>, vector<1x128x512xbf16>
    %69 = vector.shape_cast %68 : vector<1x128x512xbf16> to vector<128x512xbf16>
    %cst_32 = arith.constant dense<0.000000e+00> : vector<8x512xf32>
    %70 = tpu.matmul %67, %69, %cst_32 {dimension_numbers = #tpu.dot_dimension_numbers<[1], [0], [0], [1], [0, 0, 1, 1], [], []>} : vector<8x128xbf16>, vector<128x512xbf16>, vector<8x512xf32> -> vector<8x512xf32>
    %71 = arith.addf %66, %70 : vector<8x512xf32>
    %72 = vector.extract_strided_slice %71 {offsets = [0, 0], sizes = [8, 256], strides = [1, 1]} : vector<8x512xf32> to vector<8x256xf32>
    %73 = arith.negf %72 : vector<8x256xf32>
    %74 = math.exp %73 : vector<8x256xf32>
    %cst_33 = arith.constant 1.000000e+00 : f32
    %75 = vector.broadcast %cst_33 : f32 to vector<8x256xf32>
    %76 = arith.addf %75, %74 : vector<8x256xf32>
    %77 = arith.divf %75, %76 : vector<8x256xf32>
    %78 = vector.extract_strided_slice %77 {offsets = [0, 0], sizes = [8, 128], strides = [1, 1]} : vector<8x256xf32> to vector<8x128xf32>
    %79 = vector.extract_strided_slice %77 {offsets = [0, 128], sizes = [8, 128], strides = [1, 1]} : vector<8x256xf32> to vector<8x128xf32>
    %80 = vector.extract_strided_slice %71 {offsets = [0, 256], sizes = [8, 128], strides = [1, 1]} : vector<8x512xf32> to vector<8x128xf32>
    %81 = math.tanh %80 : vector<8x128xf32>
    %82 = vector.extract_strided_slice %71 {offsets = [0, 384], sizes = [8, 128], strides = [1, 1]} : vector<8x512xf32> to vector<8x128xf32>
    %83 = arith.negf %82 : vector<8x128xf32>
    %84 = math.exp %83 : vector<8x128xf32>
    %cst_34 = arith.constant 1.000000e+00 : f32
    %85 = vector.broadcast %cst_34 : f32 to vector<8x128xf32>
    %86 = arith.addf %85, %84 : vector<8x128xf32>
    %87 = arith.divf %85, %86 : vector<8x128xf32>
    %88 = arith.mulf %79, %62 : vector<8x128xf32>
    %89 = arith.mulf %78, %81 : vector<8x128xf32>
    %90 = arith.addf %88, %89 : vector<8x128xf32>
    %91 = math.tanh %90 : vector<8x128xf32>
    %92 = arith.mulf %87, %91 : vector<8x128xf32>
    %c16_35 = arith.constant 16 : index
    %c0_36 = arith.constant 0 : index
    %93 = vector.load %arg7[%c16_35, %c0_36] : memref<64x128xf32, #tpu.memory_space<vmem>>, vector<8x128xf32>
    tpu.vector_store %arg7[%c16_35, %c0_36], %92 {strides = array<i32>} : memref<64x128xf32, #tpu.memory_space<vmem>>, vector<8x128xf32>,
    %c24 = arith.constant 24 : index
    %c0_37 = arith.constant 0 : index
    %94 = vector.load %arg6[%c24, %c0_37] : memref<64x512xf32, #tpu.memory_space<vmem>>, vector<8x512xf32>
    %95 = arith.truncf %92 : vector<8x128xf32> to vector<8x128xbf16>
    %c1_38 = arith.constant 1 : index
    %c0_39 = arith.constant 0 : index
    %c0_40 = arith.constant 0 : index
    %96 = vector.load %arg1[%c1_38, %c0_39, %c0_40] : memref<8x128x512xbf16, #tpu.memory_space<vmem>>, vector<1x128x512xbf16>
    %97 = vector.shape_cast %96 : vector<1x128x512xbf16> to vector<128x512xbf16>
    %cst_41 = arith.constant dense<0.000000e+00> : vector<8x512xf32>
    %98 = tpu.matmul %95, %97, %cst_41 {dimension_numbers = #tpu.dot_dimension_numbers<[1], [0], [0], [1], [0, 0, 1, 1], [], []>} : vector<8x128xbf16>, vector<128x512xbf16>, vector<8x512xf32> -> vector<8x512xf32>
    %99 = arith.addf %94, %98 : vector<8x512xf32>
    %100 = vector.extract_strided_slice %99 {offsets = [0, 0], sizes = [8, 256], strides = [1, 1]} : vector<8x512xf32> to vector<8x256xf32>
    %101 = arith.negf %100 : vector<8x256xf32>
    %102 = math.exp %101 : vector<8x256xf32>
    %cst_42 = arith.constant 1.000000e+00 : f32
    %103 = vector.broadcast %cst_42 : f32 to vector<8x256xf32>
    %104 = arith.addf %103, %102 : vector<8x256xf32>
    %105 = arith.divf %103, %104 : vector<8x256xf32>
    %106 = vector.extract_strided_slice %105 {offsets = [0, 0], sizes = [8, 128], strides = [1, 1]} : vector<8x256xf32> to vector<8x128xf32>
    %107 = vector.extract_strided_slice %105 {offsets = [0, 128], sizes = [8, 128], strides = [1, 1]} : vector<8x256xf32> to vector<8x128xf32>
    %108 = vector.extract_strided_slice %99 {offsets = [0, 256], sizes = [8, 128], strides = [1, 1]} : vector<8x512xf32> to vector<8x128xf32>
    %109 = math.tanh %108 : vector<8x128xf32>
    %110 = vector.extract_strided_slice %99 {offsets = [0, 384], sizes = [8, 128], strides = [1, 1]} : vector<8x512xf32> to vector<8x128xf32>
    %111 = arith.negf %110 : vector<8x128xf32>
    %112 = math.exp %111 : vector<8x128xf32>
    %cst_43 = arith.constant 1.000000e+00 : f32
    %113 = vector.broadcast %cst_43 : f32 to vector<8x128xf32>
    %114 = arith.addf %113, %112 : vector<8x128xf32>
    %115 = arith.divf %113, %114 : vector<8x128xf32>
    %116 = arith.mulf %107, %90 : vector<8x128xf32>
    %117 = arith.mulf %106, %109 : vector<8x128xf32>
    %118 = arith.addf %116, %117 : vector<8x128xf32>
    %119 = math.tanh %118 : vector<8x128xf32>
    %120 = arith.mulf %115, %119 : vector<8x128xf32>
    %c24_44 = arith.constant 24 : index
    %c0_45 = arith.constant 0 : index
    %121 = vector.load %arg7[%c24_44, %c0_45] : memref<64x128xf32, #tpu.memory_space<vmem>>, vector<8x128xf32>
    tpu.vector_store %arg7[%c24_44, %c0_45], %120 {strides = array<i32>} : memref<64x128xf32, #tpu.memory_space<vmem>>, vector<8x128xf32>,
    %c32 = arith.constant 32 : index
    %c0_46 = arith.constant 0 : index
    %122 = vector.load %arg6[%c32, %c0_46] : memref<64x512xf32, #tpu.memory_space<vmem>>, vector<8x512xf32>
    %123 = arith.truncf %120 : vector<8x128xf32> to vector<8x128xbf16>
    %c1_47 = arith.constant 1 : index
    %c0_48 = arith.constant 0 : index
    %c0_49 = arith.constant 0 : index
    %124 = vector.load %arg1[%c1_47, %c0_48, %c0_49] : memref<8x128x512xbf16, #tpu.memory_space<vmem>>, vector<1x128x512xbf16>
    %125 = vector.shape_cast %124 : vector<1x128x512xbf16> to vector<128x512xbf16>
    %cst_50 = arith.constant dense<0.000000e+00> : vector<8x512xf32>
    %126 = tpu.matmul %123, %125, %cst_50 {dimension_numbers = #tpu.dot_dimension_numbers<[1], [0], [0], [1], [0, 0, 1, 1], [], []>} : vector<8x128xbf16>, vector<128x512xbf16>, vector<8x512xf32> -> vector<8x512xf32>
    %127 = arith.addf %122, %126 : vector<8x512xf32>
    %128 = vector.extract_strided_slice %127 {offsets = [0, 0], sizes = [8, 256], strides = [1, 1]} : vector<8x512xf32> to vector<8x256xf32>
    %129 = arith.negf %128 : vector<8x256xf32>
    %130 = math.exp %129 : vector<8x256xf32>
    %cst_51 = arith.constant 1.000000e+00 : f32
    %131 = vector.broadcast %cst_51 : f32 to vector<8x256xf32>
    %132 = arith.addf %131, %130 : vector<8x256xf32>
    %133 = arith.divf %131, %132 : vector<8x256xf32>
    %134 = vector.extract_strided_slice %133 {offsets = [0, 0], sizes = [8, 128], strides = [1, 1]} : vector<8x256xf32> to vector<8x128xf32>
    %135 = vector.extract_strided_slice %133 {offsets = [0, 128], sizes = [8, 128], strides = [1, 1]} : vector<8x256xf32> to vector<8x128xf32>
    %136 = vector.extract_strided_slice %127 {offsets = [0, 256], sizes = [8, 128], strides = [1, 1]} : vector<8x512xf32> to vector<8x128xf32>
    %137 = math.tanh %136 : vector<8x128xf32>
    %138 = vector.extract_strided_slice %127 {offsets = [0, 384], sizes = [8, 128], strides = [1, 1]} : vector<8x512xf32> to vector<8x128xf32>
    %139 = arith.negf %138 : vector<8x128xf32>
    %140 = math.exp %139 : vector<8x128xf32>
    %cst_52 = arith.constant 1.000000e+00 : f32
    %141 = vector.broadcast %cst_52 : f32 to vector<8x128xf32>
    %142 = arith.addf %141, %140 : vector<8x128xf32>
    %143 = arith.divf %141, %142 : vector<8x128xf32>
    %144 = arith.mulf %135, %118 : vector<8x128xf32>
    %145 = arith.mulf %134, %137 : vector<8x128xf32>
    %146 = arith.addf %144, %145 : vector<8x128xf32>
    %147 = math.tanh %146 : vector<8x128xf32>
    %148 = arith.mulf %143, %147 : vector<8x128xf32>
    %c32_53 = arith.constant 32 : index
    %c0_54 = arith.constant 0 : index
    %149 = vector.load %arg7[%c32_53, %c0_54] : memref<64x128xf32, #tpu.memory_space<vmem>>, vector<8x128xf32>
    tpu.vector_store %arg7[%c32_53, %c0_54], %148 {strides = array<i32>} : memref<64x128xf32, #tpu.memory_space<vmem>>, vector<8x128xf32>,
    %c40 = arith.constant 40 : index
    %c0_55 = arith.constant 0 : index
    %150 = vector.load %arg6[%c40, %c0_55] : memref<64x512xf32, #tpu.memory_space<vmem>>, vector<8x512xf32>
    %151 = arith.truncf %148 : vector<8x128xf32> to vector<8x128xbf16>
    %c1_56 = arith.constant 1 : index
    %c0_57 = arith.constant 0 : index
    %c0_58 = arith.constant 0 : index
    %152 = vector.load %arg1[%c1_56, %c0_57, %c0_58] : memref<8x128x512xbf16, #tpu.memory_space<vmem>>, vector<1x128x512xbf16>
    %153 = vector.shape_cast %152 : vector<1x128x512xbf16> to vector<128x512xbf16>
    %cst_59 = arith.constant dense<0.000000e+00> : vector<8x512xf32>
    %154 = tpu.matmul %151, %153, %cst_59 {dimension_numbers = #tpu.dot_dimension_numbers<[1], [0], [0], [1], [0, 0, 1, 1], [], []>} : vector<8x128xbf16>, vector<128x512xbf16>, vector<8x512xf32> -> vector<8x512xf32>
    %155 = arith.addf %150, %154 : vector<8x512xf32>
    %156 = vector.extract_strided_slice %155 {offsets = [0, 0], sizes = [8, 256], strides = [1, 1]} : vector<8x512xf32> to vector<8x256xf32>
    %157 = arith.negf %156 : vector<8x256xf32>
    %158 = math.exp %157 : vector<8x256xf32>
    %cst_60 = arith.constant 1.000000e+00 : f32
    %159 = vector.broadcast %cst_60 : f32 to vector<8x256xf32>
    %160 = arith.addf %159, %158 : vector<8x256xf32>
    %161 = arith.divf %159, %160 : vector<8x256xf32>
    %162 = vector.extract_strided_slice %161 {offsets = [0, 0], sizes = [8, 128], strides = [1, 1]} : vector<8x256xf32> to vector<8x128xf32>
    %163 = vector.extract_strided_slice %161 {offsets = [0, 128], sizes = [8, 128], strides = [1, 1]} : vector<8x256xf32> to vector<8x128xf32>
    %164 = vector.extract_strided_slice %155 {offsets = [0, 256], sizes = [8, 128], strides = [1, 1]} : vector<8x512xf32> to vector<8x128xf32>
    %165 = math.tanh %164 : vector<8x128xf32>
    %166 = vector.extract_strided_slice %155 {offsets = [0, 384], sizes = [8, 128], strides = [1, 1]} : vector<8x512xf32> to vector<8x128xf32>
    %167 = arith.negf %166 : vector<8x128xf32>
    %168 = math.exp %167 : vector<8x128xf32>
    %cst_61 = arith.constant 1.000000e+00 : f32
    %169 = vector.broadcast %cst_61 : f32 to vector<8x128xf32>
    %170 = arith.addf %169, %168 : vector<8x128xf32>
    %171 = arith.divf %169, %170 : vector<8x128xf32>
    %172 = arith.mulf %163, %146 : vector<8x128xf32>
    %173 = arith.mulf %162, %165 : vector<8x128xf32>
    %174 = arith.addf %172, %173 : vector<8x128xf32>
    %175 = math.tanh %174 : vector<8x128xf32>
    %176 = arith.mulf %171, %175 : vector<8x128xf32>
    %c40_62 = arith.constant 40 : index
    %c0_63 = arith.constant 0 : index
    %177 = vector.load %arg7[%c40_62, %c0_63] : memref<64x128xf32, #tpu.memory_space<vmem>>, vector<8x128xf32>
    tpu.vector_store %arg7[%c40_62, %c0_63], %176 {strides = array<i32>} : memref<64x128xf32, #tpu.memory_space<vmem>>, vector<8x128xf32>,
    %c48 = arith.constant 48 : index
    %c0_64 = arith.constant 0 : index
    %178 = vector.load %arg6[%c48, %c0_64] : memref<64x512xf32, #tpu.memory_space<vmem>>, vector<8x512xf32>
    %179 = arith.truncf %176 : vector<8x128xf32> to vector<8x128xbf16>
    %c1_65 = arith.constant 1 : index
    %c0_66 = arith.constant 0 : index
    %c0_67 = arith.constant 0 : index
    %180 = vector.load %arg1[%c1_65, %c0_66, %c0_67] : memref<8x128x512xbf16, #tpu.memory_space<vmem>>, vector<1x128x512xbf16>
    %181 = vector.shape_cast %180 : vector<1x128x512xbf16> to vector<128x512xbf16>
    %cst_68 = arith.constant dense<0.000000e+00> : vector<8x512xf32>
    %182 = tpu.matmul %179, %181, %cst_68 {dimension_numbers = #tpu.dot_dimension_numbers<[1], [0], [0], [1], [0, 0, 1, 1], [], []>} : vector<8x128xbf16>, vector<128x512xbf16>, vector<8x512xf32> -> vector<8x512xf32>
    %183 = arith.addf %178, %182 : vector<8x512xf32>
    %184 = vector.extract_strided_slice %183 {offsets = [0, 0], sizes = [8, 256], strides = [1, 1]} : vector<8x512xf32> to vector<8x256xf32>
    %185 = arith.negf %184 : vector<8x256xf32>
    %186 = math.exp %185 : vector<8x256xf32>
    %cst_69 = arith.constant 1.000000e+00 : f32
    %187 = vector.broadcast %cst_69 : f32 to vector<8x256xf32>
    %188 = arith.addf %187, %186 : vector<8x256xf32>
    %189 = arith.divf %187, %188 : vector<8x256xf32>
    %190 = vector.extract_strided_slice %189 {offsets = [0, 0], sizes = [8, 128], strides = [1, 1]} : vector<8x256xf32> to vector<8x128xf32>
    %191 = vector.extract_strided_slice %189 {offsets = [0, 128], sizes = [8, 128], strides = [1, 1]} : vector<8x256xf32> to vector<8x128xf32>
    %192 = vector.extract_strided_slice %183 {offsets = [0, 256], sizes = [8, 128], strides = [1, 1]} : vector<8x512xf32> to vector<8x128xf32>
    %193 = math.tanh %192 : vector<8x128xf32>
    %194 = vector.extract_strided_slice %183 {offsets = [0, 384], sizes = [8, 128], strides = [1, 1]} : vector<8x512xf32> to vector<8x128xf32>
    %195 = arith.negf %194 : vector<8x128xf32>
    %196 = math.exp %195 : vector<8x128xf32>
    %cst_70 = arith.constant 1.000000e+00 : f32
    %197 = vector.broadcast %cst_70 : f32 to vector<8x128xf32>
    %198 = arith.addf %197, %196 : vector<8x128xf32>
    %199 = arith.divf %197, %198 : vector<8x128xf32>
    %200 = arith.mulf %191, %174 : vector<8x128xf32>
    %201 = arith.mulf %190, %193 : vector<8x128xf32>
    %202 = arith.addf %200, %201 : vector<8x128xf32>
    %203 = math.tanh %202 : vector<8x128xf32>
    %204 = arith.mulf %199, %203 : vector<8x128xf32>
    %c48_71 = arith.constant 48 : index
    %c0_72 = arith.constant 0 : index
    %205 = vector.load %arg7[%c48_71, %c0_72] : memref<64x128xf32, #tpu.memory_space<vmem>>, vector<8x128xf32>
    tpu.vector_store %arg7[%c48_71, %c0_72], %204 {strides = array<i32>} : memref<64x128xf32, #tpu.memory_space<vmem>>, vector<8x128xf32>,
    %c56 = arith.constant 56 : index
    %c0_73 = arith.constant 0 : index
    %206 = vector.load %arg6[%c56, %c0_73] : memref<64x512xf32, #tpu.memory_space<vmem>>, vector<8x512xf32>
    %207 = arith.truncf %204 : vector<8x128xf32> to vector<8x128xbf16>
    %c1_74 = arith.constant 1 : index
    %c0_75 = arith.constant 0 : index
    %c0_76 = arith.constant 0 : index
    %208 = vector.load %arg1[%c1_74, %c0_75, %c0_76] : memref<8x128x512xbf16, #tpu.memory_space<vmem>>, vector<1x128x512xbf16>
    %209 = vector.shape_cast %208 : vector<1x128x512xbf16> to vector<128x512xbf16>
    %cst_77 = arith.constant dense<0.000000e+00> : vector<8x512xf32>
    %210 = tpu.matmul %207, %209, %cst_77 {dimension_numbers = #tpu.dot_dimension_numbers<[1], [0], [0], [1], [0, 0, 1, 1], [], []>} : vector<8x128xbf16>, vector<128x512xbf16>, vector<8x512xf32> -> vector<8x512xf32>
    %211 = arith.addf %206, %210 : vector<8x512xf32>
    %212 = vector.extract_strided_slice %211 {offsets = [0, 0], sizes = [8, 256], strides = [1, 1]} : vector<8x512xf32> to vector<8x256xf32>
    %213 = arith.negf %212 : vector<8x256xf32>
    %214 = math.exp %213 : vector<8x256xf32>
    %cst_78 = arith.constant 1.000000e+00 : f32
    %215 = vector.broadcast %cst_78 : f32 to vector<8x256xf32>
    %216 = arith.addf %215, %214 : vector<8x256xf32>
    %217 = arith.divf %215, %216 : vector<8x256xf32>
    %218 = vector.extract_strided_slice %217 {offsets = [0, 0], sizes = [8, 128], strides = [1, 1]} : vector<8x256xf32> to vector<8x128xf32>
    %219 = vector.extract_strided_slice %217 {offsets = [0, 128], sizes = [8, 128], strides = [1, 1]} : vector<8x256xf32> to vector<8x128xf32>
    %220 = vector.extract_strided_slice %211 {offsets = [0, 256], sizes = [8, 128], strides = [1, 1]} : vector<8x512xf32> to vector<8x128xf32>
    %221 = math.tanh %220 : vector<8x128xf32>
    %222 = vector.extract_strided_slice %211 {offsets = [0, 384], sizes = [8, 128], strides = [1, 1]} : vector<8x512xf32> to vector<8x128xf32>
    %223 = arith.negf %222 : vector<8x128xf32>
    %224 = math.exp %223 : vector<8x128xf32>
    %cst_79 = arith.constant 1.000000e+00 : f32
    %225 = vector.broadcast %cst_79 : f32 to vector<8x128xf32>
    %226 = arith.addf %225, %224 : vector<8x128xf32>
    %227 = arith.divf %225, %226 : vector<8x128xf32>
    %228 = arith.mulf %219, %202 : vector<8x128xf32>
    %229 = arith.mulf %218, %221 : vector<8x128xf32>
    %230 = arith.addf %228, %229 : vector<8x128xf32>
    %231 = math.tanh %230 : vector<8x128xf32>
    %232 = arith.mulf %227, %231 : vector<8x128xf32>
    %c56_80 = arith.constant 56 : index
    %c0_81 = arith.constant 0 : index
    %233 = vector.load %arg7[%c56_80, %c0_81] : memref<64x128xf32, #tpu.memory_space<vmem>>, vector<8x128xf32>
    tpu.vector_store %arg7[%c56_80, %c0_81], %232 {strides = array<i32>} : memref<64x128xf32, #tpu.memory_space<vmem>>, vector<8x128xf32>,
    %c0_82 = arith.constant 0 : index
    %c0_83 = arith.constant 0 : index
    %234 = vector.load %arg7[%c0_82, %c0_83] : memref<64x128xf32, #tpu.memory_space<vmem>>, vector<64x128xf32>
    %235 = arith.truncf %234 : vector<64x128xf32> to vector<64x128xbf16>
    %c2 = arith.constant 2 : index
    %c0_84 = arith.constant 0 : index
    %c0_85 = arith.constant 0 : index
    %236 = vector.load %arg1[%c2, %c0_84, %c0_85] : memref<8x128x512xbf16, #tpu.memory_space<vmem>>, vector<1x128x512xbf16>
    %237 = vector.shape_cast %236 : vector<1x128x512xbf16> to vector<128x512xbf16>
    %cst_86 = arith.constant dense<0.000000e+00> : vector<64x512xf32>
    %238 = tpu.matmul %235, %237, %cst_86 {dimension_numbers = #tpu.dot_dimension_numbers<[1], [0], [0], [1], [0, 0, 1, 1], [], []>} : vector<64x128xbf16>, vector<128x512xbf16>, vector<64x512xf32> -> vector<64x512xf32>
    %c1_87 = arith.constant 1 : index
    %c0_88 = arith.constant 0 : index
    %239 = vector.load %arg2[%c1_87, %c0_88] : memref<4x512xf32, #tpu.memory_space<vmem>>, vector<1x512xf32>
    %240 = vector.broadcast %239 : vector<1x512xf32> to vector<64x512xf32>
    %241 = arith.addf %238, %240 : vector<64x512xf32>
    %c0_89 = arith.constant 0 : index
    %c0_90 = arith.constant 0 : index
    %242 = vector.load %arg6[%c0_89, %c0_90] : memref<64x512xf32, #tpu.memory_space<vmem>>, vector<64x512xf32>
    tpu.vector_store %arg6[%c0_89, %c0_90], %241 {strides = array<i32>} : memref<64x512xf32, #tpu.memory_space<vmem>>, vector<64x512xf32>,
    %cst_91 = arith.constant 0.000000e+00 : f32
    %243 = vector.broadcast %cst_91 : f32 to vector<8x128xf32>
    %cst_92 = arith.constant 0.000000e+00 : f32
    %244 = vector.broadcast %cst_92 : f32 to vector<8x128xf32>
    %c0_93 = arith.constant 0 : index
    %c0_94 = arith.constant 0 : index
    %245 = vector.load %arg6[%c0_93, %c0_94] : memref<64x512xf32, #tpu.memory_space<vmem>>, vector<8x512xf32>
    %246 = arith.truncf %243 : vector<8x128xf32> to vector<8x128xbf16>
    %c3 = arith.constant 3 : index
    %c0_95 = arith.constant 0 : index
    %c0_96 = arith.constant 0 : index
    %247 = vector.load %arg1[%c3, %c0_95, %c0_96] : memref<8x128x512xbf16, #tpu.memory_space<vmem>>, vector<1x128x512xbf16>
    %248 = vector.shape_cast %247 : vector<1x128x512xbf16> to vector<128x512xbf16>
    %cst_97 = arith.constant dense<0.000000e+00> : vector<8x512xf32>
    %249 = tpu.matmul %246, %248, %cst_97 {dimension_numbers = #tpu.dot_dimension_numbers<[1], [0], [0], [1], [0, 0, 1, 1], [], []>} : vector<8x128xbf16>, vector<128x512xbf16>, vector<8x512xf32> -> vector<8x512xf32>
    %250 = arith.addf %245, %249 : vector<8x512xf32>
    %251 = vector.extract_strided_slice %250 {offsets = [0, 0], sizes = [8, 256], strides = [1, 1]} : vector<8x512xf32> to vector<8x256xf32>
    %252 = arith.negf %251 : vector<8x256xf32>
    %253 = math.exp %252 : vector<8x256xf32>
    %cst_98 = arith.constant 1.000000e+00 : f32
    %254 = vector.broadcast %cst_98 : f32 to vector<8x256xf32>
    %255 = arith.addf %254, %253 : vector<8x256xf32>
    %256 = arith.divf %254, %255 : vector<8x256xf32>
    %257 = vector.extract_strided_slice %256 {offsets = [0, 0], sizes = [8, 128], strides = [1, 1]} : vector<8x256xf32> to vector<8x128xf32>
    %258 = vector.extract_strided_slice %256 {offsets = [0, 128], sizes = [8, 128], strides = [1, 1]} : vector<8x256xf32> to vector<8x128xf32>
    %259 = vector.extract_strided_slice %250 {offsets = [0, 256], sizes = [8, 128], strides = [1, 1]} : vector<8x512xf32> to vector<8x128xf32>
    %260 = math.tanh %259 : vector<8x128xf32>
    %261 = vector.extract_strided_slice %250 {offsets = [0, 384], sizes = [8, 128], strides = [1, 1]} : vector<8x512xf32> to vector<8x128xf32>
    %262 = arith.negf %261 : vector<8x128xf32>
    %263 = math.exp %262 : vector<8x128xf32>
    %cst_99 = arith.constant 1.000000e+00 : f32
    %264 = vector.broadcast %cst_99 : f32 to vector<8x128xf32>
    %265 = arith.addf %264, %263 : vector<8x128xf32>
    %266 = arith.divf %264, %265 : vector<8x128xf32>
    %267 = arith.mulf %258, %244 : vector<8x128xf32>
    %268 = arith.mulf %257, %260 : vector<8x128xf32>
    %269 = arith.addf %267, %268 : vector<8x128xf32>
    %270 = math.tanh %269 : vector<8x128xf32>
    %271 = arith.mulf %266, %270 : vector<8x128xf32>
    %cst_100 = arith.constant 0.000000e+00 : f32
    %272 = vector.broadcast %cst_100 : f32 to vector<8x128xf32>
    %273 = arith.maximumf %271, %272 : vector<8x128xf32>
    %c0_101 = arith.constant 0 : index
    %c0_102 = arith.constant 0 : index
    %274 = vector.load %arg8[%c0_101, %c0_102] : memref<64x128xf32, #tpu.memory_space<vmem>>, vector<8x128xf32>
    tpu.vector_store %arg8[%c0_101, %c0_102], %273 {strides = array<i32>} : memref<64x128xf32, #tpu.memory_space<vmem>>, vector<8x128xf32>,
    %c8_103 = arith.constant 8 : index
    %c0_104 = arith.constant 0 : index
    %275 = vector.load %arg6[%c8_103, %c0_104] : memref<64x512xf32, #tpu.memory_space<vmem>>, vector<8x512xf32>
    %276 = arith.truncf %271 : vector<8x128xf32> to vector<8x128xbf16>
    %c3_105 = arith.constant 3 : index
    %c0_106 = arith.constant 0 : index
    %c0_107 = arith.constant 0 : index
    %277 = vector.load %arg1[%c3_105, %c0_106, %c0_107] : memref<8x128x512xbf16, #tpu.memory_space<vmem>>, vector<1x128x512xbf16>
    %278 = vector.shape_cast %277 : vector<1x128x512xbf16> to vector<128x512xbf16>
    %cst_108 = arith.constant dense<0.000000e+00> : vector<8x512xf32>
    %279 = tpu.matmul %276, %278, %cst_108 {dimension_numbers = #tpu.dot_dimension_numbers<[1], [0], [0], [1], [0, 0, 1, 1], [], []>} : vector<8x128xbf16>, vector<128x512xbf16>, vector<8x512xf32> -> vector<8x512xf32>
    %280 = arith.addf %275, %279 : vector<8x512xf32>
    %281 = vector.extract_strided_slice %280 {offsets = [0, 0], sizes = [8, 256], strides = [1, 1]} : vector<8x512xf32> to vector<8x256xf32>
    %282 = arith.negf %281 : vector<8x256xf32>
    %283 = math.exp %282 : vector<8x256xf32>
    %cst_109 = arith.constant 1.000000e+00 : f32
    %284 = vector.broadcast %cst_109 : f32 to vector<8x256xf32>
    %285 = arith.addf %284, %283 : vector<8x256xf32>
    %286 = arith.divf %284, %285 : vector<8x256xf32>
    %287 = vector.extract_strided_slice %286 {offsets = [0, 0], sizes = [8, 128], strides = [1, 1]} : vector<8x256xf32> to vector<8x128xf32>
    %288 = vector.extract_strided_slice %286 {offsets = [0, 128], sizes = [8, 128], strides = [1, 1]} : vector<8x256xf32> to vector<8x128xf32>
    %289 = vector.extract_strided_slice %280 {offsets = [0, 256], sizes = [8, 128], strides = [1, 1]} : vector<8x512xf32> to vector<8x128xf32>
    %290 = math.tanh %289 : vector<8x128xf32>
    %291 = vector.extract_strided_slice %280 {offsets = [0, 384], sizes = [8, 128], strides = [1, 1]} : vector<8x512xf32> to vector<8x128xf32>
    %292 = arith.negf %291 : vector<8x128xf32>
    %293 = math.exp %292 : vector<8x128xf32>
    %cst_110 = arith.constant 1.000000e+00 : f32
    %294 = vector.broadcast %cst_110 : f32 to vector<8x128xf32>
    %295 = arith.addf %294, %293 : vector<8x128xf32>
    %296 = arith.divf %294, %295 : vector<8x128xf32>
    %297 = arith.mulf %288, %269 : vector<8x128xf32>
    %298 = arith.mulf %287, %290 : vector<8x128xf32>
    %299 = arith.addf %297, %298 : vector<8x128xf32>
    %300 = math.tanh %299 : vector<8x128xf32>
    %301 = arith.mulf %296, %300 : vector<8x128xf32>
    %cst_111 = arith.constant 0.000000e+00 : f32
    %302 = vector.broadcast %cst_111 : f32 to vector<8x128xf32>
    %303 = arith.maximumf %301, %302 : vector<8x128xf32>
    %c8_112 = arith.constant 8 : index
    %c0_113 = arith.constant 0 : index
    %304 = vector.load %arg8[%c8_112, %c0_113] : memref<64x128xf32, #tpu.memory_space<vmem>>, vector<8x128xf32>
    tpu.vector_store %arg8[%c8_112, %c0_113], %303 {strides = array<i32>} : memref<64x128xf32, #tpu.memory_space<vmem>>, vector<8x128xf32>,
    %c16_114 = arith.constant 16 : index
    %c0_115 = arith.constant 0 : index
    %305 = vector.load %arg6[%c16_114, %c0_115] : memref<64x512xf32, #tpu.memory_space<vmem>>, vector<8x512xf32>
    %306 = arith.truncf %301 : vector<8x128xf32> to vector<8x128xbf16>
    %c3_116 = arith.constant 3 : index
    %c0_117 = arith.constant 0 : index
    %c0_118 = arith.constant 0 : index
    %307 = vector.load %arg1[%c3_116, %c0_117, %c0_118] : memref<8x128x512xbf16, #tpu.memory_space<vmem>>, vector<1x128x512xbf16>
    %308 = vector.shape_cast %307 : vector<1x128x512xbf16> to vector<128x512xbf16>
    %cst_119 = arith.constant dense<0.000000e+00> : vector<8x512xf32>
    %309 = tpu.matmul %306, %308, %cst_119 {dimension_numbers = #tpu.dot_dimension_numbers<[1], [0], [0], [1], [0, 0, 1, 1], [], []>} : vector<8x128xbf16>, vector<128x512xbf16>, vector<8x512xf32> -> vector<8x512xf32>
    %310 = arith.addf %305, %309 : vector<8x512xf32>
    %311 = vector.extract_strided_slice %310 {offsets = [0, 0], sizes = [8, 256], strides = [1, 1]} : vector<8x512xf32> to vector<8x256xf32>
    %312 = arith.negf %311 : vector<8x256xf32>
    %313 = math.exp %312 : vector<8x256xf32>
    %cst_120 = arith.constant 1.000000e+00 : f32
    %314 = vector.broadcast %cst_120 : f32 to vector<8x256xf32>
    %315 = arith.addf %314, %313 : vector<8x256xf32>
    %316 = arith.divf %314, %315 : vector<8x256xf32>
    %317 = vector.extract_strided_slice %316 {offsets = [0, 0], sizes = [8, 128], strides = [1, 1]} : vector<8x256xf32> to vector<8x128xf32>
    %318 = vector.extract_strided_slice %316 {offsets = [0, 128], sizes = [8, 128], strides = [1, 1]} : vector<8x256xf32> to vector<8x128xf32>
    %319 = vector.extract_strided_slice %310 {offsets = [0, 256], sizes = [8, 128], strides = [1, 1]} : vector<8x512xf32> to vector<8x128xf32>
    %320 = math.tanh %319 : vector<8x128xf32>
    %321 = vector.extract_strided_slice %310 {offsets = [0, 384], sizes = [8, 128], strides = [1, 1]} : vector<8x512xf32> to vector<8x128xf32>
    %322 = arith.negf %321 : vector<8x128xf32>
    %323 = math.exp %322 : vector<8x128xf32>
    %cst_121 = arith.constant 1.000000e+00 : f32
    %324 = vector.broadcast %cst_121 : f32 to vector<8x128xf32>
    %325 = arith.addf %324, %323 : vector<8x128xf32>
    %326 = arith.divf %324, %325 : vector<8x128xf32>
    %327 = arith.mulf %318, %299 : vector<8x128xf32>
    %328 = arith.mulf %317, %320 : vector<8x128xf32>
    %329 = arith.addf %327, %328 : vector<8x128xf32>
    %330 = math.tanh %329 : vector<8x128xf32>
    %331 = arith.mulf %326, %330 : vector<8x128xf32>
    %cst_122 = arith.constant 0.000000e+00 : f32
    %332 = vector.broadcast %cst_122 : f32 to vector<8x128xf32>
    %333 = arith.maximumf %331, %332 : vector<8x128xf32>
    %c16_123 = arith.constant 16 : index
    %c0_124 = arith.constant 0 : index
    %334 = vector.load %arg8[%c16_123, %c0_124] : memref<64x128xf32, #tpu.memory_space<vmem>>, vector<8x128xf32>
    tpu.vector_store %arg8[%c16_123, %c0_124], %333 {strides = array<i32>} : memref<64x128xf32, #tpu.memory_space<vmem>>, vector<8x128xf32>,
    %c24_125 = arith.constant 24 : index
    %c0_126 = arith.constant 0 : index
    %335 = vector.load %arg6[%c24_125, %c0_126] : memref<64x512xf32, #tpu.memory_space<vmem>>, vector<8x512xf32>
    %336 = arith.truncf %331 : vector<8x128xf32> to vector<8x128xbf16>
    %c3_127 = arith.constant 3 : index
    %c0_128 = arith.constant 0 : index
    %c0_129 = arith.constant 0 : index
    %337 = vector.load %arg1[%c3_127, %c0_128, %c0_129] : memref<8x128x512xbf16, #tpu.memory_space<vmem>>, vector<1x128x512xbf16>
    %338 = vector.shape_cast %337 : vector<1x128x512xbf16> to vector<128x512xbf16>
    %cst_130 = arith.constant dense<0.000000e+00> : vector<8x512xf32>
    %339 = tpu.matmul %336, %338, %cst_130 {dimension_numbers = #tpu.dot_dimension_numbers<[1], [0], [0], [1], [0, 0, 1, 1], [], []>} : vector<8x128xbf16>, vector<128x512xbf16>, vector<8x512xf32> -> vector<8x512xf32>
    %340 = arith.addf %335, %339 : vector<8x512xf32>
    %341 = vector.extract_strided_slice %340 {offsets = [0, 0], sizes = [8, 256], strides = [1, 1]} : vector<8x512xf32> to vector<8x256xf32>
    %342 = arith.negf %341 : vector<8x256xf32>
    %343 = math.exp %342 : vector<8x256xf32>
    %cst_131 = arith.constant 1.000000e+00 : f32
    %344 = vector.broadcast %cst_131 : f32 to vector<8x256xf32>
    %345 = arith.addf %344, %343 : vector<8x256xf32>
    %346 = arith.divf %344, %345 : vector<8x256xf32>
    %347 = vector.extract_strided_slice %346 {offsets = [0, 0], sizes = [8, 128], strides = [1, 1]} : vector<8x256xf32> to vector<8x128xf32>
    %348 = vector.extract_strided_slice %346 {offsets = [0, 128], sizes = [8, 128], strides = [1, 1]} : vector<8x256xf32> to vector<8x128xf32>
    %349 = vector.extract_strided_slice %340 {offsets = [0, 256], sizes = [8, 128], strides = [1, 1]} : vector<8x512xf32> to vector<8x128xf32>
    %350 = math.tanh %349 : vector<8x128xf32>
    %351 = vector.extract_strided_slice %340 {offsets = [0, 384], sizes = [8, 128], strides = [1, 1]} : vector<8x512xf32> to vector<8x128xf32>
    %352 = arith.negf %351 : vector<8x128xf32>
    %353 = math.exp %352 : vector<8x128xf32>
    %cst_132 = arith.constant 1.000000e+00 : f32
    %354 = vector.broadcast %cst_132 : f32 to vector<8x128xf32>
    %355 = arith.addf %354, %353 : vector<8x128xf32>
    %356 = arith.divf %354, %355 : vector<8x128xf32>
    %357 = arith.mulf %348, %329 : vector<8x128xf32>
    %358 = arith.mulf %347, %350 : vector<8x128xf32>
    %359 = arith.addf %357, %358 : vector<8x128xf32>
    %360 = math.tanh %359 : vector<8x128xf32>
    %361 = arith.mulf %356, %360 : vector<8x128xf32>
    %cst_133 = arith.constant 0.000000e+00 : f32
    %362 = vector.broadcast %cst_133 : f32 to vector<8x128xf32>
    %363 = arith.maximumf %361, %362 : vector<8x128xf32>
    %c24_134 = arith.constant 24 : index
    %c0_135 = arith.constant 0 : index
    %364 = vector.load %arg8[%c24_134, %c0_135] : memref<64x128xf32, #tpu.memory_space<vmem>>, vector<8x128xf32>
    tpu.vector_store %arg8[%c24_134, %c0_135], %363 {strides = array<i32>} : memref<64x128xf32, #tpu.memory_space<vmem>>, vector<8x128xf32>,
    %c32_136 = arith.constant 32 : index
    %c0_137 = arith.constant 0 : index
    %365 = vector.load %arg6[%c32_136, %c0_137] : memref<64x512xf32, #tpu.memory_space<vmem>>, vector<8x512xf32>
    %366 = arith.truncf %361 : vector<8x128xf32> to vector<8x128xbf16>
    %c3_138 = arith.constant 3 : index
    %c0_139 = arith.constant 0 : index
    %c0_140 = arith.constant 0 : index
    %367 = vector.load %arg1[%c3_138, %c0_139, %c0_140] : memref<8x128x512xbf16, #tpu.memory_space<vmem>>, vector<1x128x512xbf16>
    %368 = vector.shape_cast %367 : vector<1x128x512xbf16> to vector<128x512xbf16>
    %cst_141 = arith.constant dense<0.000000e+00> : vector<8x512xf32>
    %369 = tpu.matmul %366, %368, %cst_141 {dimension_numbers = #tpu.dot_dimension_numbers<[1], [0], [0], [1], [0, 0, 1, 1], [], []>} : vector<8x128xbf16>, vector<128x512xbf16>, vector<8x512xf32> -> vector<8x512xf32>
    %370 = arith.addf %365, %369 : vector<8x512xf32>
    %371 = vector.extract_strided_slice %370 {offsets = [0, 0], sizes = [8, 256], strides = [1, 1]} : vector<8x512xf32> to vector<8x256xf32>
    %372 = arith.negf %371 : vector<8x256xf32>
    %373 = math.exp %372 : vector<8x256xf32>
    %cst_142 = arith.constant 1.000000e+00 : f32
    %374 = vector.broadcast %cst_142 : f32 to vector<8x256xf32>
    %375 = arith.addf %374, %373 : vector<8x256xf32>
    %376 = arith.divf %374, %375 : vector<8x256xf32>
    %377 = vector.extract_strided_slice %376 {offsets = [0, 0], sizes = [8, 128], strides = [1, 1]} : vector<8x256xf32> to vector<8x128xf32>
    %378 = vector.extract_strided_slice %376 {offsets = [0, 128], sizes = [8, 128], strides = [1, 1]} : vector<8x256xf32> to vector<8x128xf32>
    %379 = vector.extract_strided_slice %370 {offsets = [0, 256], sizes = [8, 128], strides = [1, 1]} : vector<8x512xf32> to vector<8x128xf32>
    %380 = math.tanh %379 : vector<8x128xf32>
    %381 = vector.extract_strided_slice %370 {offsets = [0, 384], sizes = [8, 128], strides = [1, 1]} : vector<8x512xf32> to vector<8x128xf32>
    %382 = arith.negf %381 : vector<8x128xf32>
    %383 = math.exp %382 : vector<8x128xf32>
    %cst_143 = arith.constant 1.000000e+00 : f32
    %384 = vector.broadcast %cst_143 : f32 to vector<8x128xf32>
    %385 = arith.addf %384, %383 : vector<8x128xf32>
    %386 = arith.divf %384, %385 : vector<8x128xf32>
    %387 = arith.mulf %378, %359 : vector<8x128xf32>
    %388 = arith.mulf %377, %380 : vector<8x128xf32>
    %389 = arith.addf %387, %388 : vector<8x128xf32>
    %390 = math.tanh %389 : vector<8x128xf32>
    %391 = arith.mulf %386, %390 : vector<8x128xf32>
    %cst_144 = arith.constant 0.000000e+00 : f32
    %392 = vector.broadcast %cst_144 : f32 to vector<8x128xf32>
    %393 = arith.maximumf %391, %392 : vector<8x128xf32>
    %c32_145 = arith.constant 32 : index
    %c0_146 = arith.constant 0 : index
    %394 = vector.load %arg8[%c32_145, %c0_146] : memref<64x128xf32, #tpu.memory_space<vmem>>, vector<8x128xf32>
    tpu.vector_store %arg8[%c32_145, %c0_146], %393 {strides = array<i32>} : memref<64x128xf32, #tpu.memory_space<vmem>>, vector<8x128xf32>,
    %c40_147 = arith.constant 40 : index
    %c0_148 = arith.constant 0 : index
    %395 = vector.load %arg6[%c40_147, %c0_148] : memref<64x512xf32, #tpu.memory_space<vmem>>, vector<8x512xf32>
    %396 = arith.truncf %391 : vector<8x128xf32> to vector<8x128xbf16>
    %c3_149 = arith.constant 3 : index
    %c0_150 = arith.constant 0 : index
    %c0_151 = arith.constant 0 : index
    %397 = vector.load %arg1[%c3_149, %c0_150, %c0_151] : memref<8x128x512xbf16, #tpu.memory_space<vmem>>, vector<1x128x512xbf16>
    %398 = vector.shape_cast %397 : vector<1x128x512xbf16> to vector<128x512xbf16>
    %cst_152 = arith.constant dense<0.000000e+00> : vector<8x512xf32>
    %399 = tpu.matmul %396, %398, %cst_152 {dimension_numbers = #tpu.dot_dimension_numbers<[1], [0], [0], [1], [0, 0, 1, 1], [], []>} : vector<8x128xbf16>, vector<128x512xbf16>, vector<8x512xf32> -> vector<8x512xf32>
    %400 = arith.addf %395, %399 : vector<8x512xf32>
    %401 = vector.extract_strided_slice %400 {offsets = [0, 0], sizes = [8, 256], strides = [1, 1]} : vector<8x512xf32> to vector<8x256xf32>
    %402 = arith.negf %401 : vector<8x256xf32>
    %403 = math.exp %402 : vector<8x256xf32>
    %cst_153 = arith.constant 1.000000e+00 : f32
    %404 = vector.broadcast %cst_153 : f32 to vector<8x256xf32>
    %405 = arith.addf %404, %403 : vector<8x256xf32>
    %406 = arith.divf %404, %405 : vector<8x256xf32>
    %407 = vector.extract_strided_slice %406 {offsets = [0, 0], sizes = [8, 128], strides = [1, 1]} : vector<8x256xf32> to vector<8x128xf32>
    %408 = vector.extract_strided_slice %406 {offsets = [0, 128], sizes = [8, 128], strides = [1, 1]} : vector<8x256xf32> to vector<8x128xf32>
    %409 = vector.extract_strided_slice %400 {offsets = [0, 256], sizes = [8, 128], strides = [1, 1]} : vector<8x512xf32> to vector<8x128xf32>
    %410 = math.tanh %409 : vector<8x128xf32>
    %411 = vector.extract_strided_slice %400 {offsets = [0, 384], sizes = [8, 128], strides = [1, 1]} : vector<8x512xf32> to vector<8x128xf32>
    %412 = arith.negf %411 : vector<8x128xf32>
    %413 = math.exp %412 : vector<8x128xf32>
    %cst_154 = arith.constant 1.000000e+00 : f32
    %414 = vector.broadcast %cst_154 : f32 to vector<8x128xf32>
    %415 = arith.addf %414, %413 : vector<8x128xf32>
    %416 = arith.divf %414, %415 : vector<8x128xf32>
    %417 = arith.mulf %408, %389 : vector<8x128xf32>
    %418 = arith.mulf %407, %410 : vector<8x128xf32>
    %419 = arith.addf %417, %418 : vector<8x128xf32>
    %420 = math.tanh %419 : vector<8x128xf32>
    %421 = arith.mulf %416, %420 : vector<8x128xf32>
    %cst_155 = arith.constant 0.000000e+00 : f32
    %422 = vector.broadcast %cst_155 : f32 to vector<8x128xf32>
    %423 = arith.maximumf %421, %422 : vector<8x128xf32>
    %c40_156 = arith.constant 40 : index
    %c0_157 = arith.constant 0 : index
    %424 = vector.load %arg8[%c40_156, %c0_157] : memref<64x128xf32, #tpu.memory_space<vmem>>, vector<8x128xf32>
    tpu.vector_store %arg8[%c40_156, %c0_157], %423 {strides = array<i32>} : memref<64x128xf32, #tpu.memory_space<vmem>>, vector<8x128xf32>,
    %c48_158 = arith.constant 48 : index
    %c0_159 = arith.constant 0 : index
    %425 = vector.load %arg6[%c48_158, %c0_159] : memref<64x512xf32, #tpu.memory_space<vmem>>, vector<8x512xf32>
    %426 = arith.truncf %421 : vector<8x128xf32> to vector<8x128xbf16>
    %c3_160 = arith.constant 3 : index
    %c0_161 = arith.constant 0 : index
    %c0_162 = arith.constant 0 : index
    %427 = vector.load %arg1[%c3_160, %c0_161, %c0_162] : memref<8x128x512xbf16, #tpu.memory_space<vmem>>, vector<1x128x512xbf16>
    %428 = vector.shape_cast %427 : vector<1x128x512xbf16> to vector<128x512xbf16>
    %cst_163 = arith.constant dense<0.000000e+00> : vector<8x512xf32>
    %429 = tpu.matmul %426, %428, %cst_163 {dimension_numbers = #tpu.dot_dimension_numbers<[1], [0], [0], [1], [0, 0, 1, 1], [], []>} : vector<8x128xbf16>, vector<128x512xbf16>, vector<8x512xf32> -> vector<8x512xf32>
    %430 = arith.addf %425, %429 : vector<8x512xf32>
    %431 = vector.extract_strided_slice %430 {offsets = [0, 0], sizes = [8, 256], strides = [1, 1]} : vector<8x512xf32> to vector<8x256xf32>
    %432 = arith.negf %431 : vector<8x256xf32>
    %433 = math.exp %432 : vector<8x256xf32>
    %cst_164 = arith.constant 1.000000e+00 : f32
    %434 = vector.broadcast %cst_164 : f32 to vector<8x256xf32>
    %435 = arith.addf %434, %433 : vector<8x256xf32>
    %436 = arith.divf %434, %435 : vector<8x256xf32>
    %437 = vector.extract_strided_slice %436 {offsets = [0, 0], sizes = [8, 128], strides = [1, 1]} : vector<8x256xf32> to vector<8x128xf32>
    %438 = vector.extract_strided_slice %436 {offsets = [0, 128], sizes = [8, 128], strides = [1, 1]} : vector<8x256xf32> to vector<8x128xf32>
    %439 = vector.extract_strided_slice %430 {offsets = [0, 256], sizes = [8, 128], strides = [1, 1]} : vector<8x512xf32> to vector<8x128xf32>
    %440 = math.tanh %439 : vector<8x128xf32>
    %441 = vector.extract_strided_slice %430 {offsets = [0, 384], sizes = [8, 128], strides = [1, 1]} : vector<8x512xf32> to vector<8x128xf32>
    %442 = arith.negf %441 : vector<8x128xf32>
    %443 = math.exp %442 : vector<8x128xf32>
    %cst_165 = arith.constant 1.000000e+00 : f32
    %444 = vector.broadcast %cst_165 : f32 to vector<8x128xf32>
    %445 = arith.addf %444, %443 : vector<8x128xf32>
    %446 = arith.divf %444, %445 : vector<8x128xf32>
    %447 = arith.mulf %438, %419 : vector<8x128xf32>
    %448 = arith.mulf %437, %440 : vector<8x128xf32>
    %449 = arith.addf %447, %448 : vector<8x128xf32>
    %450 = math.tanh %449 : vector<8x128xf32>
    %451 = arith.mulf %446, %450 : vector<8x128xf32>
    %cst_166 = arith.constant 0.000000e+00 : f32
    %452 = vector.broadcast %cst_166 : f32 to vector<8x128xf32>
    %453 = arith.maximumf %451, %452 : vector<8x128xf32>
    %c48_167 = arith.constant 48 : index
    %c0_168 = arith.constant 0 : index
    %454 = vector.load %arg8[%c48_167, %c0_168] : memref<64x128xf32, #tpu.memory_space<vmem>>, vector<8x128xf32>
    tpu.vector_store %arg8[%c48_167, %c0_168], %453 {strides = array<i32>} : memref<64x128xf32, #tpu.memory_space<vmem>>, vector<8x128xf32>,
    %c56_169 = arith.constant 56 : index
    %c0_170 = arith.constant 0 : index
    %455 = vector.load %arg6[%c56_169, %c0_170] : memref<64x512xf32, #tpu.memory_space<vmem>>, vector<8x512xf32>
    %456 = arith.truncf %451 : vector<8x128xf32> to vector<8x128xbf16>
    %c3_171 = arith.constant 3 : index
    %c0_172 = arith.constant 0 : index
    %c0_173 = arith.constant 0 : index
    %457 = vector.load %arg1[%c3_171, %c0_172, %c0_173] : memref<8x128x512xbf16, #tpu.memory_space<vmem>>, vector<1x128x512xbf16>
    %458 = vector.shape_cast %457 : vector<1x128x512xbf16> to vector<128x512xbf16>
    %cst_174 = arith.constant dense<0.000000e+00> : vector<8x512xf32>
    %459 = tpu.matmul %456, %458, %cst_174 {dimension_numbers = #tpu.dot_dimension_numbers<[1], [0], [0], [1], [0, 0, 1, 1], [], []>} : vector<8x128xbf16>, vector<128x512xbf16>, vector<8x512xf32> -> vector<8x512xf32>
    %460 = arith.addf %455, %459 : vector<8x512xf32>
    %461 = vector.extract_strided_slice %460 {offsets = [0, 0], sizes = [8, 256], strides = [1, 1]} : vector<8x512xf32> to vector<8x256xf32>
    %462 = arith.negf %461 : vector<8x256xf32>
    %463 = math.exp %462 : vector<8x256xf32>
    %cst_175 = arith.constant 1.000000e+00 : f32
    %464 = vector.broadcast %cst_175 : f32 to vector<8x256xf32>
    %465 = arith.addf %464, %463 : vector<8x256xf32>
    %466 = arith.divf %464, %465 : vector<8x256xf32>
    %467 = vector.extract_strided_slice %466 {offsets = [0, 0], sizes = [8, 128], strides = [1, 1]} : vector<8x256xf32> to vector<8x128xf32>
    %468 = vector.extract_strided_slice %466 {offsets = [0, 128], sizes = [8, 128], strides = [1, 1]} : vector<8x256xf32> to vector<8x128xf32>
    %469 = vector.extract_strided_slice %460 {offsets = [0, 256], sizes = [8, 128], strides = [1, 1]} : vector<8x512xf32> to vector<8x128xf32>
    %470 = math.tanh %469 : vector<8x128xf32>
    %471 = vector.extract_strided_slice %460 {offsets = [0, 384], sizes = [8, 128], strides = [1, 1]} : vector<8x512xf32> to vector<8x128xf32>
    %472 = arith.negf %471 : vector<8x128xf32>
    %473 = math.exp %472 : vector<8x128xf32>
    %cst_176 = arith.constant 1.000000e+00 : f32
    %474 = vector.broadcast %cst_176 : f32 to vector<8x128xf32>
    %475 = arith.addf %474, %473 : vector<8x128xf32>
    %476 = arith.divf %474, %475 : vector<8x128xf32>
    %477 = arith.mulf %468, %449 : vector<8x128xf32>
    %478 = arith.mulf %467, %470 : vector<8x128xf32>
    %479 = arith.addf %477, %478 : vector<8x128xf32>
    %480 = math.tanh %479 : vector<8x128xf32>
    %481 = arith.mulf %476, %480 : vector<8x128xf32>
    %cst_177 = arith.constant 0.000000e+00 : f32
    %482 = vector.broadcast %cst_177 : f32 to vector<8x128xf32>
    %483 = arith.maximumf %481, %482 : vector<8x128xf32>
    %c56_178 = arith.constant 56 : index
    %c0_179 = arith.constant 0 : index
    %484 = vector.load %arg8[%c56_178, %c0_179] : memref<64x128xf32, #tpu.memory_space<vmem>>, vector<8x128xf32>
    tpu.vector_store %arg8[%c56_178, %c0_179], %483 {strides = array<i32>} : memref<64x128xf32, #tpu.memory_space<vmem>>, vector<8x128xf32>,
    %c0_180 = arith.constant 0 : index
    %c0_181 = arith.constant 0 : index
    %485 = vector.load %arg8[%c0_180, %c0_181] : memref<64x128xf32, #tpu.memory_space<vmem>>, vector<64x128xf32>
    %486 = arith.truncf %485 : vector<64x128xf32> to vector<64x128xbf16>
    %c4 = arith.constant 4 : index
    %c0_182 = arith.constant 0 : index
    %c0_183 = arith.constant 0 : index
    %487 = vector.load %arg1[%c4, %c0_182, %c0_183] : memref<8x128x512xbf16, #tpu.memory_space<vmem>>, vector<1x128x512xbf16>
    %488 = vector.shape_cast %487 : vector<1x128x512xbf16> to vector<128x512xbf16>
    %cst_184 = arith.constant dense<0.000000e+00> : vector<64x512xf32>
    %489 = tpu.matmul %486, %488, %cst_184 {dimension_numbers = #tpu.dot_dimension_numbers<[1], [0], [0], [1], [0, 0, 1, 1], [], []>} : vector<64x128xbf16>, vector<128x512xbf16>, vector<64x512xf32> -> vector<64x512xf32>
    %c2_185 = arith.constant 2 : index
    %c0_186 = arith.constant 0 : index
    %490 = vector.load %arg2[%c2_185, %c0_186] : memref<4x512xf32, #tpu.memory_space<vmem>>, vector<1x512xf32>
    %491 = vector.broadcast %490 : vector<1x512xf32> to vector<64x512xf32>
    %492 = arith.addf %489, %491 : vector<64x512xf32>
    %c0_187 = arith.constant 0 : index
    %c0_188 = arith.constant 0 : index
    %493 = vector.load %arg6[%c0_187, %c0_188] : memref<64x512xf32, #tpu.memory_space<vmem>>, vector<64x512xf32>
    tpu.vector_store %arg6[%c0_187, %c0_188], %492 {strides = array<i32>} : memref<64x512xf32, #tpu.memory_space<vmem>>, vector<64x512xf32>,
    %cst_189 = arith.constant 0.000000e+00 : f32
    %494 = vector.broadcast %cst_189 : f32 to vector<8x128xf32>
    %cst_190 = arith.constant 0.000000e+00 : f32
    %495 = vector.broadcast %cst_190 : f32 to vector<8x128xf32>
    %c0_191 = arith.constant 0 : index
    %c0_192 = arith.constant 0 : index
    %496 = vector.load %arg6[%c0_191, %c0_192] : memref<64x512xf32, #tpu.memory_space<vmem>>, vector<8x512xf32>
    %497 = arith.truncf %494 : vector<8x128xf32> to vector<8x128xbf16>
    %c5 = arith.constant 5 : index
    %c0_193 = arith.constant 0 : index
    %c0_194 = arith.constant 0 : index
    %498 = vector.load %arg1[%c5, %c0_193, %c0_194] : memref<8x128x512xbf16, #tpu.memory_space<vmem>>, vector<1x128x512xbf16>
    %499 = vector.shape_cast %498 : vector<1x128x512xbf16> to vector<128x512xbf16>
    %cst_195 = arith.constant dense<0.000000e+00> : vector<8x512xf32>
    %500 = tpu.matmul %497, %499, %cst_195 {dimension_numbers = #tpu.dot_dimension_numbers<[1], [0], [0], [1], [0, 0, 1, 1], [], []>} : vector<8x128xbf16>, vector<128x512xbf16>, vector<8x512xf32> -> vector<8x512xf32>
    %501 = arith.addf %496, %500 : vector<8x512xf32>
    %502 = vector.extract_strided_slice %501 {offsets = [0, 0], sizes = [8, 256], strides = [1, 1]} : vector<8x512xf32> to vector<8x256xf32>
    %503 = arith.negf %502 : vector<8x256xf32>
    %504 = math.exp %503 : vector<8x256xf32>
    %cst_196 = arith.constant 1.000000e+00 : f32
    %505 = vector.broadcast %cst_196 : f32 to vector<8x256xf32>
    %506 = arith.addf %505, %504 : vector<8x256xf32>
    %507 = arith.divf %505, %506 : vector<8x256xf32>
    %508 = vector.extract_strided_slice %507 {offsets = [0, 0], sizes = [8, 128], strides = [1, 1]} : vector<8x256xf32> to vector<8x128xf32>
    %509 = vector.extract_strided_slice %507 {offsets = [0, 128], sizes = [8, 128], strides = [1, 1]} : vector<8x256xf32> to vector<8x128xf32>
    %510 = vector.extract_strided_slice %501 {offsets = [0, 256], sizes = [8, 128], strides = [1, 1]} : vector<8x512xf32> to vector<8x128xf32>
    %511 = math.tanh %510 : vector<8x128xf32>
    %512 = vector.extract_strided_slice %501 {offsets = [0, 384], sizes = [8, 128], strides = [1, 1]} : vector<8x512xf32> to vector<8x128xf32>
    %513 = arith.negf %512 : vector<8x128xf32>
    %514 = math.exp %513 : vector<8x128xf32>
    %cst_197 = arith.constant 1.000000e+00 : f32
    %515 = vector.broadcast %cst_197 : f32 to vector<8x128xf32>
    %516 = arith.addf %515, %514 : vector<8x128xf32>
    %517 = arith.divf %515, %516 : vector<8x128xf32>
    %518 = arith.mulf %509, %495 : vector<8x128xf32>
    %519 = arith.mulf %508, %511 : vector<8x128xf32>
    %520 = arith.addf %518, %519 : vector<8x128xf32>
    %521 = math.tanh %520 : vector<8x128xf32>
    %522 = arith.mulf %517, %521 : vector<8x128xf32>
    %c0_198 = arith.constant 0 : index
    %c0_199 = arith.constant 0 : index
    %523 = vector.load %arg7[%c0_198, %c0_199] : memref<64x128xf32, #tpu.memory_space<vmem>>, vector<8x128xf32>
    tpu.vector_store %arg7[%c0_198, %c0_199], %522 {strides = array<i32>} : memref<64x128xf32, #tpu.memory_space<vmem>>, vector<8x128xf32>,
    %c8_200 = arith.constant 8 : index
    %c0_201 = arith.constant 0 : index
    %524 = vector.load %arg6[%c8_200, %c0_201] : memref<64x512xf32, #tpu.memory_space<vmem>>, vector<8x512xf32>
    %525 = arith.truncf %522 : vector<8x128xf32> to vector<8x128xbf16>
    %c5_202 = arith.constant 5 : index
    %c0_203 = arith.constant 0 : index
    %c0_204 = arith.constant 0 : index
    %526 = vector.load %arg1[%c5_202, %c0_203, %c0_204] : memref<8x128x512xbf16, #tpu.memory_space<vmem>>, vector<1x128x512xbf16>
    %527 = vector.shape_cast %526 : vector<1x128x512xbf16> to vector<128x512xbf16>
    %cst_205 = arith.constant dense<0.000000e+00> : vector<8x512xf32>
    %528 = tpu.matmul %525, %527, %cst_205 {dimension_numbers = #tpu.dot_dimension_numbers<[1], [0], [0], [1], [0, 0, 1, 1], [], []>} : vector<8x128xbf16>, vector<128x512xbf16>, vector<8x512xf32> -> vector<8x512xf32>
    %529 = arith.addf %524, %528 : vector<8x512xf32>
    %530 = vector.extract_strided_slice %529 {offsets = [0, 0], sizes = [8, 256], strides = [1, 1]} : vector<8x512xf32> to vector<8x256xf32>
    %531 = arith.negf %530 : vector<8x256xf32>
    %532 = math.exp %531 : vector<8x256xf32>
    %cst_206 = arith.constant 1.000000e+00 : f32
    %533 = vector.broadcast %cst_206 : f32 to vector<8x256xf32>
    %534 = arith.addf %533, %532 : vector<8x256xf32>
    %535 = arith.divf %533, %534 : vector<8x256xf32>
    %536 = vector.extract_strided_slice %535 {offsets = [0, 0], sizes = [8, 128], strides = [1, 1]} : vector<8x256xf32> to vector<8x128xf32>
    %537 = vector.extract_strided_slice %535 {offsets = [0, 128], sizes = [8, 128], strides = [1, 1]} : vector<8x256xf32> to vector<8x128xf32>
    %538 = vector.extract_strided_slice %529 {offsets = [0, 256], sizes = [8, 128], strides = [1, 1]} : vector<8x512xf32> to vector<8x128xf32>
    %539 = math.tanh %538 : vector<8x128xf32>
    %540 = vector.extract_strided_slice %529 {offsets = [0, 384], sizes = [8, 128], strides = [1, 1]} : vector<8x512xf32> to vector<8x128xf32>
    %541 = arith.negf %540 : vector<8x128xf32>
    %542 = math.exp %541 : vector<8x128xf32>
    %cst_207 = arith.constant 1.000000e+00 : f32
    %543 = vector.broadcast %cst_207 : f32 to vector<8x128xf32>
    %544 = arith.addf %543, %542 : vector<8x128xf32>
    %545 = arith.divf %543, %544 : vector<8x128xf32>
    %546 = arith.mulf %537, %520 : vector<8x128xf32>
    %547 = arith.mulf %536, %539 : vector<8x128xf32>
    %548 = arith.addf %546, %547 : vector<8x128xf32>
    %549 = math.tanh %548 : vector<8x128xf32>
    %550 = arith.mulf %545, %549 : vector<8x128xf32>
    %c8_208 = arith.constant 8 : index
    %c0_209 = arith.constant 0 : index
    %551 = vector.load %arg7[%c8_208, %c0_209] : memref<64x128xf32, #tpu.memory_space<vmem>>, vector<8x128xf32>
    tpu.vector_store %arg7[%c8_208, %c0_209], %550 {strides = array<i32>} : memref<64x128xf32, #tpu.memory_space<vmem>>, vector<8x128xf32>,
    %c16_210 = arith.constant 16 : index
    %c0_211 = arith.constant 0 : index
    %552 = vector.load %arg6[%c16_210, %c0_211] : memref<64x512xf32, #tpu.memory_space<vmem>>, vector<8x512xf32>
    %553 = arith.truncf %550 : vector<8x128xf32> to vector<8x128xbf16>
    %c5_212 = arith.constant 5 : index
    %c0_213 = arith.constant 0 : index
    %c0_214 = arith.constant 0 : index
    %554 = vector.load %arg1[%c5_212, %c0_213, %c0_214] : memref<8x128x512xbf16, #tpu.memory_space<vmem>>, vector<1x128x512xbf16>
    %555 = vector.shape_cast %554 : vector<1x128x512xbf16> to vector<128x512xbf16>
    %cst_215 = arith.constant dense<0.000000e+00> : vector<8x512xf32>
    %556 = tpu.matmul %553, %555, %cst_215 {dimension_numbers = #tpu.dot_dimension_numbers<[1], [0], [0], [1], [0, 0, 1, 1], [], []>} : vector<8x128xbf16>, vector<128x512xbf16>, vector<8x512xf32> -> vector<8x512xf32>
    %557 = arith.addf %552, %556 : vector<8x512xf32>
    %558 = vector.extract_strided_slice %557 {offsets = [0, 0], sizes = [8, 256], strides = [1, 1]} : vector<8x512xf32> to vector<8x256xf32>
    %559 = arith.negf %558 : vector<8x256xf32>
    %560 = math.exp %559 : vector<8x256xf32>
    %cst_216 = arith.constant 1.000000e+00 : f32
    %561 = vector.broadcast %cst_216 : f32 to vector<8x256xf32>
    %562 = arith.addf %561, %560 : vector<8x256xf32>
    %563 = arith.divf %561, %562 : vector<8x256xf32>
    %564 = vector.extract_strided_slice %563 {offsets = [0, 0], sizes = [8, 128], strides = [1, 1]} : vector<8x256xf32> to vector<8x128xf32>
    %565 = vector.extract_strided_slice %563 {offsets = [0, 128], sizes = [8, 128], strides = [1, 1]} : vector<8x256xf32> to vector<8x128xf32>
    %566 = vector.extract_strided_slice %557 {offsets = [0, 256], sizes = [8, 128], strides = [1, 1]} : vector<8x512xf32> to vector<8x128xf32>
    %567 = math.tanh %566 : vector<8x128xf32>
    %568 = vector.extract_strided_slice %557 {offsets = [0, 384], sizes = [8, 128], strides = [1, 1]} : vector<8x512xf32> to vector<8x128xf32>
    %569 = arith.negf %568 : vector<8x128xf32>
    %570 = math.exp %569 : vector<8x128xf32>
    %cst_217 = arith.constant 1.000000e+00 : f32
    %571 = vector.broadcast %cst_217 : f32 to vector<8x128xf32>
    %572 = arith.addf %571, %570 : vector<8x128xf32>
    %573 = arith.divf %571, %572 : vector<8x128xf32>
    %574 = arith.mulf %565, %548 : vector<8x128xf32>
    %575 = arith.mulf %564, %567 : vector<8x128xf32>
    %576 = arith.addf %574, %575 : vector<8x128xf32>
    %577 = math.tanh %576 : vector<8x128xf32>
    %578 = arith.mulf %573, %577 : vector<8x128xf32>
    %c16_218 = arith.constant 16 : index
    %c0_219 = arith.constant 0 : index
    %579 = vector.load %arg7[%c16_218, %c0_219] : memref<64x128xf32, #tpu.memory_space<vmem>>, vector<8x128xf32>
    tpu.vector_store %arg7[%c16_218, %c0_219], %578 {strides = array<i32>} : memref<64x128xf32, #tpu.memory_space<vmem>>, vector<8x128xf32>,
    %c24_220 = arith.constant 24 : index
    %c0_221 = arith.constant 0 : index
    %580 = vector.load %arg6[%c24_220, %c0_221] : memref<64x512xf32, #tpu.memory_space<vmem>>, vector<8x512xf32>
    %581 = arith.truncf %578 : vector<8x128xf32> to vector<8x128xbf16>
    %c5_222 = arith.constant 5 : index
    %c0_223 = arith.constant 0 : index
    %c0_224 = arith.constant 0 : index
    %582 = vector.load %arg1[%c5_222, %c0_223, %c0_224] : memref<8x128x512xbf16, #tpu.memory_space<vmem>>, vector<1x128x512xbf16>
    %583 = vector.shape_cast %582 : vector<1x128x512xbf16> to vector<128x512xbf16>
    %cst_225 = arith.constant dense<0.000000e+00> : vector<8x512xf32>
    %584 = tpu.matmul %581, %583, %cst_225 {dimension_numbers = #tpu.dot_dimension_numbers<[1], [0], [0], [1], [0, 0, 1, 1], [], []>} : vector<8x128xbf16>, vector<128x512xbf16>, vector<8x512xf32> -> vector<8x512xf32>
    %585 = arith.addf %580, %584 : vector<8x512xf32>
    %586 = vector.extract_strided_slice %585 {offsets = [0, 0], sizes = [8, 256], strides = [1, 1]} : vector<8x512xf32> to vector<8x256xf32>
    %587 = arith.negf %586 : vector<8x256xf32>
    %588 = math.exp %587 : vector<8x256xf32>
    %cst_226 = arith.constant 1.000000e+00 : f32
    %589 = vector.broadcast %cst_226 : f32 to vector<8x256xf32>
    %590 = arith.addf %589, %588 : vector<8x256xf32>
    %591 = arith.divf %589, %590 : vector<8x256xf32>
    %592 = vector.extract_strided_slice %591 {offsets = [0, 0], sizes = [8, 128], strides = [1, 1]} : vector<8x256xf32> to vector<8x128xf32>
    %593 = vector.extract_strided_slice %591 {offsets = [0, 128], sizes = [8, 128], strides = [1, 1]} : vector<8x256xf32> to vector<8x128xf32>
    %594 = vector.extract_strided_slice %585 {offsets = [0, 256], sizes = [8, 128], strides = [1, 1]} : vector<8x512xf32> to vector<8x128xf32>
    %595 = math.tanh %594 : vector<8x128xf32>
    %596 = vector.extract_strided_slice %585 {offsets = [0, 384], sizes = [8, 128], strides = [1, 1]} : vector<8x512xf32> to vector<8x128xf32>
    %597 = arith.negf %596 : vector<8x128xf32>
    %598 = math.exp %597 : vector<8x128xf32>
    %cst_227 = arith.constant 1.000000e+00 : f32
    %599 = vector.broadcast %cst_227 : f32 to vector<8x128xf32>
    %600 = arith.addf %599, %598 : vector<8x128xf32>
    %601 = arith.divf %599, %600 : vector<8x128xf32>
    %602 = arith.mulf %593, %576 : vector<8x128xf32>
    %603 = arith.mulf %592, %595 : vector<8x128xf32>
    %604 = arith.addf %602, %603 : vector<8x128xf32>
    %605 = math.tanh %604 : vector<8x128xf32>
    %606 = arith.mulf %601, %605 : vector<8x128xf32>
    %c24_228 = arith.constant 24 : index
    %c0_229 = arith.constant 0 : index
    %607 = vector.load %arg7[%c24_228, %c0_229] : memref<64x128xf32, #tpu.memory_space<vmem>>, vector<8x128xf32>
    tpu.vector_store %arg7[%c24_228, %c0_229], %606 {strides = array<i32>} : memref<64x128xf32, #tpu.memory_space<vmem>>, vector<8x128xf32>,
    %c32_230 = arith.constant 32 : index
    %c0_231 = arith.constant 0 : index
    %608 = vector.load %arg6[%c32_230, %c0_231] : memref<64x512xf32, #tpu.memory_space<vmem>>, vector<8x512xf32>
    %609 = arith.truncf %606 : vector<8x128xf32> to vector<8x128xbf16>
    %c5_232 = arith.constant 5 : index
    %c0_233 = arith.constant 0 : index
    %c0_234 = arith.constant 0 : index
    %610 = vector.load %arg1[%c5_232, %c0_233, %c0_234] : memref<8x128x512xbf16, #tpu.memory_space<vmem>>, vector<1x128x512xbf16>
    %611 = vector.shape_cast %610 : vector<1x128x512xbf16> to vector<128x512xbf16>
    %cst_235 = arith.constant dense<0.000000e+00> : vector<8x512xf32>
    %612 = tpu.matmul %609, %611, %cst_235 {dimension_numbers = #tpu.dot_dimension_numbers<[1], [0], [0], [1], [0, 0, 1, 1], [], []>} : vector<8x128xbf16>, vector<128x512xbf16>, vector<8x512xf32> -> vector<8x512xf32>
    %613 = arith.addf %608, %612 : vector<8x512xf32>
    %614 = vector.extract_strided_slice %613 {offsets = [0, 0], sizes = [8, 256], strides = [1, 1]} : vector<8x512xf32> to vector<8x256xf32>
    %615 = arith.negf %614 : vector<8x256xf32>
    %616 = math.exp %615 : vector<8x256xf32>
    %cst_236 = arith.constant 1.000000e+00 : f32
    %617 = vector.broadcast %cst_236 : f32 to vector<8x256xf32>
    %618 = arith.addf %617, %616 : vector<8x256xf32>
    %619 = arith.divf %617, %618 : vector<8x256xf32>
    %620 = vector.extract_strided_slice %619 {offsets = [0, 0], sizes = [8, 128], strides = [1, 1]} : vector<8x256xf32> to vector<8x128xf32>
    %621 = vector.extract_strided_slice %619 {offsets = [0, 128], sizes = [8, 128], strides = [1, 1]} : vector<8x256xf32> to vector<8x128xf32>
    %622 = vector.extract_strided_slice %613 {offsets = [0, 256], sizes = [8, 128], strides = [1, 1]} : vector<8x512xf32> to vector<8x128xf32>
    %623 = math.tanh %622 : vector<8x128xf32>
    %624 = vector.extract_strided_slice %613 {offsets = [0, 384], sizes = [8, 128], strides = [1, 1]} : vector<8x512xf32> to vector<8x128xf32>
    %625 = arith.negf %624 : vector<8x128xf32>
    %626 = math.exp %625 : vector<8x128xf32>
    %cst_237 = arith.constant 1.000000e+00 : f32
    %627 = vector.broadcast %cst_237 : f32 to vector<8x128xf32>
    %628 = arith.addf %627, %626 : vector<8x128xf32>
    %629 = arith.divf %627, %628 : vector<8x128xf32>
    %630 = arith.mulf %621, %604 : vector<8x128xf32>
    %631 = arith.mulf %620, %623 : vector<8x128xf32>
    %632 = arith.addf %630, %631 : vector<8x128xf32>
    %633 = math.tanh %632 : vector<8x128xf32>
    %634 = arith.mulf %629, %633 : vector<8x128xf32>
    %c32_238 = arith.constant 32 : index
    %c0_239 = arith.constant 0 : index
    %635 = vector.load %arg7[%c32_238, %c0_239] : memref<64x128xf32, #tpu.memory_space<vmem>>, vector<8x128xf32>
    tpu.vector_store %arg7[%c32_238, %c0_239], %634 {strides = array<i32>} : memref<64x128xf32, #tpu.memory_space<vmem>>, vector<8x128xf32>,
    %c40_240 = arith.constant 40 : index
    %c0_241 = arith.constant 0 : index
    %636 = vector.load %arg6[%c40_240, %c0_241] : memref<64x512xf32, #tpu.memory_space<vmem>>, vector<8x512xf32>
    %637 = arith.truncf %634 : vector<8x128xf32> to vector<8x128xbf16>
    %c5_242 = arith.constant 5 : index
    %c0_243 = arith.constant 0 : index
    %c0_244 = arith.constant 0 : index
    %638 = vector.load %arg1[%c5_242, %c0_243, %c0_244] : memref<8x128x512xbf16, #tpu.memory_space<vmem>>, vector<1x128x512xbf16>
    %639 = vector.shape_cast %638 : vector<1x128x512xbf16> to vector<128x512xbf16>
    %cst_245 = arith.constant dense<0.000000e+00> : vector<8x512xf32>
    %640 = tpu.matmul %637, %639, %cst_245 {dimension_numbers = #tpu.dot_dimension_numbers<[1], [0], [0], [1], [0, 0, 1, 1], [], []>} : vector<8x128xbf16>, vector<128x512xbf16>, vector<8x512xf32> -> vector<8x512xf32>
    %641 = arith.addf %636, %640 : vector<8x512xf32>
    %642 = vector.extract_strided_slice %641 {offsets = [0, 0], sizes = [8, 256], strides = [1, 1]} : vector<8x512xf32> to vector<8x256xf32>
    %643 = arith.negf %642 : vector<8x256xf32>
    %644 = math.exp %643 : vector<8x256xf32>
    %cst_246 = arith.constant 1.000000e+00 : f32
    %645 = vector.broadcast %cst_246 : f32 to vector<8x256xf32>
    %646 = arith.addf %645, %644 : vector<8x256xf32>
    %647 = arith.divf %645, %646 : vector<8x256xf32>
    %648 = vector.extract_strided_slice %647 {offsets = [0, 0], sizes = [8, 128], strides = [1, 1]} : vector<8x256xf32> to vector<8x128xf32>
    %649 = vector.extract_strided_slice %647 {offsets = [0, 128], sizes = [8, 128], strides = [1, 1]} : vector<8x256xf32> to vector<8x128xf32>
    %650 = vector.extract_strided_slice %641 {offsets = [0, 256], sizes = [8, 128], strides = [1, 1]} : vector<8x512xf32> to vector<8x128xf32>
    %651 = math.tanh %650 : vector<8x128xf32>
    %652 = vector.extract_strided_slice %641 {offsets = [0, 384], sizes = [8, 128], strides = [1, 1]} : vector<8x512xf32> to vector<8x128xf32>
    %653 = arith.negf %652 : vector<8x128xf32>
    %654 = math.exp %653 : vector<8x128xf32>
    %cst_247 = arith.constant 1.000000e+00 : f32
    %655 = vector.broadcast %cst_247 : f32 to vector<8x128xf32>
    %656 = arith.addf %655, %654 : vector<8x128xf32>
    %657 = arith.divf %655, %656 : vector<8x128xf32>
    %658 = arith.mulf %649, %632 : vector<8x128xf32>
    %659 = arith.mulf %648, %651 : vector<8x128xf32>
    %660 = arith.addf %658, %659 : vector<8x128xf32>
    %661 = math.tanh %660 : vector<8x128xf32>
    %662 = arith.mulf %657, %661 : vector<8x128xf32>
    %c40_248 = arith.constant 40 : index
    %c0_249 = arith.constant 0 : index
    %663 = vector.load %arg7[%c40_248, %c0_249] : memref<64x128xf32, #tpu.memory_space<vmem>>, vector<8x128xf32>
    tpu.vector_store %arg7[%c40_248, %c0_249], %662 {strides = array<i32>} : memref<64x128xf32, #tpu.memory_space<vmem>>, vector<8x128xf32>,
    %c48_250 = arith.constant 48 : index
    %c0_251 = arith.constant 0 : index
    %664 = vector.load %arg6[%c48_250, %c0_251] : memref<64x512xf32, #tpu.memory_space<vmem>>, vector<8x512xf32>
    %665 = arith.truncf %662 : vector<8x128xf32> to vector<8x128xbf16>
    %c5_252 = arith.constant 5 : index
    %c0_253 = arith.constant 0 : index
    %c0_254 = arith.constant 0 : index
    %666 = vector.load %arg1[%c5_252, %c0_253, %c0_254] : memref<8x128x512xbf16, #tpu.memory_space<vmem>>, vector<1x128x512xbf16>
    %667 = vector.shape_cast %666 : vector<1x128x512xbf16> to vector<128x512xbf16>
    %cst_255 = arith.constant dense<0.000000e+00> : vector<8x512xf32>
    %668 = tpu.matmul %665, %667, %cst_255 {dimension_numbers = #tpu.dot_dimension_numbers<[1], [0], [0], [1], [0, 0, 1, 1], [], []>} : vector<8x128xbf16>, vector<128x512xbf16>, vector<8x512xf32> -> vector<8x512xf32>
    %669 = arith.addf %664, %668 : vector<8x512xf32>
    %670 = vector.extract_strided_slice %669 {offsets = [0, 0], sizes = [8, 256], strides = [1, 1]} : vector<8x512xf32> to vector<8x256xf32>
    %671 = arith.negf %670 : vector<8x256xf32>
    %672 = math.exp %671 : vector<8x256xf32>
    %cst_256 = arith.constant 1.000000e+00 : f32
    %673 = vector.broadcast %cst_256 : f32 to vector<8x256xf32>
    %674 = arith.addf %673, %672 : vector<8x256xf32>
    %675 = arith.divf %673, %674 : vector<8x256xf32>
    %676 = vector.extract_strided_slice %675 {offsets = [0, 0], sizes = [8, 128], strides = [1, 1]} : vector<8x256xf32> to vector<8x128xf32>
    %677 = vector.extract_strided_slice %675 {offsets = [0, 128], sizes = [8, 128], strides = [1, 1]} : vector<8x256xf32> to vector<8x128xf32>
    %678 = vector.extract_strided_slice %669 {offsets = [0, 256], sizes = [8, 128], strides = [1, 1]} : vector<8x512xf32> to vector<8x128xf32>
    %679 = math.tanh %678 : vector<8x128xf32>
    %680 = vector.extract_strided_slice %669 {offsets = [0, 384], sizes = [8, 128], strides = [1, 1]} : vector<8x512xf32> to vector<8x128xf32>
    %681 = arith.negf %680 : vector<8x128xf32>
    %682 = math.exp %681 : vector<8x128xf32>
    %cst_257 = arith.constant 1.000000e+00 : f32
    %683 = vector.broadcast %cst_257 : f32 to vector<8x128xf32>
    %684 = arith.addf %683, %682 : vector<8x128xf32>
    %685 = arith.divf %683, %684 : vector<8x128xf32>
    %686 = arith.mulf %677, %660 : vector<8x128xf32>
    %687 = arith.mulf %676, %679 : vector<8x128xf32>
    %688 = arith.addf %686, %687 : vector<8x128xf32>
    %689 = math.tanh %688 : vector<8x128xf32>
    %690 = arith.mulf %685, %689 : vector<8x128xf32>
    %c48_258 = arith.constant 48 : index
    %c0_259 = arith.constant 0 : index
    %691 = vector.load %arg7[%c48_258, %c0_259] : memref<64x128xf32, #tpu.memory_space<vmem>>, vector<8x128xf32>
    tpu.vector_store %arg7[%c48_258, %c0_259], %690 {strides = array<i32>} : memref<64x128xf32, #tpu.memory_space<vmem>>, vector<8x128xf32>,
    %c56_260 = arith.constant 56 : index
    %c0_261 = arith.constant 0 : index
    %692 = vector.load %arg6[%c56_260, %c0_261] : memref<64x512xf32, #tpu.memory_space<vmem>>, vector<8x512xf32>
    %693 = arith.truncf %690 : vector<8x128xf32> to vector<8x128xbf16>
    %c5_262 = arith.constant 5 : index
    %c0_263 = arith.constant 0 : index
    %c0_264 = arith.constant 0 : index
    %694 = vector.load %arg1[%c5_262, %c0_263, %c0_264] : memref<8x128x512xbf16, #tpu.memory_space<vmem>>, vector<1x128x512xbf16>
    %695 = vector.shape_cast %694 : vector<1x128x512xbf16> to vector<128x512xbf16>
    %cst_265 = arith.constant dense<0.000000e+00> : vector<8x512xf32>
    %696 = tpu.matmul %693, %695, %cst_265 {dimension_numbers = #tpu.dot_dimension_numbers<[1], [0], [0], [1], [0, 0, 1, 1], [], []>} : vector<8x128xbf16>, vector<128x512xbf16>, vector<8x512xf32> -> vector<8x512xf32>
    %697 = arith.addf %692, %696 : vector<8x512xf32>
    %698 = vector.extract_strided_slice %697 {offsets = [0, 0], sizes = [8, 256], strides = [1, 1]} : vector<8x512xf32> to vector<8x256xf32>
    %699 = arith.negf %698 : vector<8x256xf32>
    %700 = math.exp %699 : vector<8x256xf32>
    %cst_266 = arith.constant 1.000000e+00 : f32
    %701 = vector.broadcast %cst_266 : f32 to vector<8x256xf32>
    %702 = arith.addf %701, %700 : vector<8x256xf32>
    %703 = arith.divf %701, %702 : vector<8x256xf32>
    %704 = vector.extract_strided_slice %703 {offsets = [0, 0], sizes = [8, 128], strides = [1, 1]} : vector<8x256xf32> to vector<8x128xf32>
    %705 = vector.extract_strided_slice %703 {offsets = [0, 128], sizes = [8, 128], strides = [1, 1]} : vector<8x256xf32> to vector<8x128xf32>
    %706 = vector.extract_strided_slice %697 {offsets = [0, 256], sizes = [8, 128], strides = [1, 1]} : vector<8x512xf32> to vector<8x128xf32>
    %707 = math.tanh %706 : vector<8x128xf32>
    %708 = vector.extract_strided_slice %697 {offsets = [0, 384], sizes = [8, 128], strides = [1, 1]} : vector<8x512xf32> to vector<8x128xf32>
    %709 = arith.negf %708 : vector<8x128xf32>
    %710 = math.exp %709 : vector<8x128xf32>
    %cst_267 = arith.constant 1.000000e+00 : f32
    %711 = vector.broadcast %cst_267 : f32 to vector<8x128xf32>
    %712 = arith.addf %711, %710 : vector<8x128xf32>
    %713 = arith.divf %711, %712 : vector<8x128xf32>
    %714 = arith.mulf %705, %688 : vector<8x128xf32>
    %715 = arith.mulf %704, %707 : vector<8x128xf32>
    %716 = arith.addf %714, %715 : vector<8x128xf32>
    %717 = math.tanh %716 : vector<8x128xf32>
    %718 = arith.mulf %713, %717 : vector<8x128xf32>
    %c56_268 = arith.constant 56 : index
    %c0_269 = arith.constant 0 : index
    %719 = vector.load %arg7[%c56_268, %c0_269] : memref<64x128xf32, #tpu.memory_space<vmem>>, vector<8x128xf32>
    tpu.vector_store %arg7[%c56_268, %c0_269], %718 {strides = array<i32>} : memref<64x128xf32, #tpu.memory_space<vmem>>, vector<8x128xf32>,
    %c0_270 = arith.constant 0 : index
    %c0_271 = arith.constant 0 : index
    %720 = vector.load %arg7[%c0_270, %c0_271] : memref<64x128xf32, #tpu.memory_space<vmem>>, vector<64x128xf32>
    %721 = arith.truncf %720 : vector<64x128xf32> to vector<64x128xbf16>
    %c6 = arith.constant 6 : index
    %c0_272 = arith.constant 0 : index
    %c0_273 = arith.constant 0 : index
    %722 = vector.load %arg1[%c6, %c0_272, %c0_273] : memref<8x128x512xbf16, #tpu.memory_space<vmem>>, vector<1x128x512xbf16>
    %723 = vector.shape_cast %722 : vector<1x128x512xbf16> to vector<128x512xbf16>
    %cst_274 = arith.constant dense<0.000000e+00> : vector<64x512xf32>
    %724 = tpu.matmul %721, %723, %cst_274 {dimension_numbers = #tpu.dot_dimension_numbers<[1], [0], [0], [1], [0, 0, 1, 1], [], []>} : vector<64x128xbf16>, vector<128x512xbf16>, vector<64x512xf32> -> vector<64x512xf32>
    %c3_275 = arith.constant 3 : index
    %c0_276 = arith.constant 0 : index
    %725 = vector.load %arg2[%c3_275, %c0_276] : memref<4x512xf32, #tpu.memory_space<vmem>>, vector<1x512xf32>
    %726 = vector.broadcast %725 : vector<1x512xf32> to vector<64x512xf32>
    %727 = arith.addf %724, %726 : vector<64x512xf32>
    %c0_277 = arith.constant 0 : index
    %c0_278 = arith.constant 0 : index
    %728 = vector.load %arg6[%c0_277, %c0_278] : memref<64x512xf32, #tpu.memory_space<vmem>>, vector<64x512xf32>
    tpu.vector_store %arg6[%c0_277, %c0_278], %727 {strides = array<i32>} : memref<64x512xf32, #tpu.memory_space<vmem>>, vector<64x512xf32>,
    %cst_279 = arith.constant 0.000000e+00 : f32
    %729 = vector.broadcast %cst_279 : f32 to vector<8x128xf32>
    %cst_280 = arith.constant 0.000000e+00 : f32
    %730 = vector.broadcast %cst_280 : f32 to vector<8x128xf32>
    %c0_281 = arith.constant 0 : index
    %c0_282 = arith.constant 0 : index
    %731 = vector.load %arg6[%c0_281, %c0_282] : memref<64x512xf32, #tpu.memory_space<vmem>>, vector<8x512xf32>
    %732 = arith.truncf %729 : vector<8x128xf32> to vector<8x128xbf16>
    %c7 = arith.constant 7 : index
    %c0_283 = arith.constant 0 : index
    %c0_284 = arith.constant 0 : index
    %733 = vector.load %arg1[%c7, %c0_283, %c0_284] : memref<8x128x512xbf16, #tpu.memory_space<vmem>>, vector<1x128x512xbf16>
    %734 = vector.shape_cast %733 : vector<1x128x512xbf16> to vector<128x512xbf16>
    %cst_285 = arith.constant dense<0.000000e+00> : vector<8x512xf32>
    %735 = tpu.matmul %732, %734, %cst_285 {dimension_numbers = #tpu.dot_dimension_numbers<[1], [0], [0], [1], [0, 0, 1, 1], [], []>} : vector<8x128xbf16>, vector<128x512xbf16>, vector<8x512xf32> -> vector<8x512xf32>
    %736 = arith.addf %731, %735 : vector<8x512xf32>
    %737 = vector.extract_strided_slice %736 {offsets = [0, 0], sizes = [8, 256], strides = [1, 1]} : vector<8x512xf32> to vector<8x256xf32>
    %738 = arith.negf %737 : vector<8x256xf32>
    %739 = math.exp %738 : vector<8x256xf32>
    %cst_286 = arith.constant 1.000000e+00 : f32
    %740 = vector.broadcast %cst_286 : f32 to vector<8x256xf32>
    %741 = arith.addf %740, %739 : vector<8x256xf32>
    %742 = arith.divf %740, %741 : vector<8x256xf32>
    %743 = vector.extract_strided_slice %742 {offsets = [0, 0], sizes = [8, 128], strides = [1, 1]} : vector<8x256xf32> to vector<8x128xf32>
    %744 = vector.extract_strided_slice %742 {offsets = [0, 128], sizes = [8, 128], strides = [1, 1]} : vector<8x256xf32> to vector<8x128xf32>
    %745 = vector.extract_strided_slice %736 {offsets = [0, 256], sizes = [8, 128], strides = [1, 1]} : vector<8x512xf32> to vector<8x128xf32>
    %746 = math.tanh %745 : vector<8x128xf32>
    %747 = vector.extract_strided_slice %736 {offsets = [0, 384], sizes = [8, 128], strides = [1, 1]} : vector<8x512xf32> to vector<8x128xf32>
    %748 = arith.negf %747 : vector<8x128xf32>
    %749 = math.exp %748 : vector<8x128xf32>
    %cst_287 = arith.constant 1.000000e+00 : f32
    %750 = vector.broadcast %cst_287 : f32 to vector<8x128xf32>
    %751 = arith.addf %750, %749 : vector<8x128xf32>
    %752 = arith.divf %750, %751 : vector<8x128xf32>
    %753 = arith.mulf %744, %730 : vector<8x128xf32>
    %754 = arith.mulf %743, %746 : vector<8x128xf32>
    %755 = arith.addf %753, %754 : vector<8x128xf32>
    %756 = math.tanh %755 : vector<8x128xf32>
    %757 = arith.mulf %752, %756 : vector<8x128xf32>
    %cst_288 = arith.constant 0.000000e+00 : f32
    %758 = vector.broadcast %cst_288 : f32 to vector<8x128xf32>
    %759 = arith.maximumf %757, %758 : vector<8x128xf32>
    %c0_289 = arith.constant 0 : index
    %c0_290 = arith.constant 0 : index
    %760 = vector.load %arg8[%c0_289, %c0_290] : memref<64x128xf32, #tpu.memory_space<vmem>>, vector<8x128xf32>
    tpu.vector_store %arg8[%c0_289, %c0_290], %759 {strides = array<i32>} : memref<64x128xf32, #tpu.memory_space<vmem>>, vector<8x128xf32>,
    %c8_291 = arith.constant 8 : index
    %c0_292 = arith.constant 0 : index
    %761 = vector.load %arg6[%c8_291, %c0_292] : memref<64x512xf32, #tpu.memory_space<vmem>>, vector<8x512xf32>
    %762 = arith.truncf %757 : vector<8x128xf32> to vector<8x128xbf16>
    %c7_293 = arith.constant 7 : index
    %c0_294 = arith.constant 0 : index
    %c0_295 = arith.constant 0 : index
    %763 = vector.load %arg1[%c7_293, %c0_294, %c0_295] : memref<8x128x512xbf16, #tpu.memory_space<vmem>>, vector<1x128x512xbf16>
    %764 = vector.shape_cast %763 : vector<1x128x512xbf16> to vector<128x512xbf16>
    %cst_296 = arith.constant dense<0.000000e+00> : vector<8x512xf32>
    %765 = tpu.matmul %762, %764, %cst_296 {dimension_numbers = #tpu.dot_dimension_numbers<[1], [0], [0], [1], [0, 0, 1, 1], [], []>} : vector<8x128xbf16>, vector<128x512xbf16>, vector<8x512xf32> -> vector<8x512xf32>
    %766 = arith.addf %761, %765 : vector<8x512xf32>
    %767 = vector.extract_strided_slice %766 {offsets = [0, 0], sizes = [8, 256], strides = [1, 1]} : vector<8x512xf32> to vector<8x256xf32>
    %768 = arith.negf %767 : vector<8x256xf32>
    %769 = math.exp %768 : vector<8x256xf32>
    %cst_297 = arith.constant 1.000000e+00 : f32
    %770 = vector.broadcast %cst_297 : f32 to vector<8x256xf32>
    %771 = arith.addf %770, %769 : vector<8x256xf32>
    %772 = arith.divf %770, %771 : vector<8x256xf32>
    %773 = vector.extract_strided_slice %772 {offsets = [0, 0], sizes = [8, 128], strides = [1, 1]} : vector<8x256xf32> to vector<8x128xf32>
    %774 = vector.extract_strided_slice %772 {offsets = [0, 128], sizes = [8, 128], strides = [1, 1]} : vector<8x256xf32> to vector<8x128xf32>
    %775 = vector.extract_strided_slice %766 {offsets = [0, 256], sizes = [8, 128], strides = [1, 1]} : vector<8x512xf32> to vector<8x128xf32>
    %776 = math.tanh %775 : vector<8x128xf32>
    %777 = vector.extract_strided_slice %766 {offsets = [0, 384], sizes = [8, 128], strides = [1, 1]} : vector<8x512xf32> to vector<8x128xf32>
    %778 = arith.negf %777 : vector<8x128xf32>
    %779 = math.exp %778 : vector<8x128xf32>
    %cst_298 = arith.constant 1.000000e+00 : f32
    %780 = vector.broadcast %cst_298 : f32 to vector<8x128xf32>
    %781 = arith.addf %780, %779 : vector<8x128xf32>
    %782 = arith.divf %780, %781 : vector<8x128xf32>
    %783 = arith.mulf %774, %755 : vector<8x128xf32>
    %784 = arith.mulf %773, %776 : vector<8x128xf32>
    %785 = arith.addf %783, %784 : vector<8x128xf32>
    %786 = math.tanh %785 : vector<8x128xf32>
    %787 = arith.mulf %782, %786 : vector<8x128xf32>
    %cst_299 = arith.constant 0.000000e+00 : f32
    %788 = vector.broadcast %cst_299 : f32 to vector<8x128xf32>
    %789 = arith.maximumf %787, %788 : vector<8x128xf32>
    %c8_300 = arith.constant 8 : index
    %c0_301 = arith.constant 0 : index
    %790 = vector.load %arg8[%c8_300, %c0_301] : memref<64x128xf32, #tpu.memory_space<vmem>>, vector<8x128xf32>
    tpu.vector_store %arg8[%c8_300, %c0_301], %789 {strides = array<i32>} : memref<64x128xf32, #tpu.memory_space<vmem>>, vector<8x128xf32>,
    %c16_302 = arith.constant 16 : index
    %c0_303 = arith.constant 0 : index
    %791 = vector.load %arg6[%c16_302, %c0_303] : memref<64x512xf32, #tpu.memory_space<vmem>>, vector<8x512xf32>
    %792 = arith.truncf %787 : vector<8x128xf32> to vector<8x128xbf16>
    %c7_304 = arith.constant 7 : index
    %c0_305 = arith.constant 0 : index
    %c0_306 = arith.constant 0 : index
    %793 = vector.load %arg1[%c7_304, %c0_305, %c0_306] : memref<8x128x512xbf16, #tpu.memory_space<vmem>>, vector<1x128x512xbf16>
    %794 = vector.shape_cast %793 : vector<1x128x512xbf16> to vector<128x512xbf16>
    %cst_307 = arith.constant dense<0.000000e+00> : vector<8x512xf32>
    %795 = tpu.matmul %792, %794, %cst_307 {dimension_numbers = #tpu.dot_dimension_numbers<[1], [0], [0], [1], [0, 0, 1, 1], [], []>} : vector<8x128xbf16>, vector<128x512xbf16>, vector<8x512xf32> -> vector<8x512xf32>
    %796 = arith.addf %791, %795 : vector<8x512xf32>
    %797 = vector.extract_strided_slice %796 {offsets = [0, 0], sizes = [8, 256], strides = [1, 1]} : vector<8x512xf32> to vector<8x256xf32>
    %798 = arith.negf %797 : vector<8x256xf32>
    %799 = math.exp %798 : vector<8x256xf32>
    %cst_308 = arith.constant 1.000000e+00 : f32
    %800 = vector.broadcast %cst_308 : f32 to vector<8x256xf32>
    %801 = arith.addf %800, %799 : vector<8x256xf32>
    %802 = arith.divf %800, %801 : vector<8x256xf32>
    %803 = vector.extract_strided_slice %802 {offsets = [0, 0], sizes = [8, 128], strides = [1, 1]} : vector<8x256xf32> to vector<8x128xf32>
    %804 = vector.extract_strided_slice %802 {offsets = [0, 128], sizes = [8, 128], strides = [1, 1]} : vector<8x256xf32> to vector<8x128xf32>
    %805 = vector.extract_strided_slice %796 {offsets = [0, 256], sizes = [8, 128], strides = [1, 1]} : vector<8x512xf32> to vector<8x128xf32>
    %806 = math.tanh %805 : vector<8x128xf32>
    %807 = vector.extract_strided_slice %796 {offsets = [0, 384], sizes = [8, 128], strides = [1, 1]} : vector<8x512xf32> to vector<8x128xf32>
    %808 = arith.negf %807 : vector<8x128xf32>
    %809 = math.exp %808 : vector<8x128xf32>
    %cst_309 = arith.constant 1.000000e+00 : f32
    %810 = vector.broadcast %cst_309 : f32 to vector<8x128xf32>
    %811 = arith.addf %810, %809 : vector<8x128xf32>
    %812 = arith.divf %810, %811 : vector<8x128xf32>
    %813 = arith.mulf %804, %785 : vector<8x128xf32>
    %814 = arith.mulf %803, %806 : vector<8x128xf32>
    %815 = arith.addf %813, %814 : vector<8x128xf32>
    %816 = math.tanh %815 : vector<8x128xf32>
    %817 = arith.mulf %812, %816 : vector<8x128xf32>
    %cst_310 = arith.constant 0.000000e+00 : f32
    %818 = vector.broadcast %cst_310 : f32 to vector<8x128xf32>
    %819 = arith.maximumf %817, %818 : vector<8x128xf32>
    %c16_311 = arith.constant 16 : index
    %c0_312 = arith.constant 0 : index
    %820 = vector.load %arg8[%c16_311, %c0_312] : memref<64x128xf32, #tpu.memory_space<vmem>>, vector<8x128xf32>
    tpu.vector_store %arg8[%c16_311, %c0_312], %819 {strides = array<i32>} : memref<64x128xf32, #tpu.memory_space<vmem>>, vector<8x128xf32>,
    %c24_313 = arith.constant 24 : index
    %c0_314 = arith.constant 0 : index
    %821 = vector.load %arg6[%c24_313, %c0_314] : memref<64x512xf32, #tpu.memory_space<vmem>>, vector<8x512xf32>
    %822 = arith.truncf %817 : vector<8x128xf32> to vector<8x128xbf16>
    %c7_315 = arith.constant 7 : index
    %c0_316 = arith.constant 0 : index
    %c0_317 = arith.constant 0 : index
    %823 = vector.load %arg1[%c7_315, %c0_316, %c0_317] : memref<8x128x512xbf16, #tpu.memory_space<vmem>>, vector<1x128x512xbf16>
    %824 = vector.shape_cast %823 : vector<1x128x512xbf16> to vector<128x512xbf16>
    %cst_318 = arith.constant dense<0.000000e+00> : vector<8x512xf32>
    %825 = tpu.matmul %822, %824, %cst_318 {dimension_numbers = #tpu.dot_dimension_numbers<[1], [0], [0], [1], [0, 0, 1, 1], [], []>} : vector<8x128xbf16>, vector<128x512xbf16>, vector<8x512xf32> -> vector<8x512xf32>
    %826 = arith.addf %821, %825 : vector<8x512xf32>
    %827 = vector.extract_strided_slice %826 {offsets = [0, 0], sizes = [8, 256], strides = [1, 1]} : vector<8x512xf32> to vector<8x256xf32>
    %828 = arith.negf %827 : vector<8x256xf32>
    %829 = math.exp %828 : vector<8x256xf32>
    %cst_319 = arith.constant 1.000000e+00 : f32
    %830 = vector.broadcast %cst_319 : f32 to vector<8x256xf32>
    %831 = arith.addf %830, %829 : vector<8x256xf32>
    %832 = arith.divf %830, %831 : vector<8x256xf32>
    %833 = vector.extract_strided_slice %832 {offsets = [0, 0], sizes = [8, 128], strides = [1, 1]} : vector<8x256xf32> to vector<8x128xf32>
    %834 = vector.extract_strided_slice %832 {offsets = [0, 128], sizes = [8, 128], strides = [1, 1]} : vector<8x256xf32> to vector<8x128xf32>
    %835 = vector.extract_strided_slice %826 {offsets = [0, 256], sizes = [8, 128], strides = [1, 1]} : vector<8x512xf32> to vector<8x128xf32>
    %836 = math.tanh %835 : vector<8x128xf32>
    %837 = vector.extract_strided_slice %826 {offsets = [0, 384], sizes = [8, 128], strides = [1, 1]} : vector<8x512xf32> to vector<8x128xf32>
    %838 = arith.negf %837 : vector<8x128xf32>
    %839 = math.exp %838 : vector<8x128xf32>
    %cst_320 = arith.constant 1.000000e+00 : f32
    %840 = vector.broadcast %cst_320 : f32 to vector<8x128xf32>
    %841 = arith.addf %840, %839 : vector<8x128xf32>
    %842 = arith.divf %840, %841 : vector<8x128xf32>
    %843 = arith.mulf %834, %815 : vector<8x128xf32>
    %844 = arith.mulf %833, %836 : vector<8x128xf32>
    %845 = arith.addf %843, %844 : vector<8x128xf32>
    %846 = math.tanh %845 : vector<8x128xf32>
    %847 = arith.mulf %842, %846 : vector<8x128xf32>
    %cst_321 = arith.constant 0.000000e+00 : f32
    %848 = vector.broadcast %cst_321 : f32 to vector<8x128xf32>
    %849 = arith.maximumf %847, %848 : vector<8x128xf32>
    %c24_322 = arith.constant 24 : index
    %c0_323 = arith.constant 0 : index
    %850 = vector.load %arg8[%c24_322, %c0_323] : memref<64x128xf32, #tpu.memory_space<vmem>>, vector<8x128xf32>
    tpu.vector_store %arg8[%c24_322, %c0_323], %849 {strides = array<i32>} : memref<64x128xf32, #tpu.memory_space<vmem>>, vector<8x128xf32>,
    %c32_324 = arith.constant 32 : index
    %c0_325 = arith.constant 0 : index
    %851 = vector.load %arg6[%c32_324, %c0_325] : memref<64x512xf32, #tpu.memory_space<vmem>>, vector<8x512xf32>
    %852 = arith.truncf %847 : vector<8x128xf32> to vector<8x128xbf16>
    %c7_326 = arith.constant 7 : index
    %c0_327 = arith.constant 0 : index
    %c0_328 = arith.constant 0 : index
    %853 = vector.load %arg1[%c7_326, %c0_327, %c0_328] : memref<8x128x512xbf16, #tpu.memory_space<vmem>>, vector<1x128x512xbf16>
    %854 = vector.shape_cast %853 : vector<1x128x512xbf16> to vector<128x512xbf16>
    %cst_329 = arith.constant dense<0.000000e+00> : vector<8x512xf32>
    %855 = tpu.matmul %852, %854, %cst_329 {dimension_numbers = #tpu.dot_dimension_numbers<[1], [0], [0], [1], [0, 0, 1, 1], [], []>} : vector<8x128xbf16>, vector<128x512xbf16>, vector<8x512xf32> -> vector<8x512xf32>
    %856 = arith.addf %851, %855 : vector<8x512xf32>
    %857 = vector.extract_strided_slice %856 {offsets = [0, 0], sizes = [8, 256], strides = [1, 1]} : vector<8x512xf32> to vector<8x256xf32>
    %858 = arith.negf %857 : vector<8x256xf32>
    %859 = math.exp %858 : vector<8x256xf32>
    %cst_330 = arith.constant 1.000000e+00 : f32
    %860 = vector.broadcast %cst_330 : f32 to vector<8x256xf32>
    %861 = arith.addf %860, %859 : vector<8x256xf32>
    %862 = arith.divf %860, %861 : vector<8x256xf32>
    %863 = vector.extract_strided_slice %862 {offsets = [0, 0], sizes = [8, 128], strides = [1, 1]} : vector<8x256xf32> to vector<8x128xf32>
    %864 = vector.extract_strided_slice %862 {offsets = [0, 128], sizes = [8, 128], strides = [1, 1]} : vector<8x256xf32> to vector<8x128xf32>
    %865 = vector.extract_strided_slice %856 {offsets = [0, 256], sizes = [8, 128], strides = [1, 1]} : vector<8x512xf32> to vector<8x128xf32>
    %866 = math.tanh %865 : vector<8x128xf32>
    %867 = vector.extract_strided_slice %856 {offsets = [0, 384], sizes = [8, 128], strides = [1, 1]} : vector<8x512xf32> to vector<8x128xf32>
    %868 = arith.negf %867 : vector<8x128xf32>
    %869 = math.exp %868 : vector<8x128xf32>
    %cst_331 = arith.constant 1.000000e+00 : f32
    %870 = vector.broadcast %cst_331 : f32 to vector<8x128xf32>
    %871 = arith.addf %870, %869 : vector<8x128xf32>
    %872 = arith.divf %870, %871 : vector<8x128xf32>
    %873 = arith.mulf %864, %845 : vector<8x128xf32>
    %874 = arith.mulf %863, %866 : vector<8x128xf32>
    %875 = arith.addf %873, %874 : vector<8x128xf32>
    %876 = math.tanh %875 : vector<8x128xf32>
    %877 = arith.mulf %872, %876 : vector<8x128xf32>
    %cst_332 = arith.constant 0.000000e+00 : f32
    %878 = vector.broadcast %cst_332 : f32 to vector<8x128xf32>
    %879 = arith.maximumf %877, %878 : vector<8x128xf32>
    %c32_333 = arith.constant 32 : index
    %c0_334 = arith.constant 0 : index
    %880 = vector.load %arg8[%c32_333, %c0_334] : memref<64x128xf32, #tpu.memory_space<vmem>>, vector<8x128xf32>
    tpu.vector_store %arg8[%c32_333, %c0_334], %879 {strides = array<i32>} : memref<64x128xf32, #tpu.memory_space<vmem>>, vector<8x128xf32>,
    %c40_335 = arith.constant 40 : index
    %c0_336 = arith.constant 0 : index
    %881 = vector.load %arg6[%c40_335, %c0_336] : memref<64x512xf32, #tpu.memory_space<vmem>>, vector<8x512xf32>
    %882 = arith.truncf %877 : vector<8x128xf32> to vector<8x128xbf16>
    %c7_337 = arith.constant 7 : index
    %c0_338 = arith.constant 0 : index
    %c0_339 = arith.constant 0 : index
    %883 = vector.load %arg1[%c7_337, %c0_338, %c0_339] : memref<8x128x512xbf16, #tpu.memory_space<vmem>>, vector<1x128x512xbf16>
    %884 = vector.shape_cast %883 : vector<1x128x512xbf16> to vector<128x512xbf16>
    %cst_340 = arith.constant dense<0.000000e+00> : vector<8x512xf32>
    %885 = tpu.matmul %882, %884, %cst_340 {dimension_numbers = #tpu.dot_dimension_numbers<[1], [0], [0], [1], [0, 0, 1, 1], [], []>} : vector<8x128xbf16>, vector<128x512xbf16>, vector<8x512xf32> -> vector<8x512xf32>
    %886 = arith.addf %881, %885 : vector<8x512xf32>
    %887 = vector.extract_strided_slice %886 {offsets = [0, 0], sizes = [8, 256], strides = [1, 1]} : vector<8x512xf32> to vector<8x256xf32>
    %888 = arith.negf %887 : vector<8x256xf32>
    %889 = math.exp %888 : vector<8x256xf32>
    %cst_341 = arith.constant 1.000000e+00 : f32
    %890 = vector.broadcast %cst_341 : f32 to vector<8x256xf32>
    %891 = arith.addf %890, %889 : vector<8x256xf32>
    %892 = arith.divf %890, %891 : vector<8x256xf32>
    %893 = vector.extract_strided_slice %892 {offsets = [0, 0], sizes = [8, 128], strides = [1, 1]} : vector<8x256xf32> to vector<8x128xf32>
    %894 = vector.extract_strided_slice %892 {offsets = [0, 128], sizes = [8, 128], strides = [1, 1]} : vector<8x256xf32> to vector<8x128xf32>
    %895 = vector.extract_strided_slice %886 {offsets = [0, 256], sizes = [8, 128], strides = [1, 1]} : vector<8x512xf32> to vector<8x128xf32>
    %896 = math.tanh %895 : vector<8x128xf32>
    %897 = vector.extract_strided_slice %886 {offsets = [0, 384], sizes = [8, 128], strides = [1, 1]} : vector<8x512xf32> to vector<8x128xf32>
    %898 = arith.negf %897 : vector<8x128xf32>
    %899 = math.exp %898 : vector<8x128xf32>
    %cst_342 = arith.constant 1.000000e+00 : f32
    %900 = vector.broadcast %cst_342 : f32 to vector<8x128xf32>
    %901 = arith.addf %900, %899 : vector<8x128xf32>
    %902 = arith.divf %900, %901 : vector<8x128xf32>
    %903 = arith.mulf %894, %875 : vector<8x128xf32>
    %904 = arith.mulf %893, %896 : vector<8x128xf32>
    %905 = arith.addf %903, %904 : vector<8x128xf32>
    %906 = math.tanh %905 : vector<8x128xf32>
    %907 = arith.mulf %902, %906 : vector<8x128xf32>
    %cst_343 = arith.constant 0.000000e+00 : f32
    %908 = vector.broadcast %cst_343 : f32 to vector<8x128xf32>
    %909 = arith.maximumf %907, %908 : vector<8x128xf32>
    %c40_344 = arith.constant 40 : index
    %c0_345 = arith.constant 0 : index
    %910 = vector.load %arg8[%c40_344, %c0_345] : memref<64x128xf32, #tpu.memory_space<vmem>>, vector<8x128xf32>
    tpu.vector_store %arg8[%c40_344, %c0_345], %909 {strides = array<i32>} : memref<64x128xf32, #tpu.memory_space<vmem>>, vector<8x128xf32>,
    %c48_346 = arith.constant 48 : index
    %c0_347 = arith.constant 0 : index
    %911 = vector.load %arg6[%c48_346, %c0_347] : memref<64x512xf32, #tpu.memory_space<vmem>>, vector<8x512xf32>
    %912 = arith.truncf %907 : vector<8x128xf32> to vector<8x128xbf16>
    %c7_348 = arith.constant 7 : index
    %c0_349 = arith.constant 0 : index
    %c0_350 = arith.constant 0 : index
    %913 = vector.load %arg1[%c7_348, %c0_349, %c0_350] : memref<8x128x512xbf16, #tpu.memory_space<vmem>>, vector<1x128x512xbf16>
    %914 = vector.shape_cast %913 : vector<1x128x512xbf16> to vector<128x512xbf16>
    %cst_351 = arith.constant dense<0.000000e+00> : vector<8x512xf32>
    %915 = tpu.matmul %912, %914, %cst_351 {dimension_numbers = #tpu.dot_dimension_numbers<[1], [0], [0], [1], [0, 0, 1, 1], [], []>} : vector<8x128xbf16>, vector<128x512xbf16>, vector<8x512xf32> -> vector<8x512xf32>
    %916 = arith.addf %911, %915 : vector<8x512xf32>
    %917 = vector.extract_strided_slice %916 {offsets = [0, 0], sizes = [8, 256], strides = [1, 1]} : vector<8x512xf32> to vector<8x256xf32>
    %918 = arith.negf %917 : vector<8x256xf32>
    %919 = math.exp %918 : vector<8x256xf32>
    %cst_352 = arith.constant 1.000000e+00 : f32
    %920 = vector.broadcast %cst_352 : f32 to vector<8x256xf32>
    %921 = arith.addf %920, %919 : vector<8x256xf32>
    %922 = arith.divf %920, %921 : vector<8x256xf32>
    %923 = vector.extract_strided_slice %922 {offsets = [0, 0], sizes = [8, 128], strides = [1, 1]} : vector<8x256xf32> to vector<8x128xf32>
    %924 = vector.extract_strided_slice %922 {offsets = [0, 128], sizes = [8, 128], strides = [1, 1]} : vector<8x256xf32> to vector<8x128xf32>
    %925 = vector.extract_strided_slice %916 {offsets = [0, 256], sizes = [8, 128], strides = [1, 1]} : vector<8x512xf32> to vector<8x128xf32>
    %926 = math.tanh %925 : vector<8x128xf32>
    %927 = vector.extract_strided_slice %916 {offsets = [0, 384], sizes = [8, 128], strides = [1, 1]} : vector<8x512xf32> to vector<8x128xf32>
    %928 = arith.negf %927 : vector<8x128xf32>
    %929 = math.exp %928 : vector<8x128xf32>
    %cst_353 = arith.constant 1.000000e+00 : f32
    %930 = vector.broadcast %cst_353 : f32 to vector<8x128xf32>
    %931 = arith.addf %930, %929 : vector<8x128xf32>
    %932 = arith.divf %930, %931 : vector<8x128xf32>
    %933 = arith.mulf %924, %905 : vector<8x128xf32>
    %934 = arith.mulf %923, %926 : vector<8x128xf32>
    %935 = arith.addf %933, %934 : vector<8x128xf32>
    %936 = math.tanh %935 : vector<8x128xf32>
    %937 = arith.mulf %932, %936 : vector<8x128xf32>
    %cst_354 = arith.constant 0.000000e+00 : f32
    %938 = vector.broadcast %cst_354 : f32 to vector<8x128xf32>
    %939 = arith.maximumf %937, %938 : vector<8x128xf32>
    %c48_355 = arith.constant 48 : index
    %c0_356 = arith.constant 0 : index
    %940 = vector.load %arg8[%c48_355, %c0_356] : memref<64x128xf32, #tpu.memory_space<vmem>>, vector<8x128xf32>
    tpu.vector_store %arg8[%c48_355, %c0_356], %939 {strides = array<i32>} : memref<64x128xf32, #tpu.memory_space<vmem>>, vector<8x128xf32>,
    %c56_357 = arith.constant 56 : index
    %c0_358 = arith.constant 0 : index
    %941 = vector.load %arg6[%c56_357, %c0_358] : memref<64x512xf32, #tpu.memory_space<vmem>>, vector<8x512xf32>
    %942 = arith.truncf %937 : vector<8x128xf32> to vector<8x128xbf16>
    %c7_359 = arith.constant 7 : index
    %c0_360 = arith.constant 0 : index
    %c0_361 = arith.constant 0 : index
    %943 = vector.load %arg1[%c7_359, %c0_360, %c0_361] : memref<8x128x512xbf16, #tpu.memory_space<vmem>>, vector<1x128x512xbf16>
    %944 = vector.shape_cast %943 : vector<1x128x512xbf16> to vector<128x512xbf16>
    %cst_362 = arith.constant dense<0.000000e+00> : vector<8x512xf32>
    %945 = tpu.matmul %942, %944, %cst_362 {dimension_numbers = #tpu.dot_dimension_numbers<[1], [0], [0], [1], [0, 0, 1, 1], [], []>} : vector<8x128xbf16>, vector<128x512xbf16>, vector<8x512xf32> -> vector<8x512xf32>
    %946 = arith.addf %941, %945 : vector<8x512xf32>
    %947 = vector.extract_strided_slice %946 {offsets = [0, 0], sizes = [8, 256], strides = [1, 1]} : vector<8x512xf32> to vector<8x256xf32>
    %948 = arith.negf %947 : vector<8x256xf32>
    %949 = math.exp %948 : vector<8x256xf32>
    %cst_363 = arith.constant 1.000000e+00 : f32
    %950 = vector.broadcast %cst_363 : f32 to vector<8x256xf32>
    %951 = arith.addf %950, %949 : vector<8x256xf32>
    %952 = arith.divf %950, %951 : vector<8x256xf32>
    %953 = vector.extract_strided_slice %952 {offsets = [0, 0], sizes = [8, 128], strides = [1, 1]} : vector<8x256xf32> to vector<8x128xf32>
    %954 = vector.extract_strided_slice %952 {offsets = [0, 128], sizes = [8, 128], strides = [1, 1]} : vector<8x256xf32> to vector<8x128xf32>
    %955 = vector.extract_strided_slice %946 {offsets = [0, 256], sizes = [8, 128], strides = [1, 1]} : vector<8x512xf32> to vector<8x128xf32>
    %956 = math.tanh %955 : vector<8x128xf32>
    %957 = vector.extract_strided_slice %946 {offsets = [0, 384], sizes = [8, 128], strides = [1, 1]} : vector<8x512xf32> to vector<8x128xf32>
    %958 = arith.negf %957 : vector<8x128xf32>
    %959 = math.exp %958 : vector<8x128xf32>
    %cst_364 = arith.constant 1.000000e+00 : f32
    %960 = vector.broadcast %cst_364 : f32 to vector<8x128xf32>
    %961 = arith.addf %960, %959 : vector<8x128xf32>
    %962 = arith.divf %960, %961 : vector<8x128xf32>
    %963 = arith.mulf %954, %935 : vector<8x128xf32>
    %964 = arith.mulf %953, %956 : vector<8x128xf32>
    %965 = arith.addf %963, %964 : vector<8x128xf32>
    %966 = math.tanh %965 : vector<8x128xf32>
    %967 = arith.mulf %962, %966 : vector<8x128xf32>
    %cst_365 = arith.constant 0.000000e+00 : f32
    %968 = vector.broadcast %cst_365 : f32 to vector<8x128xf32>
    %969 = arith.maximumf %967, %968 : vector<8x128xf32>
    %c56_366 = arith.constant 56 : index
    %c0_367 = arith.constant 0 : index
    %970 = vector.load %arg8[%c56_366, %c0_367] : memref<64x128xf32, #tpu.memory_space<vmem>>, vector<8x128xf32>
    tpu.vector_store %arg8[%c56_366, %c0_367], %969 {strides = array<i32>} : memref<64x128xf32, #tpu.memory_space<vmem>>, vector<8x128xf32>,
    %c0_368 = arith.constant 0 : index
    %c0_369 = arith.constant 0 : index
    %971 = vector.load %arg8[%c0_368, %c0_369] : memref<64x128xf32, #tpu.memory_space<vmem>>, vector<64x128xf32>
    %c0_370 = arith.constant 0 : index
    %c0_371 = arith.constant 0 : index
    %972 = vector.load %arg3[%c0_370, %c0_371] : memref<128x1xf32, #tpu.memory_space<vmem>>, vector<128x1xf32>
    %cst_372 = arith.constant dense<0.000000e+00> : vector<64x1xf32>
    %973 = tpu.matmul %971, %972, %cst_372 {dimension_numbers = #tpu.dot_dimension_numbers<[1], [0], [0], [1], [0, 0, 1, 1], [], []>} : vector<64x128xf32>, vector<128x1xf32>, vector<64x1xf32> -> vector<64x1xf32>
    %c0_373 = arith.constant 0 : index
    %c0_374 = arith.constant 0 : index
    %974 = vector.load %arg4[%c0_373, %c0_374] : memref<1x1xf32, #tpu.memory_space<vmem>>, vector<1x1xf32>
    %975 = vector.broadcast %974 : vector<1x1xf32> to vector<64x1xf32>
    %976 = arith.addf %973, %975 : vector<64x1xf32>
    %c0_375 = arith.constant 0 : index
    %c0_376 = arith.constant 0 : index
    %977 = vector.load %arg5[%c0_375, %c0_376] : memref<64x1xf32, #tpu.memory_space<vmem>>, vector<64x1xf32>
    tpu.vector_store %arg5[%c0_375, %c0_376], %976 {strides = array<i32>} : memref<64x1xf32, #tpu.memory_space<vmem>>, vector<64x1xf32>,
    return
  }
}

</mosaic_0001>

<bundles_post_ra>
// kernel: lstm_network_forward.1
= control target key start
LH: loop header
LB: loop body
LE: loop exit
PB: predicated region body
PF: predicated region fallthrough
CT: control target
= control target key end

     0   :  { %v19077_v1 = vmov 0   ;;  %vm11673_vm0 = vcmask 7168   ;;  %s19071_s1 = inlined_call_operand.vmem [shape: bf16[8,128,512], index: 1, kind: input, shape index: {}]   ;;  %s19072_s0 = inlined_call_operand.vmem [shape: bf16[64,128], index: 0, kind: input, shape index: {}]   ;;  %s19073_s2 = inlined_call_operand.vmem [shape: f32[4,512], index: 2, kind: input, shape index: {}]   ;;  %s19074_s3 = inlined_call_operand.vmem [shape: f32[128,1], index: 3, kind: input, shape index: {}]   ;;  %s19075_s4 = inlined_call_operand.<no memory space> [shape: f32[1,1], index: 4, kind: input, shape index: {}]   ;;  %s19076_s5 = inlined_call_operand.vmem [shape: f32[64,1], index: 5, kind: output, shape index: {}]  }
   0x1   :  { %v14163_v0 = vld [vmem:[%s19071_s1 + $0x4] ss:$16 sps:$4 sm:$0xff]   ;;  %301 = vmatprep.mubr.bf16.mxu1 %v19077_v1  ;;  %676 = vmatprep.mubr.bf16.mxu0 %v19077_v1  ;;  %v14165_v2 = vld [vmem:[%s19071_s1] ss:$16 sps:$4 sm:$0xff]   ;;  %v14214_v32 = vld [vmem:[%s19071_s1 + $0xc] ss:$16 sps:$4 sm:$0xff]  }
   0x2   :  { %269 = vmatprep.subr.bf16.mxu1 %v14163_v0  ;;  %v15343_v3 = vld [vmem:[%s19071_s1 + $0x104] ss:$16 sps:$4 sm:$0xff]   ;;  %v15348_v4 = vld [vmem:[%s19071_s1 + $0x100] ss:$16 sps:$4 sm:$0xff]   ;;  %v14212_v35 = vld [vmem:[%s19071_s1 + $0x8] ss:$16 sps:$4 sm:$0xff]  }
   0x3   :  { %270 = vmatpush1.bf16.msra.mxu1 %v14165_v2  ;;  %v14169_v5 = vld [vmem:[%s19071_s1 + $0x24] ss:$16 sps:$4 sm:$0xff]   ;;  %v14171_v6 = vld [vmem:[%s19071_s1 + $0x20] ss:$16 sps:$4 sm:$0xff]   ;;  %644 = vmatprep.subr.bf16.mxu0 %v15343_v3  ;;  %v14217_v36 = vld [vmem:[%s19071_s1 + $0x2c] ss:$16 sps:$4 sm:$0xff]  }
   0x4   :  { %v15360_v7 = vld [vmem:[%s19071_s1 + $0x124] ss:$16 sps:$4 sm:$0xff]   ;;  %645 = vmatpush1.bf16.msra.mxu0 %v15348_v4  ;;  %271 = vmatprep.subr.bf16.mxu1 %v14169_v5  ;;  %v15366_v8 = vld [vmem:[%s19071_s1 + $0x120] ss:$16 sps:$4 sm:$0xff]   ;;  %v14215_v37 = vld [vmem:[%s19071_s1 + $0x28] ss:$16 sps:$4 sm:$0xff]  }
   0x5   :  { %646 = vmatprep.subr.bf16.mxu0 %v15360_v7  ;;  %v14175_v9 = vld [vmem:[%s19071_s1 + $0x44] ss:$16 sps:$4 sm:$0xff]   ;;  %v14177_v10 = vld [vmem:[%s19071_s1 + $0x40] ss:$16 sps:$4 sm:$0xff]   ;;  %v14221_v38 = vld [vmem:[%s19071_s1 + $0x4c] ss:$16 sps:$4 sm:$0xff]  }
   0x6   :  { %v15378_v11 = vld [vmem:[%s19071_s1 + $0x144] ss:$16 sps:$4 sm:$0xff]   ;;  %v15387_v13 = vld [vmem:[%s19071_s1 + $0x140] ss:$16 sps:$4 sm:$0xff]   ;;  %v14218_v39 = vld [vmem:[%s19072_s0 + $0x8] sm:$0xff]  }
   0x7   :  { %272 = vmatpush1.bf16.msra.mxu1 %v14171_v6  ;;  %v14181_v12 = vld [vmem:[%s19071_s1 + $0x64] ss:$16 sps:$4 sm:$0xff]   ;;  %v14183_v15 = vld [vmem:[%s19071_s1 + $0x60] ss:$16 sps:$4 sm:$0xff]   ;;  %v14219_v40 = vld [vmem:[%s19071_s1 + $0x48] ss:$16 sps:$4 sm:$0xff]   ;;  %v65_v6 = vlaneseq }
   0x8   :  { %273 = vmatprep.subr.bf16.mxu1 %v14175_v9  ;;  %647 = vmatpush1.bf16.msra.mxu0 %v15366_v8  ;;  %v15393_v14 = vld [vmem:[%s19071_s1 + $0x164] ss:$16 sps:$4 sm:$0xff]   ;;  %v15405_v17 = vld [vmem:[%s19071_s1 + $0x160] ss:$16 sps:$4 sm:$0xff]   ;;  %v14224_v41 = vld [vmem:[%s19071_s1 + $0x6c] ss:$16 sps:$4 sm:$0xff]  }
   0x9   :  { %648 = vmatprep.subr.bf16.mxu0 %v15378_v11  ;;  %v14187_v16 = vld [vmem:[%s19071_s1 + $0x84] ss:$16 sps:$4 sm:$0xff]   ;;  %v14189_v19 = vld [vmem:[%s19071_s1 + $0x80] ss:$16 sps:$4 sm:$0xff]   ;;  %v14222_v42 = vld [vmem:[%s19071_s1 + $0x68] ss:$16 sps:$4 sm:$0xff]  }
   0xa   :  { %v15411_v18 = vld [vmem:[%s19071_s1 + $0x184] ss:$16 sps:$4 sm:$0xff]   ;;  %v15423_v21 = vld [vmem:[%s19071_s1 + $0x180] ss:$16 sps:$4 sm:$0xff]   ;;  %v14228_v43 = vld [vmem:[%s19071_s1 + $0x8c] ss:$16 sps:$4 sm:$0xff]  }
   0xb   :  { %274 = vmatpush1.bf16.msra.mxu1 %v14177_v10  ;;  %v14193_v20 = vld [vmem:[%s19071_s1 + $0xa4] ss:$16 sps:$4 sm:$0xff]   ;;  %v14195_v23 = vld [vmem:[%s19071_s1 + $0xa0] ss:$16 sps:$4 sm:$0xff]   ;;  %v14226_v45 = vld [vmem:[%s19071_s1 + $0x88] ss:$16 sps:$4 sm:$0xff]  }
   0xc   :  { %275 = vmatprep.subr.bf16.mxu1 %v14181_v12  ;;  %649 = vmatpush1.bf16.msra.mxu0 %v15387_v13  ;;  %v15429_v22 = vld [vmem:[%s19071_s1 + $0x1a4] ss:$16 sps:$4 sm:$0xff]   ;;  %v15441_v25 = vld [vmem:[%s19071_s1 + $0x1a0] ss:$16 sps:$4 sm:$0xff]   ;;  %v14231_v46 = vld [vmem:[%s19071_s1 + $0xac] ss:$16 sps:$4 sm:$0xff]  }
   0xd   :  { %650 = vmatprep.subr.bf16.mxu0 %v15393_v14  ;;  %v14199_v24 = vld [vmem:[%s19071_s1 + $0xc4] ss:$16 sps:$4 sm:$0xff]   ;;  %v14201_v27 = vld [vmem:[%s19071_s1 + $0xc0] ss:$16 sps:$4 sm:$0xff]   ;;  %v14229_v47 = vld [vmem:[%s19071_s1 + $0xa8] ss:$16 sps:$4 sm:$0xff]  }
   0xe   :  { %v15447_v26 = vld [vmem:[%s19071_s1 + $0x1c4] ss:$16 sps:$4 sm:$0xff]   ;;  %v15459_v29 = vld [vmem:[%s19071_s1 + $0x1c0] ss:$16 sps:$4 sm:$0xff]   ;;  %v14235_v48 = vld [vmem:[%s19071_s1 + $0xcc] ss:$16 sps:$4 sm:$0xff]  }
   0xf   :  { %276 = vmatpush1.bf16.msra.mxu1 %v14183_v15  ;;  %v14205_v28 = vld [vmem:[%s19071_s1 + $0xe4] ss:$16 sps:$4 sm:$0xff]   ;;  %v14207_v31 = vld [vmem:[%s19071_s1 + $0xe0] ss:$16 sps:$4 sm:$0xff]   ;;  %v14232_v49 = vld [vmem:[%s19072_s0 + $0x18] sm:$0xff]  }
  0x10   :  { %277 = vmatprep.subr.bf16.mxu1 %v14187_v16  ;;  %651 = vmatpush1.bf16.msra.mxu0 %v15405_v17  ;;  %v15465_v30 = vld [vmem:[%s19071_s1 + $0x1e4] ss:$16 sps:$4 sm:$0xff]   ;;  %v15477_v33 = vld [vmem:[%s19071_s1 + $0x1e0] ss:$16 sps:$4 sm:$0xff]   ;;  %v14233_v50 = vld [vmem:[%s19071_s1 + $0xc8] ss:$16 sps:$4 sm:$0xff]  }
  0x11   :  { %652 = vmatprep.subr.bf16.mxu0 %v15411_v18  ;;  %v15483_v34 = vld [vmem:[%s19072_s0] sm:$0xff]   ;;  %v14225_v44 = vld [vmem:[%s19072_s0 + $0x10] sm:$0xff]   ;;  %v14238_v51 = vld [vmem:[%s19071_s1 + $0xec] ss:$16 sps:$4 sm:$0xff]  }
  0x12   :  { %v14236_v52 = vld [vmem:[%s19071_s1 + $0xe8] ss:$16 sps:$4 sm:$0xff]   ;;  %v15561_v53 = vld [vmem:[%s19071_s1 + $0x10c] ss:$16 sps:$4 sm:$0xff]  }
  0x13   :  { %278 = vmatpush1.bf16.msra.mxu1 %v14189_v19  ;;  %v15568_v54 = vld [vmem:[%s19071_s1 + $0x108] ss:$16 sps:$4 sm:$0xff]   ;;  %v15574_v55 = vld [vmem:[%s19071_s1 + $0x12c] ss:$16 sps:$4 sm:$0xff]  }
  0x14   :  { %279 = vmatprep.subr.bf16.mxu1 %v14193_v20  ;;  %653 = vmatpush1.bf16.msra.mxu0 %v15423_v21  ;;  %v15581_v56 = vld [vmem:[%s19071_s1 + $0x128] ss:$16 sps:$4 sm:$0xff]   ;;  %v15588_v57 = vld [vmem:[%s19071_s1 + $0x14c] ss:$16 sps:$4 sm:$0xff]  }
  0x15   :  { %654 = vmatprep.subr.bf16.mxu0 %v15429_v22  ;;  %v15597_v58 = vld [vmem:[%s19071_s1 + $0x148] ss:$16 sps:$4 sm:$0xff]   ;;  %v15602_v59 = vld [vmem:[%s19071_s1 + $0x16c] ss:$16 sps:$4 sm:$0xff]  }
  0x16   :  { %v15609_v60 = vld [vmem:[%s19071_s1 + $0x168] ss:$16 sps:$4 sm:$0xff]   ;;  %v15614_v61 = vld [vmem:[%s19071_s1 + $0x18c] ss:$16 sps:$4 sm:$0xff]  }
  0x17   :  { %280 = vmatpush1.bf16.msra.mxu1 %v14195_v23  ;;  %v15622_v62 = vld [vmem:[%s19071_s1 + $0x188] ss:$16 sps:$4 sm:$0xff]   ;;  %v15627_v63 = vld [vmem:[%s19071_s1 + $0x1ac] ss:$16 sps:$4 sm:$0xff]  }
  0x18   :  { %281 = vmatprep.subr.bf16.mxu1 %v14199_v24  ;;  %655 = vmatpush1.bf16.msra.mxu0 %v15441_v25  ;;  %v15634_v0 = vld [vmem:[%s19071_s1 + $0x1a8] ss:$16 sps:$4 sm:$0xff]   ;;  %v15639_v2 = vld [vmem:[%s19071_s1 + $0x1cc] ss:$16 sps:$4 sm:$0xff]  }
  0x19   :  { %656 = vmatprep.subr.bf16.mxu0 %v15447_v26  ;;  %v15659_v5 = vld [vmem:[%s19071_s1 + $0x1e8] ss:$16 sps:$4 sm:$0xff]  }
  0x1a   :  { %v63_v9 = vld [vmem:[%s19073_s2] ss:$4 sm:$0xf] }
  0x1b   :  { %282 = vmatpush1.bf16.msra.mxu1 %v14201_v27 }
  0x1c   :  { %283 = vmatprep.subr.bf16.mxu1 %v14205_v28  ;;  %657 = vmatpush1.bf16.msra.mxu0 %v15459_v29 }
  0x1d   :  { %658 = vmatprep.subr.bf16.mxu0 %v15465_v30 }
  0x1f   :  { %284 = vmatpush1.bf16.msra.mxu1 %v14207_v31 }
  0x20   :  { %342 = vmatprep.subr.bf16.mxu1 %v14214_v32  ;;  %659 = vmatpush1.bf16.msra.mxu0 %v15477_v33 }
  0x21   :  { %952 = vmatprep.subr.bf16.mxu0 %v15343_v3 }
  0x22   :  { %302 = vmatmul.mubr.bf16.vlgmr.msra.gmra.mrb[0].mxu1 %v15483_v34 }
  0x23   :  { %343 = vmatpush1.bf16.msra.mxu1 %v14212_v35  ;;  %311 = vmatprep.mubr.bf16.mxu1 %v19077_v1 }
  0x24   :  { %677 = vmatmul.mubr.bf16.vlgmr.msra.gmra.mrb[0].mxu0 %v19077_v1  ;;  %344 = vmatprep.subr.bf16.mxu1 %v14217_v36 }
  0x25   :  { %953 = vmatpush1.bf16.msra.mxu0 %v15348_v4  ;;  %984 = vmatprep.mubr.bf16.mxu0 %v19077_v1  ;;  %v15652_v4 = vld [vmem:[%s19071_s1 + $0x1ec] ss:$16 sps:$4 sm:$0xff]  }
  0x26   :  { %954 = vmatprep.subr.bf16.mxu0 %v15360_v7  ;;  %v66_v7 = vshrl.u32 %v65_v6, 7 }
  0x27   :  { %345 = vmatpush1.bf16.msra.mxu1 %v14215_v37 }
  0x28   :  { %346 = vmatprep.subr.bf16.mxu1 %v14221_v38  ;;  %v15689_v10 = vsub.s32 1, %v66_v7 }
  0x29   :  { %955 = vmatpush1.bf16.msra.mxu0 %v15366_v8  ;;  %v15684_v8 = vsub.s32 0, %v66_v7 }
  0x2a   :  { %312 = vmatmul.mubr.bf16.gmra.mrb[4].mxu1 %v14218_v39  ;;  %956 = vmatprep.subr.bf16.mxu0 %v15378_v11  ;;  %19091 = vst [vmem:[#allocation7_spill] sm:$0xff] %v15689_v10  ;;  %v72_v12 = vrot.slane %v63_v9, %v15689_v10 }
  0x2b   :  { %347 = vmatpush1.bf16.msra.mxu1 %v14219_v40  ;;  %321 = vmatprep.mubr.bf16.mxu1 %v19077_v1  ;;  %19090 = vst [vmem:[#allocation6_spill] sm:$0xff] %v15684_v8  ;;  %v68_v11 = vrot.slane %v63_v9, %v15684_v8 }
  0x2c   :  { %348 = vmatprep.subr.bf16.mxu1 %v14224_v41 }
  0x2d   :  { %957 = vmatpush1.bf16.msra.mxu0 %v15387_v13 }
  0x2e   :  { %958 = vmatprep.subr.bf16.mxu0 %v15393_v14 }
  0x2f   :  { %349 = vmatpush1.bf16.msra.mxu1 %v14222_v42 }
  0x30   :  { %350 = vmatprep.subr.bf16.mxu1 %v14228_v43 }
  0x31   :  { %959 = vmatpush1.bf16.msra.mxu0 %v15405_v17 }
  0x32   :  { %322 = vmatmul.mubr.bf16.gmra.mrb[8].mxu1 %v14225_v44  ;;  %960 = vmatprep.subr.bf16.mxu0 %v15411_v18 }
  0x33   :  { %351 = vmatpush1.bf16.msra.mxu1 %v14226_v45  ;;  %331 = vmatprep.mubr.bf16.mxu1 %v19077_v1 }
  0x34   :  { %352 = vmatprep.subr.bf16.mxu1 %v14231_v46 }
  0x35   :  { %961 = vmatpush1.bf16.msra.mxu0 %v15423_v21 }
  0x36   :  { %962 = vmatprep.subr.bf16.mxu0 %v15429_v22 }
  0x37   :  { %353 = vmatpush1.bf16.msra.mxu1 %v14229_v47 }
  0x38   :  { %354 = vmatprep.subr.bf16.mxu1 %v14235_v48 }
  0x39   :  { %963 = vmatpush1.bf16.msra.mxu0 %v15441_v25 }
  0x3a   :  { %332 = vmatmul.mubr.bf16.gmra.mrb[12].mxu1 %v14232_v49  ;;  %964 = vmatprep.subr.bf16.mxu0 %v15447_v26 }
  0x3b   :  { %355 = vmatpush1.bf16.msra.mxu1 %v14233_v50  ;;  %374 = vmatprep.mubr.bf16.mxu1 %v19077_v1 }
  0x3c   :  { %356 = vmatprep.subr.bf16.mxu1 %v14238_v51  ;;  %v15721_v51 = vsub.s32 2, %v66_v7 }
  0x3d   :  { %965 = vmatpush1.bf16.msra.mxu0 %v15459_v29 }
  0x3e   :  { %966 = vmatprep.subr.bf16.mxu0 %v15465_v30  ;;  %19095 = vst [vmem:[#allocation11_spill] sm:$0xff] %v15721_v51  ;;  %v76_v6 = vrot.slane %v63_v9, %v15721_v51 }
  0x3f   :  { %357 = vmatpush1.bf16.msra.mxu1 %v14236_v52  ;;  %v15723_v52 = vsub.s32 3, %v66_v7 }
  0x40   :  { %685 = vmatprep.subr.bf16.mxu1 %v15561_v53 }
  0x41   :  { %967 = vmatpush1.bf16.msra.mxu0 %v15477_v33  ;;  %19096 = vst [vmem:[#allocation12_spill] sm:$0xff] %v15723_v52 }
  0x42   :  { %375 = vmatmul.mubr.bf16.vlgmr.msra.gmra.mrb[16].mxu1 %v15483_v34  ;;  %1260 = vmatprep.subr.bf16.mxu0 %v15343_v3  ;;  %v15647_v3 = vld [vmem:[%s19071_s1 + $0x1c8] ss:$16 sps:$4 sm:$0xff]  }
  0x43   :  { %686 = vmatpush1.bf16.msra.mxu1 %v15568_v54  ;;  %384 = vmatprep.mubr.bf16.mxu1 %v19077_v1 }
  0x44   :  { %687 = vmatprep.subr.bf16.mxu1 %v15574_v55 }
  0x47   :  { %688 = vmatpush1.bf16.msra.mxu1 %v15581_v56 }
  0x48   :  { %689 = vmatprep.subr.bf16.mxu1 %v15588_v57 }
  0x4a   :  { %385 = vmatmul.mubr.bf16.gmra.mrb[20].mxu1 %v14218_v39 }
  0x4b   :  { %690 = vmatpush1.bf16.msra.mxu1 %v15597_v58  ;;  %394 = vmatprep.mubr.bf16.mxu1 %v19077_v1 }
  0x4c   :  { %691 = vmatprep.subr.bf16.mxu1 %v15602_v59 }
  0x4f   :  { %692 = vmatpush1.bf16.msra.mxu1 %v15609_v60 }
  0x50   :  { %693 = vmatprep.subr.bf16.mxu1 %v15614_v61 }
  0x52   :  { %395 = vmatmul.mubr.bf16.gmra.mrb[24].mxu1 %v14225_v44 }
  0x53   :  { %694 = vmatpush1.bf16.msra.mxu1 %v15622_v62  ;;  %404 = vmatprep.mubr.bf16.mxu1 %v19077_v1 }
  0x54   :  { %695 = vmatprep.subr.bf16.mxu1 %v15627_v63 }
  0x57   :  { %696 = vmatpush1.bf16.msra.mxu1 %v15634_v0 }
  0x58   :  { %697 = vmatprep.subr.bf16.mxu1 %v15639_v2 }
  0x5a   :  { %405 = vmatmul.mubr.bf16.gmra.mrb[28].mxu1 %v14232_v49 }
  0x5b   :  { %698 = vmatpush1.bf16.msra.mxu1 %v15647_v3  ;;  %717 = vmatprep.mubr.bf16.mxu1 %v19077_v1 }
  0x5c   :  { %699 = vmatprep.subr.bf16.mxu1 %v15652_v4 }
  0x5f   :  { %700 = vmatpush1.bf16.msra.mxu1 %v15659_v5 }
  0x60   :  { %993 = vmatprep.subr.bf16.mxu1 %v15561_v53 }
  0x62   :  { %718 = vmatmul.mubr.bf16.vlgmr.msra.gmra.mrb[32].mxu1 %v19077_v1 }
  0x63   :  { %994 = vmatpush1.bf16.msra.mxu1 %v15568_v54  ;;  %1025 = vmatprep.mubr.bf16.mxu1 %v19077_v1 }
  0x64   :  { %995 = vmatprep.subr.bf16.mxu1 %v15574_v55 }
  0x67   :  { %996 = vmatpush1.bf16.msra.mxu1 %v15581_v56 }
  0x68   :  { %997 = vmatprep.subr.bf16.mxu1 %v15588_v57 }
  0x6b   :  { %998 = vmatpush1.bf16.msra.mxu1 %v15597_v58 }
  0x6c   :  { %999 = vmatprep.subr.bf16.mxu1 %v15602_v59 }
  0x6f   :  { %1000 = vmatpush1.bf16.msra.mxu1 %v15609_v60 }
  0x70   :  { %1001 = vmatprep.subr.bf16.mxu1 %v15614_v61 }
  0x73   :  { %1002 = vmatpush1.bf16.msra.mxu1 %v15622_v62 }
  0x74   :  { %1003 = vmatprep.subr.bf16.mxu1 %v15627_v63 }
  0x77   :  { %1004 = vmatpush1.bf16.msra.mxu1 %v15634_v0 }
  0x78   :  { %1005 = vmatprep.subr.bf16.mxu1 %v15639_v2 }
  0x7b   :  { %1006 = vmatpush1.bf16.msra.mxu1 %v15647_v3 }
  0x7c   :  { %1007 = vmatprep.subr.bf16.mxu1 %v15652_v4 }
  0x7f   :  { %1008 = vmatpush1.bf16.msra.mxu1 %v15659_v5 }
  0x80   :  { %1301 = vmatprep.subr.bf16.mxu1 %v15561_v53 }
  0xf5   :  { %v303_v13 = vpop.f32.mrb[0].mxu1 }
  0xf6   :  { %v304_v14 = vadd.f32 %v303_v13, %v68_v11  ;;  %v305_v15 = vpop.f32.mrb[1].mxu1 }
  0xf7   :  { %v306_v16 = vadd.f32 %v305_v15, %v72_v12  ;;  %v307_v17 = vpop.f32.mrb[2].mxu1  ;;  %v678_v18 = vpop.f32.mrb[0].mxu0 }
  0xf8   :  { %v15693_v19 = vadd.f32 %v307_v17, %v68_v11  ;;  %v726_v20 = vadd.f32 %v678_v18, %v304_v14  ;;  %v309_v21 = vpop.f32.mrb[3].mxu1  ;;  %v680_v22 = vpop.f32.mrb[1].mxu0  ;;  %v80_v14 = vrot.slane %v63_v9, %v15723_v52 }
  0xf9   :  { %v15695_v23 = vadd.f32 %v309_v21, %v72_v12  ;;  %v727_v24 = vadd.f32 %v680_v22, %v306_v16  ;;  %v682_v25 = vpop.f32.mrb[2].mxu0 }
  0xfa   :  { %v683_v26 = vpop.f32.mrb[3].mxu0  ;;  %v11786_v9 = vmul.f32 -1.442695, %v726_v20 }
  0xfd   :  { %v313_v27 = vpop.f32.mrb[4].mxu1 }
  0xfe   :  { %v15697_v28 = vadd.f32 %v313_v27, %v68_v11  ;;  %v315_v29 = vpop.f32.mrb[5].mxu1  ;;  %v11787_v27 = vmul.f32 -1.442695, %v727_v24 }
  0xff   :  { %v15699_v30 = vadd.f32 %v315_v29, %v72_v12  ;;  %v317_v31 = vpop.f32.mrb[6].mxu1 }
 0x100   :  { %v15701_v32 = vadd.f32 %v317_v31, %v68_v11  ;;  %v319_v33 = vpop.f32.mrb[7].mxu1  ;;  %14767 = vpow2.f32 %v11787_v27 }
 0x101   :  { %v15703_v34 = vadd.f32 %v319_v33, %v72_v12  ;;  %14769 = vpow2.f32 %v11786_v9 }
 0x105   :  { %v323_v35 = vpop.f32.mrb[8].mxu1 }
 0x106   :  { %v15705_v36 = vadd.f32 %v323_v35, %v68_v11  ;;  %v325_v37 = vpop.f32.mrb[9].mxu1 }
 0x107   :  { %v15707_v38 = vadd.f32 %v325_v37, %v72_v12  ;;  %v327_v39 = vpop.f32.mrb[10].mxu1 }
 0x108   :  { %v15709_v40 = vadd.f32 %v327_v39, %v68_v11  ;;  %v329_v41 = vpop.f32.mrb[11].mxu1 }
 0x109   :  { %v15711_v42 = vadd.f32 %v329_v41, %v72_v12 }
 0x10d   :  { %v333_v43 = vpop.f32.mrb[12].mxu1 }
 0x10e   :  { %v15713_v44 = vadd.f32 %v333_v43, %v68_v11  ;;  %v335_v45 = vpop.f32.mrb[13].mxu1 }
 0x10f   :  { %v15715_v46 = vadd.f32 %v335_v45, %v72_v12  ;;  %v337_v47 = vpop.f32.mrb[14].mxu1 }
 0x110   :  { %v15717_v48 = vadd.f32 %v337_v47, %v68_v11  ;;  %v339_v49 = vpop.f32.mrb[15].mxu1 }
 0x111   :  { %19092 = vst [vmem:[#allocation8_spill] sm:$0xff] %v15715_v46  ;;  %v15719_v50 = vadd.f32 %v339_v49, %v72_v12 }
 0x112   :  { %19093 = vst [vmem:[#allocation9_spill] sm:$0xff] %v15717_v48 }
 0x113   :  { %19094 = vst [vmem:[#allocation10_spill] sm:$0xff] %v15719_v50 }
 0x115   :  { %v376_v53 = vpop.f32.mrb[16].mxu1 }
 0x116   :  { %v378_v13 = vpop.f32.mrb[17].mxu1 }
 0x117   :  { %v380_v15 = vpop.f32.mrb[18].mxu1 }
 0x118   :  { %v15727_v16 = vadd.f32 %v380_v15, %v76_v6  ;;  %v382_v17 = vpop.f32.mrb[19].mxu1  ;;  %v14768_v15 = vpop.eup %14767 }
 0x119   :  { %v15729_v18 = vadd.f32 %v382_v17, %v80_v14  ;;  %v737_v27 = vadd.f32 1.0, %v14768_v15 }
 0x11b   :  { %14771 = vrcp.f32 %v737_v27  ;;  %v15289_v27 = vld [vmem:[%s19071_s1 + $0x1a0] ss:$16 sps:$4 sm:$0xff]  }
 0x11d   :  { %v386_v11 = vpop.f32.mrb[20].mxu1 }
 0x11e   :  { %v15731_v21 = vadd.f32 %v386_v11, %v76_v6  ;;  %v388_v12 = vpop.f32.mrb[21].mxu1  ;;  %v14770_v11 = vpop.eup %14769 }
 0x11f   :  { %v15733_v22 = vadd.f32 %v388_v12, %v80_v14  ;;  %v390_v7 = vpop.f32.mrb[22].mxu1  ;;  %v736_v9 = vadd.f32 1.0, %v14770_v11 }
 0x120   :  { %v15735_v25 = vadd.f32 %v390_v7, %v76_v6  ;;  %v392_v26 = vpop.f32.mrb[23].mxu1 }
 0x121   :  { %v15737_v29 = vadd.f32 %v392_v26, %v80_v14  ;;  %14773 = vrcp.f32 %v736_v9  ;;  %v15290_v9 = vld [vmem:[%s19071_s1 + $0x1c4] ss:$16 sps:$4 sm:$0xff]  }
 0x125   :  { %v396_v31 = vpop.f32.mrb[24].mxu1 }
 0x126   :  { %v15739_v33 = vadd.f32 %v396_v31, %v76_v6  ;;  %v398_v35 = vpop.f32.mrb[25].mxu1  ;;  %v377_v31 = vadd.f32 %v376_v53, %v76_v6 }
 0x127   :  { %v15741_v37 = vadd.f32 %v398_v35, %v80_v14  ;;  %v400_v39 = vpop.f32.mrb[26].mxu1  ;;  %v379_v35 = vadd.f32 %v378_v13, %v80_v14 }
 0x128   :  { %v15743_v41 = vadd.f32 %v400_v39, %v76_v6  ;;  %v402_v43 = vpop.f32.mrb[27].mxu1 }
 0x129   :  { %v15745_v45 = vadd.f32 %v402_v43, %v80_v14 }
 0x12d   :  { %v406_v47 = vpop.f32.mrb[28].mxu1 }
 0x12e   :  { %v15747_v49 = vadd.f32 %v406_v47, %v76_v6  ;;  %v408_v24 = vpop.f32.mrb[29].mxu1 }
 0x12f   :  { %v15749_v20 = vadd.f32 %v408_v24, %v80_v14  ;;  %v410_v17 = vpop.f32.mrb[30].mxu1 }
 0x130   :  { %19097 = vst [vmem:[#allocation13_spill] sm:$0xff] %v15747_v49  ;;  %v15751_v12 = vadd.f32 %v410_v17, %v76_v6  ;;  %v412_v7 = vpop.f32.mrb[31].mxu1  ;;  %v14772_v17 = vpop.eup %14771 }
 0x131   :  { %19098 = vst [vmem:[#allocation14_spill] sm:$0xff] %v15749_v20  ;;  %v15753_v26 = vadd.f32 %v412_v7, %v80_v14  ;;  %v14774_v51 = vpop.eup %14773  ;;  %v749_v7 = vmul.f32 0.0, %v14772_v17 }
 0x132   :  { %19099 = vst [vmem:[#allocation15_spill] sm:$0xff] %v15751_v12 }
 0x133   :  { %19100 = vst [vmem:[#allocation16_spill] sm:$0xff] %v15753_v26 }
 0x135   :  { %v719_v39 = vpop.f32.mrb[32].mxu1 }
 0x136   :  { %v728_v43 = vadd.f32 %v719_v39, %v377_v31  ;;  %v721_v47 = vpop.f32.mrb[33].mxu1  ;;  %v15291_v31 = vld [vmem:[%s19071_s1 + $0x1c0] ss:$16 sps:$4 sm:$0xff]  }
 0x137   :  { %v729_v1 = vadd.f32 %v721_v47, %v379_v35  ;;  %v723_v52 = vpop.f32.mrb[34].mxu1  ;;  %v15292_v35 = vld [vmem:[%s19071_s1 + $0x1e4] ss:$16 sps:$4 sm:$0xff]   ;;  %v15293_v39 = vld [vmem:[%s19071_s1 + $0x1e0] ss:$16 sps:$4 sm:$0xff]  }
 0x138   :  { %14775 = vtanh.f32 %v728_v43  ;;  %v724_v24 = vpop.f32.mrb[35].mxu1  ;;  %v15281_v52 = vld [vmem:[%s19071_s1 + $0x120] ss:$16 sps:$4 sm:$0xff]   ;;  %v15294_v43 = vld [vmem:[%s19071_s1 + $0x10c] ss:$16 sps:$4 sm:$0xff]  }
 0x139   :  { %v11788_v10 = vmul.f32 -1.442695, %v729_v1 }
 0x13b   :  { %14777 = vpow2.f32 %v11788_v10  ;;  %v15280_v10 = vld [vmem:[%s19071_s1 + $0x124] ss:$16 sps:$4 sm:$0xff]  }
 0x142   :  { %v14776_v8 = vpop.eup %14775 }
 0x143   :  { %v750_v26 = vmul.f32 %v14776_v8, %v14774_v51  ;;  %v15279_v8 = vld [vmem:[%s19071_s1 + $0x100] ss:$16 sps:$4 sm:$0xff]   ;;  %v19102_v51 = vmov 0  }
 0x145   :  { %v14778_v15 = vpop.eup %14777  ;;  %v15755_v11 = vadd.f32 %v750_v26, %v749_v7  ;;  %v15284_v26 = vld [vmem:[%s19071_s1 + $0x164] ss:$16 sps:$4 sm:$0xff]  }
 0x146   :  { %v746_v53 = vadd.f32 1.0, %v14778_v15 }
 0x147   :  { %14779 = vtanh.f32 %v15755_v11 }
 0x148   :  { %14781 = vrcp.f32 %v746_v53 }
 0x151   :  { %v14780_v6 = vpop.eup %14779 }
 0x152   :  { %v14782_v13 = vpop.eup %14781 }
 0x153   :  { %v15758_v14 = vmul.f32 %v14782_v13, %v14780_v6 }
 0x155   :  { %19101 = vst [vmem:[#allocation17_spill] sm:$0xff] %v15758_v14  ;;  %v759_v1 = vpack.c.bf16 %v15758_v14, %v15758_v14 }
 0x157   :  { %985 = vmatmul.mubr.bf16.vlgmr.msra.gmra.mrb[4].mxu0 %v759_v1  ;;  %1026 = vmatmul.mubr.bf16.vlgmr.msra.gmra.mrb[36].mxu1 %v759_v1 }
 0x158   :  { %1261 = vmatpush1.bf16.msra.mxu0 %v15279_v8  ;;  %1302 = vmatpush1.bf16.msra.mxu1 %v15568_v54  ;;  %v15282_v54 = vld [vmem:[%s19071_s1 + $0x144] ss:$16 sps:$4 sm:$0xff]  }
 0x159   :  { %1262 = vmatprep.subr.bf16.mxu0 %v15280_v10  ;;  %1303 = vmatprep.subr.bf16.mxu1 %v15574_v55  ;;  %v15283_v55 = vld [vmem:[%s19071_s1 + $0x140] ss:$16 sps:$4 sm:$0xff]  }
 0x15a   :  { %1292 = vmatprep.mubr.bf16.mxu0 %v19102_v51  ;;  %1333 = vmatprep.mubr.bf16.mxu1 %v19102_v51 }
 0x15c   :  { %1263 = vmatpush1.bf16.msra.mxu0 %v15281_v52  ;;  %1304 = vmatpush1.bf16.msra.mxu1 %v15581_v56  ;;  %v15285_v56 = vld [vmem:[%s19071_s1 + $0x160] ss:$16 sps:$4 sm:$0xff]  }
 0x15d   :  { %1264 = vmatprep.subr.bf16.mxu0 %v15282_v54  ;;  %1305 = vmatprep.subr.bf16.mxu1 %v15588_v57  ;;  %v15286_v57 = vld [vmem:[%s19071_s1 + $0x184] ss:$16 sps:$4 sm:$0xff]  }
 0x160   :  { %1265 = vmatpush1.bf16.msra.mxu0 %v15283_v55  ;;  %1306 = vmatpush1.bf16.msra.mxu1 %v15597_v58  ;;  %v15287_v58 = vld [vmem:[%s19071_s1 + $0x180] ss:$16 sps:$4 sm:$0xff]  }
 0x161   :  { %1266 = vmatprep.subr.bf16.mxu0 %v15284_v26  ;;  %1307 = vmatprep.subr.bf16.mxu1 %v15602_v59  ;;  %v15288_v59 = vld [vmem:[%s19071_s1 + $0x1a4] ss:$16 sps:$4 sm:$0xff]  }
 0x164   :  { %1267 = vmatpush1.bf16.msra.mxu0 %v15285_v56  ;;  %1308 = vmatpush1.bf16.msra.mxu1 %v15609_v60 }
 0x165   :  { %1268 = vmatprep.subr.bf16.mxu0 %v15286_v57  ;;  %1309 = vmatprep.subr.bf16.mxu1 %v15614_v61 }
 0x168   :  { %1269 = vmatpush1.bf16.msra.mxu0 %v15287_v58  ;;  %1310 = vmatpush1.bf16.msra.mxu1 %v15622_v62 }
 0x169   :  { %1270 = vmatprep.subr.bf16.mxu0 %v15288_v59  ;;  %1311 = vmatprep.subr.bf16.mxu1 %v15627_v63 }
 0x16c   :  { %1271 = vmatpush1.bf16.msra.mxu0 %v15289_v27  ;;  %1312 = vmatpush1.bf16.msra.mxu1 %v15634_v0 }
 0x16d   :  { %1272 = vmatprep.subr.bf16.mxu0 %v15290_v9  ;;  %1313 = vmatprep.subr.bf16.mxu1 %v15639_v2 }
 0x170   :  { %1273 = vmatpush1.bf16.msra.mxu0 %v15291_v31  ;;  %1314 = vmatpush1.bf16.msra.mxu1 %v15647_v3 }
 0x171   :  { %1274 = vmatprep.subr.bf16.mxu0 %v15292_v35  ;;  %1315 = vmatprep.subr.bf16.mxu1 %v15652_v4 }
 0x174   :  { %1275 = vmatpush1.bf16.msra.mxu0 %v15293_v39  ;;  %1316 = vmatpush1.bf16.msra.mxu1 %v15659_v5 }
 0x175   :  { %1609 = vmatprep.subr.bf16.mxu1 %v15294_v43 }
 0x22a   :  { %v986_v47 = vpop.f32.mrb[4].mxu0  ;;  %v1027_v24 = vpop.f32.mrb[36].mxu1 }
 0x22b   :  { %v1034_v17 = vadd.f32 %v986_v47, %v15693_v19  ;;  %v1036_v7 = vadd.f32 %v1027_v24, %v15727_v16  ;;  %v988_v15 = vpop.f32.mrb[5].mxu0  ;;  %v1029_v53 = vpop.f32.mrb[37].mxu1 }
 0x22c   :  { %v1035_v6 = vadd.f32 %v988_v15, %v15695_v23  ;;  %v1037_v13 = vadd.f32 %v1029_v53, %v15729_v18  ;;  %v990_v1 = vpop.f32.mrb[6].mxu0  ;;  %v1031_v8 = vpop.f32.mrb[38].mxu1  ;;  %v15298_v15 = vld [vmem:[%s19071_s1 + $0x14c] ss:$16 sps:$4 sm:$0xff]   ;;  %v15299_v53 = vld [vmem:[%s19071_s1 + $0x148] ss:$16 sps:$4 sm:$0xff]  }
 0x22d   :  { %v11853_v10 = vmul.f32 -1.442695, %v1034_v17  ;;  %v991_v52 = vpop.f32.mrb[7].mxu0  ;;  %v1032_v54 = vpop.f32.mrb[39].mxu1  ;;  %v15295_v17 = vld [vmem:[%s19071_s1 + $0x108] ss:$16 sps:$4 sm:$0xff]  }
 0x22e   :  { %v11854_v55 = vmul.f32 -1.442695, %v1035_v6  ;;  %v11855_v26 = vmul.f32 -1.442695, %v1037_v13  ;;  %v15300_v6 = vld [vmem:[%s19071_s1 + $0x16c] ss:$16 sps:$4 sm:$0xff]  }
 0x22f   :  { %14783 = vpow2.f32 %v11853_v10  ;;  %v15924_v13 = vld [vmem:[%s19071_s1 + $0x180] ss:$16 sps:$4 sm:$0xff]   ;;  %v15930_v1 = vld [vmem:[%s19071_s1 + $0x1a4] ss:$16 sps:$4 sm:$0xff]  }
 0x230   :  { %14785 = vpow2.f32 %v11854_v55  ;;  %v15936_v8 = vld [vmem:[%s19071_s1 + $0x1a0] ss:$16 sps:$4 sm:$0xff]   ;;  %v15942_v10 = vld [vmem:[%s19071_s1 + $0x1c4] ss:$16 sps:$4 sm:$0xff]  }
 0x231   :  { %14787 = vpow2.f32 %v11855_v26  ;;  %v15948_v52 = vld [vmem:[%s19071_s1 + $0x1c0] ss:$16 sps:$4 sm:$0xff]   ;;  %v15954_v54 = vld [vmem:[%s19071_s1 + $0x1e4] ss:$16 sps:$4 sm:$0xff]  }
 0x232   :  { %14789 = vtanh.f32 %v1036_v7  ;;  %v15297_v7 = vld [vmem:[%s19071_s1 + $0x128] ss:$16 sps:$4 sm:$0xff]   ;;  %v15960_v55 = vld [vmem:[%s19071_s1 + $0x1e0] ss:$16 sps:$4 sm:$0xff]  }
 0x239   :  { %v14784_v56 = vpop.eup %14783 }
 0x23a   :  { %v14786_v57 = vpop.eup %14785  ;;  %v1044_v19 = vadd.f32 1.0, %v14784_v56 }
 0x23b   :  { %v1045_v16 = vadd.f32 1.0, %v14786_v57  ;;  %v14788_v23 = vpop.eup %14787 }
 0x23c   :  { %14791 = vrcp.f32 %v1044_v19  ;;  %v14790_v58 = vpop.eup %14789  ;;  %v1054_v9 = vadd.f32 1.0, %v14788_v23 }
 0x23d   :  { %14793 = vrcp.f32 %v1045_v16 }
 0x23e   :  { %14795 = vrcp.f32 %v1054_v9 }
 0x246   :  { %v14792_v18 = vpop.eup %14791 }
 0x247   :  { %v14794_v59 = vpop.eup %14793  ;;  %v1058_v27 = vmul.f32 %v14792_v18, %v14790_v58 }
 0x248   :  { %v1057_v31 = vmul.f32 %v14794_v59, %v15755_v11  ;;  %v14796_v39 = vpop.eup %14795  ;;  %v15296_v11 = vld [vmem:[%s19071_s1 + $0x12c] ss:$16 sps:$4 sm:$0xff]  }
 0x24a   :  { %v15832_v35 = vadd.f32 %v1058_v27, %v1057_v31 }
 0x24c   :  { %14797 = vtanh.f32 %v15832_v35 }
 0x256   :  { %v14798_v43 = vpop.eup %14797 }
 0x257   :  { %v15835_v47 = vmul.f32 %v14798_v43, %v14796_v39 }
 0x259   :  { %19103 = vst [vmem:[#allocation18_spill] sm:$0xff] %v15835_v47  ;;  %v1067_v24 = vpack.c.bf16 %v15835_v47, %v15835_v47 }
 0x25b   :  { %1293 = vmatmul.mubr.bf16.vlgmr.msra.gmra.mrb[8].mxu0 %v1067_v24  ;;  %1334 = vmatmul.mubr.bf16.vlgmr.msra.gmra.mrb[40].mxu1 %v1067_v24 }
 0x25c   :  { %1610 = vmatpush1.bf16.msra.mxu1 %v15295_v17  ;;  %1600 = vmatprep.mubr.bf16.mxu0 %v19102_v51 }
 0x25d   :  { %1611 = vmatprep.subr.bf16.mxu1 %v15296_v11  ;;  %1641 = vmatprep.mubr.bf16.mxu1 %v19102_v51 }
 0x260   :  { %1612 = vmatpush1.bf16.msra.mxu1 %v15297_v7 }
 0x261   :  { %1613 = vmatprep.subr.bf16.mxu1 %v15298_v15 }
 0x264   :  { %1614 = vmatpush1.bf16.msra.mxu1 %v15299_v53 }
 0x265   :  { %1615 = vmatprep.subr.bf16.mxu1 %v15300_v6 }
 0x268   :  { %1616 = vmatpush1.bf16.msra.mxu1 %v15609_v60  ;;  %v15871_v60 = vld [vmem:[%s19071_s1 + $0x104] ss:$16 sps:$4 sm:$0xff]  }
 0x269   :  { %1617 = vmatprep.subr.bf16.mxu1 %v15614_v61  ;;  %v15876_v61 = vld [vmem:[%s19071_s1 + $0x100] ss:$16 sps:$4 sm:$0xff]   ;;  %1568 = vmatprep.subr.bf16.mxu0 %v15871_v60 }
 0x26a   :  { %1569 = vmatpush1.bf16.msra.mxu0 %v15876_v61 }
 0x26c   :  { %1618 = vmatpush1.bf16.msra.mxu1 %v15622_v62  ;;  %v15883_v62 = vld [vmem:[%s19071_s1 + $0x124] ss:$16 sps:$4 sm:$0xff]  }
 0x26d   :  { %1619 = vmatprep.subr.bf16.mxu1 %v15627_v63  ;;  %v15888_v63 = vld [vmem:[%s19071_s1 + $0x120] ss:$16 sps:$4 sm:$0xff]   ;;  %1570 = vmatprep.subr.bf16.mxu0 %v15883_v62 }
 0x26e   :  { %1571 = vmatpush1.bf16.msra.mxu0 %v15888_v63 }
 0x270   :  { %1620 = vmatpush1.bf16.msra.mxu1 %v15634_v0  ;;  %v15895_v0 = vld [vmem:[%s19071_s1 + $0x144] ss:$16 sps:$4 sm:$0xff]  }
 0x271   :  { %1621 = vmatprep.subr.bf16.mxu1 %v15639_v2  ;;  %v15900_v2 = vld [vmem:[%s19071_s1 + $0x140] ss:$16 sps:$4 sm:$0xff]   ;;  %1572 = vmatprep.subr.bf16.mxu0 %v15895_v0 }
 0x272   :  { %1573 = vmatpush1.bf16.msra.mxu0 %v15900_v2 }
 0x274   :  { %1622 = vmatpush1.bf16.msra.mxu1 %v15647_v3  ;;  %v15907_v3 = vld [vmem:[%s19071_s1 + $0x164] ss:$16 sps:$4 sm:$0xff]  }
 0x275   :  { %1623 = vmatprep.subr.bf16.mxu1 %v15652_v4  ;;  %v15912_v4 = vld [vmem:[%s19071_s1 + $0x160] ss:$16 sps:$4 sm:$0xff]   ;;  %1574 = vmatprep.subr.bf16.mxu0 %v15907_v3 }
 0x276   :  { %1575 = vmatpush1.bf16.msra.mxu0 %v15912_v4 }
 0x278   :  { %1624 = vmatpush1.bf16.msra.mxu1 %v15659_v5  ;;  %v15919_v5 = vld [vmem:[%s19071_s1 + $0x184] ss:$16 sps:$4 sm:$0xff]  }
 0x279   :  { %1576 = vmatprep.subr.bf16.mxu0 %v15919_v5 }
 0x27a   :  { %1577 = vmatpush1.bf16.msra.mxu0 %v15924_v13 }
 0x27b   :  { %1578 = vmatprep.subr.bf16.mxu0 %v15930_v1 }
 0x27e   :  { %1579 = vmatpush1.bf16.msra.mxu0 %v15936_v8 }
 0x27f   :  { %1580 = vmatprep.subr.bf16.mxu0 %v15942_v10 }
 0x282   :  { %1581 = vmatpush1.bf16.msra.mxu0 %v15948_v52 }
 0x283   :  { %1582 = vmatprep.subr.bf16.mxu0 %v15954_v54 }
 0x286   :  { %1583 = vmatpush1.bf16.msra.mxu0 %v15960_v55 }
 0x287   :  { %1876 = vmatprep.subr.bf16.mxu0 %v15871_v60 }
 0x32e   :  { %v1294_v26 = vpop.f32.mrb[8].mxu0  ;;  %v1335_v56 = vpop.f32.mrb[40].mxu1 }
 0x32f   :  { %v1342_v57 = vadd.f32 %v1294_v26, %v15697_v28  ;;  %v1344_v19 = vadd.f32 %v1335_v56, %v15731_v21  ;;  %v1296_v16 = vpop.f32.mrb[9].mxu0  ;;  %v1337_v23 = vpop.f32.mrb[41].mxu1 }
 0x330   :  { %v1343_v58 = vadd.f32 %v1296_v16, %v15699_v30  ;;  %v1345_v18 = vadd.f32 %v1337_v23, %v15733_v22  ;;  %v1298_v59 = vpop.f32.mrb[10].mxu0  ;;  %v1339_v27 = vpop.f32.mrb[42].mxu1 }
 0x331   :  { %v11920_v9 = vmul.f32 -1.442695, %v1342_v57  ;;  %v1299_v31 = vpop.f32.mrb[11].mxu0  ;;  %v1340_v39 = vpop.f32.mrb[43].mxu1  ;;  %v16015_v59 = vld [vmem:[%s19071_s1 + $0x128] ss:$16 sps:$4 sm:$0xff]  }
 0x332   :  { %v11921_v43 = vmul.f32 -1.442695, %v1343_v58  ;;  %v11922_v24 = vmul.f32 -1.442695, %v1345_v18  ;;  %v16003_v58 = vld [vmem:[%s19071_s1 + $0x108] ss:$16 sps:$4 sm:$0xff]  }
 0x333   :  { %14799 = vpow2.f32 %v11920_v9  ;;  %v16010_v18 = vld [vmem:[%s19071_s1 + $0x12c] ss:$16 sps:$4 sm:$0xff]   ;;  %v16027_v9 = vld [vmem:[%s19071_s1 + $0x148] ss:$16 sps:$4 sm:$0xff]  }
 0x334   :  { %14801 = vpow2.f32 %v11921_v43  ;;  %v16022_v27 = vld [vmem:[%s19071_s1 + $0x14c] ss:$16 sps:$4 sm:$0xff]   ;;  %v16039_v39 = vld [vmem:[%s19071_s1 + $0x168] ss:$16 sps:$4 sm:$0xff]  }
 0x335   :  { %14803 = vpow2.f32 %v11922_v24  ;;  %v16034_v31 = vld [vmem:[%s19071_s1 + $0x16c] ss:$16 sps:$4 sm:$0xff]   ;;  %v16051_v24 = vld [vmem:[%s19071_s1 + $0x188] ss:$16 sps:$4 sm:$0xff]  }
 0x336   :  { %14805 = vtanh.f32 %v1344_v19  ;;  %v16046_v43 = vld [vmem:[%s19071_s1 + $0x18c] ss:$16 sps:$4 sm:$0xff]  }
 0x33d   :  { %v14800_v17 = vpop.eup %14799 }
 0x33e   :  { %v14802_v11 = vpop.eup %14801  ;;  %v1352_v28 = vadd.f32 1.0, %v14800_v17  ;;  %v16057_v17 = vld [vmem:[%s19071_s1 + $0x1ac] ss:$16 sps:$4 sm:$0xff]  }
 0x33f   :  { %v1353_v21 = vadd.f32 1.0, %v14802_v11  ;;  %v14804_v30 = vpop.eup %14803  ;;  %v16063_v11 = vld [vmem:[%s19071_s1 + $0x1a8] ss:$16 sps:$4 sm:$0xff]  }
 0x340   :  { %14807 = vrcp.f32 %v1352_v28  ;;  %v14806_v7 = vpop.eup %14805  ;;  %v1362_v6 = vadd.f32 1.0, %v14804_v30  ;;  %v16069_v28 = vld [vmem:[%s19071_s1 + $0x1cc] ss:$16 sps:$4 sm:$0xff]  }
 0x341   :  { %14809 = vrcp.f32 %v1353_v21  ;;  %v16075_v21 = vld [vmem:[%s19071_s1 + $0x1c8] ss:$16 sps:$4 sm:$0xff]   ;;  %v16081_v30 = vld [vmem:[%s19071_s1 + $0x1ec] ss:$16 sps:$4 sm:$0xff]  }
 0x342   :  { %14811 = vrcp.f32 %v1362_v6 }
 0x34a   :  { %v14808_v22 = vpop.eup %14807 }
 0x34b   :  { %v14810_v15 = vpop.eup %14809  ;;  %v1366_v53 = vmul.f32 %v14808_v22, %v14806_v7  ;;  %v16087_v7 = vld [vmem:[%s19071_s1 + $0x1e8] ss:$16 sps:$4 sm:$0xff]  }
 0x34c   :  { %v1365_v26 = vmul.f32 %v14810_v15, %v15832_v35  ;;  %v14812_v57 = vpop.eup %14811  ;;  %v15998_v35 = vld [vmem:[%s19071_s1 + $0x10c] ss:$16 sps:$4 sm:$0xff]  }
 0x34d   :  { %1917 = vmatprep.subr.bf16.mxu1 %v15998_v35 }
 0x34e   :  { %v15970_v56 = vadd.f32 %v1366_v53, %v1365_v26 }
 0x350   :  { %14813 = vtanh.f32 %v15970_v56 }
 0x35a   :  { %v14814_v16 = vpop.eup %14813 }
 0x35b   :  { %v15973_v23 = vmul.f32 %v14814_v16, %v14812_v57 }
 0x35d   :  { %19104 = vst [vmem:[#allocation19_spill] sm:$0xff] %v15973_v23  ;;  %v1375_v19 = vpack.c.bf16 %v15973_v23, %v15973_v23 }
 0x35f   :  { %1601 = vmatmul.mubr.bf16.vlgmr.msra.gmra.mrb[12].mxu0 %v1375_v19  ;;  %1642 = vmatmul.mubr.bf16.vlgmr.msra.gmra.mrb[44].mxu1 %v1375_v19 }
 0x360   :  { %1877 = vmatpush1.bf16.msra.mxu0 %v15876_v61  ;;  %1908 = vmatprep.mubr.bf16.mxu0 %v19102_v51 }
 0x361   :  { %1878 = vmatprep.subr.bf16.mxu0 %v15883_v62  ;;  %1949 = vmatprep.mubr.bf16.mxu1 %v19102_v51 }
 0x362   :  { %1918 = vmatpush1.bf16.msra.mxu1 %v16003_v58 }
 0x363   :  { %1919 = vmatprep.subr.bf16.mxu1 %v16010_v18 }
 0x364   :  { %1879 = vmatpush1.bf16.msra.mxu0 %v15888_v63 }
 0x365   :  { %1880 = vmatprep.subr.bf16.mxu0 %v15895_v0 }
 0x366   :  { %1920 = vmatpush1.bf16.msra.mxu1 %v16015_v59 }
 0x367   :  { %1921 = vmatprep.subr.bf16.mxu1 %v16022_v27 }
 0x368   :  { %1881 = vmatpush1.bf16.msra.mxu0 %v15900_v2 }
 0x369   :  { %1882 = vmatprep.subr.bf16.mxu0 %v15907_v3 }
 0x36a   :  { %1922 = vmatpush1.bf16.msra.mxu1 %v16027_v9 }
 0x36b   :  { %1923 = vmatprep.subr.bf16.mxu1 %v16034_v31 }
 0x36c   :  { %1883 = vmatpush1.bf16.msra.mxu0 %v15912_v4 }
 0x36d   :  { %1884 = vmatprep.subr.bf16.mxu0 %v15919_v5 }
 0x36e   :  { %1924 = vmatpush1.bf16.msra.mxu1 %v16039_v39 }
 0x36f   :  { %1925 = vmatprep.subr.bf16.mxu1 %v16046_v43 }
 0x370   :  { %1885 = vmatpush1.bf16.msra.mxu0 %v15924_v13 }
 0x371   :  { %1886 = vmatprep.subr.bf16.mxu0 %v15930_v1 }
 0x372   :  { %1926 = vmatpush1.bf16.msra.mxu1 %v16051_v24 }
 0x373   :  { %1927 = vmatprep.subr.bf16.mxu1 %v16057_v17 }
 0x374   :  { %1887 = vmatpush1.bf16.msra.mxu0 %v15936_v8 }
 0x375   :  { %1888 = vmatprep.subr.bf16.mxu0 %v15942_v10 }
 0x376   :  { %1928 = vmatpush1.bf16.msra.mxu1 %v16063_v11 }
 0x377   :  { %1929 = vmatprep.subr.bf16.mxu1 %v16069_v28 }
 0x378   :  { %1889 = vmatpush1.bf16.msra.mxu0 %v15948_v52 }
 0x379   :  { %1890 = vmatprep.subr.bf16.mxu0 %v15954_v54 }
 0x37a   :  { %1930 = vmatpush1.bf16.msra.mxu1 %v16075_v21 }
 0x37b   :  { %1931 = vmatprep.subr.bf16.mxu1 %v16081_v30 }
 0x37c   :  { %1891 = vmatpush1.bf16.msra.mxu0 %v15960_v55 }
 0x37d   :  { %2184 = vmatprep.subr.bf16.mxu0 %v15871_v60 }
 0x37e   :  { %1932 = vmatpush1.bf16.msra.mxu1 %v16087_v7 }
 0x37f   :  { %2225 = vmatprep.subr.bf16.mxu1 %v15998_v35 }
 0x432   :  { %v1602_v22 = vpop.f32.mrb[12].mxu0  ;;  %v1643_v15 = vpop.f32.mrb[44].mxu1 }
 0x433   :  { %v1650_v53 = vadd.f32 %v1602_v22, %v15701_v32  ;;  %v1652_v6 = vadd.f32 %v1643_v15, %v15735_v25  ;;  %v1604_v26 = vpop.f32.mrb[13].mxu0  ;;  %v1645_v57 = vpop.f32.mrb[45].mxu1 }
 0x434   :  { %v1651_v16 = vadd.f32 %v1604_v26, %v15703_v34  ;;  %v1653_v19 = vadd.f32 %v1645_v57, %v15737_v29  ;;  %v1606_v50 = vpop.f32.mrb[14].mxu0  ;;  %v1647_v12 = vpop.f32.mrb[46].mxu1 }
 0x435   :  { %v11987_v48 = vmul.f32 -1.442695, %v1650_v53  ;;  %v1607_v23 = vpop.f32.mrb[15].mxu0  ;;  %v1648_v47 = vpop.f32.mrb[47].mxu1 }
 0x436   :  { %v11988_v14 = vmul.f32 -1.442695, %v1651_v16  ;;  %v11989_v20 = vmul.f32 -1.442695, %v1653_v19 }
 0x437   :  { %14815 = vpow2.f32 %v11987_v48 }
 0x438   :  { %14817 = vpow2.f32 %v11988_v14 }
 0x439   :  { %14819 = vpow2.f32 %v11989_v20 }
 0x43a   :  { %14821 = vtanh.f32 %v1652_v6 }
 0x441   :  { %v14816_v46 = vpop.eup %14815 }
 0x442   :  { %v14818_v49 = vpop.eup %14817  ;;  %v1660_v32 = vadd.f32 1.0, %v14816_v46 }
 0x443   :  { %v1661_v25 = vadd.f32 1.0, %v14818_v49  ;;  %v14820_v34 = vpop.eup %14819 }
 0x444   :  { %14823 = vrcp.f32 %v1660_v32  ;;  %v14822_v22 = vpop.eup %14821  ;;  %v1670_v15 = vadd.f32 1.0, %v14820_v34 }
 0x445   :  { %14825 = vrcp.f32 %v1661_v25 }
 0x446   :  { %14827 = vrcp.f32 %v1670_v15 }
 0x44e   :  { %v14824_v29 = vpop.eup %14823 }
 0x44f   :  { %v14826_v50 = vpop.eup %14825  ;;  %v1674_v12 = vmul.f32 %v14824_v29, %v14822_v22 }
 0x450   :  { %v1673_v47 = vmul.f32 %v14826_v50, %v15970_v56  ;;  %v14828_v48 = vpop.eup %14827 }
 0x452   :  { %v16097_v23 = vadd.f32 %v1674_v12, %v1673_v47 }
 0x454   :  { %14829 = vtanh.f32 %v16097_v23 }
 0x45e   :  { %v14830_v46 = vpop.eup %14829 }
 0x45f   :  { %v16100_v20 = vmul.f32 %v14830_v46, %v14828_v48 }
 0x461   :  { %v1683_v49 = vpack.c.bf16 %v16100_v20, %v16100_v20 }
 0x463   :  { %1909 = vmatmul.mubr.bf16.vlgmr.msra.gmra.mrb[16].mxu0 %v1683_v49  ;;  %1950 = vmatmul.mubr.bf16.vlgmr.msra.gmra.mrb[48].mxu1 %v1683_v49 }
 0x464   :  { %2185 = vmatpush1.bf16.msra.mxu0 %v15876_v61  ;;  %2226 = vmatpush1.bf16.msra.mxu1 %v16003_v58 }
 0x465   :  { %2186 = vmatprep.subr.bf16.mxu0 %v15883_v62  ;;  %2227 = vmatprep.subr.bf16.mxu1 %v16010_v18 }
 0x466   :  { %2216 = vmatprep.mubr.bf16.mxu0 %v19102_v51  ;;  %2257 = vmatprep.mubr.bf16.mxu1 %v19102_v51 }
 0x468   :  { %2187 = vmatpush1.bf16.msra.mxu0 %v15888_v63  ;;  %2228 = vmatpush1.bf16.msra.mxu1 %v16015_v59 }
 0x469   :  { %2188 = vmatprep.subr.bf16.mxu0 %v15895_v0  ;;  %2229 = vmatprep.subr.bf16.mxu1 %v16022_v27 }
 0x46c   :  { %2189 = vmatpush1.bf16.msra.mxu0 %v15900_v2  ;;  %2230 = vmatpush1.bf16.msra.mxu1 %v16027_v9 }
 0x46d   :  { %2190 = vmatprep.subr.bf16.mxu0 %v15907_v3  ;;  %2231 = vmatprep.subr.bf16.mxu1 %v16034_v31 }
 0x470   :  { %2191 = vmatpush1.bf16.msra.mxu0 %v15912_v4  ;;  %2232 = vmatpush1.bf16.msra.mxu1 %v16039_v39 }
 0x471   :  { %2192 = vmatprep.subr.bf16.mxu0 %v15919_v5  ;;  %2233 = vmatprep.subr.bf16.mxu1 %v16046_v43 }
 0x474   :  { %2193 = vmatpush1.bf16.msra.mxu0 %v15924_v13  ;;  %2234 = vmatpush1.bf16.msra.mxu1 %v16051_v24 }
 0x475   :  { %2194 = vmatprep.subr.bf16.mxu0 %v15930_v1  ;;  %2235 = vmatprep.subr.bf16.mxu1 %v16057_v17 }
 0x478   :  { %2195 = vmatpush1.bf16.msra.mxu0 %v15936_v8  ;;  %2236 = vmatpush1.bf16.msra.mxu1 %v16063_v11 }
 0x479   :  { %2196 = vmatprep.subr.bf16.mxu0 %v15942_v10  ;;  %2237 = vmatprep.subr.bf16.mxu1 %v16069_v28 }
 0x47c   :  { %2197 = vmatpush1.bf16.msra.mxu0 %v15948_v52  ;;  %2238 = vmatpush1.bf16.msra.mxu1 %v16075_v21 }
 0x47d   :  { %2198 = vmatprep.subr.bf16.mxu0 %v15954_v54  ;;  %2239 = vmatprep.subr.bf16.mxu1 %v16081_v30 }
 0x480   :  { %2199 = vmatpush1.bf16.msra.mxu0 %v15960_v55  ;;  %2240 = vmatpush1.bf16.msra.mxu1 %v16087_v7 }
 0x481   :  { %2492 = vmatprep.subr.bf16.mxu0 %v15871_v60  ;;  %2533 = vmatprep.subr.bf16.mxu1 %v15998_v35 }
 0x536   :  { %v1910_v14 = vpop.f32.mrb[16].mxu0  ;;  %v1951_v56 = vpop.f32.mrb[48].mxu1 }
 0x537   :  { %v1958_v53 = vadd.f32 %v1910_v14, %v15705_v36  ;;  %v1960_v6 = vadd.f32 %v1951_v56, %v15739_v33  ;;  %v1912_v26 = vpop.f32.mrb[17].mxu0  ;;  %v1953_v57 = vpop.f32.mrb[49].mxu1 }
 0x538   :  { %v1959_v16 = vadd.f32 %v1912_v26, %v15707_v38  ;;  %v1961_v19 = vadd.f32 %v1953_v57, %v15741_v37  ;;  %v1914_v32 = vpop.f32.mrb[18].mxu0  ;;  %v1955_v25 = vpop.f32.mrb[50].mxu1 }
 0x539   :  { %v12054_v34 = vmul.f32 -1.442695, %v1958_v53  ;;  %v1915_v22 = vpop.f32.mrb[19].mxu0  ;;  %v1956_v29 = vpop.f32.mrb[51].mxu1 }
 0x53a   :  { %v12055_v60 = vmul.f32 -1.442695, %v1959_v16  ;;  %v12056_v50 = vmul.f32 -1.442695, %v1961_v19 }
 0x53b   :  { %14831 = vpow2.f32 %v12054_v34 }
 0x53c   :  { %14833 = vpow2.f32 %v12055_v60 }
 0x53d   :  { %14835 = vpow2.f32 %v12056_v50 }
 0x53e   :  { %14837 = vtanh.f32 %v1960_v6 }
 0x545   :  { %v14832_v12 = vpop.eup %14831 }
 0x546   :  { %v14834_v15 = vpop.eup %14833  ;;  %v1968_v36 = vadd.f32 1.0, %v14832_v12 }
 0x547   :  { %v1969_v33 = vadd.f32 1.0, %v14834_v15  ;;  %v14836_v38 = vpop.eup %14835  ;;  %v14334_v15 = vld [vmem:[%s19071_s1 + $0x1e4] ss:$16 sps:$4 sm:$0xff]  }
 0x548   :  { %14839 = vrcp.f32 %v1968_v36  ;;  %v14838_v47 = vpop.eup %14837  ;;  %v1978_v49 = vadd.f32 1.0, %v14836_v38  ;;  %v14332_v36 = vld [vmem:[%s19071_s1 + $0x1e0] ss:$16 sps:$4 sm:$0xff]  }
 0x549   :  { %14841 = vrcp.f32 %v1969_v33  ;;  %v14337_v33 = vld [vmem:[%s19071_s1 + $0x204] ss:$16 sps:$4 sm:$0xff]  }
 0x54a   :  { %14843 = vrcp.f32 %v1978_v49 }
 0x552   :  { %v14840_v37 = vpop.eup %14839 }
 0x553   :  { %v14842_v48 = vpop.eup %14841  ;;  %v1982_v46 = vmul.f32 %v14840_v37, %v14838_v47 }
 0x554   :  { %v1981_v14 = vmul.f32 %v14842_v48, %v16097_v23  ;;  %v14844_v53 = vpop.eup %14843  ;;  %v19105_v48 = vld [vmem:[#allocation13_spill] sm:$0xff] }
 0x556   :  { %v16143_v56 = vadd.f32 %v1982_v46, %v1981_v14 }
 0x558   :  { %14845 = vtanh.f32 %v16143_v56 }
 0x562   :  { %v14846_v26 = vpop.eup %14845 }
 0x563   :  { %v16146_v57 = vmul.f32 %v14846_v26, %v14844_v53  ;;  %v19107_v26 = vld [vmem:[#allocation14_spill] sm:$0xff] }
 0x565   :  { %v1991_v6 = vpack.c.bf16 %v16146_v57, %v16146_v57 }
 0x567   :  { %2217 = vmatmul.mubr.bf16.vlgmr.msra.gmra.mrb[20].mxu0 %v1991_v6  ;;  %2258 = vmatmul.mubr.bf16.vlgmr.msra.gmra.mrb[52].mxu1 %v1991_v6 }
 0x568   :  { %2493 = vmatpush1.bf16.msra.mxu0 %v15876_v61  ;;  %2534 = vmatpush1.bf16.msra.mxu1 %v16003_v58 }
 0x569   :  { %2494 = vmatprep.subr.bf16.mxu0 %v15883_v62  ;;  %2535 = vmatprep.subr.bf16.mxu1 %v16010_v18 }
 0x56a   :  { %2524 = vmatprep.mubr.bf16.mxu0 %v19102_v51  ;;  %2565 = vmatprep.mubr.bf16.mxu1 %v19102_v51 }
 0x56c   :  { %2495 = vmatpush1.bf16.msra.mxu0 %v15888_v63  ;;  %2536 = vmatpush1.bf16.msra.mxu1 %v16015_v59 }
 0x56d   :  { %2496 = vmatprep.subr.bf16.mxu0 %v15895_v0  ;;  %2537 = vmatprep.subr.bf16.mxu1 %v16022_v27 }
 0x570   :  { %2497 = vmatpush1.bf16.msra.mxu0 %v15900_v2  ;;  %2538 = vmatpush1.bf16.msra.mxu1 %v16027_v9 }
 0x571   :  { %2498 = vmatprep.subr.bf16.mxu0 %v15907_v3  ;;  %2539 = vmatprep.subr.bf16.mxu1 %v16034_v31 }
 0x574   :  { %2499 = vmatpush1.bf16.msra.mxu0 %v15912_v4  ;;  %2540 = vmatpush1.bf16.msra.mxu1 %v16039_v39 }
 0x575   :  { %2500 = vmatprep.subr.bf16.mxu0 %v15919_v5  ;;  %2541 = vmatprep.subr.bf16.mxu1 %v16046_v43 }
 0x578   :  { %2501 = vmatpush1.bf16.msra.mxu0 %v15924_v13  ;;  %2542 = vmatpush1.bf16.msra.mxu1 %v16051_v24 }
 0x579   :  { %2502 = vmatprep.subr.bf16.mxu0 %v15930_v1  ;;  %2543 = vmatprep.subr.bf16.mxu1 %v16057_v17 }
 0x57c   :  { %2503 = vmatpush1.bf16.msra.mxu0 %v15936_v8  ;;  %2544 = vmatpush1.bf16.msra.mxu1 %v16063_v11 }
 0x57d   :  { %2504 = vmatprep.subr.bf16.mxu0 %v15942_v10  ;;  %2545 = vmatprep.subr.bf16.mxu1 %v16069_v28 }
 0x580   :  { %2505 = vmatpush1.bf16.msra.mxu0 %v15948_v52  ;;  %2546 = vmatpush1.bf16.msra.mxu1 %v16075_v21 }
 0x581   :  { %2506 = vmatprep.subr.bf16.mxu0 %v15954_v54  ;;  %2547 = vmatprep.subr.bf16.mxu1 %v16081_v30 }
 0x584   :  { %2507 = vmatpush1.bf16.msra.mxu0 %v15960_v55  ;;  %2548 = vmatpush1.bf16.msra.mxu1 %v16087_v7 }
 0x585   :  { %2841 = vmatprep.subr.bf16.mxu1 %v15998_v35 }
 0x63a   :  { %v2218_v61 = vpop.f32.mrb[20].mxu0  ;;  %v2259_v62 = vpop.f32.mrb[52].mxu1 }
 0x63b   :  { %v2266_v63 = vadd.f32 %v2218_v61, %v15709_v40  ;;  %v2268_v0 = vadd.f32 %v2259_v62, %v15743_v41  ;;  %v2220_v2 = vpop.f32.mrb[21].mxu0  ;;  %v2261_v3 = vpop.f32.mrb[53].mxu1 }
 0x63c   :  { %v2267_v4 = vadd.f32 %v2220_v2, %v15711_v42  ;;  %v2269_v5 = vadd.f32 %v2261_v3, %v15745_v45  ;;  %v2222_v13 = vpop.f32.mrb[22].mxu0  ;;  %v2263_v1 = vpop.f32.mrb[54].mxu1 }
 0x63d   :  { %v12121_v8 = vmul.f32 -1.442695, %v2266_v63  ;;  %v2223_v10 = vpop.f32.mrb[23].mxu0  ;;  %v2264_v52 = vpop.f32.mrb[55].mxu1 }
 0x63e   :  { %v12122_v54 = vmul.f32 -1.442695, %v2267_v4  ;;  %v12123_v55 = vmul.f32 -1.442695, %v2269_v5 }
 0x63f   :  { %14847 = vpow2.f32 %v12121_v8 }
 0x640   :  { %14849 = vpow2.f32 %v12122_v54 }
 0x641   :  { %14851 = vpow2.f32 %v12123_v55 }
 0x642   :  { %14853 = vtanh.f32 %v2268_v0 }
 0x649   :  { %v14848_v35 = vpop.eup %14847 }
 0x64a   :  { %v14850_v23 = vpop.eup %14849  ;;  %v2276_v40 = vadd.f32 1.0, %v14848_v35 }
 0x64b   :  { %v2277_v41 = vadd.f32 1.0, %v14850_v23  ;;  %v14852_v42 = vpop.eup %14851 }
 0x64c   :  { %14855 = vrcp.f32 %v2276_v40  ;;  %v14854_v16 = vpop.eup %14853  ;;  %v2286_v25 = vadd.f32 1.0, %v14852_v42 }
 0x64d   :  { %14857 = vrcp.f32 %v2277_v41 }
 0x64e   :  { %14859 = vrcp.f32 %v2286_v25  ;;  %v14343_v25 = vld [vmem:[%s19071_s1 + $0x224] ss:$16 sps:$4 sm:$0xff]  }
 0x656   :  { %v14856_v45 = vpop.eup %14855 }
 0x657   :  { %v14858_v19 = vpop.eup %14857  ;;  %v2290_v32 = vmul.f32 %v14856_v45, %v14854_v16  ;;  %v14335_v45 = vld [vmem:[%s19071_s1 + $0x200] ss:$16 sps:$4 sm:$0xff]  }
 0x658   :  { %v2289_v34 = vmul.f32 %v14858_v19, %v16143_v56  ;;  %v14860_v29 = vpop.eup %14859  ;;  %v19106_v56 = vld [vmem:[#allocation8_spill] sm:$0xff] }
 0x659   :  { %v14338_v19 = vld [vmem:[%s19071_s1 + $0x208] ss:$16 sps:$4 sm:$0xff]  }
 0x65a   :  { %v16188_v22 = vadd.f32 %v2290_v32, %v2289_v34  ;;  %v14346_v34 = vld [vmem:[%s19071_s1 + $0x22c] ss:$16 sps:$4 sm:$0xff]  }
 0x65c   :  { %14861 = vtanh.f32 %v16188_v22 }
 0x666   :  { %v14862_v60 = vpop.eup %14861 }
 0x667   :  { %v16191_v50 = vmul.f32 %v14862_v60, %v14860_v29  ;;  %v14344_v29 = vld [vmem:[%s19071_s1 + $0x228] ss:$16 sps:$4 sm:$0xff]   ;;  %v14349_v60 = vld [vmem:[%s19071_s1 + $0x244] ss:$16 sps:$4 sm:$0xff]  }
 0x669   :  { %v2299_v12 = vpack.c.bf16 %v16191_v50, %v16191_v50 }
 0x66b   :  { %2525 = vmatmul.mubr.bf16.vlgmr.msra.gmra.mrb[24].mxu0 %v2299_v12  ;;  %2566 = vmatmul.mubr.bf16.vlgmr.msra.gmra.mrb[56].mxu1 %v2299_v12  ;;  %v14352_v12 = vld [vmem:[%s19071_s1 + $0x24c] ss:$16 sps:$4 sm:$0xff]  }
 0x66c   :  { %2842 = vmatpush1.bf16.msra.mxu1 %v16003_v58  ;;  %2832 = vmatprep.mubr.bf16.mxu0 %v19102_v51  ;;  %v14313_v58 = vld [vmem:[%s19071_s1 + $0x104] ss:$16 sps:$4 sm:$0xff]  }
 0x66d   :  { %2843 = vmatprep.subr.bf16.mxu1 %v16010_v18  ;;  %2873 = vmatprep.mubr.bf16.mxu1 %v19102_v51  ;;  %v14311_v18 = vld [vmem:[%s19071_s1 + $0x100] ss:$16 sps:$4 sm:$0xff]  }
 0x66e   :  { %2800 = vmatprep.subr.bf16.mxu0 %v14313_v58  ;;  %v14347_v58 = vld [vmem:[%s19071_s1 + $0x240] ss:$16 sps:$4 sm:$0xff]  }
 0x66f   :  { %2801 = vmatpush1.bf16.msra.mxu0 %v14311_v18  ;;  %v14350_v18 = vld [vmem:[%s19071_s1 + $0x248] ss:$16 sps:$4 sm:$0xff]  }
 0x670   :  { %2844 = vmatpush1.bf16.msra.mxu1 %v16015_v59  ;;  %v14316_v59 = vld [vmem:[%s19071_s1 + $0x124] ss:$16 sps:$4 sm:$0xff]  }
 0x671   :  { %2845 = vmatprep.subr.bf16.mxu1 %v16022_v27  ;;  %v14314_v27 = vld [vmem:[%s19071_s1 + $0x120] ss:$16 sps:$4 sm:$0xff]   ;;  %2802 = vmatprep.subr.bf16.mxu0 %v14316_v59  ;;  %v14355_v59 = vld [vmem:[%s19071_s1 + $0x264] ss:$16 sps:$4 sm:$0xff]  }
 0x673   :  { %2803 = vmatpush1.bf16.msra.mxu0 %v14314_v27  ;;  %v14358_v27 = vld [vmem:[%s19071_s1 + $0x26c] ss:$16 sps:$4 sm:$0xff]  }
 0x674   :  { %2846 = vmatpush1.bf16.msra.mxu1 %v16027_v9  ;;  %v14319_v9 = vld [vmem:[%s19071_s1 + $0x144] ss:$16 sps:$4 sm:$0xff]  }
 0x675   :  { %2847 = vmatprep.subr.bf16.mxu1 %v16034_v31  ;;  %v14317_v31 = vld [vmem:[%s19071_s1 + $0x140] ss:$16 sps:$4 sm:$0xff]   ;;  %2804 = vmatprep.subr.bf16.mxu0 %v14319_v9 }
 0x676   :  { %v14353_v9 = vld [vmem:[%s19071_s1 + $0x260] ss:$16 sps:$4 sm:$0xff]  }
 0x677   :  { %2805 = vmatpush1.bf16.msra.mxu0 %v14317_v31  ;;  %v14356_v31 = vld [vmem:[%s19071_s1 + $0x268] ss:$16 sps:$4 sm:$0xff]  }
 0x678   :  { %2848 = vmatpush1.bf16.msra.mxu1 %v16039_v39  ;;  %v14322_v39 = vld [vmem:[%s19071_s1 + $0x164] ss:$16 sps:$4 sm:$0xff]  }
 0x679   :  { %2849 = vmatprep.subr.bf16.mxu1 %v16046_v43  ;;  %v14320_v43 = vld [vmem:[%s19071_s1 + $0x160] ss:$16 sps:$4 sm:$0xff]   ;;  %2806 = vmatprep.subr.bf16.mxu0 %v14322_v39  ;;  %v14361_v39 = vld [vmem:[%s19071_s1 + $0x284] ss:$16 sps:$4 sm:$0xff]  }
 0x67b   :  { %2807 = vmatpush1.bf16.msra.mxu0 %v14320_v43  ;;  %v14364_v43 = vld [vmem:[%s19071_s1 + $0x28c] ss:$16 sps:$4 sm:$0xff]  }
 0x67c   :  { %2850 = vmatpush1.bf16.msra.mxu1 %v16051_v24  ;;  %v14325_v24 = vld [vmem:[%s19071_s1 + $0x184] ss:$16 sps:$4 sm:$0xff]  }
 0x67d   :  { %2851 = vmatprep.subr.bf16.mxu1 %v16057_v17  ;;  %v14323_v17 = vld [vmem:[%s19071_s1 + $0x180] ss:$16 sps:$4 sm:$0xff]   ;;  %2808 = vmatprep.subr.bf16.mxu0 %v14325_v24 }
 0x67e   :  { %v14359_v24 = vld [vmem:[%s19071_s1 + $0x280] ss:$16 sps:$4 sm:$0xff]  }
 0x67f   :  { %2809 = vmatpush1.bf16.msra.mxu0 %v14323_v17  ;;  %v14362_v17 = vld [vmem:[%s19071_s1 + $0x288] ss:$16 sps:$4 sm:$0xff]  }
 0x680   :  { %2852 = vmatpush1.bf16.msra.mxu1 %v16063_v11  ;;  %v14326_v11 = vld [vmem:[%s19071_s1 + $0x1a0] ss:$16 sps:$4 sm:$0xff]  }
 0x681   :  { %2853 = vmatprep.subr.bf16.mxu1 %v16069_v28  ;;  %v14328_v28 = vld [vmem:[%s19071_s1 + $0x1a4] ss:$16 sps:$4 sm:$0xff]  }
 0x682   :  { %2810 = vmatprep.subr.bf16.mxu0 %v14328_v28  ;;  %v14370_v28 = vld [vmem:[%s19071_s1 + $0x2ac] ss:$16 sps:$4 sm:$0xff]  }
 0x683   :  { %2811 = vmatpush1.bf16.msra.mxu0 %v14326_v11  ;;  %v14367_v11 = vld [vmem:[%s19071_s1 + $0x2a4] ss:$16 sps:$4 sm:$0xff]  }
 0x684   :  { %2854 = vmatpush1.bf16.msra.mxu1 %v16075_v21  ;;  %v14331_v21 = vld [vmem:[%s19071_s1 + $0x1c4] ss:$16 sps:$4 sm:$0xff]  }
 0x685   :  { %2855 = vmatprep.subr.bf16.mxu1 %v16081_v30  ;;  %v14340_v30 = vld [vmem:[%s19071_s1 + $0x20c] ss:$16 sps:$4 sm:$0xff]   ;;  %2812 = vmatprep.subr.bf16.mxu0 %v14331_v21  ;;  %v14365_v21 = vld [vmem:[%s19071_s1 + $0x2a0] ss:$16 sps:$4 sm:$0xff]  }
 0x688   :  { %2856 = vmatpush1.bf16.msra.mxu1 %v16087_v7  ;;  %v14329_v7 = vld [vmem:[%s19071_s1 + $0x1c0] ss:$16 sps:$4 sm:$0xff]  }
 0x689   :  { %3212 = vmatprep.subr.bf16.mxu1 %v14340_v30  ;;  %2813 = vmatpush1.bf16.msra.mxu0 %v14329_v7  ;;  %v14368_v30 = vld [vmem:[%s19071_s1 + $0x2a8] ss:$16 sps:$4 sm:$0xff]   ;;  %v14373_v7 = vld [vmem:[%s19071_s1 + $0x2c4] ss:$16 sps:$4 sm:$0xff]  }
 0x68a   :  { %2814 = vmatprep.subr.bf16.mxu0 %v14334_v15  ;;  %v14376_v15 = vld [vmem:[%s19071_s1 + $0x2cc] ss:$16 sps:$4 sm:$0xff]  }
 0x68d   :  { %2815 = vmatpush1.bf16.msra.mxu0 %v14332_v36  ;;  %v14371_v36 = vld [vmem:[%s19071_s1 + $0x2c0] ss:$16 sps:$4 sm:$0xff]  }
 0x68e   :  { %3139 = vmatprep.subr.bf16.mxu0 %v14337_v33  ;;  %v14374_v33 = vld [vmem:[%s19071_s1 + $0x2c8] ss:$16 sps:$4 sm:$0xff]  }
 0x73e   :  { %v2526_v38 = vpop.f32.mrb[24].mxu0  ;;  %v2567_v47 = vpop.f32.mrb[56].mxu1 }
 0x73f   :  { %v2574_v37 = vadd.f32 %v2526_v38, %v15713_v44  ;;  %v2576_v46 = vadd.f32 %v2567_v47, %v19105_v48  ;;  %v2528_v49 = vpop.f32.mrb[25].mxu0  ;;  %v2569_v14 = vpop.f32.mrb[57].mxu1  ;;  %v14379_v38 = vld [vmem:[%s19071_s1 + $0x2e4] ss:$16 sps:$4 sm:$0xff]   ;;  %v14382_v47 = vld [vmem:[%s19071_s1 + $0x2ec] ss:$16 sps:$4 sm:$0xff]  }
 0x740   :  { %v2575_v53 = vadd.f32 %v2528_v49, %v19106_v56  ;;  %v2577_v6 = vadd.f32 %v2569_v14, %v19107_v26  ;;  %v2530_v61 = vpop.f32.mrb[26].mxu0  ;;  %v2571_v62 = vpop.f32.mrb[58].mxu1  ;;  %v14380_v48 = vld [vmem:[%s19071_s1 + $0x2e8] ss:$16 sps:$4 sm:$0xff]   ;;  %v2921_v26 = vpack.c.bf16 %v16191_v50, %v16146_v57  ;;  %v16395_v57 = vld [vmem:[%s19071_s1 + $0x300] ss:$16 sps:$4 sm:$0xff]  }
 0x741   :  { %v12188_v63 = vmul.f32 -1.442695, %v2574_v37  ;;  %v2531_v0 = vpop.f32.mrb[27].mxu0  ;;  %v2572_v2 = vpop.f32.mrb[59].mxu1  ;;  %v14377_v37 = vld [vmem:[%s19071_s1 + $0x2e0] ss:$16 sps:$4 sm:$0xff]  }
 0x742   :  { %v12189_v3 = vmul.f32 -1.442695, %v2575_v53  ;;  %v12190_v4 = vmul.f32 -1.442695, %v2577_v6  ;;  %v19109_v49 = vld [vmem:[#allocation18_spill] sm:$0xff]  ;;  %v19110_v56 = vld [vmem:[#allocation19_spill] sm:$0xff] }
 0x743   :  { %14863 = vpow2.f32 %v12188_v63  ;;  %v2920_v53 = vpack.c.bf16 %v16100_v20, %v19110_v56  ;;  %v16385_v6 = vld [vmem:[%s19071_s1 + $0x304] ss:$16 sps:$4 sm:$0xff]   ;;  %v16390_v20 = vld [vmem:[%s19071_s1 + $0x30c] ss:$16 sps:$4 sm:$0xff]   ;;  %v16400_v50 = vld [vmem:[%s19071_s1 + $0x308] ss:$16 sps:$4 sm:$0xff]  }
 0x744   :  { %14865 = vpow2.f32 %v12189_v3  ;;  %v16409_v61 = vld [vmem:[%s19071_s1 + $0x324] ss:$16 sps:$4 sm:$0xff]   ;;  %v16414_v62 = vld [vmem:[%s19071_s1 + $0x32c] ss:$16 sps:$4 sm:$0xff]   ;;  %v16419_v63 = vld [vmem:[%s19071_s1 + $0x320] ss:$16 sps:$4 sm:$0xff]  }
 0x745   :  { %14867 = vpow2.f32 %v12190_v4  ;;  %v16424_v0 = vld [vmem:[%s19071_s1 + $0x328] ss:$16 sps:$4 sm:$0xff]   ;;  %v16433_v2 = vld [vmem:[%s19071_s1 + $0x344] ss:$16 sps:$4 sm:$0xff]   ;;  %v16438_v3 = vld [vmem:[%s19071_s1 + $0x34c] ss:$16 sps:$4 sm:$0xff]  }
 0x746   :  { %14869 = vtanh.f32 %v2576_v46  ;;  %v19108_v46 = vld [vmem:[#allocation17_spill] sm:$0xff] }
 0x747   :  { %v2919_v14 = vpack.c.bf16 %v19109_v49, %v19108_v46  ;;  %v16443_v4 = vld [vmem:[%s19071_s1 + $0x340] ss:$16 sps:$4 sm:$0xff]  }
 0x74d   :  { %v14864_v5 = vpop.eup %14863 }
 0x74e   :  { %v14866_v13 = vpop.eup %14865  ;;  %v2584_v44 = vadd.f32 1.0, %v14864_v5  ;;  %v16448_v5 = vld [vmem:[%s19071_s1 + $0x348] ss:$16 sps:$4 sm:$0xff]  }
 0x74f   :  { %v2585_v1 = vadd.f32 1.0, %v14866_v13  ;;  %v14868_v8 = vpop.eup %14867  ;;  %v16457_v13 = vld [vmem:[%s19071_s1 + $0x360] ss:$16 sps:$4 sm:$0xff]  }
 0x750   :  { %14871 = vrcp.f32 %v2584_v44  ;;  %v14870_v10 = vpop.eup %14869  ;;  %v2594_v35 = vadd.f32 1.0, %v14868_v8  ;;  %v16462_v44 = vld [vmem:[%s19071_s1 + $0x364] ss:$16 sps:$4 sm:$0xff]   ;;  %v16472_v8 = vld [vmem:[%s19071_s1 + $0x36c] ss:$16 sps:$4 sm:$0xff]  }
 0x751   :  { %14873 = vrcp.f32 %v2585_v1  ;;  %v16467_v1 = vld [vmem:[%s19071_s1 + $0x368] ss:$16 sps:$4 sm:$0xff]  }
 0x752   :  { %14875 = vrcp.f32 %v2594_v35  ;;  %v16505_v35 = vld [vmem:[%s19071_s1 + $0x3a0] ss:$16 sps:$4 sm:$0xff]  }
 0x75a   :  { %v14872_v52 = vpop.eup %14871 }
 0x75b   :  { %v14874_v54 = vpop.eup %14873  ;;  %v2598_v55 = vmul.f32 %v14872_v52, %v14870_v10  ;;  %v16481_v10 = vld [vmem:[%s19071_s1 + $0x384] ss:$16 sps:$4 sm:$0xff]   ;;  %v16486_v52 = vld [vmem:[%s19071_s1 + $0x38c] ss:$16 sps:$4 sm:$0xff]  }
 0x75c   :  { %v2597_v23 = vmul.f32 %v14874_v54, %v16188_v22  ;;  %v14876_v41 = vpop.eup %14875  ;;  %v14341_v22 = vld [vmem:[%s19071_s1 + $0x220] ss:$16 sps:$4 sm:$0xff]  }
 0x75d   :  { %v16491_v54 = vld [vmem:[%s19071_s1 + $0x380] ss:$16 sps:$4 sm:$0xff]  }
 0x75e   :  { %v16271_v40 = vadd.f32 %v2598_v55, %v2597_v23  ;;  %v16496_v55 = vld [vmem:[%s19071_s1 + $0x388] ss:$16 sps:$4 sm:$0xff]   ;;  %v16510_v23 = vld [vmem:[%s19071_s1 + $0x3a4] ss:$16 sps:$4 sm:$0xff]  }
 0x760   :  { %14877 = vtanh.f32 %v16271_v40 }
 0x76a   :  { %v14878_v42 = vpop.eup %14877 }
 0x76b   :  { %v16274_v16 = vmul.f32 %v14878_v42, %v14876_v41  ;;  %v16515_v41 = vld [vmem:[%s19071_s1 + $0x3a8] ss:$16 sps:$4 sm:$0xff]   ;;  %v16520_v42 = vld [vmem:[%s19071_s1 + $0x3ac] ss:$16 sps:$4 sm:$0xff]  }
 0x76d   :  { %v2607_v32 = vpack.c.bf16 %v16274_v16, %v16274_v16 }
 0x76f   :  { %2833 = vmatmul.mubr.bf16.vlgmr.msra.gmra.mrb[28].mxu0 %v2607_v32  ;;  %2874 = vmatmul.mubr.bf16.vlgmr.msra.gmra.mrb[60].mxu1 %v2607_v32  ;;  %v16539_v32 = vld [vmem:[%s19071_s1 + $0x3c0] ss:$16 sps:$4 sm:$0xff]  }
 0x770   :  { %3140 = vmatpush1.bf16.msra.mxu0 %v14335_v45  ;;  %3213 = vmatpush1.bf16.msra.mxu1 %v14338_v19  ;;  %v16529_v45 = vld [vmem:[%s19071_s1 + $0x3c4] ss:$16 sps:$4 sm:$0xff]   ;;  %v16534_v19 = vld [vmem:[%s19071_s1 + $0x3cc] ss:$16 sps:$4 sm:$0xff]  }
 0x771   :  { %3141 = vmatprep.subr.bf16.mxu0 %v14343_v25  ;;  %3214 = vmatprep.subr.bf16.mxu1 %v14346_v34  ;;  %v16544_v25 = vld [vmem:[%s19071_s1 + $0x3c8] ss:$16 sps:$4 sm:$0xff]   ;;  %v16553_v34 = vld [vmem:[%s19071_s1 + $0x3e0] ss:$16 sps:$4 sm:$0xff]  }
 0x772   :  { %3171 = vmatprep.mubr.bf16.mxu0 %v19102_v51  ;;  %3244 = vmatprep.mubr.bf16.mxu1 %v19102_v51 }
 0x774   :  { %3142 = vmatpush1.bf16.msra.mxu0 %v14341_v22  ;;  %3215 = vmatpush1.bf16.msra.mxu1 %v14344_v29  ;;  %v16558_v22 = vld [vmem:[%s19071_s1 + $0x3e4] ss:$16 sps:$4 sm:$0xff]   ;;  %v16563_v29 = vld [vmem:[%s19071_s1 + $0x3e8] ss:$16 sps:$4 sm:$0xff]  }
 0x775   :  { %3143 = vmatprep.subr.bf16.mxu0 %v14349_v60  ;;  %3216 = vmatprep.subr.bf16.mxu1 %v14352_v12  ;;  %v16568_v60 = vld [vmem:[%s19071_s1 + $0x3ec] ss:$16 sps:$4 sm:$0xff]  }
 0x778   :  { %3144 = vmatpush1.bf16.msra.mxu0 %v14347_v58  ;;  %3217 = vmatpush1.bf16.msra.mxu1 %v14350_v18  ;;  %v19111_v18 = vld [vmem:[#allocation9_spill] sm:$0xff] }
 0x779   :  { %3145 = vmatprep.subr.bf16.mxu0 %v14355_v59  ;;  %3218 = vmatprep.subr.bf16.mxu1 %v14358_v27  ;;  %v19112_v27 = vld [vmem:[#allocation15_spill] sm:$0xff] }
 0x77c   :  { %3146 = vmatpush1.bf16.msra.mxu0 %v14353_v9  ;;  %3219 = vmatpush1.bf16.msra.mxu1 %v14356_v31 }
 0x77d   :  { %3147 = vmatprep.subr.bf16.mxu0 %v14361_v39  ;;  %3220 = vmatprep.subr.bf16.mxu1 %v14364_v43  ;;  %v19113_v43 = vld [vmem:[#allocation10_spill] sm:$0xff] }
 0x780   :  { %3148 = vmatpush1.bf16.msra.mxu0 %v14359_v24  ;;  %3221 = vmatpush1.bf16.msra.mxu1 %v14362_v17  ;;  %v19114_v17 = vld [vmem:[#allocation16_spill] sm:$0xff] }
 0x781   :  { %3149 = vmatprep.subr.bf16.mxu0 %v14367_v11  ;;  %3222 = vmatprep.subr.bf16.mxu1 %v14370_v28 }
 0x784   :  { %3150 = vmatpush1.bf16.msra.mxu0 %v14365_v21  ;;  %3223 = vmatpush1.bf16.msra.mxu1 %v14368_v30 }
 0x785   :  { %3151 = vmatprep.subr.bf16.mxu0 %v14373_v7  ;;  %3224 = vmatprep.subr.bf16.mxu1 %v14376_v15 }
 0x788   :  { %3152 = vmatpush1.bf16.msra.mxu0 %v14371_v36  ;;  %3225 = vmatpush1.bf16.msra.mxu1 %v14374_v33 }
 0x789   :  { %3153 = vmatprep.subr.bf16.mxu0 %v14379_v38  ;;  %3226 = vmatprep.subr.bf16.mxu1 %v14382_v47 }
 0x78c   :  { %3154 = vmatpush1.bf16.msra.mxu0 %v14377_v37  ;;  %3227 = vmatpush1.bf16.msra.mxu1 %v14380_v48 }
 0x78d   :  { %3514 = vmatprep.subr.bf16.mxu0 %v16385_v6  ;;  %3555 = vmatprep.subr.bf16.mxu1 %v16390_v20 }
 0x78f   :  { %3172 = vmatmul.mubr.bf16.vlgmr.msra.gmra.mrb[32].mxu0 %v2919_v14  ;;  %3245 = vmatmul.mubr.bf16.vlgmr.msra.gmra.mrb[64].mxu1 %v2919_v14 }
 0x790   :  { %3181 = vmatprep.mubr.bf16.mxu0 %v19102_v51  ;;  %3254 = vmatprep.mubr.bf16.mxu1 %v19102_v51 }
 0x791   :  { %3515 = vmatpush1.bf16.msra.mxu0 %v16395_v57  ;;  %3556 = vmatpush1.bf16.msra.mxu1 %v16400_v50 }
 0x792   :  { %3516 = vmatprep.subr.bf16.mxu0 %v16409_v61  ;;  %3557 = vmatprep.subr.bf16.mxu1 %v16414_v62 }
 0x795   :  { %3517 = vmatpush1.bf16.msra.mxu0 %v16419_v63  ;;  %3558 = vmatpush1.bf16.msra.mxu1 %v16424_v0 }
 0x796   :  { %3518 = vmatprep.subr.bf16.mxu0 %v16433_v2  ;;  %3559 = vmatprep.subr.bf16.mxu1 %v16438_v3 }
 0x797   :  { %3182 = vmatmul.mubr.bf16.gmra.mrb[36].mxu0 %v2920_v53  ;;  %3255 = vmatmul.mubr.bf16.gmra.mrb[68].mxu1 %v2920_v53 }
 0x798   :  { %3191 = vmatprep.mubr.bf16.mxu0 %v19102_v51  ;;  %3264 = vmatprep.mubr.bf16.mxu1 %v19102_v51 }
 0x799   :  { %3519 = vmatpush1.bf16.msra.mxu0 %v16443_v4  ;;  %3560 = vmatpush1.bf16.msra.mxu1 %v16448_v5 }
 0x79a   :  { %3520 = vmatprep.subr.bf16.mxu0 %v16462_v44  ;;  %3561 = vmatprep.subr.bf16.mxu1 %v16472_v8 }
 0x79d   :  { %3521 = vmatpush1.bf16.msra.mxu0 %v16457_v13  ;;  %3562 = vmatpush1.bf16.msra.mxu1 %v16467_v1 }
 0x79e   :  { %3522 = vmatprep.subr.bf16.mxu0 %v16481_v10  ;;  %3563 = vmatprep.subr.bf16.mxu1 %v16486_v52 }
 0x79f   :  { %3192 = vmatmul.mubr.bf16.gmra.mrb[40].mxu0 %v2921_v26  ;;  %3265 = vmatmul.mubr.bf16.gmra.mrb[72].mxu1 %v2921_v26 }
 0x7a0   :  { %3201 = vmatprep.mubr.bf16.mxu0 %v19102_v51  ;;  %3274 = vmatprep.mubr.bf16.mxu1 %v19102_v51 }
 0x7a1   :  { %3523 = vmatpush1.bf16.msra.mxu0 %v16491_v54  ;;  %3564 = vmatpush1.bf16.msra.mxu1 %v16496_v55 }
 0x7a2   :  { %3524 = vmatprep.subr.bf16.mxu0 %v16510_v23  ;;  %3565 = vmatprep.subr.bf16.mxu1 %v16520_v42 }
 0x7a5   :  { %3525 = vmatpush1.bf16.msra.mxu0 %v16505_v35  ;;  %3566 = vmatpush1.bf16.msra.mxu1 %v16515_v41 }
 0x7a6   :  { %3526 = vmatprep.subr.bf16.mxu0 %v16529_v45  ;;  %3567 = vmatprep.subr.bf16.mxu1 %v16534_v19 }
 0x7a9   :  { %3527 = vmatpush1.bf16.msra.mxu0 %v16539_v32  ;;  %3568 = vmatpush1.bf16.msra.mxu1 %v16544_v25 }
 0x7aa   :  { %3528 = vmatprep.subr.bf16.mxu0 %v16558_v22  ;;  %3569 = vmatprep.subr.bf16.mxu1 %v16568_v60 }
 0x7ad   :  { %3529 = vmatpush1.bf16.msra.mxu0 %v16553_v34  ;;  %3570 = vmatpush1.bf16.msra.mxu1 %v16563_v29 }
 0x7ae   :  { %3823 = vmatprep.subr.bf16.mxu0 %v16385_v6  ;;  %3864 = vmatprep.subr.bf16.mxu1 %v16390_v20 }
 0x842   :  { %v2834_v12 = vpop.f32.mrb[28].mxu0  ;;  %v2875_v58 = vpop.f32.mrb[60].mxu1 }
 0x843   :  { %v2882_v59 = vadd.f32 %v2834_v12, %v19111_v18  ;;  %v2884_v9 = vadd.f32 %v2875_v58, %v19112_v27  ;;  %v2836_v31 = vpop.f32.mrb[29].mxu0  ;;  %v2877_v39 = vpop.f32.mrb[61].mxu1 }
 0x844   :  { %v2883_v24 = vadd.f32 %v2836_v31, %v19113_v43  ;;  %v2885_v11 = vadd.f32 %v2877_v39, %v19114_v17  ;;  %v2838_v28 = vpop.f32.mrb[30].mxu0  ;;  %v2879_v21 = vpop.f32.mrb[62].mxu1 }
 0x845   :  { %v12255_v30 = vmul.f32 -1.442695, %v2882_v59  ;;  %v2839_v7 = vpop.f32.mrb[31].mxu0  ;;  %v2880_v15 = vpop.f32.mrb[63].mxu1 }
 0x846   :  { %v12256_v36 = vmul.f32 -1.442695, %v2883_v24  ;;  %v12257_v33 = vmul.f32 -1.442695, %v2885_v11 }
 0x847   :  { %14879 = vpow2.f32 %v12255_v30 }
 0x848   :  { %14881 = vpow2.f32 %v12256_v36 }
 0x849   :  { %14883 = vpow2.f32 %v12257_v33 }
 0x84a   :  { %14885 = vtanh.f32 %v2884_v9 }
 0x851   :  { %v14880_v38 = vpop.eup %14879 }
 0x852   :  { %v14882_v47 = vpop.eup %14881  ;;  %v2892_v37 = vadd.f32 1.0, %v14880_v38 }
 0x853   :  { %v2893_v48 = vadd.f32 1.0, %v14882_v47  ;;  %v14884_v46 = vpop.eup %14883 }
 0x854   :  { %14887 = vrcp.f32 %v2892_v37  ;;  %v14886_v49 = vpop.eup %14885  ;;  %v2902_v26 = vadd.f32 1.0, %v14884_v46 }
 0x855   :  { %14889 = vrcp.f32 %v2893_v48 }
 0x856   :  { %14891 = vrcp.f32 %v2902_v26  ;;  %v12290_v26 = vld [vmem:[%s19073_s2 + $0x1] ss:$4 sm:$0xf] }
 0x85e   :  { %v14888_v14 = vpop.eup %14887 }
 0x85f   :  { %v14890_v56 = vpop.eup %14889  ;;  %v2906_v53 = vmul.f32 %v14888_v14, %v14886_v49 }
 0x860   :  { %v2905_v12 = vmul.f32 %v14890_v56, %v16271_v40  ;;  %v14892_v7 = vpop.eup %14891 }
 0x862   :  { %v16581_v58 = vpop.f32.mrb[32].mxu0  ;;  %v16583_v18 = vpop.f32.mrb[64].mxu1  ;;  %v2907_v59 = vadd.f32 %v2906_v53, %v2905_v12 }
 0x863   :  { %v16585_v27 = vpop.f32.mrb[33].mxu0  ;;  %v16587_v9 = vpop.f32.mrb[65].mxu1 }
 0x864   :  { %v16589_v31 = vpop.f32.mrb[34].mxu0  ;;  %v16591_v39 = vpop.f32.mrb[66].mxu1  ;;  %14893 = vtanh.f32 %v2907_v59 }
 0x865   :  { %v16593_v43 = vpop.f32.mrb[35].mxu0  ;;  %v16595_v24 = vpop.f32.mrb[67].mxu1 }
 0x86a   :  { %v16597_v40 = vpop.f32.mrb[36].mxu0  ;;  %v16599_v17 = vpop.f32.mrb[68].mxu1 }
 0x86b   :  { %19115 = vst [vmem:[#allocation13_spill] sm:$0xff] %v16599_v17  ;;  %v16601_v11 = vpop.f32.mrb[37].mxu0  ;;  %v16603_v28 = vpop.f32.mrb[69].mxu1 }
 0x86c   :  { %19116 = vst [vmem:[#allocation8_spill] sm:$0xff] %v16601_v11  ;;  %19117 = vst [vmem:[#allocation14_spill] sm:$0xff] %v16603_v28  ;;  %v16605_v21 = vpop.f32.mrb[38].mxu0  ;;  %v16607_v30 = vpop.f32.mrb[70].mxu1 }
 0x86d   :  { %19118 = vst [vmem:[#allocation17_spill] sm:$0xff] %v16605_v21  ;;  %19119 = vst [vmem:[#allocation18_spill] sm:$0xff] %v16607_v30  ;;  %v16609_v15 = vpop.f32.mrb[39].mxu0  ;;  %v16611_v36 = vpop.f32.mrb[71].mxu1 }
 0x86e   :  { %19120 = vst [vmem:[#allocation19_spill] sm:$0xff] %v16609_v15  ;;  %19121 = vst [vmem:[#allocation9_spill] sm:$0xff] %v16611_v36  ;;  %v14894_v33 = vpop.eup %14893 }
 0x86f   :  { %v2909_v38 = vmul.f32 %v14894_v33, %v14892_v7 }
 0x871   :  { %v2922_v47 = vpack.c.bf16 %v2909_v38, %v16274_v16 }
 0x872   :  { %v16614_v37 = vpop.f32.mrb[40].mxu0  ;;  %v16616_v48 = vpop.f32.mrb[72].mxu1 }
 0x873   :  { %19122 = vst [vmem:[#allocation15_spill] sm:$0xff] %v16614_v37  ;;  %19123 = vst [vmem:[#allocation10_spill] sm:$0xff] %v16616_v48  ;;  %v16618_v46 = vpop.f32.mrb[41].mxu0  ;;  %v16620_v49 = vpop.f32.mrb[73].mxu1  ;;  %3202 = vmatmul.mubr.bf16.gmra.mrb[44].mxu0 %v2922_v47  ;;  %3275 = vmatmul.mubr.bf16.gmra.mrb[76].mxu1 %v2922_v47 }
 0x874   :  { %19124 = vst [vmem:[#allocation16_spill] sm:$0xff] %v16618_v46  ;;  %19125 = vst [vmem:[#allocation20_spill] sm:$0xff] %v16620_v49  ;;  %v16622_v14 = vpop.f32.mrb[42].mxu0  ;;  %v16624_v56 = vpop.f32.mrb[74].mxu1  ;;  %3546 = vmatprep.mubr.bf16.mxu0 %v19102_v51  ;;  %3587 = vmatprep.mubr.bf16.mxu1 %v19102_v51 }
 0x875   :  { %19126 = vst [vmem:[#allocation21_spill] sm:$0xff] %v16622_v14  ;;  %19127 = vst [vmem:[#allocation22_spill] sm:$0xff] %v16624_v56  ;;  %v16628_v53 = vpop.f32.mrb[43].mxu0  ;;  %v16630_v16 = vpop.f32.mrb[75].mxu1  ;;  %v19137_v56 = vld [vmem:[#allocation11_spill] sm:$0xff] }
 0x876   :  { %19128 = vst [vmem:[#allocation23_spill] sm:$0xff] %v16628_v53  ;;  %19129 = vst [vmem:[#allocation24_spill] sm:$0xff] %v16630_v16  ;;  %v19136_v16 = vld [vmem:[#allocation6_spill] sm:$0xff]  ;;  %v16687_v14 = vrot.slane %v12290_v26, %v19137_v56 }
 0x877   :  { %v16684_v53 = vrot.slane %v12290_v26, %v19136_v16 }
 0x878   :  { %v3247_v16 = vadd.f32 %v16583_v18, %v16687_v14 }
 0x87b   :  { %3547 = vmatmul.mubr.bf16.vlgmr.msra.gmra.mrb[48].mxu0 %v19102_v51  ;;  %3588 = vmatmul.mubr.bf16.vlgmr.msra.gmra.mrb[80].mxu1 %v19102_v51 }
 0x87c   :  { %3824 = vmatpush1.bf16.msra.mxu0 %v16395_v57  ;;  %3865 = vmatpush1.bf16.msra.mxu1 %v16400_v50 }
 0x87d   :  { %3825 = vmatprep.subr.bf16.mxu0 %v16409_v61  ;;  %3866 = vmatprep.subr.bf16.mxu1 %v16414_v62 }
 0x87e   :  { %3855 = vmatprep.mubr.bf16.mxu0 %v19102_v51  ;;  %3896 = vmatprep.mubr.bf16.mxu1 %v19102_v51 }
 0x880   :  { %3826 = vmatpush1.bf16.msra.mxu0 %v16419_v63  ;;  %3867 = vmatpush1.bf16.msra.mxu1 %v16424_v0 }
 0x881   :  { %3827 = vmatprep.subr.bf16.mxu0 %v16433_v2  ;;  %3868 = vmatprep.subr.bf16.mxu1 %v16438_v3 }
 0x884   :  { %3828 = vmatpush1.bf16.msra.mxu0 %v16443_v4  ;;  %3869 = vmatpush1.bf16.msra.mxu1 %v16448_v5 }
 0x885   :  { %3829 = vmatprep.subr.bf16.mxu0 %v16462_v44  ;;  %3870 = vmatprep.subr.bf16.mxu1 %v16472_v8 }
 0x888   :  { %3830 = vmatpush1.bf16.msra.mxu0 %v16457_v13  ;;  %3871 = vmatpush1.bf16.msra.mxu1 %v16467_v1 }
 0x889   :  { %3831 = vmatprep.subr.bf16.mxu0 %v16481_v10  ;;  %3872 = vmatprep.subr.bf16.mxu1 %v16486_v52 }
 0x88c   :  { %3832 = vmatpush1.bf16.msra.mxu0 %v16491_v54  ;;  %3873 = vmatpush1.bf16.msra.mxu1 %v16496_v55 }
 0x88d   :  { %3833 = vmatprep.subr.bf16.mxu0 %v16510_v23  ;;  %3874 = vmatprep.subr.bf16.mxu1 %v16520_v42 }
 0x890   :  { %3834 = vmatpush1.bf16.msra.mxu0 %v16505_v35  ;;  %3875 = vmatpush1.bf16.msra.mxu1 %v16515_v41 }
 0x891   :  { %3835 = vmatprep.subr.bf16.mxu0 %v16529_v45  ;;  %3876 = vmatprep.subr.bf16.mxu1 %v16534_v19 }
 0x894   :  { %3836 = vmatpush1.bf16.msra.mxu0 %v16539_v32  ;;  %3877 = vmatpush1.bf16.msra.mxu1 %v16544_v25 }
 0x895   :  { %3837 = vmatprep.subr.bf16.mxu0 %v16558_v22  ;;  %3878 = vmatprep.subr.bf16.mxu1 %v16568_v60 }
 0x898   :  { %3838 = vmatpush1.bf16.msra.mxu0 %v16553_v34  ;;  %3879 = vmatpush1.bf16.msra.mxu1 %v16563_v29 }
 0x899   :  { %4132 = vmatprep.subr.bf16.mxu0 %v16385_v6  ;;  %4173 = vmatprep.subr.bf16.mxu1 %v16390_v20 }
 0x946   :  { %v16671_v12 = vpop.f32.mrb[44].mxu0  ;;  %v16673_v59 = vpop.f32.mrb[76].mxu1 }
 0x947   :  { %19130 = vst [vmem:[#allocation25_spill] sm:$0xff] %v16671_v12  ;;  %19131 = vst [vmem:[#allocation26_spill] sm:$0xff] %v16673_v59  ;;  %v16675_v7 = vpop.f32.mrb[45].mxu0  ;;  %v16677_v33 = vpop.f32.mrb[77].mxu1  ;;  %v19140_v12 = vld [vmem:[#allocation7_spill] sm:$0xff] }
 0x948   :  { %19132 = vst [vmem:[#allocation27_spill] sm:$0xff] %v16675_v7  ;;  %19133 = vst [vmem:[#allocation28_spill] sm:$0xff] %v16677_v33  ;;  %v16679_v38 = vpop.f32.mrb[46].mxu0  ;;  %v16681_v47 = vpop.f32.mrb[78].mxu1  ;;  %v16694_v59 = vrot.slane %v12290_v26, %v19140_v12  ;;  %v19141_v7 = vld [vmem:[#allocation12_spill] sm:$0xff] }
 0x949   :  { %19134 = vst [vmem:[#allocation29_spill] sm:$0xff] %v16679_v38  ;;  %19135 = vst [vmem:[#allocation30_spill] sm:$0xff] %v16681_v47  ;;  %v16689_v49 = vpop.f32.mrb[47].mxu0  ;;  %v16691_v46 = vpop.f32.mrb[79].mxu1  ;;  %v16697_v48 = vrot.slane %v12290_v26, %v19141_v7  ;;  %v3174_v38 = vadd.f32 %v16581_v58, %v16684_v53 }
 0x94a   :  { %19138 = vst [vmem:[#allocation31_spill] sm:$0xff] %v16689_v49  ;;  %19139 = vst [vmem:[#allocation32_spill] sm:$0xff] %v16691_v46  ;;  %v3176_v56 = vadd.f32 %v16585_v27, %v16694_v59 }
 0x94b   :  { %v3249_v49 = vadd.f32 %v16587_v9, %v16697_v48 }
 0x94e   :  { %v3548_v47 = vpop.f32.mrb[48].mxu0  ;;  %v3589_v46 = vpop.f32.mrb[80].mxu1 }
 0x94f   :  { %v3596_v33 = vadd.f32 %v3548_v47, %v3174_v38  ;;  %v3598_v12 = vadd.f32 %v3589_v46, %v3247_v16  ;;  %v3550_v37 = vpop.f32.mrb[49].mxu0  ;;  %v3591_v36 = vpop.f32.mrb[81].mxu1  ;;  %v3253_v47 = vadd.f32 %v16595_v24, %v16697_v48 }
 0x950   :  { %v3597_v26 = vadd.f32 %v3550_v37, %v3176_v56  ;;  %v3599_v7 = vadd.f32 %v3591_v36, %v3249_v49  ;;  %v3552_v15 = vpop.f32.mrb[50].mxu0  ;;  %v3593_v30 = vpop.f32.mrb[82].mxu1 }
 0x951   :  { %v12387_v58 = vmul.f32 -1.442695, %v3596_v33  ;;  %v3553_v21 = vpop.f32.mrb[51].mxu0  ;;  %v3594_v28 = vpop.f32.mrb[83].mxu1  ;;  %v3180_v33 = vadd.f32 %v16593_v43, %v16694_v59 }
 0x952   :  { %v12388_v18 = vmul.f32 -1.442695, %v3597_v26  ;;  %v12389_v27 = vmul.f32 -1.442695, %v3599_v7  ;;  %v3251_v7 = vadd.f32 %v16591_v39, %v16687_v14 }
 0x953   :  { %14895 = vpow2.f32 %v12387_v58 }
 0x954   :  { %14897 = vpow2.f32 %v12388_v18 }
 0x955   :  { %14899 = vpow2.f32 %v12389_v27 }
 0x956   :  { %14901 = vtanh.f32 %v3598_v12  ;;  %v3178_v12 = vadd.f32 %v16589_v31, %v16684_v53 }
 0x95d   :  { %v14896_v11 = vpop.eup %14895 }
 0x95e   :  { %v14898_v17 = vpop.eup %14897  ;;  %v3606_v9 = vadd.f32 1.0, %v14896_v11 }
 0x95f   :  { %v3607_v38 = vadd.f32 1.0, %v14898_v17  ;;  %v14900_v46 = vpop.eup %14899 }
 0x960   :  { %14903 = vrcp.f32 %v3606_v9  ;;  %v14902_v37 = vpop.eup %14901  ;;  %v3616_v49 = vadd.f32 1.0, %v14900_v46 }
 0x961   :  { %14905 = vrcp.f32 %v3607_v38 }
 0x962   :  { %14907 = vrcp.f32 %v3616_v49 }
 0x96a   :  { %v14904_v36 = vpop.eup %14903 }
 0x96b   :  { %v14906_v15 = vpop.eup %14905  ;;  %v3620_v30 = vmul.f32 %v14904_v36, %v14902_v37 }
 0x96c   :  { %v3619_v21 = vmul.f32 0.0, %v14906_v15  ;;  %v14908_v56 = vpop.eup %14907 }
 0x96e   :  { %v16707_v28 = vadd.f32 %v3620_v30, %v3619_v21 }
 0x970   :  { %14909 = vtanh.f32 %v16707_v28 }
 0x97a   :  { %v14910_v16 = vpop.eup %14909 }
 0x97b   :  { %v16710_v11 = vmul.f32 %v14910_v16, %v14908_v56 }
 0x97d   :  { %v3630_v17 = vpack.c.bf16 %v16710_v11, %v16710_v11 }
 0x97f   :  { %3856 = vmatmul.mubr.bf16.vlgmr.msra.gmra.mrb[52].mxu0 %v3630_v17  ;;  %3897 = vmatmul.mubr.bf16.vlgmr.msra.gmra.mrb[84].mxu1 %v3630_v17 }
 0x980   :  { %4133 = vmatpush1.bf16.msra.mxu0 %v16395_v57  ;;  %4174 = vmatpush1.bf16.msra.mxu1 %v16400_v50 }
 0x981   :  { %4134 = vmatprep.subr.bf16.mxu0 %v16409_v61  ;;  %4175 = vmatprep.subr.bf16.mxu1 %v16414_v62 }
 0x982   :  { %4164 = vmatprep.mubr.bf16.mxu0 %v19102_v51  ;;  %4205 = vmatprep.mubr.bf16.mxu1 %v19102_v51 }
 0x984   :  { %4135 = vmatpush1.bf16.msra.mxu0 %v16419_v63  ;;  %4176 = vmatpush1.bf16.msra.mxu1 %v16424_v0 }
 0x985   :  { %4136 = vmatprep.subr.bf16.mxu0 %v16433_v2  ;;  %4177 = vmatprep.subr.bf16.mxu1 %v16438_v3 }
 0x988   :  { %4137 = vmatpush1.bf16.msra.mxu0 %v16443_v4  ;;  %4178 = vmatpush1.bf16.msra.mxu1 %v16448_v5 }
 0x989   :  { %4138 = vmatprep.subr.bf16.mxu0 %v16462_v44  ;;  %4179 = vmatprep.subr.bf16.mxu1 %v16472_v8 }
 0x98c   :  { %4139 = vmatpush1.bf16.msra.mxu0 %v16457_v13  ;;  %4180 = vmatpush1.bf16.msra.mxu1 %v16467_v1 }
 0x98d   :  { %4140 = vmatprep.subr.bf16.mxu0 %v16481_v10  ;;  %4181 = vmatprep.subr.bf16.mxu1 %v16486_v52 }
 0x990   :  { %4141 = vmatpush1.bf16.msra.mxu0 %v16491_v54  ;;  %4182 = vmatpush1.bf16.msra.mxu1 %v16496_v55 }
 0x991   :  { %4142 = vmatprep.subr.bf16.mxu0 %v16510_v23  ;;  %4183 = vmatprep.subr.bf16.mxu1 %v16520_v42 }
 0x994   :  { %4143 = vmatpush1.bf16.msra.mxu0 %v16505_v35  ;;  %4184 = vmatpush1.bf16.msra.mxu1 %v16515_v41 }
 0x995   :  { %4144 = vmatprep.subr.bf16.mxu0 %v16529_v45  ;;  %4185 = vmatprep.subr.bf16.mxu1 %v16534_v19 }
 0x998   :  { %4145 = vmatpush1.bf16.msra.mxu0 %v16539_v32  ;;  %4186 = vmatpush1.bf16.msra.mxu1 %v16544_v25 }
 0x999   :  { %4146 = vmatprep.subr.bf16.mxu0 %v16558_v22  ;;  %4187 = vmatprep.subr.bf16.mxu1 %v16568_v60 }
 0x99c   :  { %4147 = vmatpush1.bf16.msra.mxu0 %v16553_v34  ;;  %4188 = vmatpush1.bf16.msra.mxu1 %v16563_v29 }
 0x99d   :  { %4441 = vmatprep.subr.bf16.mxu0 %v16385_v6  ;;  %4482 = vmatprep.subr.bf16.mxu1 %v16390_v20 }
 0xa52   :  { %v3857_v26 = vpop.f32.mrb[52].mxu0  ;;  %v3898_v58 = vpop.f32.mrb[84].mxu1 }
 0xa53   :  { %v3905_v18 = vadd.f32 %v3857_v26, %v3178_v12  ;;  %v3907_v27 = vadd.f32 %v3898_v58, %v3251_v7  ;;  %v3859_v9 = vpop.f32.mrb[53].mxu0  ;;  %v3900_v6 = vpop.f32.mrb[85].mxu1 }
 0xa54   :  { %v3906_v38 = vadd.f32 %v3859_v9, %v3180_v33  ;;  %v3908_v20 = vadd.f32 %v3900_v6, %v3253_v47  ;;  %v3861_v46 = vpop.f32.mrb[54].mxu0  ;;  %v3902_v37 = vpop.f32.mrb[86].mxu1  ;;  %v3624_v6 = vmax.f32 %v16710_v11, 0.0 }
 0xa55   :  { %v12454_v31 = vmul.f32 -1.442695, %v3905_v18  ;;  %v3862_v36 = vpop.f32.mrb[55].mxu0  ;;  %v3903_v15 = vpop.f32.mrb[87].mxu1 }
 0xa56   :  { %v12455_v39 = vmul.f32 -1.442695, %v3906_v38  ;;  %v12456_v43 = vmul.f32 -1.442695, %v3908_v20 }
 0xa57   :  { %14911 = vpow2.f32 %v12454_v31 }
 0xa58   :  { %14913 = vpow2.f32 %v12455_v39  ;;  %v16816_v39 = vld [vmem:[%s19071_s1 + $0x304] ss:$16 sps:$4 sm:$0xff]  }
 0xa59   :  { %14915 = vpow2.f32 %v12456_v43  ;;  %v16821_v43 = vld [vmem:[%s19071_s1 + $0x30c] ss:$16 sps:$4 sm:$0xff]  }
 0xa5a   :  { %14917 = vtanh.f32 %v3907_v27 }
 0xa61   :  { %v14912_v30 = vpop.eup %14911 }
 0xa62   :  { %v14914_v49 = vpop.eup %14913  ;;  %v3915_v24 = vadd.f32 1.0, %v14912_v30  ;;  %v16826_v30 = vld [vmem:[%s19071_s1 + $0x300] ss:$16 sps:$4 sm:$0xff]  }
 0xa63   :  { %v3916_v21 = vadd.f32 1.0, %v14914_v49  ;;  %v14916_v56 = vpop.eup %14915  ;;  %v16831_v49 = vld [vmem:[%s19071_s1 + $0x308] ss:$16 sps:$4 sm:$0xff]  }
 0xa64   :  { %14919 = vrcp.f32 %v3915_v24  ;;  %v14918_v16 = vpop.eup %14917  ;;  %v3925_v33 = vadd.f32 1.0, %v14916_v56  ;;  %v16840_v24 = vld [vmem:[%s19071_s1 + $0x324] ss:$16 sps:$4 sm:$0xff]   ;;  %v16850_v56 = vld [vmem:[%s19071_s1 + $0x320] ss:$16 sps:$4 sm:$0xff]  }
 0xa65   :  { %14921 = vrcp.f32 %v3916_v21  ;;  %v16845_v21 = vld [vmem:[%s19071_s1 + $0x32c] ss:$16 sps:$4 sm:$0xff]  }
 0xa66   :  { %14923 = vrcp.f32 %v3925_v33  ;;  %v16879_v33 = vld [vmem:[%s19071_s1 + $0x348] ss:$16 sps:$4 sm:$0xff]  }
 0xa6e   :  { %v14920_v17 = vpop.eup %14919 }
 0xa6f   :  { %v14922_v12 = vpop.eup %14921  ;;  %v3929_v7 = vmul.f32 %v14920_v17, %v14918_v16  ;;  %v16855_v16 = vld [vmem:[%s19071_s1 + $0x328] ss:$16 sps:$4 sm:$0xff]   ;;  %v16864_v17 = vld [vmem:[%s19071_s1 + $0x344] ss:$16 sps:$4 sm:$0xff]  }
 0xa70   :  { %v3928_v47 = vmul.f32 %v14922_v12, %v16707_v28  ;;  %v14924_v58 = vpop.eup %14923  ;;  %v16869_v12 = vld [vmem:[%s19071_s1 + $0x34c] ss:$16 sps:$4 sm:$0xff]  }
 0xa72   :  { %v16757_v26 = vadd.f32 %v3929_v7, %v3928_v47  ;;  %v16874_v7 = vld [vmem:[%s19071_s1 + $0x340] ss:$16 sps:$4 sm:$0xff]   ;;  %v16888_v47 = vld [vmem:[%s19071_s1 + $0x364] ss:$16 sps:$4 sm:$0xff]  }
 0xa74   :  { %14925 = vtanh.f32 %v16757_v26 }
 0xa7e   :  { %v14926_v18 = vpop.eup %14925 }
 0xa7f   :  { %v3932_v9 = vmul.f32 %v14926_v18, %v14924_v58  ;;  %v16898_v58 = vld [vmem:[%s19071_s1 + $0x360] ss:$16 sps:$4 sm:$0xff]   ;;  %v16903_v18 = vld [vmem:[%s19071_s1 + $0x368] ss:$16 sps:$4 sm:$0xff]  }
 0xa81   :  { %v3939_v27 = vpack.c.bf16 %v3932_v9, %v3932_v9  ;;  %v3933_v38 = vmax.f32 %v3932_v9, 0.0  ;;  %v16912_v9 = vld [vmem:[%s19071_s1 + $0x384] ss:$16 sps:$4 sm:$0xff]  }
 0xa83   :  { %4165 = vmatmul.mubr.bf16.vlgmr.msra.gmra.mrb[56].mxu0 %v3939_v27  ;;  %4206 = vmatmul.mubr.bf16.vlgmr.msra.gmra.mrb[88].mxu1 %v3939_v27  ;;  %v16761_v20 = vpack.c.bf16 %v3933_v38, %v3624_v6  ;;  %v16917_v27 = vld [vmem:[%s19071_s1 + $0x38c] ss:$16 sps:$4 sm:$0xff]   ;;  %v16922_v6 = vld [vmem:[%s19071_s1 + $0x380] ss:$16 sps:$4 sm:$0xff]   ;;  %v16927_v38 = vld [vmem:[%s19071_s1 + $0x388] ss:$16 sps:$4 sm:$0xff]  }
 0xa84   :  { %4442 = vmatpush1.bf16.msra.mxu0 %v16395_v57  ;;  %4483 = vmatpush1.bf16.msra.mxu1 %v16400_v50  ;;  %v3184_v57 = vadd.f32 %v16597_v40, %v16684_v53  ;;  %v19142_v50 = vld [vmem:[#allocation13_spill] sm:$0xff] }
 0xa85   :  { %4443 = vmatprep.subr.bf16.mxu0 %v16409_v61  ;;  %4484 = vmatprep.subr.bf16.mxu1 %v16414_v62  ;;  %v3257_v61 = vadd.f32 %v19142_v50, %v16687_v14  ;;  %v19143_v62 = vld [vmem:[#allocation8_spill] sm:$0xff] }
 0xa86   :  { %4473 = vmatprep.mubr.bf16.mxu0 %v19102_v51  ;;  %4514 = vmatprep.mubr.bf16.mxu1 %v19102_v51  ;;  %v16941_v50 = vld [vmem:[%s19071_s1 + $0x3a0] ss:$16 sps:$4 sm:$0xff]  }
 0xa88   :  { %4444 = vmatpush1.bf16.msra.mxu0 %v16419_v63  ;;  %4485 = vmatpush1.bf16.msra.mxu1 %v16424_v0  ;;  %v3186_v63 = vadd.f32 %v19143_v62, %v16694_v59  ;;  %v19144_v0 = vld [vmem:[#allocation14_spill] sm:$0xff]  ;;  %v16951_v62 = vld [vmem:[%s19071_s1 + $0x3ac] ss:$16 sps:$4 sm:$0xff]  }
 0xa89   :  { %4445 = vmatprep.subr.bf16.mxu0 %v16433_v2  ;;  %4486 = vmatprep.subr.bf16.mxu1 %v16438_v3  ;;  %v3259_v2 = vadd.f32 %v19144_v0, %v16697_v48  ;;  %v16962_v0 = vld [vmem:[%s19071_s1 + $0x3cc] ss:$16 sps:$4 sm:$0xff]  }
 0xa8c   :  { %4446 = vmatpush1.bf16.msra.mxu0 %v16443_v4  ;;  %4487 = vmatpush1.bf16.msra.mxu1 %v16448_v5 }
 0xa8d   :  { %4447 = vmatprep.subr.bf16.mxu0 %v16462_v44  ;;  %4488 = vmatprep.subr.bf16.mxu1 %v16472_v8 }
 0xa90   :  { %4448 = vmatpush1.bf16.msra.mxu0 %v16457_v13  ;;  %4489 = vmatpush1.bf16.msra.mxu1 %v16467_v1 }
 0xa91   :  { %4449 = vmatprep.subr.bf16.mxu0 %v16481_v10  ;;  %4490 = vmatprep.subr.bf16.mxu1 %v16486_v52 }
 0xa94   :  { %4450 = vmatpush1.bf16.msra.mxu0 %v16491_v54  ;;  %4491 = vmatpush1.bf16.msra.mxu1 %v16496_v55 }
 0xa95   :  { %4451 = vmatprep.subr.bf16.mxu0 %v16510_v23  ;;  %4492 = vmatprep.subr.bf16.mxu1 %v16520_v42 }
 0xa98   :  { %4452 = vmatpush1.bf16.msra.mxu0 %v16505_v35  ;;  %4493 = vmatpush1.bf16.msra.mxu1 %v16515_v41 }
 0xa99   :  { %4453 = vmatprep.subr.bf16.mxu0 %v16529_v45  ;;  %4494 = vmatprep.subr.bf16.mxu1 %v16534_v19 }
 0xa9c   :  { %4454 = vmatpush1.bf16.msra.mxu0 %v16539_v32  ;;  %4495 = vmatpush1.bf16.msra.mxu1 %v16544_v25 }
 0xa9d   :  { %4455 = vmatprep.subr.bf16.mxu0 %v16558_v22  ;;  %4496 = vmatprep.subr.bf16.mxu1 %v16568_v60 }
 0xaa0   :  { %4456 = vmatpush1.bf16.msra.mxu0 %v16553_v34  ;;  %4497 = vmatpush1.bf16.msra.mxu1 %v16563_v29 }
 0xaa1   :  { %4750 = vmatprep.subr.bf16.mxu0 %v16816_v39  ;;  %4791 = vmatprep.subr.bf16.mxu1 %v16821_v43 }
 0xb56   :  { %v4166_v3 = vpop.f32.mrb[56].mxu0  ;;  %v4207_v4 = vpop.f32.mrb[88].mxu1 }
 0xb57   :  { %v4214_v5 = vadd.f32 %v4166_v3, %v3184_v57  ;;  %v4216_v13 = vadd.f32 %v4207_v4, %v3257_v61  ;;  %v4168_v44 = vpop.f32.mrb[57].mxu0  ;;  %v4209_v1 = vpop.f32.mrb[89].mxu1  ;;  %v16934_v57 = vld [vmem:[%s19071_s1 + $0x3a4] ss:$16 sps:$4 sm:$0xff]   ;;  %v16946_v61 = vld [vmem:[%s19071_s1 + $0x3a8] ss:$16 sps:$4 sm:$0xff]  }
 0xb58   :  { %v4215_v8 = vadd.f32 %v4168_v44, %v3186_v63  ;;  %v4217_v10 = vadd.f32 %v4209_v1, %v3259_v2  ;;  %v4170_v52 = vpop.f32.mrb[58].mxu0  ;;  %v4211_v54 = vpop.f32.mrb[90].mxu1  ;;  %v16957_v63 = vld [vmem:[%s19071_s1 + $0x3c4] ss:$16 sps:$4 sm:$0xff]   ;;  %v16970_v2 = vld [vmem:[%s19071_s1 + $0x3c0] ss:$16 sps:$4 sm:$0xff]  }
 0xb59   :  { %v12521_v55 = vmul.f32 -1.442695, %v4214_v5  ;;  %v4171_v35 = vpop.f32.mrb[59].mxu0  ;;  %v4212_v23 = vpop.f32.mrb[91].mxu1  ;;  %v16975_v3 = vld [vmem:[%s19071_s1 + $0x3c8] ss:$16 sps:$4 sm:$0xff]  }
 0xb5a   :  { %v12522_v41 = vmul.f32 -1.442695, %v4215_v8  ;;  %v12523_v42 = vmul.f32 -1.442695, %v4217_v10  ;;  %v16982_v4 = vld [vmem:[%s19071_s1 + $0x3e4] ss:$16 sps:$4 sm:$0xff]  }
 0xb5b   :  { %14927 = vpow2.f32 %v12521_v55  ;;  %v16987_v5 = vld [vmem:[%s19071_s1 + $0x3ec] ss:$16 sps:$4 sm:$0xff]   ;;  %v16999_v44 = vld [vmem:[%s19071_s1 + $0x3e8] ss:$16 sps:$4 sm:$0xff]  }
 0xb5c   :  { %14929 = vpow2.f32 %v12522_v41  ;;  %v19145_v1 = vld [vmem:[#allocation17_spill] sm:$0xff]  ;;  %v19146_v10 = vld [vmem:[#allocation18_spill] sm:$0xff]  ;;  %v19147_v54 = vld [vmem:[#allocation19_spill] sm:$0xff] }
 0xb5d   :  { %14931 = vpow2.f32 %v12523_v42  ;;  %v3188_v8 = vadd.f32 %v19145_v1, %v16684_v53  ;;  %v3261_v52 = vadd.f32 %v19146_v10, %v16687_v14  ;;  %v3190_v55 = vadd.f32 %v19147_v54, %v16694_v59  ;;  %v19148_v35 = vld [vmem:[#allocation9_spill] sm:$0xff] }
 0xb5e   :  { %14933 = vtanh.f32 %v4216_v13  ;;  %v16994_v13 = vld [vmem:[%s19071_s1 + $0x3e0] ss:$16 sps:$4 sm:$0xff]   ;;  %v3263_v23 = vadd.f32 %v19148_v35, %v16697_v48 }
 0xb65   :  { %v14928_v45 = vpop.eup %14927 }
 0xb66   :  { %v14930_v19 = vpop.eup %14929  ;;  %v4224_v32 = vadd.f32 1.0, %v14928_v45 }
 0xb67   :  { %v4225_v25 = vadd.f32 1.0, %v14930_v19  ;;  %v14932_v34 = vpop.eup %14931 }
 0xb68   :  { %14935 = vrcp.f32 %v4224_v32  ;;  %v14934_v22 = vpop.eup %14933  ;;  %v4234_v28 = vadd.f32 1.0, %v14932_v34 }
 0xb69   :  { %14937 = vrcp.f32 %v4225_v25 }
 0xb6a   :  { %14939 = vrcp.f32 %v4234_v28 }
 0xb72   :  { %v14936_v29 = vpop.eup %14935 }
 0xb73   :  { %v14938_v60 = vpop.eup %14937  ;;  %v4238_v40 = vmul.f32 %v14936_v29, %v14934_v22 }
 0xb74   :  { %v4237_v11 = vmul.f32 %v14938_v60, %v16757_v26  ;;  %v14940_v37 = vpop.eup %14939  ;;  %v16893_v26 = vld [vmem:[%s19071_s1 + $0x36c] ss:$16 sps:$4 sm:$0xff]  }
 0xb76   :  { %v16804_v46 = vadd.f32 %v4238_v40, %v4237_v11 }
 0xb78   :  { %14941 = vtanh.f32 %v16804_v46 }
 0xb82   :  { %v14942_v31 = vpop.eup %14941 }
 0xb83   :  { %v16807_v36 = vmul.f32 %v14942_v31, %v14940_v37 }
 0xb85   :  { %v4248_v15 = vpack.c.bf16 %v16807_v36, %v16807_v36 }
 0xb87   :  { %4474 = vmatmul.mubr.bf16.vlgmr.msra.gmra.mrb[60].mxu0 %v4248_v15  ;;  %4515 = vmatmul.mubr.bf16.vlgmr.msra.gmra.mrb[92].mxu1 %v4248_v15 }
 0xb88   :  { %4782 = vmatprep.mubr.bf16.mxu0 %v19102_v51  ;;  %4823 = vmatprep.mubr.bf16.mxu1 %v19102_v51 }
 0xb89   :  { %4751 = vmatpush1.bf16.msra.mxu0 %v16826_v30  ;;  %4792 = vmatpush1.bf16.msra.mxu1 %v16831_v49 }
 0xb8a   :  { %4752 = vmatprep.subr.bf16.mxu0 %v16840_v24  ;;  %4793 = vmatprep.subr.bf16.mxu1 %v16845_v21 }
 0xb8d   :  { %4753 = vmatpush1.bf16.msra.mxu0 %v16850_v56  ;;  %4794 = vmatpush1.bf16.msra.mxu1 %v16855_v16 }
 0xb8e   :  { %4754 = vmatprep.subr.bf16.mxu0 %v16864_v17  ;;  %4795 = vmatprep.subr.bf16.mxu1 %v16869_v12 }
 0xb91   :  { %4755 = vmatpush1.bf16.msra.mxu0 %v16874_v7  ;;  %4796 = vmatpush1.bf16.msra.mxu1 %v16879_v33 }
 0xb92   :  { %4756 = vmatprep.subr.bf16.mxu0 %v16888_v47  ;;  %4797 = vmatprep.subr.bf16.mxu1 %v16893_v26 }
 0xb95   :  { %4757 = vmatpush1.bf16.msra.mxu0 %v16898_v58  ;;  %4798 = vmatpush1.bf16.msra.mxu1 %v16903_v18 }
 0xb96   :  { %4758 = vmatprep.subr.bf16.mxu0 %v16912_v9  ;;  %4799 = vmatprep.subr.bf16.mxu1 %v16917_v27 }
 0xb99   :  { %4759 = vmatpush1.bf16.msra.mxu0 %v16922_v6  ;;  %4800 = vmatpush1.bf16.msra.mxu1 %v16927_v38 }
 0xb9a   :  { %4760 = vmatprep.subr.bf16.mxu0 %v16934_v57  ;;  %4801 = vmatprep.subr.bf16.mxu1 %v16951_v62 }
 0xb9d   :  { %4761 = vmatpush1.bf16.msra.mxu0 %v16941_v50  ;;  %4802 = vmatpush1.bf16.msra.mxu1 %v16946_v61 }
 0xb9e   :  { %4762 = vmatprep.subr.bf16.mxu0 %v16957_v63  ;;  %4803 = vmatprep.subr.bf16.mxu1 %v16962_v0 }
 0xba1   :  { %4763 = vmatpush1.bf16.msra.mxu0 %v16970_v2  ;;  %4804 = vmatpush1.bf16.msra.mxu1 %v16975_v3 }
 0xba2   :  { %4764 = vmatprep.subr.bf16.mxu0 %v16982_v4  ;;  %4805 = vmatprep.subr.bf16.mxu1 %v16987_v5 }
 0xba5   :  { %4765 = vmatpush1.bf16.msra.mxu0 %v16994_v13  ;;  %4806 = vmatpush1.bf16.msra.mxu1 %v16999_v44 }
 0xba6   :  { %5059 = vmatprep.subr.bf16.mxu0 %v16816_v39  ;;  %5100 = vmatprep.subr.bf16.mxu1 %v16821_v43 }
 0xc5a   :  { %v4475_v41 = vpop.f32.mrb[60].mxu0  ;;  %v4516_v42 = vpop.f32.mrb[92].mxu1 }
 0xc5b   :  { %v4523_v45 = vadd.f32 %v4475_v41, %v3188_v8  ;;  %v4525_v19 = vadd.f32 %v4516_v42, %v3261_v52  ;;  %v4477_v32 = vpop.f32.mrb[61].mxu0  ;;  %v4518_v25 = vpop.f32.mrb[93].mxu1 }
 0xc5c   :  { %v4524_v34 = vadd.f32 %v4477_v32, %v3190_v55  ;;  %v4526_v22 = vadd.f32 %v4518_v25, %v3263_v23  ;;  %v4479_v29 = vpop.f32.mrb[62].mxu0  ;;  %v4520_v60 = vpop.f32.mrb[94].mxu1 }
 0xc5d   :  { %v12588_v40 = vmul.f32 -1.442695, %v4523_v45  ;;  %v4480_v28 = vpop.f32.mrb[63].mxu0  ;;  %v4521_v11 = vpop.f32.mrb[95].mxu1 }
 0xc5e   :  { %v12589_v37 = vmul.f32 -1.442695, %v4524_v34  ;;  %v12590_v31 = vmul.f32 -1.442695, %v4526_v22  ;;  %v4242_v22 = vmax.f32 %v16807_v36, 0.0  ;;  %v19151_v11 = vld [vmem:[#allocation16_spill] sm:$0xff] }
 0xc5f   :  { %14943 = vpow2.f32 %v12588_v40  ;;  %v19150_v40 = vld [vmem:[#allocation10_spill] sm:$0xff] }
 0xc60   :  { %14945 = vpow2.f32 %v12589_v37  ;;  %v3267_v28 = vadd.f32 %v19150_v40, %v16687_v14  ;;  %v3196_v37 = vadd.f32 %v19151_v11, %v16694_v59 }
 0xc61   :  { %14947 = vpow2.f32 %v12590_v31  ;;  %v19152_v31 = vld [vmem:[#allocation20_spill] sm:$0xff] }
 0xc62   :  { %14949 = vtanh.f32 %v4525_v19 }
 0xc69   :  { %v14944_v15 = vpop.eup %14943 }
 0xc6a   :  { %v14946_v1 = vpop.eup %14945  ;;  %v4533_v10 = vadd.f32 1.0, %v14944_v15  ;;  %v3269_v15 = vadd.f32 %v19152_v31, %v16697_v48 }
 0xc6b   :  { %v4534_v8 = vadd.f32 1.0, %v14946_v1  ;;  %v14948_v52 = vpop.eup %14947 }
 0xc6c   :  { %14951 = vrcp.f32 %v4533_v10  ;;  %v14950_v54 = vpop.eup %14949  ;;  %v4543_v41 = vadd.f32 1.0, %v14948_v52 }
 0xc6d   :  { %14953 = vrcp.f32 %v4534_v8 }
 0xc6e   :  { %14955 = vrcp.f32 %v4543_v41 }
 0xc76   :  { %v14952_v55 = vpop.eup %14951 }
 0xc77   :  { %v14954_v35 = vpop.eup %14953  ;;  %v4547_v23 = vmul.f32 %v14952_v55, %v14950_v54 }
 0xc78   :  { %v4546_v42 = vmul.f32 %v14954_v35, %v16804_v46  ;;  %v14956_v32 = vpop.eup %14955  ;;  %v19149_v46 = vld [vmem:[#allocation15_spill] sm:$0xff] }
 0xc79   :  { %v3194_v36 = vadd.f32 %v19149_v46, %v16684_v53 }
 0xc7a   :  { %v17016_v45 = vadd.f32 %v4547_v23, %v4546_v42 }
 0xc7c   :  { %14957 = vtanh.f32 %v17016_v45 }
 0xc86   :  { %v14958_v25 = vpop.eup %14957 }
 0xc87   :  { %v4550_v34 = vmul.f32 %v14958_v25, %v14956_v32 }
 0xc89   :  { %v4557_v19 = vpack.c.bf16 %v4550_v34, %v4550_v34  ;;  %v4551_v29 = vmax.f32 %v4550_v34, 0.0 }
 0xc8b   :  { %4783 = vmatmul.mubr.bf16.vlgmr.msra.gmra.mrb[64].mxu0 %v4557_v19  ;;  %4824 = vmatmul.mubr.bf16.vlgmr.msra.gmra.mrb[96].mxu1 %v4557_v19  ;;  %v17020_v60 = vpack.c.bf16 %v4551_v29, %v4242_v22 }
 0xc8c   :  { %5060 = vmatpush1.bf16.msra.mxu0 %v16826_v30  ;;  %5101 = vmatpush1.bf16.msra.mxu1 %v16831_v49 }
 0xc8d   :  { %5061 = vmatprep.subr.bf16.mxu0 %v16840_v24  ;;  %5102 = vmatprep.subr.bf16.mxu1 %v16845_v21 }
 0xc8e   :  { %5091 = vmatprep.mubr.bf16.mxu0 %v19102_v51  ;;  %5132 = vmatprep.mubr.bf16.mxu1 %v19102_v51 }
 0xc90   :  { %5062 = vmatpush1.bf16.msra.mxu0 %v16850_v56  ;;  %5103 = vmatpush1.bf16.msra.mxu1 %v16855_v16 }
 0xc91   :  { %5063 = vmatprep.subr.bf16.mxu0 %v16864_v17  ;;  %5104 = vmatprep.subr.bf16.mxu1 %v16869_v12 }
 0xc94   :  { %5064 = vmatpush1.bf16.msra.mxu0 %v16874_v7  ;;  %5105 = vmatpush1.bf16.msra.mxu1 %v16879_v33 }
 0xc95   :  { %5065 = vmatprep.subr.bf16.mxu0 %v16888_v47  ;;  %5106 = vmatprep.subr.bf16.mxu1 %v16893_v26 }
 0xc98   :  { %5066 = vmatpush1.bf16.msra.mxu0 %v16898_v58  ;;  %5107 = vmatpush1.bf16.msra.mxu1 %v16903_v18 }
 0xc99   :  { %5067 = vmatprep.subr.bf16.mxu0 %v16912_v9  ;;  %5108 = vmatprep.subr.bf16.mxu1 %v16917_v27 }
 0xc9c   :  { %5068 = vmatpush1.bf16.msra.mxu0 %v16922_v6  ;;  %5109 = vmatpush1.bf16.msra.mxu1 %v16927_v38 }
 0xc9d   :  { %5069 = vmatprep.subr.bf16.mxu0 %v16934_v57  ;;  %5110 = vmatprep.subr.bf16.mxu1 %v16951_v62 }
 0xca0   :  { %5070 = vmatpush1.bf16.msra.mxu0 %v16941_v50  ;;  %5111 = vmatpush1.bf16.msra.mxu1 %v16946_v61 }
 0xca1   :  { %5071 = vmatprep.subr.bf16.mxu0 %v16957_v63  ;;  %5112 = vmatprep.subr.bf16.mxu1 %v16962_v0 }
 0xca4   :  { %5072 = vmatpush1.bf16.msra.mxu0 %v16970_v2  ;;  %5113 = vmatpush1.bf16.msra.mxu1 %v16975_v3 }
 0xca5   :  { %5073 = vmatprep.subr.bf16.mxu0 %v16982_v4  ;;  %5114 = vmatprep.subr.bf16.mxu1 %v16987_v5 }
 0xca8   :  { %5074 = vmatpush1.bf16.msra.mxu0 %v16994_v13  ;;  %5115 = vmatpush1.bf16.msra.mxu1 %v16999_v44 }
 0xca9   :  { %5368 = vmatprep.subr.bf16.mxu0 %v16816_v39  ;;  %5409 = vmatprep.subr.bf16.mxu1 %v16821_v43 }
 0xd5e   :  { %v4784_v1 = vpop.f32.mrb[64].mxu0  ;;  %v4825_v10 = vpop.f32.mrb[96].mxu1 }
 0xd5f   :  { %v4832_v8 = vadd.f32 %v4784_v1, %v3194_v36  ;;  %v4834_v52 = vadd.f32 %v4825_v10, %v3267_v28  ;;  %v4786_v54 = vpop.f32.mrb[65].mxu0  ;;  %v4827_v55 = vpop.f32.mrb[97].mxu1 }
 0xd60   :  { %v4833_v35 = vadd.f32 %v4786_v54, %v3196_v37  ;;  %v4835_v23 = vadd.f32 %v4827_v55, %v3269_v15  ;;  %v4788_v41 = vpop.f32.mrb[66].mxu0  ;;  %v4829_v42 = vpop.f32.mrb[98].mxu1 }
 0xd61   :  { %v12655_v32 = vmul.f32 -1.442695, %v4832_v8  ;;  %v4789_v25 = vpop.f32.mrb[67].mxu0  ;;  %v4830_v34 = vpop.f32.mrb[99].mxu1  ;;  %v19154_v41 = vld [vmem:[#allocation22_spill] sm:$0xff] }
 0xd62   :  { %v12656_v19 = vmul.f32 -1.442695, %v4833_v35  ;;  %v12657_v22 = vmul.f32 -1.442695, %v4835_v23  ;;  %v3271_v42 = vadd.f32 %v19154_v41, %v16687_v14  ;;  %v19156_v34 = vld [vmem:[#allocation24_spill] sm:$0xff] }
 0xd63   :  { %14959 = vpow2.f32 %v12655_v32  ;;  %v19155_v32 = vld [vmem:[#allocation23_spill] sm:$0xff] }
 0xd64   :  { %14961 = vpow2.f32 %v12656_v19  ;;  %v3200_v25 = vadd.f32 %v19155_v32, %v16694_v59  ;;  %v3273_v19 = vadd.f32 %v19156_v34, %v16697_v48 }
 0xd65   :  { %14963 = vpow2.f32 %v12657_v22 }
 0xd66   :  { %14965 = vtanh.f32 %v4834_v52 }
 0xd6d   :  { %v14960_v29 = vpop.eup %14959 }
 0xd6e   :  { %v14962_v46 = vpop.eup %14961  ;;  %v4842_v40 = vadd.f32 1.0, %v14960_v29 }
 0xd6f   :  { %v4843_v36 = vadd.f32 1.0, %v14962_v46  ;;  %v14964_v28 = vpop.eup %14963 }
 0xd70   :  { %14967 = vrcp.f32 %v4842_v40  ;;  %v14966_v11 = vpop.eup %14965  ;;  %v4852_v1 = vadd.f32 1.0, %v14964_v28 }
 0xd71   :  { %14969 = vrcp.f32 %v4843_v36 }
 0xd72   :  { %14971 = vrcp.f32 %v4852_v1 }
 0xd7a   :  { %v14968_v37 = vpop.eup %14967 }
 0xd7b   :  { %v14970_v31 = vpop.eup %14969  ;;  %v4856_v15 = vmul.f32 %v14968_v37, %v14966_v11 }
 0xd7c   :  { %v4855_v10 = vmul.f32 %v14970_v31, %v17016_v45  ;;  %v14972_v54 = vpop.eup %14971  ;;  %v19153_v45 = vld [vmem:[#allocation21_spill] sm:$0xff] }
 0xd7d   :  { %v3198_v23 = vadd.f32 %v19153_v45, %v16684_v53 }
 0xd7e   :  { %v17065_v8 = vadd.f32 %v4856_v15, %v4855_v10 }
 0xd80   :  { %14973 = vtanh.f32 %v17065_v8 }
 0xd8a   :  { %v14974_v55 = vpop.eup %14973 }
 0xd8b   :  { %v17068_v35 = vmul.f32 %v14974_v55, %v14972_v54 }
 0xd8d   :  { %v4866_v52 = vpack.c.bf16 %v17068_v35, %v17068_v35 }
 0xd8f   :  { %5092 = vmatmul.mubr.bf16.vlgmr.msra.gmra.mrb[68].mxu0 %v4866_v52  ;;  %5133 = vmatmul.mubr.bf16.vlgmr.msra.gmra.mrb[100].mxu1 %v4866_v52 }
 0xd90   :  { %5369 = vmatpush1.bf16.msra.mxu0 %v16826_v30  ;;  %5410 = vmatpush1.bf16.msra.mxu1 %v16831_v49 }
 0xd91   :  { %5370 = vmatprep.subr.bf16.mxu0 %v16840_v24  ;;  %5411 = vmatprep.subr.bf16.mxu1 %v16845_v21 }
 0xd92   :  { %5400 = vmatprep.mubr.bf16.mxu0 %v19102_v51  ;;  %5441 = vmatprep.mubr.bf16.mxu1 %v19102_v51 }
 0xd94   :  { %5371 = vmatpush1.bf16.msra.mxu0 %v16850_v56  ;;  %5412 = vmatpush1.bf16.msra.mxu1 %v16855_v16 }
 0xd95   :  { %5372 = vmatprep.subr.bf16.mxu0 %v16864_v17  ;;  %5413 = vmatprep.subr.bf16.mxu1 %v16869_v12 }
 0xd98   :  { %5373 = vmatpush1.bf16.msra.mxu0 %v16874_v7  ;;  %5414 = vmatpush1.bf16.msra.mxu1 %v16879_v33 }
 0xd99   :  { %5374 = vmatprep.subr.bf16.mxu0 %v16888_v47  ;;  %5415 = vmatprep.subr.bf16.mxu1 %v16893_v26 }
 0xd9c   :  { %5375 = vmatpush1.bf16.msra.mxu0 %v16898_v58  ;;  %5416 = vmatpush1.bf16.msra.mxu1 %v16903_v18 }
 0xd9d   :  { %5376 = vmatprep.subr.bf16.mxu0 %v16912_v9  ;;  %5417 = vmatprep.subr.bf16.mxu1 %v16917_v27 }
 0xda0   :  { %5377 = vmatpush1.bf16.msra.mxu0 %v16922_v6  ;;  %5418 = vmatpush1.bf16.msra.mxu1 %v16927_v38 }
 0xda1   :  { %5378 = vmatprep.subr.bf16.mxu0 %v16934_v57  ;;  %5419 = vmatprep.subr.bf16.mxu1 %v16951_v62 }
 0xda4   :  { %5379 = vmatpush1.bf16.msra.mxu0 %v16941_v50  ;;  %5420 = vmatpush1.bf16.msra.mxu1 %v16946_v61 }
 0xda5   :  { %5380 = vmatprep.subr.bf16.mxu0 %v16957_v63  ;;  %5421 = vmatprep.subr.bf16.mxu1 %v16962_v0 }
 0xda8   :  { %5381 = vmatpush1.bf16.msra.mxu0 %v16970_v2  ;;  %5422 = vmatpush1.bf16.msra.mxu1 %v16975_v3 }
 0xda9   :  { %5382 = vmatprep.subr.bf16.mxu0 %v16982_v4  ;;  %5423 = vmatprep.subr.bf16.mxu1 %v16987_v5 }
 0xdac   :  { %5383 = vmatpush1.bf16.msra.mxu0 %v16994_v13  ;;  %5424 = vmatpush1.bf16.msra.mxu1 %v16999_v44 }
 0xdad   :  { %5677 = vmatprep.subr.bf16.mxu0 %v16816_v39  ;;  %5718 = vmatprep.subr.bf16.mxu1 %v16821_v43 }
 0xe62   :  { %v5093_v22 = vpop.f32.mrb[68].mxu0  ;;  %v5134_v29 = vpop.f32.mrb[100].mxu1 }
 0xe63   :  { %v5141_v46 = vadd.f32 %v5093_v22, %v3198_v23  ;;  %v5143_v40 = vadd.f32 %v5134_v29, %v3271_v42  ;;  %v5095_v36 = vpop.f32.mrb[69].mxu0  ;;  %v5136_v39 = vpop.f32.mrb[101].mxu1 }
 0xe64   :  { %v5142_v28 = vadd.f32 %v5095_v36, %v3200_v25  ;;  %v5144_v43 = vadd.f32 %v5136_v39, %v3273_v19  ;;  %v5097_v11 = vpop.f32.mrb[70].mxu0  ;;  %v5138_v37 = vpop.f32.mrb[102].mxu1 }
 0xe65   :  { %v12722_v31 = vmul.f32 -1.442695, %v5141_v46  ;;  %v5098_v15 = vpop.f32.mrb[71].mxu0  ;;  %v5139_v1 = vpop.f32.mrb[103].mxu1 }
 0xe66   :  { %v12723_v10 = vmul.f32 -1.442695, %v5142_v28  ;;  %v12724_v54 = vmul.f32 -1.442695, %v5144_v43  ;;  %v4860_v28 = vmax.f32 %v17068_v35, 0.0 }
 0xe67   :  { %14975 = vpow2.f32 %v12722_v31 }
 0xe68   :  { %14977 = vpow2.f32 %v12723_v10 }
 0xe69   :  { %14979 = vpow2.f32 %v12724_v54 }
 0xe6a   :  { %14981 = vtanh.f32 %v5143_v40 }
 0xe71   :  { %v14976_v55 = vpop.eup %14975 }
 0xe72   :  { %v14978_v52 = vpop.eup %14977  ;;  %v5151_v45 = vadd.f32 1.0, %v14976_v55 }
 0xe73   :  { %v5152_v23 = vadd.f32 1.0, %v14978_v52  ;;  %v14980_v41 = vpop.eup %14979 }
 0xe74   :  { %14983 = vrcp.f32 %v5151_v45  ;;  %v14982_v42 = vpop.eup %14981  ;;  %v5161_v19 = vadd.f32 1.0, %v14980_v41  ;;  %v14479_v45 = vld [vmem:[%s19071_s1 + $0x400] ss:$16 sps:$4 sm:$0xff]  }
 0xe75   :  { %14985 = vrcp.f32 %v5152_v23  ;;  %v14482_v23 = vld [vmem:[%s19071_s1 + $0x408] ss:$16 sps:$4 sm:$0xff]  }
 0xe76   :  { %14987 = vrcp.f32 %v5161_v19  ;;  %v14493_v19 = vld [vmem:[%s19071_s1 + $0x444] ss:$16 sps:$4 sm:$0xff]  }
 0xe7e   :  { %v14984_v32 = vpop.eup %14983 }
 0xe7f   :  { %v14986_v25 = vpop.eup %14985  ;;  %v5165_v34 = vmul.f32 %v14984_v32, %v14982_v42  ;;  %v14487_v42 = vld [vmem:[%s19071_s1 + $0x424] ss:$16 sps:$4 sm:$0xff]   ;;  %v14490_v32 = vld [vmem:[%s19071_s1 + $0x42c] ss:$16 sps:$4 sm:$0xff]  }
 0xe80   :  { %v5164_v22 = vmul.f32 %v14986_v25, %v17065_v8  ;;  %v14988_v46 = vpop.eup %14987  ;;  %v14485_v25 = vld [vmem:[%s19071_s1 + $0x420] ss:$16 sps:$4 sm:$0xff]  }
 0xe82   :  { %v17115_v29 = vadd.f32 %v5165_v34, %v5164_v22  ;;  %v14488_v34 = vld [vmem:[%s19071_s1 + $0x428] ss:$16 sps:$4 sm:$0xff]   ;;  %v14496_v22 = vld [vmem:[%s19071_s1 + $0x44c] ss:$16 sps:$4 sm:$0xff]  }
 0xe84   :  { %14989 = vtanh.f32 %v17115_v29 }
 0xe8e   :  { %v14990_v36 = vpop.eup %14989 }
 0xe8f   :  { %v5168_v39 = vmul.f32 %v14990_v36, %v14988_v46  ;;  %v14494_v46 = vld [vmem:[%s19071_s1 + $0x448] ss:$16 sps:$4 sm:$0xff]   ;;  %v14499_v36 = vld [vmem:[%s19071_s1 + $0x464] ss:$16 sps:$4 sm:$0xff]  }
 0xe91   :  { %v5175_v40 = vpack.c.bf16 %v5168_v39, %v5168_v39  ;;  %v5169_v43 = vmax.f32 %v5168_v39, 0.0  ;;  %v14502_v39 = vld [vmem:[%s19071_s1 + $0x46c] ss:$16 sps:$4 sm:$0xff]  }
 0xe93   :  { %5401 = vmatmul.mubr.bf16.vlgmr.msra.gmra.mrb[72].mxu0 %v5175_v40  ;;  %5442 = vmatmul.mubr.bf16.vlgmr.msra.gmra.mrb[104].mxu1 %v5175_v40  ;;  %v17119_v11 = vpack.c.bf16 %v5169_v43, %v4860_v28  ;;  %v14497_v40 = vld [vmem:[%s19071_s1 + $0x460] ss:$16 sps:$4 sm:$0xff]   ;;  %v14500_v28 = vld [vmem:[%s19071_s1 + $0x468] ss:$16 sps:$4 sm:$0xff]   ;;  %v14505_v43 = vld [vmem:[%s19071_s1 + $0x484] ss:$16 sps:$4 sm:$0xff]  }
 0xe94   :  { %5678 = vmatpush1.bf16.msra.mxu0 %v16826_v30  ;;  %5719 = vmatpush1.bf16.msra.mxu1 %v16831_v49  ;;  %v14481_v30 = vld [vmem:[%s19071_s1 + $0x404] ss:$16 sps:$4 sm:$0xff]   ;;  %v14484_v49 = vld [vmem:[%s19071_s1 + $0x40c] ss:$16 sps:$4 sm:$0xff]  }
 0xe95   :  { %5679 = vmatprep.subr.bf16.mxu0 %v16840_v24  ;;  %5720 = vmatprep.subr.bf16.mxu1 %v16845_v21  ;;  %v19157_v24 = vld [vmem:[#allocation25_spill] sm:$0xff] }
 0xe96   :  { %5709 = vmatprep.mubr.bf16.mxu0 %v19102_v51  ;;  %5750 = vmatprep.mubr.bf16.mxu1 %v19102_v51  ;;  %v3204_v21 = vadd.f32 %v19157_v24, %v16684_v53  ;;  %v14506_v24 = vld [vmem:[%s19071_s1 + $0x488] ss:$16 sps:$4 sm:$0xff]  }
 0xe98   :  { %5680 = vmatpush1.bf16.msra.mxu0 %v16850_v56  ;;  %5721 = vmatpush1.bf16.msra.mxu1 %v16855_v16  ;;  %v19158_v56 = vld [vmem:[#allocation26_spill] sm:$0xff] }
 0xe99   :  { %5681 = vmatprep.subr.bf16.mxu0 %v16864_v17  ;;  %5722 = vmatprep.subr.bf16.mxu1 %v16869_v12  ;;  %v3277_v16 = vadd.f32 %v19158_v56, %v16687_v14  ;;  %v19159_v17 = vld [vmem:[#allocation27_spill] sm:$0xff] }
 0xe9a   :  { %v3206_v12 = vadd.f32 %v19159_v17, %v16694_v59  ;;  %v14514_v56 = vld [vmem:[%s19071_s1 + $0x4ac] ss:$16 sps:$4 sm:$0xff]   ;;  %v14512_v17 = vld [vmem:[%s19071_s1 + $0x4a8] ss:$16 sps:$4 sm:$0xff]  }
 0xe9c   :  { %5682 = vmatpush1.bf16.msra.mxu0 %v16874_v7  ;;  %5723 = vmatpush1.bf16.msra.mxu1 %v16879_v33  ;;  %v19160_v7 = vld [vmem:[#allocation28_spill] sm:$0xff] }
 0xe9d   :  { %5683 = vmatprep.subr.bf16.mxu0 %v16888_v47  ;;  %5724 = vmatprep.subr.bf16.mxu1 %v16893_v26  ;;  %v3279_v33 = vadd.f32 %v19160_v7, %v16697_v48  ;;  %v14520_v7 = vld [vmem:[%s19071_s1 + $0x4cc] ss:$16 sps:$4 sm:$0xff]  }
 0xea0   :  { %5684 = vmatpush1.bf16.msra.mxu0 %v16898_v58  ;;  %5725 = vmatpush1.bf16.msra.mxu1 %v16903_v18 }
 0xea1   :  { %5685 = vmatprep.subr.bf16.mxu0 %v16912_v9  ;;  %5726 = vmatprep.subr.bf16.mxu1 %v16917_v27 }
 0xea4   :  { %5686 = vmatpush1.bf16.msra.mxu0 %v16922_v6  ;;  %5727 = vmatpush1.bf16.msra.mxu1 %v16927_v38 }
 0xea5   :  { %5687 = vmatprep.subr.bf16.mxu0 %v16934_v57  ;;  %5728 = vmatprep.subr.bf16.mxu1 %v16951_v62 }
 0xea8   :  { %5688 = vmatpush1.bf16.msra.mxu0 %v16941_v50  ;;  %5729 = vmatpush1.bf16.msra.mxu1 %v16946_v61 }
 0xea9   :  { %5689 = vmatprep.subr.bf16.mxu0 %v16957_v63  ;;  %5730 = vmatprep.subr.bf16.mxu1 %v16962_v0 }
 0xeac   :  { %5690 = vmatpush1.bf16.msra.mxu0 %v16970_v2  ;;  %5731 = vmatpush1.bf16.msra.mxu1 %v16975_v3 }
 0xead   :  { %5691 = vmatprep.subr.bf16.mxu0 %v16982_v4  ;;  %5732 = vmatprep.subr.bf16.mxu1 %v16987_v5 }
 0xeb0   :  { %5692 = vmatpush1.bf16.msra.mxu0 %v16994_v13  ;;  %5733 = vmatpush1.bf16.msra.mxu1 %v16999_v44 }
 0xeb1   :  { %6017 = vmatprep.subr.bf16.mxu0 %v14481_v30  ;;  %6090 = vmatprep.subr.bf16.mxu1 %v14484_v49  ;;  %v14508_v30 = vld [vmem:[%s19071_s1 + $0x48c] ss:$16 sps:$4 sm:$0xff]   ;;  %v14503_v49 = vld [vmem:[%s19071_s1 + $0x480] ss:$16 sps:$4 sm:$0xff]  }
 0xf66   :  { %v5402_v47 = vpop.f32.mrb[72].mxu0  ;;  %v5443_v26 = vpop.f32.mrb[104].mxu1 }
 0xf67   :  { %v5450_v58 = vadd.f32 %v5402_v47, %v3204_v21  ;;  %v5452_v18 = vadd.f32 %v5443_v26, %v3277_v16  ;;  %v5404_v9 = vpop.f32.mrb[73].mxu0  ;;  %v5445_v27 = vpop.f32.mrb[105].mxu1  ;;  %v14511_v21 = vld [vmem:[%s19071_s1 + $0x4a4] ss:$16 sps:$4 sm:$0xff]   ;;  %v14509_v16 = vld [vmem:[%s19071_s1 + $0x4a0] ss:$16 sps:$4 sm:$0xff]  }
 0xf68   :  { %v5451_v6 = vadd.f32 %v5404_v9, %v3206_v12  ;;  %v5453_v38 = vadd.f32 %v5445_v27, %v3279_v33  ;;  %v5406_v57 = vpop.f32.mrb[74].mxu0  ;;  %v5447_v50 = vpop.f32.mrb[106].mxu1  ;;  %v14517_v12 = vld [vmem:[%s19071_s1 + $0x4c4] ss:$16 sps:$4 sm:$0xff]   ;;  %v14515_v33 = vld [vmem:[%s19071_s1 + $0x4c0] ss:$16 sps:$4 sm:$0xff]  }
 0xf69   :  { %v12789_v61 = vmul.f32 -1.442695, %v5450_v58  ;;  %v5407_v62 = vpop.f32.mrb[75].mxu0  ;;  %v5448_v63 = vpop.f32.mrb[107].mxu1  ;;  %v14518_v47 = vld [vmem:[%s19071_s1 + $0x4c8] ss:$16 sps:$4 sm:$0xff]  }
 0xf6a   :  { %v12790_v0 = vmul.f32 -1.442695, %v5451_v6  ;;  %v12791_v2 = vmul.f32 -1.442695, %v5453_v38  ;;  %v14523_v26 = vld [vmem:[%s19071_s1 + $0x4e4] ss:$16 sps:$4 sm:$0xff]  }
 0xf6b   :  { %14991 = vpow2.f32 %v12789_v61  ;;  %v14526_v58 = vld [vmem:[%s19071_s1 + $0x4ec] ss:$16 sps:$4 sm:$0xff]   ;;  %v14524_v9 = vld [vmem:[%s19071_s1 + $0x4e8] ss:$16 sps:$4 sm:$0xff]   ;;  %v17292_v27 = vld [vmem:[%s19071_s1 + $0x500] ss:$16 sps:$4 sm:$0xff]  }
 0xf6c   :  { %14993 = vpow2.f32 %v12790_v0  ;;  %v17306_v6 = vld [vmem:[%s19071_s1 + $0x524] ss:$16 sps:$4 sm:$0xff]   ;;  %v17311_v38 = vld [vmem:[%s19071_s1 + $0x520] ss:$16 sps:$4 sm:$0xff]   ;;  %v17316_v57 = vld [vmem:[%s19071_s1 + $0x528] ss:$16 sps:$4 sm:$0xff]  }
 0xf6d   :  { %14995 = vpow2.f32 %v12791_v2  ;;  %v17321_v50 = vld [vmem:[%s19071_s1 + $0x52c] ss:$16 sps:$4 sm:$0xff]   ;;  %v17330_v61 = vld [vmem:[%s19071_s1 + $0x544] ss:$16 sps:$4 sm:$0xff]   ;;  %v17340_v63 = vld [vmem:[%s19071_s1 + $0x540] ss:$16 sps:$4 sm:$0xff]  }
 0xf6e   :  { %14997 = vtanh.f32 %v5452_v18  ;;  %v14521_v18 = vld [vmem:[%s19071_s1 + $0x4e0] ss:$16 sps:$4 sm:$0xff]   ;;  %v17335_v62 = vld [vmem:[%s19071_s1 + $0x54c] ss:$16 sps:$4 sm:$0xff]   ;;  %v17345_v0 = vld [vmem:[%s19071_s1 + $0x548] ss:$16 sps:$4 sm:$0xff]  }
 0xf6f   :  { %v17354_v2 = vld [vmem:[%s19071_s1 + $0x564] ss:$16 sps:$4 sm:$0xff]  }
 0xf75   :  { %v14992_v3 = vpop.eup %14991 }
 0xf76   :  { %v14994_v4 = vpop.eup %14993  ;;  %v5460_v5 = vadd.f32 1.0, %v14992_v3  ;;  %v17359_v3 = vld [vmem:[%s19071_s1 + $0x56c] ss:$16 sps:$4 sm:$0xff]  }
 0xf77   :  { %v5461_v13 = vadd.f32 1.0, %v14994_v4  ;;  %v14996_v44 = vpop.eup %14995  ;;  %v17364_v4 = vld [vmem:[%s19071_s1 + $0x560] ss:$16 sps:$4 sm:$0xff]  }
 0xf78   :  { %14999 = vrcp.f32 %v5460_v5  ;;  %v14998_v8 = vpop.eup %14997  ;;  %v5470_v15 = vadd.f32 1.0, %v14996_v44  ;;  %v17369_v5 = vld [vmem:[%s19071_s1 + $0x568] ss:$16 sps:$4 sm:$0xff]   ;;  %v17383_v44 = vld [vmem:[%s19071_s1 + $0x58c] ss:$16 sps:$4 sm:$0xff]  }
 0xf79   :  { %15001 = vrcp.f32 %v5461_v13  ;;  %v17378_v13 = vld [vmem:[%s19071_s1 + $0x584] ss:$16 sps:$4 sm:$0xff]  }
 0xf7a   :  { %15003 = vrcp.f32 %v5470_v15  ;;  %v17412_v15 = vld [vmem:[%s19071_s1 + $0x5a0] ss:$16 sps:$4 sm:$0xff]  }
 0xf82   :  { %v15000_v35 = vpop.eup %14999 }
 0xf83   :  { %v15002_v37 = vpop.eup %15001  ;;  %v5474_v31 = vmul.f32 %v15000_v35, %v14998_v8  ;;  %v17388_v8 = vld [vmem:[%s19071_s1 + $0x580] ss:$16 sps:$4 sm:$0xff]   ;;  %v17393_v35 = vld [vmem:[%s19071_s1 + $0x588] ss:$16 sps:$4 sm:$0xff]  }
 0xf84   :  { %v5473_v1 = vmul.f32 %v15002_v37, %v17115_v29  ;;  %v15004_v54 = vpop.eup %15003  ;;  %v14491_v29 = vld [vmem:[%s19071_s1 + $0x440] ss:$16 sps:$4 sm:$0xff]   ;;  %v17402_v37 = vld [vmem:[%s19071_s1 + $0x5a4] ss:$16 sps:$4 sm:$0xff]  }
 0xf86   :  { %v17168_v10 = vadd.f32 %v5474_v31, %v5473_v1  ;;  %v17407_v31 = vld [vmem:[%s19071_s1 + $0x5ac] ss:$16 sps:$4 sm:$0xff]   ;;  %v17417_v1 = vld [vmem:[%s19071_s1 + $0x5a8] ss:$16 sps:$4 sm:$0xff]  }
 0xf88   :  { %15005 = vtanh.f32 %v17168_v10 }
 0xf92   :  { %v15006_v55 = vpop.eup %15005 }
 0xf93   :  { %v17171_v52 = vmul.f32 %v15006_v55, %v15004_v54  ;;  %v17426_v54 = vld [vmem:[%s19071_s1 + $0x5c4] ss:$16 sps:$4 sm:$0xff]   ;;  %v17431_v55 = vld [vmem:[%s19071_s1 + $0x5cc] ss:$16 sps:$4 sm:$0xff]  }
 0xf95   :  { %v5484_v41 = vpack.c.bf16 %v17171_v52, %v17171_v52 }
 0xf97   :  { %5710 = vmatmul.mubr.bf16.vlgmr.msra.gmra.mrb[76].mxu0 %v5484_v41  ;;  %5751 = vmatmul.mubr.bf16.vlgmr.msra.gmra.mrb[108].mxu1 %v5484_v41  ;;  %v17448_v41 = vld [vmem:[%s19071_s1 + $0x5e4] ss:$16 sps:$4 sm:$0xff]  }
 0xf98   :  { %6018 = vmatpush1.bf16.msra.mxu0 %v14479_v45  ;;  %6091 = vmatpush1.bf16.msra.mxu1 %v14482_v23  ;;  %v17436_v45 = vld [vmem:[%s19071_s1 + $0x5c0] ss:$16 sps:$4 sm:$0xff]   ;;  %v17441_v23 = vld [vmem:[%s19071_s1 + $0x5c8] ss:$16 sps:$4 sm:$0xff]  }
 0xf99   :  { %6019 = vmatprep.subr.bf16.mxu0 %v14487_v42  ;;  %6092 = vmatprep.subr.bf16.mxu1 %v14490_v32  ;;  %v17454_v42 = vld [vmem:[%s19071_s1 + $0x5e0] ss:$16 sps:$4 sm:$0xff]   ;;  %v17459_v32 = vld [vmem:[%s19071_s1 + $0x5ec] ss:$16 sps:$4 sm:$0xff]  }
 0xf9a   :  { %6049 = vmatprep.mubr.bf16.mxu0 %v19102_v51  ;;  %6122 = vmatprep.mubr.bf16.mxu1 %v19102_v51 }
 0xf9c   :  { %6020 = vmatpush1.bf16.msra.mxu0 %v14485_v25  ;;  %6093 = vmatpush1.bf16.msra.mxu1 %v14488_v34  ;;  %v17466_v25 = vld [vmem:[%s19071_s1 + $0x5e8] ss:$16 sps:$4 sm:$0xff]  }
 0xf9d   :  { %6021 = vmatprep.subr.bf16.mxu0 %v14493_v19  ;;  %6094 = vmatprep.subr.bf16.mxu1 %v14496_v22  ;;  %v19161_v34 = vld [vmem:[#allocation29_spill] sm:$0xff]  ;;  %v19162_v22 = vld [vmem:[#allocation30_spill] sm:$0xff] }
 0xf9e   :  { %v3208_v19 = vadd.f32 %v19161_v34, %v16684_v53 }
 0xfa0   :  { %6022 = vmatpush1.bf16.msra.mxu0 %v14491_v29  ;;  %6095 = vmatpush1.bf16.msra.mxu1 %v14494_v46  ;;  %v3281_v29 = vadd.f32 %v19162_v22, %v16687_v14  ;;  %v19163_v46 = vld [vmem:[#allocation31_spill] sm:$0xff] }
 0xfa1   :  { %6023 = vmatprep.subr.bf16.mxu0 %v14499_v36  ;;  %6096 = vmatprep.subr.bf16.mxu1 %v14502_v39  ;;  %v3210_v36 = vadd.f32 %v19163_v46, %v16694_v59  ;;  %v19164_v39 = vld [vmem:[#allocation32_spill] sm:$0xff] }
 0xfa4   :  { %6024 = vmatpush1.bf16.msra.mxu0 %v14497_v40  ;;  %6097 = vmatpush1.bf16.msra.mxu1 %v14500_v28  ;;  %v3283_v40 = vadd.f32 %v19164_v39, %v16697_v48 }
 0xfa5   :  { %6025 = vmatprep.subr.bf16.mxu0 %v14505_v43  ;;  %6098 = vmatprep.subr.bf16.mxu1 %v14508_v30 }
 0xfa8   :  { %6026 = vmatpush1.bf16.msra.mxu0 %v14503_v49  ;;  %6099 = vmatpush1.bf16.msra.mxu1 %v14506_v24 }
 0xfa9   :  { %6027 = vmatprep.subr.bf16.mxu0 %v14511_v21  ;;  %6100 = vmatprep.subr.bf16.mxu1 %v14514_v56 }
 0xfac   :  { %6028 = vmatpush1.bf16.msra.mxu0 %v14509_v16  ;;  %6101 = vmatpush1.bf16.msra.mxu1 %v14512_v17 }
 0xfad   :  { %6029 = vmatprep.subr.bf16.mxu0 %v14517_v12  ;;  %6102 = vmatprep.subr.bf16.mxu1 %v14520_v7 }
 0xfb0   :  { %6030 = vmatpush1.bf16.msra.mxu0 %v14515_v33  ;;  %6103 = vmatpush1.bf16.msra.mxu1 %v14518_v47 }
 0xfb1   :  { %6031 = vmatprep.subr.bf16.mxu0 %v14523_v26  ;;  %6104 = vmatprep.subr.bf16.mxu1 %v14526_v58 }
 0xfb4   :  { %6032 = vmatpush1.bf16.msra.mxu0 %v14521_v18  ;;  %6105 = vmatpush1.bf16.msra.mxu1 %v14524_v9 }
 0xfb7   :  { %6050 = vmatmul.mubr.bf16.vlgmr.msra.gmra.mrb[80].mxu0 %v16761_v20  ;;  %6123 = vmatmul.mubr.bf16.vlgmr.msra.gmra.mrb[112].mxu1 %v16761_v20  ;;  %v17282_v20 = vld [vmem:[%s19071_s1 + $0x504] ss:$16 sps:$4 sm:$0xff]  }
 0xfb8   :  { %6059 = vmatprep.mubr.bf16.mxu0 %v19102_v51  ;;  %6132 = vmatprep.mubr.bf16.mxu1 %v19102_v51 }
 0xfb9   :  { %6392 = vmatprep.subr.bf16.mxu0 %v17282_v20 }
 0xfba   :  { %6393 = vmatpush1.bf16.msra.mxu0 %v17292_v27 }
 0xfbb   :  { %6394 = vmatprep.subr.bf16.mxu0 %v17306_v6 }
 0xfbe   :  { %6395 = vmatpush1.bf16.msra.mxu0 %v17311_v38 }
 0xfbf   :  { %6060 = vmatmul.mubr.bf16.gmra.mrb[84].mxu0 %v17020_v60  ;;  %6133 = vmatmul.mubr.bf16.gmra.mrb[116].mxu1 %v17020_v60  ;;  %v17287_v60 = vld [vmem:[%s19071_s1 + $0x50c] ss:$16 sps:$4 sm:$0xff]  }
 0xfc0   :  { %6069 = vmatprep.mubr.bf16.mxu0 %v19102_v51  ;;  %6142 = vmatprep.mubr.bf16.mxu1 %v19102_v51 }
 0xfc1   :  { %6433 = vmatprep.subr.bf16.mxu1 %v17287_v60  ;;  %6396 = vmatprep.subr.bf16.mxu0 %v17330_v61 }
 0xfc2   :  { %6397 = vmatpush1.bf16.msra.mxu0 %v17340_v63 }
 0xfc3   :  { %6398 = vmatprep.subr.bf16.mxu0 %v17354_v2 }
 0xfc6   :  { %6399 = vmatpush1.bf16.msra.mxu0 %v17364_v4 }
 0xfc7   :  { %6070 = vmatmul.mubr.bf16.gmra.mrb[88].mxu0 %v17119_v11  ;;  %6143 = vmatmul.mubr.bf16.gmra.mrb[120].mxu1 %v17119_v11  ;;  %v17297_v11 = vld [vmem:[%s19071_s1 + $0x508] ss:$16 sps:$4 sm:$0xff]  }
 0xfc8   :  { %6079 = vmatprep.mubr.bf16.mxu0 %v19102_v51  ;;  %6152 = vmatprep.mubr.bf16.mxu1 %v19102_v51 }
 0xfc9   :  { %6434 = vmatpush1.bf16.msra.mxu1 %v17297_v11  ;;  %6400 = vmatprep.subr.bf16.mxu0 %v17378_v13 }
 0xfca   :  { %6435 = vmatprep.subr.bf16.mxu1 %v17321_v50  ;;  %6401 = vmatpush1.bf16.msra.mxu0 %v17388_v8 }
 0xfcb   :  { %6402 = vmatprep.subr.bf16.mxu0 %v17402_v37 }
 0xfcd   :  { %6436 = vmatpush1.bf16.msra.mxu1 %v17316_v57 }
 0xfce   :  { %6437 = vmatprep.subr.bf16.mxu1 %v17335_v62  ;;  %6403 = vmatpush1.bf16.msra.mxu0 %v17412_v15 }
 0xfcf   :  { %6404 = vmatprep.subr.bf16.mxu0 %v17426_v54 }
 0xfd1   :  { %6438 = vmatpush1.bf16.msra.mxu1 %v17345_v0 }
 0xfd2   :  { %6439 = vmatprep.subr.bf16.mxu1 %v17359_v3  ;;  %6405 = vmatpush1.bf16.msra.mxu0 %v17436_v45 }
 0xfd3   :  { %6406 = vmatprep.subr.bf16.mxu0 %v17448_v41 }
 0xfd5   :  { %6440 = vmatpush1.bf16.msra.mxu1 %v17369_v5 }
 0xfd6   :  { %6441 = vmatprep.subr.bf16.mxu1 %v17383_v44  ;;  %6407 = vmatpush1.bf16.msra.mxu0 %v17454_v42 }
 0xfd7   :  { %6700 = vmatprep.subr.bf16.mxu0 %v17282_v20 }
 0xfd9   :  { %6442 = vmatpush1.bf16.msra.mxu1 %v17393_v35 }
 0xfda   :  { %6443 = vmatprep.subr.bf16.mxu1 %v17407_v31 }
 0xfdd   :  { %6444 = vmatpush1.bf16.msra.mxu1 %v17417_v1 }
 0xfde   :  { %6445 = vmatprep.subr.bf16.mxu1 %v17431_v55 }
 0xfe1   :  { %6446 = vmatpush1.bf16.msra.mxu1 %v17441_v23 }
 0xfe2   :  { %6447 = vmatprep.subr.bf16.mxu1 %v17459_v32 }
 0xfe5   :  { %6448 = vmatpush1.bf16.msra.mxu1 %v17466_v25 }
 0xfe6   :  { %6741 = vmatprep.subr.bf16.mxu1 %v17287_v60 }
0x106a   :  { %v5711_v28 = vpop.f32.mrb[76].mxu0  ;;  %v5752_v43 = vpop.f32.mrb[108].mxu1 }
0x106b   :  { %v5759_v30 = vadd.f32 %v5711_v28, %v3208_v19  ;;  %v5761_v49 = vadd.f32 %v5752_v43, %v3281_v29  ;;  %v5713_v24 = vpop.f32.mrb[77].mxu0  ;;  %v5754_v21 = vpop.f32.mrb[109].mxu1 }
0x106c   :  { %v5760_v56 = vadd.f32 %v5713_v24, %v3210_v36  ;;  %v5762_v16 = vadd.f32 %v5754_v21, %v3283_v40  ;;  %v5715_v17 = vpop.f32.mrb[78].mxu0  ;;  %v5756_v12 = vpop.f32.mrb[110].mxu1 }
0x106d   :  { %v12856_v53 = vmul.f32 -1.442695, %v5759_v30  ;;  %v5716_v7 = vpop.f32.mrb[79].mxu0  ;;  %v5757_v33 = vpop.f32.mrb[111].mxu1 }
0x106e   :  { %v12857_v14 = vmul.f32 -1.442695, %v5760_v56  ;;  %v12858_v59 = vmul.f32 -1.442695, %v5762_v16 }
0x106f   :  { %15007 = vpow2.f32 %v12856_v53 }
0x1070   :  { %15009 = vpow2.f32 %v12857_v14 }
0x1071   :  { %15011 = vpow2.f32 %v12858_v59 }
0x1072   :  { %15013 = vtanh.f32 %v5761_v49 }
0x1079   :  { %v15008_v47 = vpop.eup %15007 }
0x107a   :  { %v15010_v26 = vpop.eup %15009  ;;  %v5769_v48 = vadd.f32 1.0, %v15008_v47 }
0x107b   :  { %v5770_v58 = vadd.f32 1.0, %v15010_v26  ;;  %v15012_v18 = vpop.eup %15011  ;;  %v5478_v26 = vmax.f32 %v17171_v52, 0.0  ;;  %v12891_v52 = vld [vmem:[%s19073_s2 + $0x2] ss:$4 sm:$0xf] }
0x107c   :  { %15015 = vrcp.f32 %v5769_v48  ;;  %v15014_v9 = vpop.eup %15013  ;;  %v5779_v29 = vadd.f32 1.0, %v15012_v18 }
0x107d   :  { %15017 = vrcp.f32 %v5770_v58 }
0x107e   :  { %15019 = vrcp.f32 %v5779_v29 }
0x1086   :  { %v15016_v34 = vpop.eup %15015 }
0x1087   :  { %v15018_v19 = vpop.eup %15017  ;;  %v5783_v22 = vmul.f32 %v15016_v34, %v15014_v9 }
0x1088   :  { %v5782_v46 = vmul.f32 %v15018_v19, %v17168_v10  ;;  %v15020_v7 = vpop.eup %15019 }
0x108a   :  { %v5784_v36 = vadd.f32 %v5783_v22, %v5782_v46  ;;  %v17482_v39 = vpop.f32.mrb[80].mxu0  ;;  %v17484_v40 = vpop.f32.mrb[112].mxu1 }
0x108b   :  { %v17486_v28 = vpop.f32.mrb[81].mxu0  ;;  %v17488_v43 = vpop.f32.mrb[113].mxu1 }
0x108c   :  { %v17490_v30 = vpop.f32.mrb[82].mxu0  ;;  %v17492_v49 = vpop.f32.mrb[114].mxu1  ;;  %15021 = vtanh.f32 %v5784_v36 }
0x108d   :  { %v17494_v24 = vpop.f32.mrb[83].mxu0  ;;  %v17496_v21 = vpop.f32.mrb[115].mxu1 }
0x1092   :  { %v17498_v10 = vpop.f32.mrb[84].mxu0  ;;  %v17500_v56 = vpop.f32.mrb[116].mxu1 }
0x1093   :  { %19165 = vst [vmem:[#allocation13_spill] sm:$0xff] %v17500_v56  ;;  %v17502_v16 = vpop.f32.mrb[85].mxu0  ;;  %v17504_v17 = vpop.f32.mrb[117].mxu1 }
0x1094   :  { %19166 = vst [vmem:[#allocation8_spill] sm:$0xff] %v17502_v16  ;;  %19167 = vst [vmem:[#allocation14_spill] sm:$0xff] %v17504_v17  ;;  %v17506_v12 = vpop.f32.mrb[86].mxu0  ;;  %v17508_v53 = vpop.f32.mrb[118].mxu1 }
0x1095   :  { %19168 = vst [vmem:[#allocation17_spill] sm:$0xff] %v17506_v12  ;;  %19169 = vst [vmem:[#allocation18_spill] sm:$0xff] %v17508_v53  ;;  %v17510_v33 = vpop.f32.mrb[87].mxu0  ;;  %v17512_v14 = vpop.f32.mrb[119].mxu1 }
0x1096   :  { %19170 = vst [vmem:[#allocation19_spill] sm:$0xff] %v17510_v33  ;;  %19171 = vst [vmem:[#allocation9_spill] sm:$0xff] %v17512_v14  ;;  %v15022_v59 = vpop.eup %15021 }
0x1097   :  { %v5786_v47 = vmul.f32 %v15022_v59, %v15020_v7 }
0x1099   :  { %v5787_v48 = vmax.f32 %v5786_v47, 0.0 }
0x109a   :  { %v17515_v58 = vpop.f32.mrb[88].mxu0  ;;  %v17517_v18 = vpop.f32.mrb[120].mxu1 }
0x109b   :  { %19172 = vst [vmem:[#allocation15_spill] sm:$0xff] %v17515_v58  ;;  %19173 = vst [vmem:[#allocation10_spill] sm:$0xff] %v17517_v18  ;;  %v17519_v9 = vpop.f32.mrb[89].mxu0  ;;  %v17521_v34 = vpop.f32.mrb[121].mxu1  ;;  %v5800_v19 = vpack.c.bf16 %v5787_v48, %v5478_v26 }
0x109c   :  { %19174 = vst [vmem:[#allocation16_spill] sm:$0xff] %v17519_v9  ;;  %19175 = vst [vmem:[#allocation20_spill] sm:$0xff] %v17521_v34  ;;  %v17523_v22 = vpop.f32.mrb[90].mxu0  ;;  %v17525_v29 = vpop.f32.mrb[122].mxu1 }
0x109d   :  { %19176 = vst [vmem:[#allocation21_spill] sm:$0xff] %v17523_v22  ;;  %19177 = vst [vmem:[#allocation22_spill] sm:$0xff] %v17525_v29  ;;  %v17527_v46 = vpop.f32.mrb[91].mxu0  ;;  %v17529_v36 = vpop.f32.mrb[123].mxu1  ;;  %6080 = vmatmul.mubr.bf16.gmra.mrb[92].mxu0 %v5800_v19  ;;  %6153 = vmatmul.mubr.bf16.gmra.mrb[124].mxu1 %v5800_v19  ;;  %v19187_v29 = vld [vmem:[#allocation11_spill] sm:$0xff] }
0x109e   :  { %19178 = vst [vmem:[#allocation23_spill] sm:$0xff] %v17527_v46  ;;  %19179 = vst [vmem:[#allocation24_spill] sm:$0xff] %v17529_v36  ;;  %6424 = vmatprep.mubr.bf16.mxu0 %v19102_v51  ;;  %6465 = vmatprep.mubr.bf16.mxu1 %v19102_v51  ;;  %v19186_v36 = vld [vmem:[#allocation6_spill] sm:$0xff]  ;;  %v17588_v22 = vrot.slane %v12891_v52, %v19187_v29 }
0x109f   :  { %v17585_v46 = vrot.slane %v12891_v52, %v19186_v36 }
0x10a0   :  { %v6125_v36 = vadd.f32 %v17484_v40, %v17588_v22 }
0x10a5   :  { %6425 = vmatmul.mubr.bf16.vlgmr.msra.gmra.mrb[96].mxu0 %v19102_v51  ;;  %6466 = vmatmul.mubr.bf16.vlgmr.msra.gmra.mrb[128].mxu1 %v19102_v51 }
0x10a6   :  { %6701 = vmatpush1.bf16.msra.mxu0 %v17292_v27  ;;  %6742 = vmatpush1.bf16.msra.mxu1 %v17297_v11 }
0x10a7   :  { %6702 = vmatprep.subr.bf16.mxu0 %v17306_v6  ;;  %6743 = vmatprep.subr.bf16.mxu1 %v17321_v50 }
0x10a8   :  { %6732 = vmatprep.mubr.bf16.mxu0 %v19102_v51  ;;  %6773 = vmatprep.mubr.bf16.mxu1 %v19102_v51 }
0x10aa   :  { %6703 = vmatpush1.bf16.msra.mxu0 %v17311_v38  ;;  %6744 = vmatpush1.bf16.msra.mxu1 %v17316_v57 }
0x10ab   :  { %6704 = vmatprep.subr.bf16.mxu0 %v17330_v61  ;;  %6745 = vmatprep.subr.bf16.mxu1 %v17335_v62 }
0x10ae   :  { %6705 = vmatpush1.bf16.msra.mxu0 %v17340_v63  ;;  %6746 = vmatpush1.bf16.msra.mxu1 %v17345_v0 }
0x10af   :  { %6706 = vmatprep.subr.bf16.mxu0 %v17354_v2  ;;  %6747 = vmatprep.subr.bf16.mxu1 %v17359_v3 }
0x10b2   :  { %6707 = vmatpush1.bf16.msra.mxu0 %v17364_v4  ;;  %6748 = vmatpush1.bf16.msra.mxu1 %v17369_v5 }
0x10b3   :  { %6708 = vmatprep.subr.bf16.mxu0 %v17378_v13  ;;  %6749 = vmatprep.subr.bf16.mxu1 %v17383_v44 }
0x10b6   :  { %6709 = vmatpush1.bf16.msra.mxu0 %v17388_v8  ;;  %6750 = vmatpush1.bf16.msra.mxu1 %v17393_v35 }
0x10b7   :  { %6710 = vmatprep.subr.bf16.mxu0 %v17402_v37  ;;  %6751 = vmatprep.subr.bf16.mxu1 %v17407_v31 }
0x10ba   :  { %6711 = vmatpush1.bf16.msra.mxu0 %v17412_v15  ;;  %6752 = vmatpush1.bf16.msra.mxu1 %v17417_v1 }
0x10bb   :  { %6712 = vmatprep.subr.bf16.mxu0 %v17426_v54  ;;  %6753 = vmatprep.subr.bf16.mxu1 %v17431_v55 }
0x10be   :  { %6713 = vmatpush1.bf16.msra.mxu0 %v17436_v45  ;;  %6754 = vmatpush1.bf16.msra.mxu1 %v17441_v23 }
0x10bf   :  { %6714 = vmatprep.subr.bf16.mxu0 %v17448_v41  ;;  %6755 = vmatprep.subr.bf16.mxu1 %v17459_v32 }
0x10c2   :  { %6715 = vmatpush1.bf16.msra.mxu0 %v17454_v42  ;;  %6756 = vmatpush1.bf16.msra.mxu1 %v17466_v25 }
0x10c3   :  { %7008 = vmatprep.subr.bf16.mxu0 %v17282_v20  ;;  %7049 = vmatprep.subr.bf16.mxu1 %v17287_v60 }
0x1170   :  { %v17572_v7 = vpop.f32.mrb[92].mxu0  ;;  %v17574_v59 = vpop.f32.mrb[124].mxu1 }
0x1171   :  { %19180 = vst [vmem:[#allocation25_spill] sm:$0xff] %v17572_v7  ;;  %19181 = vst [vmem:[#allocation26_spill] sm:$0xff] %v17574_v59  ;;  %v17576_v47 = vpop.f32.mrb[93].mxu0  ;;  %v17578_v26 = vpop.f32.mrb[125].mxu1  ;;  %v19190_v7 = vld [vmem:[#allocation7_spill] sm:$0xff] }
0x1172   :  { %19182 = vst [vmem:[#allocation27_spill] sm:$0xff] %v17576_v47  ;;  %19183 = vst [vmem:[#allocation28_spill] sm:$0xff] %v17578_v26  ;;  %v17580_v48 = vpop.f32.mrb[94].mxu0  ;;  %v17582_v19 = vpop.f32.mrb[126].mxu1  ;;  %v17595_v59 = vrot.slane %v12891_v52, %v19190_v7  ;;  %v19191_v47 = vld [vmem:[#allocation12_spill] sm:$0xff] }
0x1173   :  { %19184 = vst [vmem:[#allocation29_spill] sm:$0xff] %v17580_v48  ;;  %19185 = vst [vmem:[#allocation30_spill] sm:$0xff] %v17582_v19  ;;  %v17590_v34 = vpop.f32.mrb[95].mxu0  ;;  %v17592_v9 = vpop.f32.mrb[127].mxu1  ;;  %v17598_v18 = vrot.slane %v12891_v52, %v19191_v47  ;;  %v6052_v48 = vadd.f32 %v17482_v39, %v17585_v46 }
0x1174   :  { %19188 = vst [vmem:[#allocation31_spill] sm:$0xff] %v17590_v34  ;;  %19189 = vst [vmem:[#allocation32_spill] sm:$0xff] %v17592_v9  ;;  %v6054_v29 = vadd.f32 %v17486_v28, %v17595_v59 }
0x1175   :  { %v6127_v34 = vadd.f32 %v17488_v43, %v17598_v18 }
0x1178   :  { %v6426_v19 = vpop.f32.mrb[96].mxu0  ;;  %v6467_v9 = vpop.f32.mrb[128].mxu1 }
0x1179   :  { %v6474_v26 = vadd.f32 %v6426_v19, %v6052_v48  ;;  %v6476_v7 = vadd.f32 %v6467_v9, %v6125_v36  ;;  %v6428_v58 = vpop.f32.mrb[97].mxu0  ;;  %v6469_v14 = vpop.f32.mrb[129].mxu1  ;;  %v6131_v19 = vadd.f32 %v17496_v21, %v17598_v18 }
0x117a   :  { %v6475_v52 = vadd.f32 %v6428_v58, %v6054_v29  ;;  %v6477_v47 = vadd.f32 %v6469_v14, %v6127_v34  ;;  %v6430_v33 = vpop.f32.mrb[98].mxu0  ;;  %v6471_v53 = vpop.f32.mrb[130].mxu1 }
0x117b   :  { %v12988_v39 = vmul.f32 -1.442695, %v6474_v26  ;;  %v6431_v12 = vpop.f32.mrb[99].mxu0  ;;  %v6472_v17 = vpop.f32.mrb[131].mxu1  ;;  %v6058_v26 = vadd.f32 %v17494_v24, %v17595_v59 }
0x117c   :  { %v12989_v40 = vmul.f32 -1.442695, %v6475_v52  ;;  %v12990_v28 = vmul.f32 -1.442695, %v6477_v47  ;;  %v6129_v47 = vadd.f32 %v17492_v49, %v17588_v22 }
0x117d   :  { %15023 = vpow2.f32 %v12988_v39 }
0x117e   :  { %15025 = vpow2.f32 %v12989_v40 }
0x117f   :  { %15027 = vpow2.f32 %v12990_v28 }
0x1180   :  { %15029 = vtanh.f32 %v6476_v7  ;;  %v6056_v7 = vadd.f32 %v17490_v30, %v17585_v46 }
0x1187   :  { %v15024_v16 = vpop.eup %15023 }
0x1188   :  { %v15026_v56 = vpop.eup %15025  ;;  %v6484_v43 = vadd.f32 1.0, %v15024_v16 }
0x1189   :  { %v6485_v48 = vadd.f32 1.0, %v15026_v56  ;;  %v15028_v9 = vpop.eup %15027 }
0x118a   :  { %15031 = vrcp.f32 %v6484_v43  ;;  %v15030_v58 = vpop.eup %15029  ;;  %v6494_v34 = vadd.f32 1.0, %v15028_v9 }
0x118b   :  { %15033 = vrcp.f32 %v6485_v48 }
0x118c   :  { %15035 = vrcp.f32 %v6494_v34 }
0x1194   :  { %v15032_v14 = vpop.eup %15031 }
0x1195   :  { %v15034_v33 = vpop.eup %15033  ;;  %v6498_v53 = vmul.f32 %v15032_v14, %v15030_v58 }
0x1196   :  { %v6497_v12 = vmul.f32 0.0, %v15034_v33  ;;  %v15036_v29 = vpop.eup %15035 }
0x1198   :  { %v17608_v17 = vadd.f32 %v6498_v53, %v6497_v12 }
0x119a   :  { %15037 = vtanh.f32 %v17608_v17 }
0x11a4   :  { %v15038_v36 = vpop.eup %15037 }
0x11a5   :  { %v17611_v16 = vmul.f32 %v15038_v36, %v15036_v29 }
0x11a7   :  { %v6507_v56 = vpack.c.bf16 %v17611_v16, %v17611_v16 }
0x11a9   :  { %6733 = vmatmul.mubr.bf16.vlgmr.msra.gmra.mrb[100].mxu0 %v6507_v56  ;;  %6774 = vmatmul.mubr.bf16.vlgmr.msra.gmra.mrb[132].mxu1 %v6507_v56 }
0x11aa   :  { %7009 = vmatpush1.bf16.msra.mxu0 %v17292_v27  ;;  %7050 = vmatpush1.bf16.msra.mxu1 %v17297_v11 }
0x11ab   :  { %7010 = vmatprep.subr.bf16.mxu0 %v17306_v6  ;;  %7051 = vmatprep.subr.bf16.mxu1 %v17321_v50 }
0x11ac   :  { %7040 = vmatprep.mubr.bf16.mxu0 %v19102_v51  ;;  %7081 = vmatprep.mubr.bf16.mxu1 %v19102_v51 }
0x11ae   :  { %7011 = vmatpush1.bf16.msra.mxu0 %v17311_v38  ;;  %7052 = vmatpush1.bf16.msra.mxu1 %v17316_v57 }
0x11af   :  { %7012 = vmatprep.subr.bf16.mxu0 %v17330_v61  ;;  %7053 = vmatprep.subr.bf16.mxu1 %v17335_v62 }
0x11b2   :  { %7013 = vmatpush1.bf16.msra.mxu0 %v17340_v63  ;;  %7054 = vmatpush1.bf16.msra.mxu1 %v17345_v0 }
0x11b3   :  { %7014 = vmatprep.subr.bf16.mxu0 %v17354_v2  ;;  %7055 = vmatprep.subr.bf16.mxu1 %v17359_v3 }
0x11b6   :  { %7015 = vmatpush1.bf16.msra.mxu0 %v17364_v4  ;;  %7056 = vmatpush1.bf16.msra.mxu1 %v17369_v5 }
0x11b7   :  { %7016 = vmatprep.subr.bf16.mxu0 %v17378_v13  ;;  %7057 = vmatprep.subr.bf16.mxu1 %v17383_v44 }
0x11ba   :  { %7017 = vmatpush1.bf16.msra.mxu0 %v17388_v8  ;;  %7058 = vmatpush1.bf16.msra.mxu1 %v17393_v35 }
0x11bb   :  { %7018 = vmatprep.subr.bf16.mxu0 %v17402_v37  ;;  %7059 = vmatprep.subr.bf16.mxu1 %v17407_v31 }
0x11be   :  { %7019 = vmatpush1.bf16.msra.mxu0 %v17412_v15  ;;  %7060 = vmatpush1.bf16.msra.mxu1 %v17417_v1 }
0x11bf   :  { %7020 = vmatprep.subr.bf16.mxu0 %v17426_v54  ;;  %7061 = vmatprep.subr.bf16.mxu1 %v17431_v55 }
0x11c2   :  { %7021 = vmatpush1.bf16.msra.mxu0 %v17436_v45  ;;  %7062 = vmatpush1.bf16.msra.mxu1 %v17441_v23 }
0x11c3   :  { %7022 = vmatprep.subr.bf16.mxu0 %v17448_v41  ;;  %7063 = vmatprep.subr.bf16.mxu1 %v17459_v32 }
0x11c6   :  { %7023 = vmatpush1.bf16.msra.mxu0 %v17454_v42  ;;  %7064 = vmatpush1.bf16.msra.mxu1 %v17466_v25 }
0x11c7   :  { %7316 = vmatprep.subr.bf16.mxu0 %v17282_v20  ;;  %7357 = vmatprep.subr.bf16.mxu1 %v17287_v60 }
0x127c   :  { %v6734_v52 = vpop.f32.mrb[100].mxu0  ;;  %v6775_v39 = vpop.f32.mrb[132].mxu1 }
0x127d   :  { %v6782_v40 = vadd.f32 %v6734_v52, %v6056_v7  ;;  %v6784_v28 = vadd.f32 %v6775_v39, %v6129_v47  ;;  %v6736_v43 = vpop.f32.mrb[101].mxu0  ;;  %v6777_v20 = vpop.f32.mrb[133].mxu1 }
0x127e   :  { %v6783_v48 = vadd.f32 %v6736_v43, %v6058_v26  ;;  %v6785_v60 = vadd.f32 %v6777_v20, %v6131_v19  ;;  %v6738_v9 = vpop.f32.mrb[102].mxu0  ;;  %v6779_v58 = vpop.f32.mrb[134].mxu1 }
0x127f   :  { %v13055_v30 = vmul.f32 -1.442695, %v6782_v40  ;;  %v6739_v14 = vpop.f32.mrb[103].mxu0  ;;  %v6780_v33 = vpop.f32.mrb[135].mxu1 }
0x1280   :  { %v13056_v49 = vmul.f32 -1.442695, %v6783_v48  ;;  %v13057_v24 = vmul.f32 -1.442695, %v6785_v60  ;;  %v17718_v14 = vld [vmem:[%s19071_s1 + $0x504] ss:$16 sps:$4 sm:$0xff]  }
0x1281   :  { %15039 = vpow2.f32 %v13055_v30  ;;  %v17723_v33 = vld [vmem:[%s19071_s1 + $0x50c] ss:$16 sps:$4 sm:$0xff]  }
0x1282   :  { %15041 = vpow2.f32 %v13056_v49  ;;  %v17728_v49 = vld [vmem:[%s19071_s1 + $0x500] ss:$16 sps:$4 sm:$0xff]  }
0x1283   :  { %15043 = vpow2.f32 %v13057_v24  ;;  %v17733_v24 = vld [vmem:[%s19071_s1 + $0x508] ss:$16 sps:$4 sm:$0xff]  }
0x1284   :  { %15045 = vtanh.f32 %v6784_v28 }
0x128b   :  { %v15040_v53 = vpop.eup %15039 }
0x128c   :  { %v15042_v34 = vpop.eup %15041  ;;  %v6792_v21 = vadd.f32 1.0, %v15040_v53  ;;  %v17742_v53 = vld [vmem:[%s19071_s1 + $0x524] ss:$16 sps:$4 sm:$0xff]  }
0x128d   :  { %v6793_v12 = vadd.f32 1.0, %v15042_v34  ;;  %v15044_v29 = vpop.eup %15043  ;;  %v17747_v34 = vld [vmem:[%s19071_s1 + $0x52c] ss:$16 sps:$4 sm:$0xff]  }
0x128e   :  { %15047 = vrcp.f32 %v6792_v21  ;;  %v15046_v36 = vpop.eup %15045  ;;  %v6802_v26 = vadd.f32 1.0, %v15044_v29  ;;  %v17752_v21 = vld [vmem:[%s19071_s1 + $0x520] ss:$16 sps:$4 sm:$0xff]   ;;  %v17766_v29 = vld [vmem:[%s19071_s1 + $0x544] ss:$16 sps:$4 sm:$0xff]  }
0x128f   :  { %15049 = vrcp.f32 %v6793_v12  ;;  %v17757_v12 = vld [vmem:[%s19071_s1 + $0x528] ss:$16 sps:$4 sm:$0xff]  }
0x1290   :  { %15051 = vrcp.f32 %v6802_v26  ;;  %v17795_v26 = vld [vmem:[%s19071_s1 + $0x56c] ss:$16 sps:$4 sm:$0xff]  }
0x1298   :  { %v15048_v56 = vpop.eup %15047 }
0x1299   :  { %v15050_v7 = vpop.eup %15049  ;;  %v6806_v47 = vmul.f32 %v15048_v56, %v15046_v36  ;;  %v17771_v36 = vld [vmem:[%s19071_s1 + $0x54c] ss:$16 sps:$4 sm:$0xff]   ;;  %v17776_v56 = vld [vmem:[%s19071_s1 + $0x540] ss:$16 sps:$4 sm:$0xff]  }
0x129a   :  { %v6805_v19 = vmul.f32 %v15050_v7, %v17608_v17  ;;  %v15052_v39 = vpop.eup %15051  ;;  %v17781_v7 = vld [vmem:[%s19071_s1 + $0x548] ss:$16 sps:$4 sm:$0xff]  }
0x129c   :  { %v17658_v52 = vadd.f32 %v6806_v47, %v6805_v19  ;;  %v17790_v47 = vld [vmem:[%s19071_s1 + $0x564] ss:$16 sps:$4 sm:$0xff]   ;;  %v17800_v19 = vld [vmem:[%s19071_s1 + $0x560] ss:$16 sps:$4 sm:$0xff]  }
0x129e   :  { %15053 = vtanh.f32 %v17658_v52 }
0x12a8   :  { %v15054_v40 = vpop.eup %15053 }
0x12a9   :  { %v17661_v43 = vmul.f32 %v15054_v40, %v15052_v39  ;;  %v17814_v39 = vld [vmem:[%s19071_s1 + $0x584] ss:$16 sps:$4 sm:$0xff]   ;;  %v17819_v40 = vld [vmem:[%s19071_s1 + $0x58c] ss:$16 sps:$4 sm:$0xff]  }
0x12ab   :  { %v6815_v28 = vpack.c.bf16 %v17661_v43, %v17661_v43 }
0x12ad   :  { %7041 = vmatmul.mubr.bf16.vlgmr.msra.gmra.mrb[104].mxu0 %v6815_v28  ;;  %7082 = vmatmul.mubr.bf16.vlgmr.msra.gmra.mrb[136].mxu1 %v6815_v28  ;;  %v17824_v28 = vld [vmem:[%s19071_s1 + $0x580] ss:$16 sps:$4 sm:$0xff]  }
0x12ae   :  { %7317 = vmatpush1.bf16.msra.mxu0 %v17292_v27  ;;  %7358 = vmatpush1.bf16.msra.mxu1 %v17297_v11  ;;  %v6062_v27 = vadd.f32 %v17498_v10, %v17585_v46  ;;  %v19192_v11 = vld [vmem:[#allocation13_spill] sm:$0xff] }
0x12af   :  { %7318 = vmatprep.subr.bf16.mxu0 %v17306_v6  ;;  %7359 = vmatprep.subr.bf16.mxu1 %v17321_v50  ;;  %v6135_v6 = vadd.f32 %v19192_v11, %v17588_v22  ;;  %v19194_v50 = vld [vmem:[#allocation14_spill] sm:$0xff] }
0x12b0   :  { %7348 = vmatprep.mubr.bf16.mxu0 %v19102_v51  ;;  %7389 = vmatprep.mubr.bf16.mxu1 %v19102_v51  ;;  %v17836_v11 = vld [vmem:[%s19071_s1 + $0x5a4] ss:$16 sps:$4 sm:$0xff]  }
0x12b2   :  { %7319 = vmatpush1.bf16.msra.mxu0 %v17311_v38  ;;  %7360 = vmatpush1.bf16.msra.mxu1 %v17316_v57  ;;  %v19193_v38 = vld [vmem:[#allocation8_spill] sm:$0xff] }
0x12b3   :  { %7320 = vmatprep.subr.bf16.mxu0 %v17330_v61  ;;  %7361 = vmatprep.subr.bf16.mxu1 %v17335_v62  ;;  %v6064_v57 = vadd.f32 %v19193_v38, %v17595_v59  ;;  %v6137_v61 = vadd.f32 %v19194_v50, %v17598_v18  ;;  %v17848_v38 = vld [vmem:[%s19071_s1 + $0x5a8] ss:$16 sps:$4 sm:$0xff]   ;;  %v17859_v50 = vld [vmem:[%s19071_s1 + $0x5c4] ss:$16 sps:$4 sm:$0xff]  }
0x12b6   :  { %7321 = vmatpush1.bf16.msra.mxu0 %v17340_v63  ;;  %7362 = vmatpush1.bf16.msra.mxu1 %v17345_v0 }
0x12b7   :  { %7322 = vmatprep.subr.bf16.mxu0 %v17354_v2  ;;  %7363 = vmatprep.subr.bf16.mxu1 %v17359_v3 }
0x12ba   :  { %7323 = vmatpush1.bf16.msra.mxu0 %v17364_v4  ;;  %7364 = vmatpush1.bf16.msra.mxu1 %v17369_v5 }
0x12bb   :  { %7324 = vmatprep.subr.bf16.mxu0 %v17378_v13  ;;  %7365 = vmatprep.subr.bf16.mxu1 %v17383_v44 }
0x12be   :  { %7325 = vmatpush1.bf16.msra.mxu0 %v17388_v8  ;;  %7366 = vmatpush1.bf16.msra.mxu1 %v17393_v35 }
0x12bf   :  { %7326 = vmatprep.subr.bf16.mxu0 %v17402_v37  ;;  %7367 = vmatprep.subr.bf16.mxu1 %v17407_v31 }
0x12c2   :  { %7327 = vmatpush1.bf16.msra.mxu0 %v17412_v15  ;;  %7368 = vmatpush1.bf16.msra.mxu1 %v17417_v1 }
0x12c3   :  { %7328 = vmatprep.subr.bf16.mxu0 %v17426_v54  ;;  %7369 = vmatprep.subr.bf16.mxu1 %v17431_v55 }
0x12c6   :  { %7329 = vmatpush1.bf16.msra.mxu0 %v17436_v45  ;;  %7370 = vmatpush1.bf16.msra.mxu1 %v17441_v23 }
0x12c7   :  { %7330 = vmatprep.subr.bf16.mxu0 %v17448_v41  ;;  %7371 = vmatprep.subr.bf16.mxu1 %v17459_v32 }
0x12ca   :  { %7331 = vmatpush1.bf16.msra.mxu0 %v17454_v42  ;;  %7372 = vmatpush1.bf16.msra.mxu1 %v17466_v25 }
0x12cb   :  { %7624 = vmatprep.subr.bf16.mxu0 %v17718_v14  ;;  %7665 = vmatprep.subr.bf16.mxu1 %v17723_v33 }
0x1380   :  { %v7042_v62 = vpop.f32.mrb[104].mxu0  ;;  %v7083_v63 = vpop.f32.mrb[136].mxu1 }
0x1381   :  { %v7090_v0 = vadd.f32 %v7042_v62, %v6062_v27  ;;  %v7092_v2 = vadd.f32 %v7083_v63, %v6135_v6  ;;  %v7044_v3 = vpop.f32.mrb[105].mxu0  ;;  %v7085_v4 = vpop.f32.mrb[137].mxu1  ;;  %v17829_v27 = vld [vmem:[%s19071_s1 + $0x588] ss:$16 sps:$4 sm:$0xff]   ;;  %v17843_v6 = vld [vmem:[%s19071_s1 + $0x5a0] ss:$16 sps:$4 sm:$0xff]  }
0x1382   :  { %v7091_v5 = vadd.f32 %v7044_v3, %v6064_v57  ;;  %v7093_v13 = vadd.f32 %v7085_v4, %v6137_v61  ;;  %v7046_v44 = vpop.f32.mrb[106].mxu0  ;;  %v7087_v8 = vpop.f32.mrb[138].mxu1  ;;  %v17853_v57 = vld [vmem:[%s19071_s1 + $0x5ac] ss:$16 sps:$4 sm:$0xff]   ;;  %v17872_v62 = vld [vmem:[%s19071_s1 + $0x5c0] ss:$16 sps:$4 sm:$0xff]  }
0x1383   :  { %v13122_v35 = vmul.f32 -1.442695, %v7090_v0  ;;  %v7047_v37 = vpop.f32.mrb[107].mxu0  ;;  %v7088_v31 = vpop.f32.mrb[139].mxu1  ;;  %v17864_v61 = vld [vmem:[%s19071_s1 + $0x5cc] ss:$16 sps:$4 sm:$0xff]  }
0x1384   :  { %v13123_v15 = vmul.f32 -1.442695, %v7091_v5  ;;  %v13124_v1 = vmul.f32 -1.442695, %v7093_v13  ;;  %v17877_v63 = vld [vmem:[%s19071_s1 + $0x5c8] ss:$16 sps:$4 sm:$0xff]  }
0x1385   :  { %15055 = vpow2.f32 %v13122_v35  ;;  %v17884_v0 = vld [vmem:[%s19071_s1 + $0x5e4] ss:$16 sps:$4 sm:$0xff]   ;;  %v17896_v3 = vld [vmem:[%s19071_s1 + $0x5e0] ss:$16 sps:$4 sm:$0xff]   ;;  %v17901_v4 = vld [vmem:[%s19071_s1 + $0x5e8] ss:$16 sps:$4 sm:$0xff]  }
0x1386   :  { %15057 = vpow2.f32 %v13123_v15  ;;  %v19195_v5 = vld [vmem:[#allocation17_spill] sm:$0xff]  ;;  %v19196_v44 = vld [vmem:[#allocation18_spill] sm:$0xff]  ;;  %v19197_v35 = vld [vmem:[#allocation19_spill] sm:$0xff] }
0x1387   :  { %15059 = vpow2.f32 %v13124_v1  ;;  %v6066_v13 = vadd.f32 %v19195_v5, %v17585_v46  ;;  %v6139_v8 = vadd.f32 %v19196_v44, %v17588_v22  ;;  %v6068_v37 = vadd.f32 %v19197_v35, %v17595_v59  ;;  %v19198_v31 = vld [vmem:[#allocation9_spill] sm:$0xff] }
0x1388   :  { %15061 = vtanh.f32 %v7092_v2  ;;  %v17889_v2 = vld [vmem:[%s19071_s1 + $0x5ec] ss:$16 sps:$4 sm:$0xff]   ;;  %v6141_v15 = vadd.f32 %v19198_v31, %v17598_v18 }
0x138f   :  { %v15056_v54 = vpop.eup %15055 }
0x1390   :  { %v15058_v55 = vpop.eup %15057  ;;  %v7100_v45 = vadd.f32 1.0, %v15056_v54 }
0x1391   :  { %v7101_v23 = vadd.f32 1.0, %v15058_v55  ;;  %v15060_v41 = vpop.eup %15059 }
0x1392   :  { %15063 = vrcp.f32 %v7100_v45  ;;  %v15062_v42 = vpop.eup %15061  ;;  %v7110_v17 = vadd.f32 1.0, %v15060_v41 }
0x1393   :  { %15065 = vrcp.f32 %v7101_v23 }
0x1394   :  { %15067 = vrcp.f32 %v7110_v17 }
0x139c   :  { %v15064_v32 = vpop.eup %15063 }
0x139d   :  { %v15066_v25 = vpop.eup %15065  ;;  %v7114_v10 = vmul.f32 %v15064_v32, %v15062_v42 }
0x139e   :  { %v7113_v20 = vmul.f32 %v15066_v25, %v17658_v52  ;;  %v15068_v60 = vpop.eup %15067  ;;  %v17805_v52 = vld [vmem:[%s19071_s1 + $0x568] ss:$16 sps:$4 sm:$0xff]  }
0x13a0   :  { %v17706_v48 = vadd.f32 %v7114_v10, %v7113_v20 }
0x13a2   :  { %15069 = vtanh.f32 %v17706_v48 }
0x13ac   :  { %v15070_v9 = vpop.eup %15069 }
0x13ad   :  { %v17709_v58 = vmul.f32 %v15070_v9, %v15068_v60 }
0x13af   :  { %v7123_v30 = vpack.c.bf16 %v17709_v58, %v17709_v58 }
0x13b1   :  { %7349 = vmatmul.mubr.bf16.vlgmr.msra.gmra.mrb[108].mxu0 %v7123_v30  ;;  %7390 = vmatmul.mubr.bf16.vlgmr.msra.gmra.mrb[140].mxu1 %v7123_v30 }
0x13b2   :  { %7656 = vmatprep.mubr.bf16.mxu0 %v19102_v51  ;;  %7697 = vmatprep.mubr.bf16.mxu1 %v19102_v51 }
0x13b3   :  { %7625 = vmatpush1.bf16.msra.mxu0 %v17728_v49  ;;  %7666 = vmatpush1.bf16.msra.mxu1 %v17733_v24 }
0x13b4   :  { %7626 = vmatprep.subr.bf16.mxu0 %v17742_v53  ;;  %7667 = vmatprep.subr.bf16.mxu1 %v17747_v34 }
0x13b7   :  { %7627 = vmatpush1.bf16.msra.mxu0 %v17752_v21  ;;  %7668 = vmatpush1.bf16.msra.mxu1 %v17757_v12 }
0x13b8   :  { %7628 = vmatprep.subr.bf16.mxu0 %v17766_v29  ;;  %7669 = vmatprep.subr.bf16.mxu1 %v17771_v36 }
0x13bb   :  { %7629 = vmatpush1.bf16.msra.mxu0 %v17776_v56  ;;  %7670 = vmatpush1.bf16.msra.mxu1 %v17781_v7 }
0x13bc   :  { %7630 = vmatprep.subr.bf16.mxu0 %v17790_v47  ;;  %7671 = vmatprep.subr.bf16.mxu1 %v17795_v26 }
0x13bf   :  { %7631 = vmatpush1.bf16.msra.mxu0 %v17800_v19  ;;  %7672 = vmatpush1.bf16.msra.mxu1 %v17805_v52 }
0x13c0   :  { %7632 = vmatprep.subr.bf16.mxu0 %v17814_v39  ;;  %7673 = vmatprep.subr.bf16.mxu1 %v17819_v40 }
0x13c3   :  { %7633 = vmatpush1.bf16.msra.mxu0 %v17824_v28  ;;  %7674 = vmatpush1.bf16.msra.mxu1 %v17829_v27 }
0x13c4   :  { %7634 = vmatprep.subr.bf16.mxu0 %v17836_v11  ;;  %7675 = vmatprep.subr.bf16.mxu1 %v17853_v57 }
0x13c7   :  { %7635 = vmatpush1.bf16.msra.mxu0 %v17843_v6  ;;  %7676 = vmatpush1.bf16.msra.mxu1 %v17848_v38 }
0x13c8   :  { %7636 = vmatprep.subr.bf16.mxu0 %v17859_v50  ;;  %7677 = vmatprep.subr.bf16.mxu1 %v17864_v61 }
0x13cb   :  { %7637 = vmatpush1.bf16.msra.mxu0 %v17872_v62  ;;  %7678 = vmatpush1.bf16.msra.mxu1 %v17877_v63 }
0x13cc   :  { %7638 = vmatprep.subr.bf16.mxu0 %v17884_v0  ;;  %7679 = vmatprep.subr.bf16.mxu1 %v17889_v2 }
0x13cf   :  { %7639 = vmatpush1.bf16.msra.mxu0 %v17896_v3  ;;  %7680 = vmatpush1.bf16.msra.mxu1 %v17901_v4 }
0x13d0   :  { %7932 = vmatprep.subr.bf16.mxu0 %v17718_v14  ;;  %7973 = vmatprep.subr.bf16.mxu1 %v17723_v33 }
0x1484   :  { %v7350_v1 = vpop.f32.mrb[108].mxu0  ;;  %v7391_v54 = vpop.f32.mrb[140].mxu1 }
0x1485   :  { %v7398_v55 = vadd.f32 %v7350_v1, %v6066_v13  ;;  %v7400_v45 = vadd.f32 %v7391_v54, %v6139_v8  ;;  %v7352_v23 = vpop.f32.mrb[109].mxu0  ;;  %v7393_v41 = vpop.f32.mrb[141].mxu1 }
0x1486   :  { %v7399_v42 = vadd.f32 %v7352_v23, %v6068_v37  ;;  %v7401_v32 = vadd.f32 %v7393_v41, %v6141_v15  ;;  %v7354_v25 = vpop.f32.mrb[110].mxu0  ;;  %v7395_v10 = vpop.f32.mrb[142].mxu1 }
0x1487   :  { %v13189_v17 = vmul.f32 -1.442695, %v7398_v55  ;;  %v7355_v20 = vpop.f32.mrb[111].mxu0  ;;  %v7396_v60 = vpop.f32.mrb[143].mxu1  ;;  %v19200_v10 = vld [vmem:[#allocation10_spill] sm:$0xff] }
0x1488   :  { %v13190_v9 = vmul.f32 -1.442695, %v7399_v42  ;;  %v13191_v30 = vmul.f32 -1.442695, %v7401_v32  ;;  %v19201_v20 = vld [vmem:[#allocation16_spill] sm:$0xff] }
0x1489   :  { %15071 = vpow2.f32 %v13189_v17  ;;  %v6145_v17 = vadd.f32 %v19200_v10, %v17588_v22  ;;  %v6074_v60 = vadd.f32 %v19201_v20, %v17595_v59 }
0x148a   :  { %15073 = vpow2.f32 %v13190_v9  ;;  %v19202_v9 = vld [vmem:[#allocation20_spill] sm:$0xff] }
0x148b   :  { %15075 = vpow2.f32 %v13191_v30  ;;  %v6147_v30 = vadd.f32 %v19202_v9, %v17598_v18 }
0x148c   :  { %15077 = vtanh.f32 %v7400_v45 }
0x1493   :  { %v15072_v5 = vpop.eup %15071 }
0x1494   :  { %v15074_v44 = vpop.eup %15073  ;;  %v7408_v35 = vadd.f32 1.0, %v15072_v5 }
0x1495   :  { %v7409_v13 = vadd.f32 1.0, %v15074_v44  ;;  %v15076_v8 = vpop.eup %15075 }
0x1496   :  { %15079 = vrcp.f32 %v7408_v35  ;;  %v15078_v37 = vpop.eup %15077  ;;  %v7418_v54 = vadd.f32 1.0, %v15076_v8 }
0x1497   :  { %15081 = vrcp.f32 %v7409_v13 }
0x1498   :  { %15083 = vrcp.f32 %v7418_v54 }
0x14a0   :  { %v15080_v31 = vpop.eup %15079 }
0x14a1   :  { %v15082_v15 = vpop.eup %15081  ;;  %v7422_v1 = vmul.f32 %v15080_v31, %v15078_v37 }
0x14a2   :  { %v7421_v55 = vmul.f32 %v15082_v15, %v17706_v48  ;;  %v15084_v41 = vpop.eup %15083  ;;  %v19199_v48 = vld [vmem:[#allocation15_spill] sm:$0xff] }
0x14a3   :  { %v6072_v25 = vadd.f32 %v19199_v48, %v17585_v46 }
0x14a4   :  { %v17918_v23 = vadd.f32 %v7422_v1, %v7421_v55 }
0x14a6   :  { %15085 = vtanh.f32 %v17918_v23 }
0x14b0   :  { %v15086_v42 = vpop.eup %15085 }
0x14b1   :  { %v17921_v32 = vmul.f32 %v15086_v42, %v15084_v41 }
0x14b3   :  { %v7431_v45 = vpack.c.bf16 %v17921_v32, %v17921_v32 }
0x14b5   :  { %7657 = vmatmul.mubr.bf16.vlgmr.msra.gmra.mrb[112].mxu0 %v7431_v45  ;;  %7698 = vmatmul.mubr.bf16.vlgmr.msra.gmra.mrb[144].mxu1 %v7431_v45 }
0x14b6   :  { %7933 = vmatpush1.bf16.msra.mxu0 %v17728_v49  ;;  %7974 = vmatpush1.bf16.msra.mxu1 %v17733_v24 }
0x14b7   :  { %7934 = vmatprep.subr.bf16.mxu0 %v17742_v53  ;;  %7975 = vmatprep.subr.bf16.mxu1 %v17747_v34 }
0x14b8   :  { %7964 = vmatprep.mubr.bf16.mxu0 %v19102_v51  ;;  %8005 = vmatprep.mubr.bf16.mxu1 %v19102_v51 }
0x14ba   :  { %7935 = vmatpush1.bf16.msra.mxu0 %v17752_v21  ;;  %7976 = vmatpush1.bf16.msra.mxu1 %v17757_v12 }
0x14bb   :  { %7936 = vmatprep.subr.bf16.mxu0 %v17766_v29  ;;  %7977 = vmatprep.subr.bf16.mxu1 %v17771_v36 }
0x14be   :  { %7937 = vmatpush1.bf16.msra.mxu0 %v17776_v56  ;;  %7978 = vmatpush1.bf16.msra.mxu1 %v17781_v7 }
0x14bf   :  { %7938 = vmatprep.subr.bf16.mxu0 %v17790_v47  ;;  %7979 = vmatprep.subr.bf16.mxu1 %v17795_v26 }
0x14c2   :  { %7939 = vmatpush1.bf16.msra.mxu0 %v17800_v19  ;;  %7980 = vmatpush1.bf16.msra.mxu1 %v17805_v52 }
0x14c3   :  { %7940 = vmatprep.subr.bf16.mxu0 %v17814_v39  ;;  %7981 = vmatprep.subr.bf16.mxu1 %v17819_v40 }
0x14c6   :  { %7941 = vmatpush1.bf16.msra.mxu0 %v17824_v28  ;;  %7982 = vmatpush1.bf16.msra.mxu1 %v17829_v27 }
0x14c7   :  { %7942 = vmatprep.subr.bf16.mxu0 %v17836_v11  ;;  %7983 = vmatprep.subr.bf16.mxu1 %v17853_v57 }
0x14ca   :  { %7943 = vmatpush1.bf16.msra.mxu0 %v17843_v6  ;;  %7984 = vmatpush1.bf16.msra.mxu1 %v17848_v38 }
0x14cb   :  { %7944 = vmatprep.subr.bf16.mxu0 %v17859_v50  ;;  %7985 = vmatprep.subr.bf16.mxu1 %v17864_v61 }
0x14ce   :  { %7945 = vmatpush1.bf16.msra.mxu0 %v17872_v62  ;;  %7986 = vmatpush1.bf16.msra.mxu1 %v17877_v63 }
0x14cf   :  { %7946 = vmatprep.subr.bf16.mxu0 %v17884_v0  ;;  %7987 = vmatprep.subr.bf16.mxu1 %v17889_v2 }
0x14d2   :  { %7947 = vmatpush1.bf16.msra.mxu0 %v17896_v3  ;;  %7988 = vmatpush1.bf16.msra.mxu1 %v17901_v4 }
0x14d3   :  { %8240 = vmatprep.subr.bf16.mxu0 %v17718_v14  ;;  %8281 = vmatprep.subr.bf16.mxu1 %v17723_v33 }
0x1588   :  { %v7658_v5 = vpop.f32.mrb[112].mxu0  ;;  %v7699_v44 = vpop.f32.mrb[144].mxu1 }
0x1589   :  { %v7706_v35 = vadd.f32 %v7658_v5, %v6072_v25  ;;  %v7708_v13 = vadd.f32 %v7699_v44, %v6145_v17  ;;  %v7660_v8 = vpop.f32.mrb[113].mxu0  ;;  %v7701_v37 = vpop.f32.mrb[145].mxu1 }
0x158a   :  { %v7707_v31 = vadd.f32 %v7660_v8, %v6074_v60  ;;  %v7709_v15 = vadd.f32 %v7701_v37, %v6147_v30  ;;  %v7662_v1 = vpop.f32.mrb[114].mxu0  ;;  %v7703_v54 = vpop.f32.mrb[146].mxu1 }
0x158b   :  { %v13256_v55 = vmul.f32 -1.442695, %v7706_v35  ;;  %v7663_v41 = vpop.f32.mrb[115].mxu0  ;;  %v7704_v42 = vpop.f32.mrb[147].mxu1 }
0x158c   :  { %v13257_v45 = vmul.f32 -1.442695, %v7707_v31  ;;  %v13258_v48 = vmul.f32 -1.442695, %v7709_v15  ;;  %v19205_v42 = vld [vmem:[#allocation23_spill] sm:$0xff] }
0x158d   :  { %15087 = vpow2.f32 %v13256_v55  ;;  %v19204_v55 = vld [vmem:[#allocation22_spill] sm:$0xff] }
0x158e   :  { %15089 = vpow2.f32 %v13257_v45  ;;  %v6149_v41 = vadd.f32 %v19204_v55, %v17588_v22  ;;  %v6078_v45 = vadd.f32 %v19205_v42, %v17595_v59 }
0x158f   :  { %15091 = vpow2.f32 %v13258_v48  ;;  %v19206_v48 = vld [vmem:[#allocation24_spill] sm:$0xff] }
0x1590   :  { %15093 = vtanh.f32 %v7708_v13 }
0x1597   :  { %v15088_v10 = vpop.eup %15087 }
0x1598   :  { %v15090_v20 = vpop.eup %15089  ;;  %v7716_v9 = vadd.f32 1.0, %v15088_v10  ;;  %v6151_v10 = vadd.f32 %v19206_v48, %v17598_v18 }
0x1599   :  { %v7717_v25 = vadd.f32 1.0, %v15090_v20  ;;  %v15092_v17 = vpop.eup %15091 }
0x159a   :  { %15095 = vrcp.f32 %v7716_v9  ;;  %v15094_v60 = vpop.eup %15093  ;;  %v7726_v35 = vadd.f32 1.0, %v15092_v17 }
0x159b   :  { %15097 = vrcp.f32 %v7717_v25 }
0x159c   :  { %15099 = vrcp.f32 %v7726_v35 }
0x15a4   :  { %v15096_v30 = vpop.eup %15095 }
0x15a5   :  { %v15098_v5 = vpop.eup %15097  ;;  %v7730_v44 = vmul.f32 %v15096_v30, %v15094_v60 }
0x15a6   :  { %v7729_v8 = vmul.f32 %v15098_v5, %v17918_v23  ;;  %v15100_v31 = vpop.eup %15099  ;;  %v19203_v23 = vld [vmem:[#allocation21_spill] sm:$0xff] }
0x15a7   :  { %v6076_v54 = vadd.f32 %v19203_v23, %v17585_v46 }
0x15a8   :  { %v17968_v37 = vadd.f32 %v7730_v44, %v7729_v8 }
0x15aa   :  { %15101 = vtanh.f32 %v17968_v37 }
0x15b4   :  { %v15102_v15 = vpop.eup %15101 }
0x15b5   :  { %v17971_v1 = vmul.f32 %v15102_v15, %v15100_v31 }
0x15b7   :  { %v7739_v13 = vpack.c.bf16 %v17971_v1, %v17971_v1 }
0x15b9   :  { %7965 = vmatmul.mubr.bf16.vlgmr.msra.gmra.mrb[116].mxu0 %v7739_v13  ;;  %8006 = vmatmul.mubr.bf16.vlgmr.msra.gmra.mrb[148].mxu1 %v7739_v13 }
0x15ba   :  { %8241 = vmatpush1.bf16.msra.mxu0 %v17728_v49  ;;  %8282 = vmatpush1.bf16.msra.mxu1 %v17733_v24 }
0x15bb   :  { %8242 = vmatprep.subr.bf16.mxu0 %v17742_v53  ;;  %8283 = vmatprep.subr.bf16.mxu1 %v17747_v34 }
0x15bc   :  { %8272 = vmatprep.mubr.bf16.mxu0 %v19102_v51  ;;  %8313 = vmatprep.mubr.bf16.mxu1 %v19102_v51 }
0x15be   :  { %8243 = vmatpush1.bf16.msra.mxu0 %v17752_v21  ;;  %8284 = vmatpush1.bf16.msra.mxu1 %v17757_v12 }
0x15bf   :  { %8244 = vmatprep.subr.bf16.mxu0 %v17766_v29  ;;  %8285 = vmatprep.subr.bf16.mxu1 %v17771_v36 }
0x15c2   :  { %8245 = vmatpush1.bf16.msra.mxu0 %v17776_v56  ;;  %8286 = vmatpush1.bf16.msra.mxu1 %v17781_v7 }
0x15c3   :  { %8246 = vmatprep.subr.bf16.mxu0 %v17790_v47  ;;  %8287 = vmatprep.subr.bf16.mxu1 %v17795_v26 }
0x15c6   :  { %8247 = vmatpush1.bf16.msra.mxu0 %v17800_v19  ;;  %8288 = vmatpush1.bf16.msra.mxu1 %v17805_v52 }
0x15c7   :  { %8248 = vmatprep.subr.bf16.mxu0 %v17814_v39  ;;  %8289 = vmatprep.subr.bf16.mxu1 %v17819_v40 }
0x15ca   :  { %8249 = vmatpush1.bf16.msra.mxu0 %v17824_v28  ;;  %8290 = vmatpush1.bf16.msra.mxu1 %v17829_v27 }
0x15cb   :  { %8250 = vmatprep.subr.bf16.mxu0 %v17836_v11  ;;  %8291 = vmatprep.subr.bf16.mxu1 %v17853_v57 }
0x15ce   :  { %8251 = vmatpush1.bf16.msra.mxu0 %v17843_v6  ;;  %8292 = vmatpush1.bf16.msra.mxu1 %v17848_v38 }
0x15cf   :  { %8252 = vmatprep.subr.bf16.mxu0 %v17859_v50  ;;  %8293 = vmatprep.subr.bf16.mxu1 %v17864_v61 }
0x15d2   :  { %8253 = vmatpush1.bf16.msra.mxu0 %v17872_v62  ;;  %8294 = vmatpush1.bf16.msra.mxu1 %v17877_v63 }
0x15d3   :  { %8254 = vmatprep.subr.bf16.mxu0 %v17884_v0  ;;  %8295 = vmatprep.subr.bf16.mxu1 %v17889_v2 }
0x15d6   :  { %8255 = vmatpush1.bf16.msra.mxu0 %v17896_v3  ;;  %8296 = vmatpush1.bf16.msra.mxu1 %v17901_v4 }
0x15d7   :  { %8548 = vmatprep.subr.bf16.mxu0 %v17718_v14  ;;  %8589 = vmatprep.subr.bf16.mxu1 %v17723_v33 }
0x168c   :  { %v7966_v20 = vpop.f32.mrb[116].mxu0  ;;  %v8007_v9 = vpop.f32.mrb[148].mxu1 }
0x168d   :  { %v8014_v25 = vadd.f32 %v7966_v20, %v6076_v54  ;;  %v8016_v17 = vadd.f32 %v8007_v9, %v6149_v41  ;;  %v7968_v60 = vpop.f32.mrb[117].mxu0  ;;  %v8009_v14 = vpop.f32.mrb[149].mxu1 }
0x168e   :  { %v8015_v30 = vadd.f32 %v7968_v60, %v6078_v45  ;;  %v8017_v33 = vadd.f32 %v8009_v14, %v6151_v10  ;;  %v7970_v5 = vpop.f32.mrb[118].mxu0  ;;  %v8011_v44 = vpop.f32.mrb[150].mxu1 }
0x168f   :  { %v13323_v35 = vmul.f32 -1.442695, %v8014_v25  ;;  %v7971_v8 = vpop.f32.mrb[119].mxu0  ;;  %v8012_v31 = vpop.f32.mrb[151].mxu1 }
0x1690   :  { %v13324_v15 = vmul.f32 -1.442695, %v8015_v30  ;;  %v13325_v13 = vmul.f32 -1.442695, %v8017_v33 }
0x1691   :  { %15103 = vpow2.f32 %v13323_v35 }
0x1692   :  { %15105 = vpow2.f32 %v13324_v15 }
0x1693   :  { %15107 = vpow2.f32 %v13325_v13 }
0x1694   :  { %15109 = vtanh.f32 %v8016_v17 }
0x169b   :  { %v15104_v23 = vpop.eup %15103 }
0x169c   :  { %v15106_v55 = vpop.eup %15105  ;;  %v8024_v42 = vadd.f32 1.0, %v15104_v23 }
0x169d   :  { %v8025_v54 = vadd.f32 1.0, %v15106_v55  ;;  %v15108_v41 = vpop.eup %15107 }
0x169e   :  { %15111 = vrcp.f32 %v8024_v42  ;;  %v15110_v45 = vpop.eup %15109  ;;  %v8034_v9 = vadd.f32 1.0, %v15108_v41  ;;  %v14623_v42 = vld [vmem:[%s19071_s1 + $0x600] ss:$16 sps:$4 sm:$0xff]  }
0x169f   :  { %15113 = vrcp.f32 %v8025_v54  ;;  %v14626_v54 = vld [vmem:[%s19071_s1 + $0x608] ss:$16 sps:$4 sm:$0xff]  }
0x16a0   :  { %15115 = vrcp.f32 %v8034_v9  ;;  %v14637_v9 = vld [vmem:[%s19071_s1 + $0x644] ss:$16 sps:$4 sm:$0xff]  }
0x16a8   :  { %v15112_v48 = vpop.eup %15111 }
0x16a9   :  { %v15114_v10 = vpop.eup %15113  ;;  %v8038_v20 = vmul.f32 %v15112_v48, %v15110_v45  ;;  %v14631_v45 = vld [vmem:[%s19071_s1 + $0x624] ss:$16 sps:$4 sm:$0xff]   ;;  %v14634_v48 = vld [vmem:[%s19071_s1 + $0x62c] ss:$16 sps:$4 sm:$0xff]  }
0x16aa   :  { %v8037_v25 = vmul.f32 %v15114_v10, %v17968_v37  ;;  %v15116_v14 = vpop.eup %15115  ;;  %v14629_v10 = vld [vmem:[%s19071_s1 + $0x620] ss:$16 sps:$4 sm:$0xff]  }
0x16ac   :  { %v18018_v60 = vadd.f32 %v8038_v20, %v8037_v25  ;;  %v14632_v20 = vld [vmem:[%s19071_s1 + $0x628] ss:$16 sps:$4 sm:$0xff]   ;;  %v14640_v25 = vld [vmem:[%s19071_s1 + $0x64c] ss:$16 sps:$4 sm:$0xff]  }
0x16ae   :  { %15117 = vtanh.f32 %v18018_v60 }
0x16b8   :  { %v15118_v30 = vpop.eup %15117 }
0x16b9   :  { %v18021_v33 = vmul.f32 %v15118_v30, %v15116_v14  ;;  %v14638_v14 = vld [vmem:[%s19071_s1 + $0x648] ss:$16 sps:$4 sm:$0xff]   ;;  %v14643_v30 = vld [vmem:[%s19071_s1 + $0x664] ss:$16 sps:$4 sm:$0xff]  }
0x16bb   :  { %v8047_v17 = vpack.c.bf16 %v18021_v33, %v18021_v33 }
0x16bd   :  { %8273 = vmatmul.mubr.bf16.vlgmr.msra.gmra.mrb[120].mxu0 %v8047_v17  ;;  %8314 = vmatmul.mubr.bf16.vlgmr.msra.gmra.mrb[152].mxu1 %v8047_v17  ;;  %v14646_v17 = vld [vmem:[%s19071_s1 + $0x66c] ss:$16 sps:$4 sm:$0xff]  }
0x16be   :  { %8549 = vmatpush1.bf16.msra.mxu0 %v17728_v49  ;;  %8590 = vmatpush1.bf16.msra.mxu1 %v17733_v24  ;;  %v14625_v49 = vld [vmem:[%s19071_s1 + $0x604] ss:$16 sps:$4 sm:$0xff]   ;;  %v14628_v24 = vld [vmem:[%s19071_s1 + $0x60c] ss:$16 sps:$4 sm:$0xff]  }
0x16bf   :  { %8550 = vmatprep.subr.bf16.mxu0 %v17742_v53  ;;  %8591 = vmatprep.subr.bf16.mxu1 %v17747_v34  ;;  %v19207_v53 = vld [vmem:[#allocation25_spill] sm:$0xff] }
0x16c0   :  { %8580 = vmatprep.mubr.bf16.mxu0 %v19102_v51  ;;  %8621 = vmatprep.mubr.bf16.mxu1 %v19102_v51  ;;  %v6082_v34 = vadd.f32 %v19207_v53, %v17585_v46  ;;  %v14649_v53 = vld [vmem:[%s19071_s1 + $0x684] ss:$16 sps:$4 sm:$0xff]  }
0x16c2   :  { %8551 = vmatpush1.bf16.msra.mxu0 %v17752_v21  ;;  %8592 = vmatpush1.bf16.msra.mxu1 %v17757_v12  ;;  %v19208_v21 = vld [vmem:[#allocation26_spill] sm:$0xff] }
0x16c3   :  { %8552 = vmatprep.subr.bf16.mxu0 %v17766_v29  ;;  %8593 = vmatprep.subr.bf16.mxu1 %v17771_v36  ;;  %v6155_v12 = vadd.f32 %v19208_v21, %v17588_v22  ;;  %v19209_v29 = vld [vmem:[#allocation27_spill] sm:$0xff] }
0x16c4   :  { %v6084_v36 = vadd.f32 %v19209_v29, %v17595_v59  ;;  %v14647_v21 = vld [vmem:[%s19071_s1 + $0x680] ss:$16 sps:$4 sm:$0xff]   ;;  %v14655_v29 = vld [vmem:[%s19071_s1 + $0x6a4] ss:$16 sps:$4 sm:$0xff]  }
0x16c6   :  { %8553 = vmatpush1.bf16.msra.mxu0 %v17776_v56  ;;  %8594 = vmatpush1.bf16.msra.mxu1 %v17781_v7  ;;  %v19210_v56 = vld [vmem:[#allocation28_spill] sm:$0xff] }
0x16c7   :  { %8554 = vmatprep.subr.bf16.mxu0 %v17790_v47  ;;  %8595 = vmatprep.subr.bf16.mxu1 %v17795_v26  ;;  %v6157_v7 = vadd.f32 %v19210_v56, %v17598_v18  ;;  %v14653_v56 = vld [vmem:[%s19071_s1 + $0x6a0] ss:$16 sps:$4 sm:$0xff]  }
0x16ca   :  { %8555 = vmatpush1.bf16.msra.mxu0 %v17800_v19  ;;  %8596 = vmatpush1.bf16.msra.mxu1 %v17805_v52 }
0x16cb   :  { %8556 = vmatprep.subr.bf16.mxu0 %v17814_v39  ;;  %8597 = vmatprep.subr.bf16.mxu1 %v17819_v40 }
0x16ce   :  { %8557 = vmatpush1.bf16.msra.mxu0 %v17824_v28  ;;  %8598 = vmatpush1.bf16.msra.mxu1 %v17829_v27 }
0x16cf   :  { %8558 = vmatprep.subr.bf16.mxu0 %v17836_v11  ;;  %8599 = vmatprep.subr.bf16.mxu1 %v17853_v57 }
0x16d2   :  { %8559 = vmatpush1.bf16.msra.mxu0 %v17843_v6  ;;  %8600 = vmatpush1.bf16.msra.mxu1 %v17848_v38 }
0x16d3   :  { %8560 = vmatprep.subr.bf16.mxu0 %v17859_v50  ;;  %8601 = vmatprep.subr.bf16.mxu1 %v17864_v61 }
0x16d6   :  { %8561 = vmatpush1.bf16.msra.mxu0 %v17872_v62  ;;  %8602 = vmatpush1.bf16.msra.mxu1 %v17877_v63 }
0x16d7   :  { %8562 = vmatprep.subr.bf16.mxu0 %v17884_v0  ;;  %8603 = vmatprep.subr.bf16.mxu1 %v17889_v2 }
0x16da   :  { %8563 = vmatpush1.bf16.msra.mxu0 %v17896_v3  ;;  %8604 = vmatpush1.bf16.msra.mxu1 %v17901_v4 }
0x16db   :  { %8887 = vmatprep.subr.bf16.mxu0 %v14625_v49  ;;  %8960 = vmatprep.subr.bf16.mxu1 %v14628_v24  ;;  %v14641_v49 = vld [vmem:[%s19071_s1 + $0x660] ss:$16 sps:$4 sm:$0xff]   ;;  %v14644_v24 = vld [vmem:[%s19071_s1 + $0x668] ss:$16 sps:$4 sm:$0xff]  }
0x1790   :  { %v8274_v47 = vpop.f32.mrb[120].mxu0  ;;  %v8315_v26 = vpop.f32.mrb[152].mxu1 }
0x1791   :  { %v8322_v19 = vadd.f32 %v8274_v47, %v6082_v34  ;;  %v8324_v52 = vadd.f32 %v8315_v26, %v6155_v12  ;;  %v8276_v39 = vpop.f32.mrb[121].mxu0  ;;  %v8317_v40 = vpop.f32.mrb[153].mxu1  ;;  %v14652_v34 = vld [vmem:[%s19071_s1 + $0x68c] ss:$16 sps:$4 sm:$0xff]   ;;  %v14650_v12 = vld [vmem:[%s19071_s1 + $0x688] ss:$16 sps:$4 sm:$0xff]  }
0x1792   :  { %v8323_v28 = vadd.f32 %v8276_v39, %v6084_v36  ;;  %v8325_v27 = vadd.f32 %v8317_v40, %v6157_v7  ;;  %v8278_v11 = vpop.f32.mrb[122].mxu0  ;;  %v8319_v6 = vpop.f32.mrb[154].mxu1  ;;  %v14658_v36 = vld [vmem:[%s19071_s1 + $0x6ac] ss:$16 sps:$4 sm:$0xff]   ;;  %v14656_v7 = vld [vmem:[%s19071_s1 + $0x6a8] ss:$16 sps:$4 sm:$0xff]  }
0x1793   :  { %v13390_v38 = vmul.f32 -1.442695, %v8322_v19  ;;  %v8279_v57 = vpop.f32.mrb[123].mxu0  ;;  %v8320_v50 = vpop.f32.mrb[155].mxu1  ;;  %v14661_v47 = vld [vmem:[%s19071_s1 + $0x6c4] ss:$16 sps:$4 sm:$0xff]   ;;  %v8667_v11 = vpack.c.bf16 %v17661_v43, %v17611_v16  ;;  %v8668_v6 = vpack.c.bf16 %v17921_v32, %v17709_v58 }
0x1794   :  { %v13391_v61 = vmul.f32 -1.442695, %v8323_v28  ;;  %v13392_v62 = vmul.f32 -1.442695, %v8325_v27  ;;  %v14664_v26 = vld [vmem:[%s19071_s1 + $0x6cc] ss:$16 sps:$4 sm:$0xff]  }
0x1795   :  { %15119 = vpow2.f32 %v13390_v38  ;;  %v14659_v19 = vld [vmem:[%s19071_s1 + $0x6c0] ss:$16 sps:$4 sm:$0xff]   ;;  %v14667_v39 = vld [vmem:[%s19071_s1 + $0x6e4] ss:$16 sps:$4 sm:$0xff]   ;;  %v14670_v40 = vld [vmem:[%s19071_s1 + $0x6ec] ss:$16 sps:$4 sm:$0xff]   ;;  %v8669_v38 = vpack.c.bf16 %v18021_v33, %v17971_v1 }
0x1796   :  { %15121 = vpow2.f32 %v13391_v61  ;;  %v14665_v28 = vld [vmem:[%s19071_s1 + $0x6e0] ss:$16 sps:$4 sm:$0xff]   ;;  %v14668_v27 = vld [vmem:[%s19071_s1 + $0x6e8] ss:$16 sps:$4 sm:$0xff]   ;;  %v18186_v16 = vld [vmem:[%s19071_s1 + $0x704] ss:$16 sps:$4 sm:$0xff]  }
0x1797   :  { %15123 = vpow2.f32 %v13392_v62  ;;  %v18191_v43 = vld [vmem:[%s19071_s1 + $0x70c] ss:$16 sps:$4 sm:$0xff]   ;;  %v18196_v58 = vld [vmem:[%s19071_s1 + $0x700] ss:$16 sps:$4 sm:$0xff]   ;;  %v18201_v32 = vld [vmem:[%s19071_s1 + $0x708] ss:$16 sps:$4 sm:$0xff]  }
0x1798   :  { %15125 = vtanh.f32 %v8324_v52  ;;  %v14662_v52 = vld [vmem:[%s19071_s1 + $0x6c8] ss:$16 sps:$4 sm:$0xff]   ;;  %v18210_v1 = vld [vmem:[%s19071_s1 + $0x724] ss:$16 sps:$4 sm:$0xff]   ;;  %v18215_v33 = vld [vmem:[%s19071_s1 + $0x72c] ss:$16 sps:$4 sm:$0xff]  }
0x1799   :  { %v18220_v57 = vld [vmem:[%s19071_s1 + $0x720] ss:$16 sps:$4 sm:$0xff]   ;;  %v18225_v50 = vld [vmem:[%s19071_s1 + $0x728] ss:$16 sps:$4 sm:$0xff]   ;;  %v18234_v61 = vld [vmem:[%s19071_s1 + $0x744] ss:$16 sps:$4 sm:$0xff]  }
0x179a   :  { %v18239_v62 = vld [vmem:[%s19071_s1 + $0x74c] ss:$16 sps:$4 sm:$0xff]  }
0x179f   :  { %v15120_v63 = vpop.eup %15119 }
0x17a0   :  { %v15122_v0 = vpop.eup %15121  ;;  %v8332_v2 = vadd.f32 1.0, %v15120_v63  ;;  %v18244_v63 = vld [vmem:[%s19071_s1 + $0x740] ss:$16 sps:$4 sm:$0xff]  }
0x17a1   :  { %v8333_v3 = vadd.f32 1.0, %v15122_v0  ;;  %v15124_v4 = vpop.eup %15123  ;;  %v18249_v0 = vld [vmem:[%s19071_s1 + $0x748] ss:$16 sps:$4 sm:$0xff]  }
0x17a2   :  { %15127 = vrcp.f32 %v8332_v2  ;;  %v15126_v37 = vpop.eup %15125  ;;  %v8342_v8 = vadd.f32 1.0, %v15124_v4  ;;  %v18258_v2 = vld [vmem:[%s19071_s1 + $0x760] ss:$16 sps:$4 sm:$0xff]   ;;  %v18268_v4 = vld [vmem:[%s19071_s1 + $0x768] ss:$16 sps:$4 sm:$0xff]  }
0x17a3   :  { %15129 = vrcp.f32 %v8333_v3  ;;  %v18263_v3 = vld [vmem:[%s19071_s1 + $0x764] ss:$16 sps:$4 sm:$0xff]  }
0x17a4   :  { %15131 = vrcp.f32 %v8342_v8  ;;  %v18297_v8 = vld [vmem:[%s19071_s1 + $0x788] ss:$16 sps:$4 sm:$0xff]  }
0x17ac   :  { %v15128_v5 = vpop.eup %15127 }
0x17ad   :  { %v15130_v44 = vpop.eup %15129  ;;  %v8346_v35 = vmul.f32 %v15128_v5, %v15126_v37  ;;  %v18273_v37 = vld [vmem:[%s19071_s1 + $0x76c] ss:$16 sps:$4 sm:$0xff]   ;;  %v18282_v5 = vld [vmem:[%s19071_s1 + $0x784] ss:$16 sps:$4 sm:$0xff]  }
0x17ae   :  { %v8345_v31 = vmul.f32 %v15130_v44, %v18018_v60  ;;  %v15132_v13 = vpop.eup %15131  ;;  %v14635_v60 = vld [vmem:[%s19071_s1 + $0x640] ss:$16 sps:$4 sm:$0xff]   ;;  %v18287_v44 = vld [vmem:[%s19071_s1 + $0x78c] ss:$16 sps:$4 sm:$0xff]  }
0x17b0   :  { %v18072_v15 = vadd.f32 %v8346_v35, %v8345_v31  ;;  %v18292_v35 = vld [vmem:[%s19071_s1 + $0x780] ss:$16 sps:$4 sm:$0xff]  }
0x17b1   :  { %v18306_v31 = vld [vmem:[%s19071_s1 + $0x7a0] ss:$16 sps:$4 sm:$0xff]  }
0x17b2   :  { %15133 = vtanh.f32 %v18072_v15 }
0x17bc   :  { %v15134_v23 = vpop.eup %15133 }
0x17bd   :  { %v18075_v55 = vmul.f32 %v15134_v23, %v15132_v13  ;;  %v18311_v13 = vld [vmem:[%s19071_s1 + $0x7a4] ss:$16 sps:$4 sm:$0xff]   ;;  %v18316_v23 = vld [vmem:[%s19071_s1 + $0x7a8] ss:$16 sps:$4 sm:$0xff]  }
0x17bf   :  { %v8355_v41 = vpack.c.bf16 %v18075_v55, %v18075_v55 }
0x17c1   :  { %8581 = vmatmul.mubr.bf16.vlgmr.msra.gmra.mrb[124].mxu0 %v8355_v41  ;;  %8622 = vmatmul.mubr.bf16.vlgmr.msra.gmra.mrb[156].mxu1 %v8355_v41  ;;  %v18335_v41 = vld [vmem:[%s19071_s1 + $0x7cc] ss:$16 sps:$4 sm:$0xff]  }
0x17c2   :  { %8888 = vmatpush1.bf16.msra.mxu0 %v14623_v42  ;;  %8961 = vmatpush1.bf16.msra.mxu1 %v14626_v54  ;;  %v18321_v42 = vld [vmem:[%s19071_s1 + $0x7ac] ss:$16 sps:$4 sm:$0xff]   ;;  %v18330_v54 = vld [vmem:[%s19071_s1 + $0x7c4] ss:$16 sps:$4 sm:$0xff]  }
0x17c3   :  { %8889 = vmatprep.subr.bf16.mxu0 %v14631_v45  ;;  %8962 = vmatprep.subr.bf16.mxu1 %v14634_v48  ;;  %v18340_v45 = vld [vmem:[%s19071_s1 + $0x7c0] ss:$16 sps:$4 sm:$0xff]   ;;  %v18345_v48 = vld [vmem:[%s19071_s1 + $0x7c8] ss:$16 sps:$4 sm:$0xff]  }
0x17c4   :  { %8919 = vmatprep.mubr.bf16.mxu0 %v19102_v51  ;;  %8992 = vmatprep.mubr.bf16.mxu1 %v19102_v51 }
0x17c6   :  { %8890 = vmatpush1.bf16.msra.mxu0 %v14629_v10  ;;  %8963 = vmatpush1.bf16.msra.mxu1 %v14632_v20  ;;  %v18354_v10 = vld [vmem:[%s19071_s1 + $0x7e0] ss:$16 sps:$4 sm:$0xff]   ;;  %v18359_v20 = vld [vmem:[%s19071_s1 + $0x7e4] ss:$16 sps:$4 sm:$0xff]  }
0x17c7   :  { %8891 = vmatprep.subr.bf16.mxu0 %v14637_v9  ;;  %8964 = vmatprep.subr.bf16.mxu1 %v14640_v25  ;;  %v18364_v9 = vld [vmem:[%s19071_s1 + $0x7e8] ss:$16 sps:$4 sm:$0xff]   ;;  %v18369_v25 = vld [vmem:[%s19071_s1 + $0x7ec] ss:$16 sps:$4 sm:$0xff]  }
0x17ca   :  { %8892 = vmatpush1.bf16.msra.mxu0 %v14635_v60  ;;  %8965 = vmatpush1.bf16.msra.mxu1 %v14638_v14  ;;  %v19211_v60 = vld [vmem:[#allocation29_spill] sm:$0xff] }
0x17cb   :  { %8893 = vmatprep.subr.bf16.mxu0 %v14643_v30  ;;  %8966 = vmatprep.subr.bf16.mxu1 %v14646_v17  ;;  %v6086_v14 = vadd.f32 %v19211_v60, %v17585_v46  ;;  %v19212_v30 = vld [vmem:[#allocation30_spill] sm:$0xff] }
0x17cc   :  { %v6159_v17 = vadd.f32 %v19212_v30, %v17588_v22 }
0x17ce   :  { %8894 = vmatpush1.bf16.msra.mxu0 %v14641_v49  ;;  %8967 = vmatpush1.bf16.msra.mxu1 %v14644_v24  ;;  %v19213_v49 = vld [vmem:[#allocation31_spill] sm:$0xff] }
0x17cf   :  { %8895 = vmatprep.subr.bf16.mxu0 %v14649_v53  ;;  %8968 = vmatprep.subr.bf16.mxu1 %v14652_v34  ;;  %v6088_v24 = vadd.f32 %v19213_v49, %v17595_v59  ;;  %v19214_v53 = vld [vmem:[#allocation32_spill] sm:$0xff] }
0x17d0   :  { %v6161_v34 = vadd.f32 %v19214_v53, %v17598_v18 }
0x17d2   :  { %8896 = vmatpush1.bf16.msra.mxu0 %v14647_v21  ;;  %8969 = vmatpush1.bf16.msra.mxu1 %v14650_v12 }
0x17d3   :  { %8897 = vmatprep.subr.bf16.mxu0 %v14655_v29  ;;  %8970 = vmatprep.subr.bf16.mxu1 %v14658_v36 }
0x17d6   :  { %8898 = vmatpush1.bf16.msra.mxu0 %v14653_v56  ;;  %8971 = vmatpush1.bf16.msra.mxu1 %v14656_v7 }
0x17d7   :  { %8899 = vmatprep.subr.bf16.mxu0 %v14661_v47  ;;  %8972 = vmatprep.subr.bf16.mxu1 %v14664_v26 }
0x17da   :  { %8900 = vmatpush1.bf16.msra.mxu0 %v14659_v19  ;;  %8973 = vmatpush1.bf16.msra.mxu1 %v14662_v52 }
0x17db   :  { %8901 = vmatprep.subr.bf16.mxu0 %v14667_v39  ;;  %8974 = vmatprep.subr.bf16.mxu1 %v14670_v40 }
0x17de   :  { %8902 = vmatpush1.bf16.msra.mxu0 %v14665_v28  ;;  %8975 = vmatpush1.bf16.msra.mxu1 %v14668_v27 }
0x17df   :  { %9262 = vmatprep.subr.bf16.mxu0 %v18186_v16  ;;  %9303 = vmatprep.subr.bf16.mxu1 %v18191_v43 }
0x17e1   :  { %8920 = vmatmul.mubr.bf16.vlgmr.msra.gmra.mrb[128].mxu0 %v8667_v11  ;;  %8993 = vmatmul.mubr.bf16.vlgmr.msra.gmra.mrb[160].mxu1 %v8667_v11 }
0x17e2   :  { %8929 = vmatprep.mubr.bf16.mxu0 %v19102_v51  ;;  %9002 = vmatprep.mubr.bf16.mxu1 %v19102_v51 }
0x17e3   :  { %9263 = vmatpush1.bf16.msra.mxu0 %v18196_v58  ;;  %9304 = vmatpush1.bf16.msra.mxu1 %v18201_v32 }
0x17e4   :  { %9264 = vmatprep.subr.bf16.mxu0 %v18210_v1  ;;  %9305 = vmatprep.subr.bf16.mxu1 %v18215_v33 }
0x17e7   :  { %9265 = vmatpush1.bf16.msra.mxu0 %v18220_v57  ;;  %9306 = vmatpush1.bf16.msra.mxu1 %v18225_v50 }
0x17e8   :  { %9266 = vmatprep.subr.bf16.mxu0 %v18234_v61  ;;  %9307 = vmatprep.subr.bf16.mxu1 %v18239_v62 }
0x17e9   :  { %8930 = vmatmul.mubr.bf16.gmra.mrb[132].mxu0 %v8668_v6  ;;  %9003 = vmatmul.mubr.bf16.gmra.mrb[164].mxu1 %v8668_v6 }
0x17ea   :  { %8939 = vmatprep.mubr.bf16.mxu0 %v19102_v51  ;;  %9012 = vmatprep.mubr.bf16.mxu1 %v19102_v51 }
0x17eb   :  { %9267 = vmatpush1.bf16.msra.mxu0 %v18244_v63  ;;  %9308 = vmatpush1.bf16.msra.mxu1 %v18249_v0 }
0x17ec   :  { %9268 = vmatprep.subr.bf16.mxu0 %v18263_v3  ;;  %9309 = vmatprep.subr.bf16.mxu1 %v18273_v37 }
0x17ef   :  { %9269 = vmatpush1.bf16.msra.mxu0 %v18258_v2  ;;  %9310 = vmatpush1.bf16.msra.mxu1 %v18268_v4 }
0x17f0   :  { %9270 = vmatprep.subr.bf16.mxu0 %v18282_v5  ;;  %9311 = vmatprep.subr.bf16.mxu1 %v18287_v44 }
0x17f1   :  { %8940 = vmatmul.mubr.bf16.gmra.mrb[136].mxu0 %v8669_v38  ;;  %9013 = vmatmul.mubr.bf16.gmra.mrb[168].mxu1 %v8669_v38 }
0x17f2   :  { %8949 = vmatprep.mubr.bf16.mxu0 %v19102_v51  ;;  %9022 = vmatprep.mubr.bf16.mxu1 %v19102_v51 }
0x17f3   :  { %9271 = vmatpush1.bf16.msra.mxu0 %v18292_v35  ;;  %9312 = vmatpush1.bf16.msra.mxu1 %v18297_v8 }
0x17f4   :  { %9272 = vmatprep.subr.bf16.mxu0 %v18311_v13  ;;  %9313 = vmatprep.subr.bf16.mxu1 %v18321_v42 }
0x17f7   :  { %9273 = vmatpush1.bf16.msra.mxu0 %v18306_v31  ;;  %9314 = vmatpush1.bf16.msra.mxu1 %v18316_v23 }
0x17f8   :  { %9274 = vmatprep.subr.bf16.mxu0 %v18330_v54  ;;  %9315 = vmatprep.subr.bf16.mxu1 %v18335_v41 }
0x17fb   :  { %9275 = vmatpush1.bf16.msra.mxu0 %v18340_v45  ;;  %9316 = vmatpush1.bf16.msra.mxu1 %v18345_v48 }
0x17fc   :  { %9276 = vmatprep.subr.bf16.mxu0 %v18359_v20  ;;  %9317 = vmatprep.subr.bf16.mxu1 %v18369_v25 }
0x17ff   :  { %9277 = vmatpush1.bf16.msra.mxu0 %v18354_v10  ;;  %9318 = vmatpush1.bf16.msra.mxu1 %v18364_v9 }
0x1800   :  { %9571 = vmatprep.subr.bf16.mxu0 %v18186_v16  ;;  %9612 = vmatprep.subr.bf16.mxu1 %v18191_v43 }
0x1894   :  { %v8582_v21 = vpop.f32.mrb[124].mxu0  ;;  %v8623_v12 = vpop.f32.mrb[156].mxu1 }
0x1895   :  { %v8630_v29 = vadd.f32 %v8582_v21, %v6086_v14  ;;  %v8632_v36 = vadd.f32 %v8623_v12, %v6159_v17  ;;  %v8584_v56 = vpop.f32.mrb[125].mxu0  ;;  %v8625_v7 = vpop.f32.mrb[157].mxu1 }
0x1896   :  { %v8631_v47 = vadd.f32 %v8584_v56, %v6088_v24  ;;  %v8633_v26 = vadd.f32 %v8625_v7, %v6161_v34  ;;  %v8586_v19 = vpop.f32.mrb[126].mxu0  ;;  %v8627_v52 = vpop.f32.mrb[158].mxu1 }
0x1897   :  { %v13457_v46 = vmul.f32 -1.442695, %v8630_v29  ;;  %v8587_v39 = vpop.f32.mrb[127].mxu0  ;;  %v8628_v40 = vpop.f32.mrb[159].mxu1 }
0x1898   :  { %v13458_v22 = vmul.f32 -1.442695, %v8631_v47  ;;  %v13459_v59 = vmul.f32 -1.442695, %v8633_v26 }
0x1899   :  { %15135 = vpow2.f32 %v13457_v46 }
0x189a   :  { %15137 = vpow2.f32 %v13458_v22 }
0x189b   :  { %15139 = vpow2.f32 %v13459_v59 }
0x189c   :  { %15141 = vtanh.f32 %v8632_v36 }
0x18a3   :  { %v15136_v28 = vpop.eup %15135 }
0x18a4   :  { %v15138_v27 = vpop.eup %15137  ;;  %v8640_v18 = vadd.f32 1.0, %v15136_v28 }
0x18a5   :  { %v8641_v11 = vadd.f32 1.0, %v15138_v27  ;;  %v15140_v6 = vpop.eup %15139 }
0x18a6   :  { %15143 = vrcp.f32 %v8640_v18  ;;  %v15142_v38 = vpop.eup %15141  ;;  %v8650_v17 = vadd.f32 1.0, %v15140_v6 }
0x18a7   :  { %15145 = vrcp.f32 %v8641_v11 }
0x18a8   :  { %15147 = vrcp.f32 %v8650_v17  ;;  %v13492_v17 = vld [vmem:[%s19073_s2 + $0x3] ss:$4 sm:$0xf] }
0x18b0   :  { %v15144_v60 = vpop.eup %15143 }
0x18b1   :  { %v15146_v14 = vpop.eup %15145  ;;  %v8654_v30 = vmul.f32 %v15144_v60, %v15142_v38 }
0x18b2   :  { %v8653_v49 = vmul.f32 %v15146_v14, %v18072_v15  ;;  %v15148_v39 = vpop.eup %15147 }
0x18b4   :  { %v18386_v24 = vpop.f32.mrb[128].mxu0  ;;  %v18388_v53 = vpop.f32.mrb[160].mxu1  ;;  %v8655_v34 = vadd.f32 %v8654_v30, %v8653_v49 }
0x18b5   :  { %v18390_v21 = vpop.f32.mrb[129].mxu0  ;;  %v18392_v12 = vpop.f32.mrb[161].mxu1 }
0x18b6   :  { %v18394_v29 = vpop.f32.mrb[130].mxu0  ;;  %v18396_v36 = vpop.f32.mrb[162].mxu1  ;;  %15149 = vtanh.f32 %v8655_v34 }
0x18b7   :  { %v18398_v56 = vpop.f32.mrb[131].mxu0  ;;  %v18400_v7 = vpop.f32.mrb[163].mxu1 }
0x18bc   :  { %v18402_v15 = vpop.f32.mrb[132].mxu0  ;;  %v18404_v47 = vpop.f32.mrb[164].mxu1 }
0x18bd   :  { %19215 = vst [vmem:[#allocation13_spill] sm:$0xff] %v18404_v47  ;;  %v18406_v26 = vpop.f32.mrb[133].mxu0  ;;  %v18408_v19 = vpop.f32.mrb[165].mxu1 }
0x18be   :  { %19216 = vst [vmem:[#allocation8_spill] sm:$0xff] %v18406_v26  ;;  %19217 = vst [vmem:[#allocation14_spill] sm:$0xff] %v18408_v19  ;;  %v18410_v52 = vpop.f32.mrb[134].mxu0  ;;  %v18412_v46 = vpop.f32.mrb[166].mxu1 }
0x18bf   :  { %19218 = vst [vmem:[#allocation17_spill] sm:$0xff] %v18410_v52  ;;  %19219 = vst [vmem:[#allocation18_spill] sm:$0xff] %v18412_v46  ;;  %v18414_v40 = vpop.f32.mrb[135].mxu0  ;;  %v18416_v22 = vpop.f32.mrb[167].mxu1 }
0x18c0   :  { %19220 = vst [vmem:[#allocation19_spill] sm:$0xff] %v18414_v40  ;;  %19221 = vst [vmem:[#allocation9_spill] sm:$0xff] %v18416_v22  ;;  %v15150_v59 = vpop.eup %15149 }
0x18c1   :  { %v8657_v28 = vmul.f32 %v15150_v59, %v15148_v39 }
0x18c3   :  { %v8670_v27 = vpack.c.bf16 %v8657_v28, %v18075_v55 }
0x18c4   :  { %v18419_v18 = vpop.f32.mrb[136].mxu0  ;;  %v18421_v11 = vpop.f32.mrb[168].mxu1 }
0x18c5   :  { %19222 = vst [vmem:[#allocation15_spill] sm:$0xff] %v18419_v18  ;;  %19223 = vst [vmem:[#allocation10_spill] sm:$0xff] %v18421_v11  ;;  %v18423_v6 = vpop.f32.mrb[137].mxu0  ;;  %v18425_v38 = vpop.f32.mrb[169].mxu1  ;;  %8950 = vmatmul.mubr.bf16.gmra.mrb[140].mxu0 %v8670_v27  ;;  %9023 = vmatmul.mubr.bf16.gmra.mrb[172].mxu1 %v8670_v27 }
0x18c6   :  { %19224 = vst [vmem:[#allocation16_spill] sm:$0xff] %v18423_v6  ;;  %19225 = vst [vmem:[#allocation20_spill] sm:$0xff] %v18425_v38  ;;  %v18427_v60 = vpop.f32.mrb[138].mxu0  ;;  %v18429_v14 = vpop.f32.mrb[170].mxu1  ;;  %9294 = vmatprep.mubr.bf16.mxu0 %v19102_v51  ;;  %9335 = vmatprep.mubr.bf16.mxu1 %v19102_v51 }
0x18c7   :  { %19226 = vst [vmem:[#allocation21_spill] sm:$0xff] %v18427_v60  ;;  %19227 = vst [vmem:[#allocation22_spill] sm:$0xff] %v18429_v14  ;;  %v18433_v30 = vpop.f32.mrb[139].mxu0  ;;  %v18435_v55 = vpop.f32.mrb[171].mxu1  ;;  %v19237_v14 = vld [vmem:[#allocation11_spill] sm:$0xff] }
0x18c8   :  { %19228 = vst [vmem:[#allocation23_spill] sm:$0xff] %v18433_v30  ;;  %19229 = vst [vmem:[#allocation24_spill] sm:$0xff] %v18435_v55  ;;  %v19236_v55 = vld [vmem:[#allocation6_spill] sm:$0xff]  ;;  %v18492_v60 = vrot.slane %v13492_v17, %v19237_v14 }
0x18c9   :  { %v18489_v30 = vrot.slane %v13492_v17, %v19236_v55 }
0x18ca   :  { %v8995_v55 = vadd.f32 %v18388_v53, %v18492_v60 }
0x18cd   :  { %9295 = vmatmul.mubr.bf16.vlgmr.msra.gmra.mrb[144].mxu0 %v19102_v51  ;;  %9336 = vmatmul.mubr.bf16.vlgmr.msra.gmra.mrb[176].mxu1 %v19102_v51 }
0x18ce   :  { %9572 = vmatpush1.bf16.msra.mxu0 %v18196_v58  ;;  %9613 = vmatpush1.bf16.msra.mxu1 %v18201_v32 }
0x18cf   :  { %9573 = vmatprep.subr.bf16.mxu0 %v18210_v1  ;;  %9614 = vmatprep.subr.bf16.mxu1 %v18215_v33 }
0x18d0   :  { %9603 = vmatprep.mubr.bf16.mxu0 %v19102_v51  ;;  %9644 = vmatprep.mubr.bf16.mxu1 %v19102_v51 }
0x18d2   :  { %9574 = vmatpush1.bf16.msra.mxu0 %v18220_v57  ;;  %9615 = vmatpush1.bf16.msra.mxu1 %v18225_v50 }
0x18d3   :  { %9575 = vmatprep.subr.bf16.mxu0 %v18234_v61  ;;  %9616 = vmatprep.subr.bf16.mxu1 %v18239_v62 }
0x18d6   :  { %9576 = vmatpush1.bf16.msra.mxu0 %v18244_v63  ;;  %9617 = vmatpush1.bf16.msra.mxu1 %v18249_v0 }
0x18d7   :  { %9577 = vmatprep.subr.bf16.mxu0 %v18263_v3  ;;  %9618 = vmatprep.subr.bf16.mxu1 %v18273_v37 }
0x18da   :  { %9578 = vmatpush1.bf16.msra.mxu0 %v18258_v2  ;;  %9619 = vmatpush1.bf16.msra.mxu1 %v18268_v4 }
0x18db   :  { %9579 = vmatprep.subr.bf16.mxu0 %v18282_v5  ;;  %9620 = vmatprep.subr.bf16.mxu1 %v18287_v44 }
0x18de   :  { %9580 = vmatpush1.bf16.msra.mxu0 %v18292_v35  ;;  %9621 = vmatpush1.bf16.msra.mxu1 %v18297_v8 }
0x18df   :  { %9581 = vmatprep.subr.bf16.mxu0 %v18311_v13  ;;  %9622 = vmatprep.subr.bf16.mxu1 %v18321_v42 }
0x18e2   :  { %9582 = vmatpush1.bf16.msra.mxu0 %v18306_v31  ;;  %9623 = vmatpush1.bf16.msra.mxu1 %v18316_v23 }
0x18e3   :  { %9583 = vmatprep.subr.bf16.mxu0 %v18330_v54  ;;  %9624 = vmatprep.subr.bf16.mxu1 %v18335_v41 }
0x18e6   :  { %9584 = vmatpush1.bf16.msra.mxu0 %v18340_v45  ;;  %9625 = vmatpush1.bf16.msra.mxu1 %v18345_v48 }
0x18e7   :  { %9585 = vmatprep.subr.bf16.mxu0 %v18359_v20  ;;  %9626 = vmatprep.subr.bf16.mxu1 %v18369_v25 }
0x18ea   :  { %9586 = vmatpush1.bf16.msra.mxu0 %v18354_v10  ;;  %9627 = vmatpush1.bf16.msra.mxu1 %v18364_v9 }
0x18eb   :  { %9880 = vmatprep.subr.bf16.mxu0 %v18186_v16  ;;  %9921 = vmatprep.subr.bf16.mxu1 %v18191_v43 }
0x1998   :  { %v18476_v49 = vpop.f32.mrb[140].mxu0  ;;  %v18478_v34 = vpop.f32.mrb[172].mxu1 }
0x1999   :  { %19230 = vst [vmem:[#allocation25_spill] sm:$0xff] %v18476_v49  ;;  %19231 = vst [vmem:[#allocation26_spill] sm:$0xff] %v18478_v34  ;;  %v18480_v39 = vpop.f32.mrb[141].mxu0  ;;  %v18482_v59 = vpop.f32.mrb[173].mxu1  ;;  %v19240_v49 = vld [vmem:[#allocation7_spill] sm:$0xff] }
0x199a   :  { %19232 = vst [vmem:[#allocation27_spill] sm:$0xff] %v18480_v39  ;;  %19233 = vst [vmem:[#allocation28_spill] sm:$0xff] %v18482_v59  ;;  %v18484_v28 = vpop.f32.mrb[142].mxu0  ;;  %v18486_v27 = vpop.f32.mrb[174].mxu1  ;;  %v18499_v34 = vrot.slane %v13492_v17, %v19240_v49  ;;  %v19241_v39 = vld [vmem:[#allocation12_spill] sm:$0xff] }
0x199b   :  { %19234 = vst [vmem:[#allocation29_spill] sm:$0xff] %v18484_v28  ;;  %19235 = vst [vmem:[#allocation30_spill] sm:$0xff] %v18486_v27  ;;  %v18494_v38 = vpop.f32.mrb[143].mxu0  ;;  %v18496_v6 = vpop.f32.mrb[175].mxu1  ;;  %v18502_v11 = vrot.slane %v13492_v17, %v19241_v39  ;;  %v8922_v28 = vadd.f32 %v18386_v24, %v18489_v30 }
0x199c   :  { %19238 = vst [vmem:[#allocation31_spill] sm:$0xff] %v18494_v38  ;;  %19239 = vst [vmem:[#allocation32_spill] sm:$0xff] %v18496_v6  ;;  %v8924_v14 = vadd.f32 %v18390_v21, %v18499_v34 }
0x199d   :  { %v8997_v38 = vadd.f32 %v18392_v12, %v18502_v11 }
0x19a0   :  { %v9296_v27 = vpop.f32.mrb[144].mxu0  ;;  %v9337_v6 = vpop.f32.mrb[176].mxu1 }
0x19a1   :  { %v9344_v59 = vadd.f32 %v9296_v27, %v8922_v28  ;;  %v9346_v49 = vadd.f32 %v9337_v6, %v8995_v55  ;;  %v9298_v18 = vpop.f32.mrb[145].mxu0  ;;  %v9339_v22 = vpop.f32.mrb[177].mxu1  ;;  %v8926_v55 = vadd.f32 %v18394_v29, %v18489_v30 }
0x19a2   :  { %v9345_v17 = vadd.f32 %v9298_v18, %v8924_v14  ;;  %v9347_v39 = vadd.f32 %v9339_v22, %v8997_v38  ;;  %v9300_v40 = vpop.f32.mrb[146].mxu0  ;;  %v9341_v46 = vpop.f32.mrb[178].mxu1  ;;  %v8999_v14 = vadd.f32 %v18396_v36, %v18492_v60 }
0x19a3   :  { %v13589_v24 = vmul.f32 -1.442695, %v9344_v59  ;;  %v9301_v52 = vpop.f32.mrb[147].mxu0  ;;  %v9342_v19 = vpop.f32.mrb[179].mxu1 }
0x19a4   :  { %v13590_v53 = vmul.f32 -1.442695, %v9345_v17  ;;  %v13591_v21 = vmul.f32 -1.442695, %v9347_v39  ;;  %v9001_v17 = vadd.f32 %v18400_v7, %v18502_v11 }
0x19a5   :  { %15151 = vpow2.f32 %v13589_v24 }
0x19a6   :  { %15153 = vpow2.f32 %v13590_v53 }
0x19a7   :  { %15155 = vpow2.f32 %v13591_v21 }
0x19a8   :  { %15157 = vtanh.f32 %v9346_v49  ;;  %v8928_v49 = vadd.f32 %v18398_v56, %v18499_v34 }
0x19af   :  { %v15152_v26 = vpop.eup %15151 }
0x19b0   :  { %v15154_v47 = vpop.eup %15153  ;;  %v9354_v12 = vadd.f32 1.0, %v15152_v26 }
0x19b1   :  { %v9355_v28 = vadd.f32 1.0, %v15154_v47  ;;  %v15156_v6 = vpop.eup %15155 }
0x19b2   :  { %15159 = vrcp.f32 %v9354_v12  ;;  %v15158_v18 = vpop.eup %15157  ;;  %v9364_v38 = vadd.f32 1.0, %v15156_v6 }
0x19b3   :  { %15161 = vrcp.f32 %v9355_v28 }
0x19b4   :  { %15163 = vrcp.f32 %v9364_v38 }
0x19bc   :  { %v15160_v22 = vpop.eup %15159 }
0x19bd   :  { %v15162_v40 = vpop.eup %15161  ;;  %v9368_v46 = vmul.f32 %v15160_v22, %v15158_v18 }
0x19be   :  { %v9367_v52 = vmul.f32 0.0, %v15162_v40  ;;  %v15164_v59 = vpop.eup %15163 }
0x19c0   :  { %v18512_v19 = vadd.f32 %v9368_v46, %v9367_v52 }
0x19c2   :  { %15165 = vtanh.f32 %v18512_v19 }
0x19cc   :  { %v15166_v27 = vpop.eup %15165 }
0x19cd   :  { %v18515_v26 = vmul.f32 %v15166_v27, %v15164_v59 }
0x19cf   :  { %v9378_v47 = vpack.c.bf16 %v18515_v26, %v18515_v26 }
0x19d1   :  { %9604 = vmatmul.mubr.bf16.vlgmr.msra.gmra.mrb[148].mxu0 %v9378_v47  ;;  %9645 = vmatmul.mubr.bf16.vlgmr.msra.gmra.mrb[180].mxu1 %v9378_v47 }
0x19d2   :  { %9881 = vmatpush1.bf16.msra.mxu0 %v18196_v58  ;;  %9922 = vmatpush1.bf16.msra.mxu1 %v18201_v32 }
0x19d3   :  { %9882 = vmatprep.subr.bf16.mxu0 %v18210_v1  ;;  %9923 = vmatprep.subr.bf16.mxu1 %v18215_v33 }
0x19d4   :  { %9912 = vmatprep.mubr.bf16.mxu0 %v19102_v51  ;;  %9953 = vmatprep.mubr.bf16.mxu1 %v19102_v51 }
0x19d6   :  { %9883 = vmatpush1.bf16.msra.mxu0 %v18220_v57  ;;  %9924 = vmatpush1.bf16.msra.mxu1 %v18225_v50 }
0x19d7   :  { %9884 = vmatprep.subr.bf16.mxu0 %v18234_v61  ;;  %9925 = vmatprep.subr.bf16.mxu1 %v18239_v62 }
0x19da   :  { %9885 = vmatpush1.bf16.msra.mxu0 %v18244_v63  ;;  %9926 = vmatpush1.bf16.msra.mxu1 %v18249_v0 }
0x19db   :  { %9886 = vmatprep.subr.bf16.mxu0 %v18263_v3  ;;  %9927 = vmatprep.subr.bf16.mxu1 %v18273_v37 }
0x19de   :  { %9887 = vmatpush1.bf16.msra.mxu0 %v18258_v2  ;;  %9928 = vmatpush1.bf16.msra.mxu1 %v18268_v4 }
0x19df   :  { %9888 = vmatprep.subr.bf16.mxu0 %v18282_v5  ;;  %9929 = vmatprep.subr.bf16.mxu1 %v18287_v44 }
0x19e2   :  { %9889 = vmatpush1.bf16.msra.mxu0 %v18292_v35  ;;  %9930 = vmatpush1.bf16.msra.mxu1 %v18297_v8 }
0x19e3   :  { %9890 = vmatprep.subr.bf16.mxu0 %v18311_v13  ;;  %9931 = vmatprep.subr.bf16.mxu1 %v18321_v42 }
0x19e6   :  { %9891 = vmatpush1.bf16.msra.mxu0 %v18306_v31  ;;  %9932 = vmatpush1.bf16.msra.mxu1 %v18316_v23 }
0x19e7   :  { %9892 = vmatprep.subr.bf16.mxu0 %v18330_v54  ;;  %9933 = vmatprep.subr.bf16.mxu1 %v18335_v41 }
0x19ea   :  { %9893 = vmatpush1.bf16.msra.mxu0 %v18340_v45  ;;  %9934 = vmatpush1.bf16.msra.mxu1 %v18345_v48 }
0x19eb   :  { %9894 = vmatprep.subr.bf16.mxu0 %v18359_v20  ;;  %9935 = vmatprep.subr.bf16.mxu1 %v18369_v25 }
0x19ee   :  { %9895 = vmatpush1.bf16.msra.mxu0 %v18354_v10  ;;  %9936 = vmatpush1.bf16.msra.mxu1 %v18364_v9 }
0x19ef   :  { %10189 = vmatprep.subr.bf16.mxu0 %v18186_v16  ;;  %10230 = vmatprep.subr.bf16.mxu1 %v18191_v43 }
0x1aa4   :  { %v9605_v39 = vpop.f32.mrb[148].mxu0  ;;  %v9646_v24 = vpop.f32.mrb[180].mxu1 }
0x1aa5   :  { %v9653_v53 = vadd.f32 %v9605_v39, %v8926_v55  ;;  %v9655_v21 = vadd.f32 %v9646_v24, %v8999_v14  ;;  %v9607_v12 = vpop.f32.mrb[149].mxu0  ;;  %v9648_v16 = vpop.f32.mrb[181].mxu1 }
0x1aa6   :  { %v9654_v28 = vadd.f32 %v9607_v12, %v8928_v49  ;;  %v9656_v43 = vadd.f32 %v9648_v16, %v9001_v17  ;;  %v9609_v6 = vpop.f32.mrb[150].mxu0  ;;  %v9650_v18 = vpop.f32.mrb[182].mxu1 }
0x1aa7   :  { %v13656_v29 = vmul.f32 -1.442695, %v9653_v53  ;;  %v9610_v22 = vpop.f32.mrb[151].mxu0  ;;  %v9651_v40 = vpop.f32.mrb[183].mxu1 }
0x1aa8   :  { %v13657_v36 = vmul.f32 -1.442695, %v9654_v28  ;;  %v13658_v56 = vmul.f32 -1.442695, %v9656_v43  ;;  %v18622_v22 = vld [vmem:[%s19071_s1 + $0x704] ss:$16 sps:$4 sm:$0xff]  }
0x1aa9   :  { %15167 = vpow2.f32 %v13656_v29  ;;  %v18627_v40 = vld [vmem:[%s19071_s1 + $0x70c] ss:$16 sps:$4 sm:$0xff]  }
0x1aaa   :  { %15169 = vpow2.f32 %v13657_v36  ;;  %v18632_v36 = vld [vmem:[%s19071_s1 + $0x700] ss:$16 sps:$4 sm:$0xff]  }
0x1aab   :  { %15171 = vpow2.f32 %v13658_v56  ;;  %v18637_v56 = vld [vmem:[%s19071_s1 + $0x708] ss:$16 sps:$4 sm:$0xff]  }
0x1aac   :  { %15173 = vtanh.f32 %v9655_v21 }
0x1ab3   :  { %v15168_v46 = vpop.eup %15167 }
0x1ab4   :  { %v15170_v38 = vpop.eup %15169  ;;  %v9663_v7 = vadd.f32 1.0, %v15168_v46  ;;  %v18646_v46 = vld [vmem:[%s19071_s1 + $0x724] ss:$16 sps:$4 sm:$0xff]  }
0x1ab5   :  { %v9664_v52 = vadd.f32 1.0, %v15170_v38  ;;  %v15172_v59 = vpop.eup %15171  ;;  %v18651_v38 = vld [vmem:[%s19071_s1 + $0x72c] ss:$16 sps:$4 sm:$0xff]  }
0x1ab6   :  { %15175 = vrcp.f32 %v9663_v7  ;;  %v15174_v27 = vpop.eup %15173  ;;  %v9673_v49 = vadd.f32 1.0, %v15172_v59  ;;  %v18656_v7 = vld [vmem:[%s19071_s1 + $0x720] ss:$16 sps:$4 sm:$0xff]   ;;  %v18670_v59 = vld [vmem:[%s19071_s1 + $0x744] ss:$16 sps:$4 sm:$0xff]  }
0x1ab7   :  { %15177 = vrcp.f32 %v9664_v52  ;;  %v18661_v52 = vld [vmem:[%s19071_s1 + $0x728] ss:$16 sps:$4 sm:$0xff]  }
0x1ab8   :  { %15179 = vrcp.f32 %v9673_v49  ;;  %v18699_v49 = vld [vmem:[%s19071_s1 + $0x76c] ss:$16 sps:$4 sm:$0xff]  }
0x1ac0   :  { %v15176_v47 = vpop.eup %15175 }
0x1ac1   :  { %v15178_v55 = vpop.eup %15177  ;;  %v9677_v14 = vmul.f32 %v15176_v47, %v15174_v27  ;;  %v18675_v27 = vld [vmem:[%s19071_s1 + $0x74c] ss:$16 sps:$4 sm:$0xff]   ;;  %v18680_v47 = vld [vmem:[%s19071_s1 + $0x740] ss:$16 sps:$4 sm:$0xff]  }
0x1ac2   :  { %v9676_v17 = vmul.f32 %v15178_v55, %v18512_v19  ;;  %v15180_v24 = vpop.eup %15179  ;;  %v18685_v55 = vld [vmem:[%s19071_s1 + $0x748] ss:$16 sps:$4 sm:$0xff]  }
0x1ac4   :  { %v18562_v39 = vadd.f32 %v9677_v14, %v9676_v17  ;;  %v18694_v14 = vld [vmem:[%s19071_s1 + $0x764] ss:$16 sps:$4 sm:$0xff]   ;;  %v18704_v17 = vld [vmem:[%s19071_s1 + $0x760] ss:$16 sps:$4 sm:$0xff]  }
0x1ac6   :  { %15181 = vtanh.f32 %v18562_v39 }
0x1ad0   :  { %v15182_v53 = vpop.eup %15181 }
0x1ad1   :  { %v18565_v12 = vmul.f32 %v15182_v53, %v15180_v24  ;;  %v18718_v24 = vld [vmem:[%s19071_s1 + $0x784] ss:$16 sps:$4 sm:$0xff]   ;;  %v18723_v53 = vld [vmem:[%s19071_s1 + $0x78c] ss:$16 sps:$4 sm:$0xff]  }
0x1ad3   :  { %v9687_v21 = vpack.c.bf16 %v18565_v12, %v18565_v12 }
0x1ad5   :  { %9913 = vmatmul.mubr.bf16.vlgmr.msra.gmra.mrb[152].mxu0 %v9687_v21  ;;  %9954 = vmatmul.mubr.bf16.vlgmr.msra.gmra.mrb[184].mxu1 %v9687_v21  ;;  %v18728_v21 = vld [vmem:[%s19071_s1 + $0x780] ss:$16 sps:$4 sm:$0xff]  }
0x1ad6   :  { %10190 = vmatpush1.bf16.msra.mxu0 %v18196_v58  ;;  %10231 = vmatpush1.bf16.msra.mxu1 %v18201_v32  ;;  %v8932_v58 = vadd.f32 %v18402_v15, %v18489_v30  ;;  %v19242_v32 = vld [vmem:[#allocation13_spill] sm:$0xff] }
0x1ad7   :  { %10191 = vmatprep.subr.bf16.mxu0 %v18210_v1  ;;  %10232 = vmatprep.subr.bf16.mxu1 %v18215_v33  ;;  %v9005_v1 = vadd.f32 %v19242_v32, %v18492_v60  ;;  %v19243_v33 = vld [vmem:[#allocation8_spill] sm:$0xff] }
0x1ad8   :  { %10221 = vmatprep.mubr.bf16.mxu0 %v19102_v51  ;;  %10262 = vmatprep.mubr.bf16.mxu1 %v19102_v51  ;;  %v18740_v32 = vld [vmem:[%s19071_s1 + $0x7a4] ss:$16 sps:$4 sm:$0xff]  }
0x1ada   :  { %10192 = vmatpush1.bf16.msra.mxu0 %v18220_v57  ;;  %10233 = vmatpush1.bf16.msra.mxu1 %v18225_v50  ;;  %v8934_v57 = vadd.f32 %v19243_v33, %v18499_v34  ;;  %v19244_v50 = vld [vmem:[#allocation14_spill] sm:$0xff] }
0x1adb   :  { %10193 = vmatprep.subr.bf16.mxu0 %v18234_v61  ;;  %10234 = vmatprep.subr.bf16.mxu1 %v18239_v62  ;;  %v9007_v61 = vadd.f32 %v19244_v50, %v18502_v11  ;;  %v18752_v33 = vld [vmem:[%s19071_s1 + $0x7a8] ss:$16 sps:$4 sm:$0xff]   ;;  %v18763_v50 = vld [vmem:[%s19071_s1 + $0x7c4] ss:$16 sps:$4 sm:$0xff]  }
0x1ade   :  { %10194 = vmatpush1.bf16.msra.mxu0 %v18244_v63  ;;  %10235 = vmatpush1.bf16.msra.mxu1 %v18249_v0 }
0x1adf   :  { %10195 = vmatprep.subr.bf16.mxu0 %v18263_v3  ;;  %10236 = vmatprep.subr.bf16.mxu1 %v18273_v37 }
0x1ae2   :  { %10196 = vmatpush1.bf16.msra.mxu0 %v18258_v2  ;;  %10237 = vmatpush1.bf16.msra.mxu1 %v18268_v4 }
0x1ae3   :  { %10197 = vmatprep.subr.bf16.mxu0 %v18282_v5  ;;  %10238 = vmatprep.subr.bf16.mxu1 %v18287_v44 }
0x1ae6   :  { %10198 = vmatpush1.bf16.msra.mxu0 %v18292_v35  ;;  %10239 = vmatpush1.bf16.msra.mxu1 %v18297_v8 }
0x1ae7   :  { %10199 = vmatprep.subr.bf16.mxu0 %v18311_v13  ;;  %10240 = vmatprep.subr.bf16.mxu1 %v18321_v42 }
0x1aea   :  { %10200 = vmatpush1.bf16.msra.mxu0 %v18306_v31  ;;  %10241 = vmatpush1.bf16.msra.mxu1 %v18316_v23 }
0x1aeb   :  { %10201 = vmatprep.subr.bf16.mxu0 %v18330_v54  ;;  %10242 = vmatprep.subr.bf16.mxu1 %v18335_v41 }
0x1aee   :  { %10202 = vmatpush1.bf16.msra.mxu0 %v18340_v45  ;;  %10243 = vmatpush1.bf16.msra.mxu1 %v18345_v48 }
0x1aef   :  { %10203 = vmatprep.subr.bf16.mxu0 %v18359_v20  ;;  %10244 = vmatprep.subr.bf16.mxu1 %v18369_v25 }
0x1af2   :  { %10204 = vmatpush1.bf16.msra.mxu0 %v18354_v10  ;;  %10245 = vmatpush1.bf16.msra.mxu1 %v18364_v9 }
0x1af3   :  { %10498 = vmatprep.subr.bf16.mxu0 %v18622_v22  ;;  %10539 = vmatprep.subr.bf16.mxu1 %v18627_v40 }
0x1ba8   :  { %v9914_v62 = vpop.f32.mrb[152].mxu0  ;;  %v9955_v63 = vpop.f32.mrb[184].mxu1 }
0x1ba9   :  { %v9962_v0 = vadd.f32 %v9914_v62, %v8932_v58  ;;  %v9964_v2 = vadd.f32 %v9955_v63, %v9005_v1  ;;  %v9916_v3 = vpop.f32.mrb[153].mxu0  ;;  %v9957_v4 = vpop.f32.mrb[185].mxu1  ;;  %v18733_v58 = vld [vmem:[%s19071_s1 + $0x788] ss:$16 sps:$4 sm:$0xff]   ;;  %v18747_v1 = vld [vmem:[%s19071_s1 + $0x7a0] ss:$16 sps:$4 sm:$0xff]  }
0x1baa   :  { %v9963_v37 = vadd.f32 %v9916_v3, %v8934_v57  ;;  %v9965_v5 = vadd.f32 %v9957_v4, %v9007_v61  ;;  %v9918_v44 = vpop.f32.mrb[154].mxu0  ;;  %v9959_v35 = vpop.f32.mrb[186].mxu1  ;;  %v18757_v57 = vld [vmem:[%s19071_s1 + $0x7ac] ss:$16 sps:$4 sm:$0xff]   ;;  %v18776_v62 = vld [vmem:[%s19071_s1 + $0x7c0] ss:$16 sps:$4 sm:$0xff]  }
0x1bab   :  { %v13723_v8 = vmul.f32 -1.442695, %v9962_v0  ;;  %v9919_v31 = vpop.f32.mrb[155].mxu0  ;;  %v9960_v13 = vpop.f32.mrb[187].mxu1  ;;  %v18768_v61 = vld [vmem:[%s19071_s1 + $0x7cc] ss:$16 sps:$4 sm:$0xff]  }
0x1bac   :  { %v13724_v23 = vmul.f32 -1.442695, %v9963_v37  ;;  %v13725_v42 = vmul.f32 -1.442695, %v9965_v5  ;;  %v18781_v63 = vld [vmem:[%s19071_s1 + $0x7c8] ss:$16 sps:$4 sm:$0xff]  }
0x1bad   :  { %15183 = vpow2.f32 %v13723_v8  ;;  %v18788_v0 = vld [vmem:[%s19071_s1 + $0x7e4] ss:$16 sps:$4 sm:$0xff]   ;;  %v18800_v3 = vld [vmem:[%s19071_s1 + $0x7e0] ss:$16 sps:$4 sm:$0xff]   ;;  %v18805_v4 = vld [vmem:[%s19071_s1 + $0x7e8] ss:$16 sps:$4 sm:$0xff]  }
0x1bae   :  { %15185 = vpow2.f32 %v13724_v23  ;;  %v19245_v37 = vld [vmem:[#allocation17_spill] sm:$0xff]  ;;  %v19246_v44 = vld [vmem:[#allocation18_spill] sm:$0xff]  ;;  %v19247_v8 = vld [vmem:[#allocation19_spill] sm:$0xff] }
0x1baf   :  { %15187 = vpow2.f32 %v13725_v42  ;;  %v8936_v5 = vadd.f32 %v19245_v37, %v18489_v30  ;;  %v9009_v35 = vadd.f32 %v19246_v44, %v18492_v60  ;;  %v8938_v31 = vadd.f32 %v19247_v8, %v18499_v34  ;;  %v19248_v13 = vld [vmem:[#allocation9_spill] sm:$0xff] }
0x1bb0   :  { %15189 = vtanh.f32 %v9964_v2  ;;  %v18793_v2 = vld [vmem:[%s19071_s1 + $0x7ec] ss:$16 sps:$4 sm:$0xff]   ;;  %v9011_v23 = vadd.f32 %v19248_v13, %v18502_v11 }
0x1bb7   :  { %v15184_v54 = vpop.eup %15183 }
0x1bb8   :  { %v15186_v41 = vpop.eup %15185  ;;  %v9972_v45 = vadd.f32 1.0, %v15184_v54 }
0x1bb9   :  { %v9973_v48 = vadd.f32 1.0, %v15186_v41  ;;  %v15188_v10 = vpop.eup %15187 }
0x1bba   :  { %15191 = vrcp.f32 %v9972_v45  ;;  %v15190_v20 = vpop.eup %15189  ;;  %v9982_v19 = vadd.f32 1.0, %v15188_v10 }
0x1bbb   :  { %15193 = vrcp.f32 %v9973_v48 }
0x1bbc   :  { %15195 = vrcp.f32 %v9982_v19 }
0x1bc4   :  { %v15192_v9 = vpop.eup %15191 }
0x1bc5   :  { %v15194_v25 = vpop.eup %15193  ;;  %v9986_v15 = vmul.f32 %v15192_v9, %v15190_v20 }
0x1bc6   :  { %v9985_v16 = vmul.f32 %v15194_v25, %v18562_v39  ;;  %v15196_v43 = vpop.eup %15195  ;;  %v18709_v39 = vld [vmem:[%s19071_s1 + $0x768] ss:$16 sps:$4 sm:$0xff]  }
0x1bc8   :  { %v18610_v28 = vadd.f32 %v9986_v15, %v9985_v16 }
0x1bca   :  { %15197 = vtanh.f32 %v18610_v28 }
0x1bd4   :  { %v15198_v6 = vpop.eup %15197 }
0x1bd5   :  { %v18613_v18 = vmul.f32 %v15198_v6, %v15196_v43 }
0x1bd7   :  { %v9996_v29 = vpack.c.bf16 %v18613_v18, %v18613_v18 }
0x1bd9   :  { %10222 = vmatmul.mubr.bf16.vlgmr.msra.gmra.mrb[156].mxu0 %v9996_v29  ;;  %10263 = vmatmul.mubr.bf16.vlgmr.msra.gmra.mrb[188].mxu1 %v9996_v29 }
0x1bda   :  { %10530 = vmatprep.mubr.bf16.mxu0 %v19102_v51  ;;  %10571 = vmatprep.mubr.bf16.mxu1 %v19102_v51 }
0x1bdb   :  { %10499 = vmatpush1.bf16.msra.mxu0 %v18632_v36  ;;  %10540 = vmatpush1.bf16.msra.mxu1 %v18637_v56 }
0x1bdc   :  { %10500 = vmatprep.subr.bf16.mxu0 %v18646_v46  ;;  %10541 = vmatprep.subr.bf16.mxu1 %v18651_v38 }
0x1bdf   :  { %10501 = vmatpush1.bf16.msra.mxu0 %v18656_v7  ;;  %10542 = vmatpush1.bf16.msra.mxu1 %v18661_v52 }
0x1be0   :  { %10502 = vmatprep.subr.bf16.mxu0 %v18670_v59  ;;  %10543 = vmatprep.subr.bf16.mxu1 %v18675_v27 }
0x1be3   :  { %10503 = vmatpush1.bf16.msra.mxu0 %v18680_v47  ;;  %10544 = vmatpush1.bf16.msra.mxu1 %v18685_v55 }
0x1be4   :  { %10504 = vmatprep.subr.bf16.mxu0 %v18694_v14  ;;  %10545 = vmatprep.subr.bf16.mxu1 %v18699_v49 }
0x1be7   :  { %10505 = vmatpush1.bf16.msra.mxu0 %v18704_v17  ;;  %10546 = vmatpush1.bf16.msra.mxu1 %v18709_v39 }
0x1be8   :  { %10506 = vmatprep.subr.bf16.mxu0 %v18718_v24  ;;  %10547 = vmatprep.subr.bf16.mxu1 %v18723_v53 }
0x1beb   :  { %10507 = vmatpush1.bf16.msra.mxu0 %v18728_v21  ;;  %10548 = vmatpush1.bf16.msra.mxu1 %v18733_v58 }
0x1bec   :  { %10508 = vmatprep.subr.bf16.mxu0 %v18740_v32  ;;  %10549 = vmatprep.subr.bf16.mxu1 %v18757_v57 }
0x1bef   :  { %10509 = vmatpush1.bf16.msra.mxu0 %v18747_v1  ;;  %10550 = vmatpush1.bf16.msra.mxu1 %v18752_v33 }
0x1bf0   :  { %10510 = vmatprep.subr.bf16.mxu0 %v18763_v50  ;;  %10551 = vmatprep.subr.bf16.mxu1 %v18768_v61 }
0x1bf3   :  { %10511 = vmatpush1.bf16.msra.mxu0 %v18776_v62  ;;  %10552 = vmatpush1.bf16.msra.mxu1 %v18781_v63 }
0x1bf4   :  { %10512 = vmatprep.subr.bf16.mxu0 %v18788_v0  ;;  %10553 = vmatprep.subr.bf16.mxu1 %v18793_v2 }
0x1bf7   :  { %10513 = vmatpush1.bf16.msra.mxu0 %v18800_v3  ;;  %10554 = vmatpush1.bf16.msra.mxu1 %v18805_v4 }
0x1bf8   :  { %10807 = vmatprep.subr.bf16.mxu0 %v18622_v22  ;;  %10848 = vmatprep.subr.bf16.mxu1 %v18627_v40 }
0x1cac   :  { %v10223_v42 = vpop.f32.mrb[156].mxu0  ;;  %v10264_v54 = vpop.f32.mrb[188].mxu1 }
0x1cad   :  { %v10271_v41 = vadd.f32 %v10223_v42, %v8936_v5  ;;  %v10273_v45 = vadd.f32 %v10264_v54, %v9009_v35  ;;  %v10225_v48 = vpop.f32.mrb[157].mxu0  ;;  %v10266_v10 = vpop.f32.mrb[189].mxu1 }
0x1cae   :  { %v10272_v20 = vadd.f32 %v10225_v48, %v8938_v31  ;;  %v10274_v9 = vadd.f32 %v10266_v10, %v9011_v23  ;;  %v10227_v25 = vpop.f32.mrb[158].mxu0  ;;  %v10268_v15 = vpop.f32.mrb[190].mxu1 }
0x1caf   :  { %v13790_v19 = vmul.f32 -1.442695, %v10271_v41  ;;  %v10228_v16 = vpop.f32.mrb[159].mxu0  ;;  %v10269_v43 = vpop.f32.mrb[191].mxu1  ;;  %v19250_v15 = vld [vmem:[#allocation10_spill] sm:$0xff] }
0x1cb0   :  { %v13791_v6 = vmul.f32 -1.442695, %v10272_v20  ;;  %v13792_v29 = vmul.f32 -1.442695, %v10274_v9  ;;  %v19251_v16 = vld [vmem:[#allocation16_spill] sm:$0xff] }
0x1cb1   :  { %15199 = vpow2.f32 %v13790_v19  ;;  %v9015_v19 = vadd.f32 %v19250_v15, %v18492_v60  ;;  %v8944_v43 = vadd.f32 %v19251_v16, %v18499_v34 }
0x1cb2   :  { %15201 = vpow2.f32 %v13791_v6  ;;  %v19252_v6 = vld [vmem:[#allocation20_spill] sm:$0xff] }
0x1cb3   :  { %15203 = vpow2.f32 %v13792_v29  ;;  %v9017_v29 = vadd.f32 %v19252_v6, %v18502_v11 }
0x1cb4   :  { %15205 = vtanh.f32 %v10273_v45 }
0x1cbb   :  { %v15200_v37 = vpop.eup %15199 }
0x1cbc   :  { %v15202_v44 = vpop.eup %15201  ;;  %v10281_v8 = vadd.f32 1.0, %v15200_v37 }
0x1cbd   :  { %v10282_v5 = vadd.f32 1.0, %v15202_v44  ;;  %v15204_v35 = vpop.eup %15203 }
0x1cbe   :  { %15207 = vrcp.f32 %v10281_v8  ;;  %v15206_v31 = vpop.eup %15205  ;;  %v10291_v54 = vadd.f32 1.0, %v15204_v35 }
0x1cbf   :  { %15209 = vrcp.f32 %v10282_v5 }
0x1cc0   :  { %15211 = vrcp.f32 %v10291_v54 }
0x1cc8   :  { %v15208_v13 = vpop.eup %15207 }
0x1cc9   :  { %v15210_v23 = vpop.eup %15209  ;;  %v10295_v42 = vmul.f32 %v15208_v13, %v15206_v31 }
0x1cca   :  { %v10294_v41 = vmul.f32 %v15210_v23, %v18610_v28  ;;  %v15212_v10 = vpop.eup %15211  ;;  %v19249_v28 = vld [vmem:[#allocation15_spill] sm:$0xff] }
0x1ccb   :  { %v8942_v25 = vadd.f32 %v19249_v28, %v18489_v30 }
0x1ccc   :  { %v18822_v48 = vadd.f32 %v10295_v42, %v10294_v41 }
0x1cce   :  { %15213 = vtanh.f32 %v18822_v48 }
0x1cd8   :  { %v15214_v20 = vpop.eup %15213 }
0x1cd9   :  { %v18825_v9 = vmul.f32 %v15214_v20, %v15212_v10 }
0x1cdb   :  { %v10305_v45 = vpack.c.bf16 %v18825_v9, %v18825_v9 }
0x1cdd   :  { %10531 = vmatmul.mubr.bf16.vlgmr.msra.gmra.mrb[160].mxu0 %v10305_v45  ;;  %10572 = vmatmul.mubr.bf16.vlgmr.msra.gmra.mrb[192].mxu1 %v10305_v45 }
0x1cde   :  { %10808 = vmatpush1.bf16.msra.mxu0 %v18632_v36  ;;  %10849 = vmatpush1.bf16.msra.mxu1 %v18637_v56 }
0x1cdf   :  { %10809 = vmatprep.subr.bf16.mxu0 %v18646_v46  ;;  %10850 = vmatprep.subr.bf16.mxu1 %v18651_v38 }
0x1ce0   :  { %10839 = vmatprep.mubr.bf16.mxu0 %v19102_v51  ;;  %10880 = vmatprep.mubr.bf16.mxu1 %v19102_v51 }
0x1ce2   :  { %10810 = vmatpush1.bf16.msra.mxu0 %v18656_v7  ;;  %10851 = vmatpush1.bf16.msra.mxu1 %v18661_v52 }
0x1ce3   :  { %10811 = vmatprep.subr.bf16.mxu0 %v18670_v59  ;;  %10852 = vmatprep.subr.bf16.mxu1 %v18675_v27 }
0x1ce6   :  { %10812 = vmatpush1.bf16.msra.mxu0 %v18680_v47  ;;  %10853 = vmatpush1.bf16.msra.mxu1 %v18685_v55 }
0x1ce7   :  { %10813 = vmatprep.subr.bf16.mxu0 %v18694_v14  ;;  %10854 = vmatprep.subr.bf16.mxu1 %v18699_v49 }
0x1cea   :  { %10814 = vmatpush1.bf16.msra.mxu0 %v18704_v17  ;;  %10855 = vmatpush1.bf16.msra.mxu1 %v18709_v39 }
0x1ceb   :  { %10815 = vmatprep.subr.bf16.mxu0 %v18718_v24  ;;  %10856 = vmatprep.subr.bf16.mxu1 %v18723_v53 }
0x1cee   :  { %10816 = vmatpush1.bf16.msra.mxu0 %v18728_v21  ;;  %10857 = vmatpush1.bf16.msra.mxu1 %v18733_v58 }
0x1cef   :  { %10817 = vmatprep.subr.bf16.mxu0 %v18740_v32  ;;  %10858 = vmatprep.subr.bf16.mxu1 %v18757_v57 }
0x1cf2   :  { %10818 = vmatpush1.bf16.msra.mxu0 %v18747_v1  ;;  %10859 = vmatpush1.bf16.msra.mxu1 %v18752_v33 }
0x1cf3   :  { %10819 = vmatprep.subr.bf16.mxu0 %v18763_v50  ;;  %10860 = vmatprep.subr.bf16.mxu1 %v18768_v61 }
0x1cf6   :  { %10820 = vmatpush1.bf16.msra.mxu0 %v18776_v62  ;;  %10861 = vmatpush1.bf16.msra.mxu1 %v18781_v63 }
0x1cf7   :  { %10821 = vmatprep.subr.bf16.mxu0 %v18788_v0  ;;  %10862 = vmatprep.subr.bf16.mxu1 %v18793_v2 }
0x1cfa   :  { %10822 = vmatpush1.bf16.msra.mxu0 %v18800_v3  ;;  %10863 = vmatpush1.bf16.msra.mxu1 %v18805_v4 }
0x1cfb   :  { %11116 = vmatprep.subr.bf16.mxu0 %v18622_v22  ;;  %11157 = vmatprep.subr.bf16.mxu1 %v18627_v40 }
0x1db0   :  { %v10532_v37 = vpop.f32.mrb[160].mxu0  ;;  %v10573_v44 = vpop.f32.mrb[192].mxu1 }
0x1db1   :  { %v10580_v8 = vadd.f32 %v10532_v37, %v8942_v25  ;;  %v10582_v5 = vadd.f32 %v10573_v44, %v9015_v19  ;;  %v10534_v35 = vpop.f32.mrb[161].mxu0  ;;  %v10575_v31 = vpop.f32.mrb[193].mxu1 }
0x1db2   :  { %v10581_v13 = vadd.f32 %v10534_v35, %v8944_v43  ;;  %v10583_v23 = vadd.f32 %v10575_v31, %v9017_v29  ;;  %v10536_v42 = vpop.f32.mrb[162].mxu0  ;;  %v10577_v54 = vpop.f32.mrb[194].mxu1 }
0x1db3   :  { %v13857_v41 = vmul.f32 -1.442695, %v10580_v8  ;;  %v10537_v10 = vpop.f32.mrb[163].mxu0  ;;  %v10578_v20 = vpop.f32.mrb[195].mxu1 }
0x1db4   :  { %v13858_v45 = vmul.f32 -1.442695, %v10581_v13  ;;  %v13859_v28 = vmul.f32 -1.442695, %v10583_v23  ;;  %v19255_v20 = vld [vmem:[#allocation23_spill] sm:$0xff] }
0x1db5   :  { %15215 = vpow2.f32 %v13857_v41  ;;  %v19254_v41 = vld [vmem:[#allocation22_spill] sm:$0xff] }
0x1db6   :  { %15217 = vpow2.f32 %v13858_v45  ;;  %v9019_v10 = vadd.f32 %v19254_v41, %v18492_v60  ;;  %v8948_v45 = vadd.f32 %v19255_v20, %v18499_v34 }
0x1db7   :  { %15219 = vpow2.f32 %v13859_v28  ;;  %v19256_v28 = vld [vmem:[#allocation24_spill] sm:$0xff] }
0x1db8   :  { %15221 = vtanh.f32 %v10582_v5 }
0x1dbf   :  { %v15216_v15 = vpop.eup %15215 }
0x1dc0   :  { %v15218_v16 = vpop.eup %15217  ;;  %v10590_v6 = vadd.f32 1.0, %v15216_v15  ;;  %v9021_v15 = vadd.f32 %v19256_v28, %v18502_v11 }
0x1dc1   :  { %v10591_v25 = vadd.f32 1.0, %v15218_v16  ;;  %v15220_v19 = vpop.eup %15219 }
0x1dc2   :  { %15223 = vrcp.f32 %v10590_v6  ;;  %v15222_v43 = vpop.eup %15221  ;;  %v10600_v8 = vadd.f32 1.0, %v15220_v19 }
0x1dc3   :  { %15225 = vrcp.f32 %v10591_v25 }
0x1dc4   :  { %15227 = vrcp.f32 %v10600_v8 }
0x1dcc   :  { %v15224_v29 = vpop.eup %15223 }
0x1dcd   :  { %v15226_v37 = vpop.eup %15225  ;;  %v10604_v44 = vmul.f32 %v15224_v29, %v15222_v43 }
0x1dce   :  { %v10603_v35 = vmul.f32 %v15226_v37, %v18822_v48  ;;  %v15228_v13 = vpop.eup %15227  ;;  %v19253_v48 = vld [vmem:[#allocation21_spill] sm:$0xff] }
0x1dcf   :  { %v8946_v54 = vadd.f32 %v19253_v48, %v18489_v30 }
0x1dd0   :  { %v18872_v31 = vadd.f32 %v10604_v44, %v10603_v35 }
0x1dd2   :  { %15229 = vtanh.f32 %v18872_v31 }
0x1ddc   :  { %v15230_v23 = vpop.eup %15229 }
0x1ddd   :  { %v18875_v42 = vmul.f32 %v15230_v23, %v15228_v13 }
0x1ddf   :  { %v10614_v5 = vpack.c.bf16 %v18875_v42, %v18875_v42 }
0x1de1   :  { %10840 = vmatmul.mubr.bf16.vlgmr.msra.gmra.mrb[164].mxu0 %v10614_v5  ;;  %10881 = vmatmul.mubr.bf16.vlgmr.msra.gmra.mrb[196].mxu1 %v10614_v5 }
0x1de2   :  { %11117 = vmatpush1.bf16.msra.mxu0 %v18632_v36  ;;  %11158 = vmatpush1.bf16.msra.mxu1 %v18637_v56 }
0x1de3   :  { %11118 = vmatprep.subr.bf16.mxu0 %v18646_v46  ;;  %11159 = vmatprep.subr.bf16.mxu1 %v18651_v38 }
0x1de4   :  { %11148 = vmatprep.mubr.bf16.mxu0 %v19102_v51  ;;  %11189 = vmatprep.mubr.bf16.mxu1 %v19102_v51 }
0x1de6   :  { %11119 = vmatpush1.bf16.msra.mxu0 %v18656_v7  ;;  %11160 = vmatpush1.bf16.msra.mxu1 %v18661_v52 }
0x1de7   :  { %11120 = vmatprep.subr.bf16.mxu0 %v18670_v59  ;;  %11161 = vmatprep.subr.bf16.mxu1 %v18675_v27 }
0x1dea   :  { %11121 = vmatpush1.bf16.msra.mxu0 %v18680_v47  ;;  %11162 = vmatpush1.bf16.msra.mxu1 %v18685_v55 }
0x1deb   :  { %11122 = vmatprep.subr.bf16.mxu0 %v18694_v14  ;;  %11163 = vmatprep.subr.bf16.mxu1 %v18699_v49 }
0x1dee   :  { %11123 = vmatpush1.bf16.msra.mxu0 %v18704_v17  ;;  %11164 = vmatpush1.bf16.msra.mxu1 %v18709_v39 }
0x1def   :  { %11124 = vmatprep.subr.bf16.mxu0 %v18718_v24  ;;  %11165 = vmatprep.subr.bf16.mxu1 %v18723_v53 }
0x1df2   :  { %11125 = vmatpush1.bf16.msra.mxu0 %v18728_v21  ;;  %11166 = vmatpush1.bf16.msra.mxu1 %v18733_v58 }
0x1df3   :  { %11126 = vmatprep.subr.bf16.mxu0 %v18740_v32  ;;  %11167 = vmatprep.subr.bf16.mxu1 %v18757_v57 }
0x1df6   :  { %11127 = vmatpush1.bf16.msra.mxu0 %v18747_v1  ;;  %11168 = vmatpush1.bf16.msra.mxu1 %v18752_v33 }
0x1df7   :  { %11128 = vmatprep.subr.bf16.mxu0 %v18763_v50  ;;  %11169 = vmatprep.subr.bf16.mxu1 %v18768_v61 }
0x1dfa   :  { %11129 = vmatpush1.bf16.msra.mxu0 %v18776_v62  ;;  %11170 = vmatpush1.bf16.msra.mxu1 %v18781_v63 }
0x1dfb   :  { %11130 = vmatprep.subr.bf16.mxu0 %v18788_v0  ;;  %11171 = vmatprep.subr.bf16.mxu1 %v18793_v2 }
0x1dfe   :  { %11131 = vmatpush1.bf16.msra.mxu0 %v18800_v3  ;;  %11172 = vmatpush1.bf16.msra.mxu1 %v18805_v4 }
0x1dff   :  { %11425 = vmatprep.subr.bf16.mxu0 %v18622_v22  ;;  %11466 = vmatprep.subr.bf16.mxu1 %v18627_v40 }
0x1eb4   :  { %v10841_v16 = vpop.f32.mrb[164].mxu0  ;;  %v10882_v6 = vpop.f32.mrb[196].mxu1 }
0x1eb5   :  { %v10889_v25 = vadd.f32 %v10841_v16, %v8946_v54  ;;  %v10891_v19 = vadd.f32 %v10882_v6, %v9019_v10  ;;  %v10843_v43 = vpop.f32.mrb[165].mxu0  ;;  %v10884_v22 = vpop.f32.mrb[197].mxu1 }
0x1eb6   :  { %v10890_v29 = vadd.f32 %v10843_v43, %v8948_v45  ;;  %v10892_v40 = vadd.f32 %v10884_v22, %v9021_v15  ;;  %v10845_v37 = vpop.f32.mrb[166].mxu0  ;;  %v10886_v44 = vpop.f32.mrb[198].mxu1 }
0x1eb7   :  { %v13924_v8 = vmul.f32 -1.442695, %v10889_v25  ;;  %v10846_v35 = vpop.f32.mrb[167].mxu0  ;;  %v10887_v13 = vpop.f32.mrb[199].mxu1 }
0x1eb8   :  { %v13925_v23 = vmul.f32 -1.442695, %v10890_v29  ;;  %v13926_v5 = vmul.f32 -1.442695, %v10892_v40 }
0x1eb9   :  { %15231 = vpow2.f32 %v13924_v8 }
0x1eba   :  { %15233 = vpow2.f32 %v13925_v23 }
0x1ebb   :  { %15235 = vpow2.f32 %v13926_v5 }
0x1ebc   :  { %15237 = vtanh.f32 %v10891_v19 }
0x1ec3   :  { %v15232_v48 = vpop.eup %15231 }
0x1ec4   :  { %v15234_v41 = vpop.eup %15233  ;;  %v10899_v20 = vadd.f32 1.0, %v15232_v48 }
0x1ec5   :  { %v10900_v54 = vadd.f32 1.0, %v15234_v41  ;;  %v15236_v10 = vpop.eup %15235  ;;  %v11547_v41 = vld [vmem:[%s19074_s3 + $0x10] sm:$0xff] }
0x1ec6   :  { %15239 = vrcp.f32 %v10899_v20  ;;  %v15238_v45 = vpop.eup %15237  ;;  %v10909_v6 = vadd.f32 1.0, %v15236_v10  ;;  %v11548_v20 = vld [vmem:[%s19074_s3 + $0x18] sm:$0xff] }
0x1ec7   :  { %15241 = vrcp.f32 %v10900_v54 }
0x1ec8   :  { %15243 = vrcp.f32 %v10909_v6 }
0x1ed0   :  { %v15240_v28 = vpop.eup %15239 }
0x1ed1   :  { %v15242_v15 = vpop.eup %15241  ;;  %v10913_v16 = vmul.f32 %v15240_v28, %v15238_v45  ;;  %v14134_v45 = vpack.c.bf16 %v11548_v20, %v11547_v41  ;;  %v9372_v28 = vmax.f32 %v18515_v26, 0.0  ;;  %v11552_v26 = vld [vmem:[%s19074_s3 + $0x38] sm:$0xff] }
0x1ed2   :  { %v10912_v25 = vmul.f32 %v15242_v15, %v18872_v31  ;;  %v15244_v22 = vpop.eup %15243  ;;  %v11549_v15 = vld [vmem:[%s19074_s3 + $0x20] sm:$0xff] }
0x1ed4   :  { %v18922_v43 = vadd.f32 %v10913_v16, %v10912_v25  ;;  %v11550_v16 = vld [vmem:[%s19074_s3 + $0x28] sm:$0xff]  ;;  %v11551_v25 = vld [vmem:[%s19074_s3 + $0x30] sm:$0xff] }
0x1ed5   :  { %v14138_v6 = vpack.c.bf16 %v11550_v16, %v11549_v15 }
0x1ed6   :  { %15245 = vtanh.f32 %v18922_v43 }
0x1ee0   :  { %v15246_v29 = vpop.eup %15245 }
0x1ee1   :  { %v18925_v40 = vmul.f32 %v15246_v29, %v15244_v22  ;;  %v11553_v22 = vld [vmem:[%s19074_s3 + $0x40] sm:$0xff]  ;;  %v11554_v29 = vld [vmem:[%s19074_s3 + $0x48] sm:$0xff] }
0x1ee3   :  { %v10923_v19 = vpack.c.bf16 %v18925_v40, %v18925_v40 }
0x1ee5   :  { %11149 = vmatmul.mubr.bf16.vlgmr.msra.gmra.mrb[168].mxu0 %v10923_v19  ;;  %11190 = vmatmul.mubr.bf16.vlgmr.msra.gmra.mrb[200].mxu1 %v10923_v19  ;;  %v14146_v19 = vpack.c.bf16 %v11554_v29, %v11553_v22 }
0x1ee6   :  { %11426 = vmatpush1.bf16.msra.mxu0 %v18632_v36  ;;  %11467 = vmatpush1.bf16.msra.mxu1 %v18637_v56  ;;  %v11546_v36 = vld [vmem:[%s19074_s3 + $0x8] sm:$0xff] }
0x1ee7   :  { %11427 = vmatprep.subr.bf16.mxu0 %v18646_v46  ;;  %11468 = vmatprep.subr.bf16.mxu1 %v18651_v38  ;;  %v19257_v46 = vld [vmem:[#allocation25_spill] sm:$0xff] }
0x1ee8   :  { %11457 = vmatprep.mubr.bf16.mxu0 %v19102_v51  ;;  %11498 = vmatprep.mubr.bf16.mxu1 %v19102_v51  ;;  %v11545_v51 = vld [vmem:[%s19074_s3] sm:$0xff]  ;;  %v8952_v38 = vadd.f32 %v19257_v46, %v18489_v30 }
0x1ee9   :  { %v14130_v56 = vpack.c.bf16 %v11546_v36, %v11545_v51  ;;  %v11555_v51 = vld [vmem:[%s19074_s3 + $0x50] sm:$0xff]  ;;  %v11556_v36 = vld [vmem:[%s19074_s3 + $0x58] sm:$0xff]  ;;  %v11557_v46 = vld [vmem:[%s19074_s3 + $0x60] sm:$0xff] }
0x1eea   :  { %11428 = vmatpush1.bf16.msra.mxu0 %v18656_v7  ;;  %11469 = vmatpush1.bf16.msra.mxu1 %v18661_v52  ;;  %v19258_v7 = vld [vmem:[#allocation26_spill] sm:$0xff] }
0x1eeb   :  { %11429 = vmatprep.subr.bf16.mxu0 %v18670_v59  ;;  %11470 = vmatprep.subr.bf16.mxu1 %v18675_v27  ;;  %v9025_v52 = vadd.f32 %v19258_v7, %v18492_v60  ;;  %v19259_v59 = vld [vmem:[#allocation27_spill] sm:$0xff] }
0x1eec   :  { %v8954_v27 = vadd.f32 %v19259_v59, %v18499_v34  ;;  %v11560_v59 = vld [vmem:[%s19074_s3 + $0x78] sm:$0xff] }
0x1eee   :  { %11430 = vmatpush1.bf16.msra.mxu0 %v18680_v47  ;;  %11471 = vmatpush1.bf16.msra.mxu1 %v18685_v55  ;;  %v19260_v47 = vld [vmem:[#allocation28_spill] sm:$0xff] }
0x1eef   :  { %11431 = vmatprep.subr.bf16.mxu0 %v18694_v14  ;;  %11472 = vmatprep.subr.bf16.mxu1 %v18699_v49  ;;  %v9027_v55 = vadd.f32 %v19260_v47, %v18502_v11  ;;  %v9681_v47 = vmax.f32 %v18565_v12, 0.0  ;;  %v19261_v12 = vld [vmem:[#allocation29_spill] sm:$0xff] }
0x1ef2   :  { %11432 = vmatpush1.bf16.msra.mxu0 %v18704_v17  ;;  %11473 = vmatpush1.bf16.msra.mxu1 %v18709_v39 }
0x1ef3   :  { %11433 = vmatprep.subr.bf16.mxu0 %v18718_v24  ;;  %11474 = vmatprep.subr.bf16.mxu1 %v18723_v53 }
0x1ef6   :  { %11434 = vmatpush1.bf16.msra.mxu0 %v18728_v21  ;;  %11475 = vmatpush1.bf16.msra.mxu1 %v18733_v58 }
0x1ef7   :  { %11435 = vmatprep.subr.bf16.mxu0 %v18740_v32  ;;  %11476 = vmatprep.subr.bf16.mxu1 %v18757_v57 }
0x1efa   :  { %11436 = vmatpush1.bf16.msra.mxu0 %v18747_v1  ;;  %11477 = vmatpush1.bf16.msra.mxu1 %v18752_v33 }
0x1efb   :  { %11437 = vmatprep.subr.bf16.mxu0 %v18763_v50  ;;  %11478 = vmatprep.subr.bf16.mxu1 %v18768_v61 }
0x1efe   :  { %11438 = vmatpush1.bf16.msra.mxu0 %v18776_v62  ;;  %11479 = vmatpush1.bf16.msra.mxu1 %v18781_v63 }
0x1eff   :  { %11439 = vmatprep.subr.bf16.mxu0 %v18788_v0  ;;  %11480 = vmatprep.subr.bf16.mxu1 %v18793_v2 }
0x1f02   :  { %11440 = vmatpush1.bf16.msra.mxu0 %v18800_v3  ;;  %11481 = vmatpush1.bf16.msra.mxu1 %v18805_v4 }
0x1f03   :  { %14131 = vmatprep.subr.bf16.mxu0 %v14130_v56 }
0x1fb8   :  { %v11150_v14 = vpop.f32.mrb[168].mxu0  ;;  %v11191_v49 = vpop.f32.mrb[200].mxu1 }
0x1fb9   :  { %v11198_v17 = vadd.f32 %v11150_v14, %v8952_v38  ;;  %v11200_v39 = vadd.f32 %v11191_v49, %v9025_v52  ;;  %v11152_v24 = vpop.f32.mrb[169].mxu0  ;;  %v11193_v53 = vpop.f32.mrb[201].mxu1  ;;  %v11558_v38 = vld [vmem:[%s19074_s3 + $0x68] sm:$0xff]  ;;  %v11559_v52 = vld [vmem:[%s19074_s3 + $0x70] sm:$0xff]  ;;  %v10299_v14 = vmax.f32 %v18825_v9, 0.0  ;;  %v10608_v49 = vmax.f32 %v18875_v42, 0.0 }
0x1fba   :  { %v11199_v21 = vadd.f32 %v11152_v24, %v8954_v27  ;;  %v11201_v58 = vadd.f32 %v11193_v53, %v9027_v55  ;;  %v11154_v32 = vpop.f32.mrb[170].mxu0  ;;  %v11195_v1 = vpop.f32.mrb[202].mxu1  ;;  %v14154_v7 = vpack.c.bf16 %v11558_v38, %v11557_v46  ;;  %v14158_v27 = vpack.c.bf16 %v11560_v59, %v11559_v52  ;;  %v19262_v53 = vld [vmem:[#allocation30_spill] sm:$0xff]  ;;  %v19263_v42 = vld [vmem:[#allocation31_spill] sm:$0xff] }
0x1fbb   :  { %v13991_v33 = vmul.f32 -1.442695, %v11198_v17  ;;  %v11155_v57 = vpop.f32.mrb[171].mxu0  ;;  %v11196_v50 = vpop.f32.mrb[203].mxu1  ;;  %v9990_v55 = vmax.f32 %v18613_v18, 0.0  ;;  %v10917_v17 = vmax.f32 %v18925_v40, 0.0  ;;  %v10_v24 = vstv %s19075_s4 }
0x1fbc   :  { %v13992_v61 = vmul.f32 -1.442695, %v11199_v21  ;;  %v13993_v62 = vmul.f32 -1.442695, %v11201_v58  ;;  %11 = vst [vmem:[#allocation5] sm:$0x1] %v10_v24  ;;  %v8956_v18 = vadd.f32 %v19261_v12, %v18489_v30  ;;  %v9029_v9 = vadd.f32 %v19262_v53, %v18492_v60 }
0x1fbd   :  { %15247 = vpow2.f32 %v13991_v33  ;;  %v8958_v21 = vadd.f32 %v19263_v42, %v18499_v34  ;;  %v19264_v58 = vld [vmem:[#allocation32_spill] sm:$0xff] }
0x1fbe   :  { %15249 = vpow2.f32 %v13992_v61  ;;  %v9031_v40 = vadd.f32 %v19264_v58, %v18502_v11 }
0x1fbf   :  { %15251 = vpow2.f32 %v13993_v62 }
0x1fc0   :  { %15253 = vtanh.f32 %v11200_v39 }
0x1fc7   :  { %v15248_v63 = vpop.eup %15247 }
0x1fc8   :  { %v15250_v0 = vpop.eup %15249  ;;  %v11208_v2 = vadd.f32 1.0, %v15248_v63 }
0x1fc9   :  { %v11209_v3 = vadd.f32 1.0, %v15250_v0  ;;  %v15252_v4 = vpop.eup %15251 }
0x1fca   :  { %15255 = vrcp.f32 %v11208_v2  ;;  %v15254_v31 = vpop.eup %15253  ;;  %v11218_v35 = vadd.f32 1.0, %v15252_v4 }
0x1fcb   :  { %15257 = vrcp.f32 %v11209_v3 }
0x1fcc   :  { %15259 = vrcp.f32 %v11218_v35 }
0x1fd4   :  { %v15256_v37 = vpop.eup %15255 }
0x1fd5   :  { %v15258_v44 = vpop.eup %15257  ;;  %v11222_v8 = vmul.f32 %v15256_v37, %v15254_v31 }
0x1fd6   :  { %v11221_v13 = vmul.f32 %v15258_v44, %v18922_v43  ;;  %v15260_v5 = vpop.eup %15259  ;;  %v14142_v43 = vpack.c.bf16 %v11552_v26, %v11551_v25 }
0x1fd8   :  { %v18976_v23 = vadd.f32 %v11222_v8, %v11221_v13 }
0x1fda   :  { %15261 = vtanh.f32 %v18976_v23 }
0x1fe4   :  { %v15262_v48 = vpop.eup %15261 }
0x1fe5   :  { %v11225_v54 = vmul.f32 %v15262_v48, %v15260_v5 }
0x1fe7   :  { %v11232_v10 = vpack.c.bf16 %v11225_v54, %v11225_v54  ;;  %v11226_v39 = vmax.f32 %v11225_v54, 0.0  ;;  %v14061_v54 = vld [vmem:[#allocation5] ss:$0 sm:$0xff] }
0x1fe9   :  { %11458 = vmatmul.mubr.bf16.vlgmr.msra.gmra.mrb[172].mxu0 %v11232_v10  ;;  %11499 = vmatmul.mubr.bf16.vlgmr.msra.gmra.mrb[204].mxu1 %v11232_v10 }
0x1fea   :  { %14133 = vmatpush3.bf16.msra.mxu0 %v14130_v56  ;;  %14118 = vmatprep.mubr.f32.mxu0 %v9372_v28  ;;  %v14150_v56 = vpack.c.bf16 %v11556_v36, %v11555_v51 }
0x1feb   :  { %14135 = vmatprep.subr.bf16.mxu0 %v14134_v45 }
0x1fee   :  { %14137 = vmatpush3.bf16.msra.mxu0 %v14134_v45 }
0x1fef   :  { %14139 = vmatprep.subr.bf16.mxu0 %v14138_v6 }
0x1ff2   :  { %14141 = vmatpush3.bf16.msra.mxu0 %v14138_v6 }
0x1ff3   :  { %14143 = vmatprep.subr.bf16.mxu0 %v14142_v43 }
0x1ff6   :  { %14145 = vmatpush3.bf16.msra.mxu0 %v14142_v43 }
0x1ff7   :  { %14147 = vmatprep.subr.bf16.mxu0 %v14146_v19 }
0x1ffa   :  { %14149 = vmatpush3.bf16.msra.mxu0 %v14146_v19 }
0x1ffb   :  { %14151 = vmatprep.subr.bf16.mxu0 %v14150_v56 }
0x1ffe   :  { %14153 = vmatpush3.bf16.msra.mxu0 %v14150_v56 }
0x1fff   :  { %14155 = vmatprep.subr.bf16.mxu0 %v14154_v7 }
0x2002   :  { %14157 = vmatpush3.bf16.msra.mxu0 %v14154_v7 }
0x2003   :  { %14159 = vmatprep.subr.bf16.mxu0 %v14158_v27 }
0x2006   :  { %14161 = vmatpush3.bf16.msra.mxu0 %v14158_v27 }
0x2009   :  { %14119 = vmatmul.mubr.f32.vlgmr.msra.gmra.mrb[176].mxu0 %v9681_v47 }
0x200a   :  { %14121 = vmatprep.mubr.f32.mxu0 %v9990_v55 }
0x200d   :  { %14122 = vmatmul.mubr.f32.gmra.mrb[178].mxu0 %v10299_v14 }
0x200e   :  { %14124 = vmatprep.mubr.f32.mxu0 %v10608_v49 }
0x2011   :  { %14125 = vmatmul.mubr.f32.gmra.mrb[180].mxu0 %v10917_v17 }
0x2012   :  { %14127 = vmatprep.mubr.f32.mxu0 %v11226_v39 }
0x20bc   :  { %v11459_v32 = vpop.f32.mrb[172].mxu0  ;;  %v11500_v1 = vpop.f32.mrb[204].mxu1 }
0x20bd   :  { %v11507_v33 = vadd.f32 %v11459_v32, %v8956_v18  ;;  %v11509_v57 = vadd.f32 %v11500_v1, %v9029_v9  ;;  %v11461_v50 = vpop.f32.mrb[173].mxu0  ;;  %v11502_v61 = vpop.f32.mrb[205].mxu1 }
0x20be   :  { %v11508_v62 = vadd.f32 %v11461_v50, %v8958_v21  ;;  %v11510_v63 = vadd.f32 %v11502_v61, %v9031_v40  ;;  %v11463_v0 = vpop.f32.mrb[174].mxu0  ;;  %v11504_v2 = vpop.f32.mrb[206].mxu1 }
0x20bf   :  { %v14058_v30 = vmul.f32 -1.442695, %v11507_v33  ;;  %v11464_v3 = vpop.f32.mrb[175].mxu0  ;;  %v11505_v4 = vpop.f32.mrb[207].mxu1 }
0x20c0   :  { %v14059_v60 = vmul.f32 -1.442695, %v11508_v62  ;;  %v14060_v34 = vmul.f32 -1.442695, %v11510_v63 }
0x20c1   :  { %15263 = vpow2.f32 %v14058_v30 }
0x20c2   :  { %15265 = vpow2.f32 %v14059_v60 }
0x20c3   :  { %15267 = vpow2.f32 %v14060_v34 }
0x20c4   :  { %15269 = vtanh.f32 %v11509_v57 }
0x20cb   :  { %v15264_v31 = vpop.eup %15263 }
0x20cc   :  { %v15266_v37 = vpop.eup %15265  ;;  %v11517_v11 = vadd.f32 1.0, %v15264_v31 }
0x20cd   :  { %v11518_v44 = vadd.f32 1.0, %v15266_v37  ;;  %v15268_v8 = vpop.eup %15267 }
0x20ce   :  { %15271 = vrcp.f32 %v11517_v11  ;;  %v15270_v35 = vpop.eup %15269  ;;  %v11527_v41 = vadd.f32 1.0, %v15268_v8 }
0x20cf   :  { %15273 = vrcp.f32 %v11518_v44 }
0x20d0   :  { %15275 = vrcp.f32 %v11527_v41 }
0x20d8   :  { %v15272_v13 = vpop.eup %15271 }
0x20d9   :  { %v15274_v5 = vpop.eup %15273  ;;  %v11531_v48 = vmul.f32 %v15272_v13, %v15270_v35 }
0x20da   :  { %v11530_v20 = vmul.f32 %v15274_v5, %v18976_v23  ;;  %v15276_v51 = vpop.eup %15275 }
0x20dc   :  { %v14120_v10 = vpop.f32.mrb[176].mxu0  ;;  %v11532_v45 = vadd.f32 %v11531_v48, %v11530_v20 }
0x20dd   :  { %v11640_v28 = vadd.f32 %v14120_v10, %v14061_v54  ;;  %v11634_v15 = vpop.f32.mrb[177].mxu0 }
0x20de   :  { %v11635_v16 = vadd.f32 %v14061_v54, %v11634_v15  ;;  %15277 = vtanh.f32 %v11532_v45 }
0x20df   :  { %11675 = vst.msk [vmem:[%s19076_s5 + $0x8] sm:$0xff] %vm11673_vm0, %v11640_v28 }
0x20e0   :  { %11674 = vst.msk [vmem:[%s19076_s5] sm:$0xff] %vm11673_vm0, %v11635_v16  ;;  %v14123_v23 = vpop.f32.mrb[178].mxu0 }
0x20e1   :  { %v11650_v6 = vadd.f32 %v14123_v23, %v14061_v54  ;;  %v11644_v25 = vpop.f32.mrb[179].mxu0 }
0x20e2   :  { %v11645_v26 = vadd.f32 %v14061_v54, %v11644_v25 }
0x20e3   :  { %11677 = vst.msk [vmem:[%s19076_s5 + $0x18] sm:$0xff] %vm11673_vm0, %v11650_v6 }
0x20e4   :  { %11676 = vst.msk [vmem:[%s19076_s5 + $0x10] sm:$0xff] %vm11673_vm0, %v11645_v26  ;;  %v14126_v43 = vpop.f32.mrb[180].mxu0 }
0x20e5   :  { %v11660_v22 = vadd.f32 %v14126_v43, %v14061_v54  ;;  %v11654_v29 = vpop.f32.mrb[181].mxu0 }
0x20e6   :  { %v11655_v19 = vadd.f32 %v14061_v54, %v11654_v29 }
0x20e7   :  { %11679 = vst.msk [vmem:[%s19076_s5 + $0x28] sm:$0xff] %vm11673_vm0, %v11660_v22 }
0x20e8   :  { %v15278_v36 = vpop.eup %15277  ;;  %11678 = vst.msk [vmem:[%s19076_s5 + $0x20] sm:$0xff] %vm11673_vm0, %v11655_v19 }
0x20e9   :  { %v11534_v56 = vmul.f32 %v15278_v36, %v15276_v51 }
0x20eb   :  { %v11535_v46 = vmax.f32 %v11534_v56, 0.0 }
0x20ed   :  { %14128 = vmatmul.mubr.f32.gmra.mrb[182].mxu0 %v11535_v46 }
0x21c0   :  { %v14129_v38 = vpop.f32.mrb[182].mxu0 }
0x21c1   :  { %v11670_v7 = vadd.f32 %v14129_v38, %v14061_v54  ;;  %v11664_v52 = vpop.f32.mrb[183].mxu0 }
0x21c2   :  { %v11665_v59 = vadd.f32 %v14061_v54, %v11664_v52 }
0x21c3   :  { %11681 = vst.msk [vmem:[%s19076_s5 + $0x38] sm:$0xff] %vm11673_vm0, %v11670_v7 }
0x21c4   :  { %11680 = vst.msk [vmem:[%s19076_s5 + $0x30] sm:$0xff] %vm11673_vm0, %v11665_v59 }

</bundles_post_ra>
